<compile_context>
chip_gen: v6e
topology: v6e:2x2x1
jax: 0.10.0
libtpu: 0.0.40
codegen_flags: <defaults>
</compile_context>

<pallas_src>
import jax
import jax.numpy as jnp
from jax import lax
from jax.experimental import pallas as pl
from jax.experimental.pallas import tpu as pltpu


_TM_CAP = 1024   # keeps double-buffered tiles well under v7x's 64 MiB VMEM
_TN_CAP = 1024


# ---------------------------------------------------------------------------
# Pallas kernel: o = relu(a) @ w   (bf16 inputs, f32 MXU accumulation, bf16 out)
# ---------------------------------------------------------------------------
def _relu_matmul_kernel(a_ref, w_ref, o_ref):
    a = jnp.maximum(a_ref[...], 0.0)                      # fused input ReLU (relu(0)=0)
    o_ref[...] = jnp.dot(a, w_ref[...],
                         preferred_element_type=jnp.float32).astype(o_ref.dtype)


def relu_matmul(a, w):
    """relu(a) @ w.  a: [M, K] bf16, w: [K, N] bf16 (N a multiple of 128)."""
    M, K = a.shape
    K2, N = w.shape
    assert K == K2

    tm = M if M <= _TM_CAP else _TM_CAP
    Mp = pl.cdiv(M, tm) * tm
    if Mp != M:                                           # rare: pad rows (relu(0)@w = garbage-free zeros)
        a = jnp.pad(a, ((0, Mp - M), (0, 0)))

    tn = N
    while tn > _TN_CAP and tn % 2 == 0:
        tn //= 2

    out = pl.pallas_call(
        _relu_matmul_kernel,
        out_shape=jax.ShapeDtypeStruct((Mp, N), jnp.bfloat16),
        grid_spec=pltpu.PrefetchScalarGridSpec(
            num_scalar_prefetch=0,
            # M axis innermost -> the (K, tn) weight tile is DMA'd once per j and stays resident.
            grid=(N // tn, Mp // tm),
            in_specs=[
                pl.BlockSpec((tm, K), lambda j, i: (i, 0)),
                pl.BlockSpec((K, tn), lambda j, i: (0, j)),
            ],
            out_specs=pl.BlockSpec((tm, tn), lambda j, i: (i, j)),
        ),
        compiler_params=pltpu.CompilerParams(
            dimension_semantics=("parallel", "parallel"),
            vmem_limit_bytes=32 * 1024 * 1024,
        ),
    )(a, w)
    return out[:M] if Mp != M else out


# ---------------------------------------------------------------------------
# col2im / overlap-add of 4x4 output patches placed at stride 2, padding 1
# ---------------------------------------------------------------------------
def _overlap_add(patches, B, H, W, Co):
    """patches: [B*H*W, 16*Co] with (ky, kx, co) minor order -> y: [B, 2H, 2W, Co]."""
    p6 = patches.reshape(B, H, W, 4, 4, Co)
    rows = []
    for sy in range(2):                                   # output-row parity phase
        cols = []
        for sx in range(2):                               # output-col parity phase
            acc = None
            for gy in range(2):
                for gx in range(2):
                    t = p6[:, :, :, 2 * gy + sy, 2 * gx + sx, :]
                    t = jnp.pad(t, ((0, 0), (gy, 1 - gy), (gx, 1 - gx), (0, 0)))
                    acc = t if acc is None else acc + t
            cols.append(acc)                              # [B, H+1, W+1, Co]
        rows.append(jnp.stack(cols, axis=3))              # [B, H+1, W+1, 2, Co]
    y = jnp.stack(rows, axis=2)                           # [B, H+1, 2, W+1, 2, Co]
    y = y.reshape(B, 2 * (H + 1), 2 * (W + 1), Co)        # interleave phases
    return y[:, 1 : 2 * H + 1, 1 : 2 * W + 1, :]          # drop the padding=1 overhang


def conv_transpose_with_input_relu(x_nhwc, wmat, co):
    """ReLU(x) -> ConvTranspose2d(k=4, s=2, p=1, bias=False).  wmat: [Ci, 16*Co] bf16."""
    B, H, W, Ci = x_nhwc.shape
    patches = relu_matmul(x_nhwc.reshape(B * H * W, Ci), wmat)   # [B*H*W, 16*Co]
    return _overlap_add(patches, B, H, W, co)                    # [B, 2H, 2W, Co]


# ---------------------------------------------------------------------------
# Weight preparation (fold 1x1 conv into tconv5, build bf16 matmul RHS matrices)
# ---------------------------------------------------------------------------
def _prep_weight_mats(params):
    tconv = list(params["tconv"])                         # each [Ci, Co, 4, 4]
    cw = params["conv_w"].reshape(params["conv_w"].shape[0], -1)       # [9, 16]
    w5 = jnp.einsum("iokl,po->ipkl", tconv[-1], cw)                    # [32, 9, 4, 4]
    w5 = jnp.pad(w5, ((0, 0), (0, 16 - cw.shape[0]), (0, 0), (0, 0)))  # pad Co 9->16 (lane-dense)
    tconv[-1] = w5
    mats = []
    for w in tconv:
        ci, co = w.shape[0], w.shape[1]
        wm = jnp.transpose(w, (0, 2, 3, 1)).reshape(ci, 16 * co)       # (ky, kx, co) minor
        mats.append((wm.astype(jnp.bfloat16), co))
    return mats


# ---------------------------------------------------------------------------
# Full decoder forward (matches Net.forward after resnet18short)
# ---------------------------------------------------------------------------
def net_decoder_forward(feat_nchw, params):
    """feat_nchw: backbone features [B, 512, h, w] (NCHW).  Returns [B, 9, 32h, 32w] (f32)."""
    x = jnp.transpose(feat_nchw, (0, 2, 3, 1)).astype(jnp.bfloat16)    # NHWC, bf16 activations
    for wmat, co in _prep_weight_mats(params):                         # relu_i + tconv_i (x5)
        x = conv_transpose_with_input_relu(x, wmat, co)
    n_out = params["conv_b"].shape[0]
    y = x[..., :n_out].astype(jnp.float32) + params["conv_b"]          # drop pad chans, +bias
    return jnp.transpose(y, (0, 3, 1, 2))                              # -> NCHW


def init_params(key):
    chans = [(512, 256), (256, 128), (128, 64), (64, 32), (32, 16)]
    keys = jax.random.split(key, len(chans) + 2)
    tconv = []
    for k, (ci, co) in zip(keys[: len(chans)], chans):
        tconv.append(0.05 * jax.random.normal(k, (ci, co, 4, 4), jnp.float32))
    conv_w = 0.05 * jax.random.normal(keys[-2], (9, 16, 1, 1), jnp.float32)
    conv_b = 0.05 * jax.random.normal(keys[-1], (9,), jnp.float32)
    return {"tconv": tconv, "conv_w": conv_w, "conv_b": conv_b}


# ---------------------------------------------------------------------------
# Pure-JAX f32 reference (XLA conv) for numerical sanity check
# ---------------------------------------------------------------------------
def reference_forward(feat_nchw, params):
    x = jnp.transpose(feat_nchw, (0, 2, 3, 1))
    for w in params["tconv"]:
        x = jnp.maximum(x, 0.0)
        rhs = jnp.transpose(w[:, :, ::-1, ::-1], (2, 3, 0, 1))          # [4,4,Ci,Co]
        x = lax.conv_general_dilated(
            x, rhs, window_strides=(1, 1), padding=[(2, 2), (2, 2)],
            lhs_dilation=(2, 2),
            dimension_numbers=("NHWC", "HWIO", "NHWC"),
        )
    rhs = jnp.transpose(params["conv_w"], (2, 3, 1, 0))                 # [1,1,Ci,Co]
    x = lax.conv_general_dilated(
        x, rhs, window_strides=(1, 1), padding=[(0, 0), (0, 0)],
        dimension_numbers=("NHWC", "HWIO", "NHWC"),
    ) + params["conv_b"]
    return jnp.transpose(x, (0, 3, 1, 2))


if __name__ == "__main__":
    key = jax.random.PRNGKey(0)
    k_feat, k_par = jax.random.split(key)

    # Backbone (resnet18short) output features: small test shape [N=2, C=512, h=2, w=2].
    feat = jax.random.normal(k_feat, (2, 512, 2, 2), jnp.float32)
    params = init_params(k_par)

    out = jax.block_until_ready(jax.jit(net_decoder_forward)(feat, params))
    assert out.shape == (2, 9, 64, 64), out.shape

    ref = jax.block_until_ready(jax.jit(reference_forward)(feat, params))
    err = float(jnp.max(jnp.abs(out - ref)) / (jnp.max(jnp.abs(ref)) + 1e-8))
    # bf16 matmul inputs (f32 accumulation) vs pure-f32 XLA reference -> loosened tolerance.
    assert err < 5e-2, f"mismatch vs reference, rel err = {err}"

    print("KERNEL_OK")
</pallas_src>

<mosaic_0001>
module attributes {stable_mosaic.version = 11 : i64} {
  func.func @_relu_matmul_kernel(%arg0: i32, %arg1: i32, %arg2: memref<8x512xbf16, #tpu.memory_space<vmem>>, %arg3: memref<512x1024xbf16, #tpu.memory_space<vmem>>, %arg4: memref<8x1024xbf16, #tpu.memory_space<vmem>>) attributes {dimension_semantics = [#tpu.dimension_semantics<parallel>, #tpu.dimension_semantics<parallel>], iteration_bounds = array<i64: 4, 1>, scalar_prefetch = 0 : i64, scratch_operands = 0 : i64, tpu.core_type = #tpu.core_type<tc>, window_params = [{transform_indices = @transform_0, window_bounds = array<i64: 8, 512>}, {transform_indices = @transform_1, window_bounds = array<i64: 512, 1024>}, {transform_indices = @transform_2, window_bounds = array<i64: 8, 1024>}]} {
    %c0 = arith.constant 0 : index
    %c0_0 = arith.constant 0 : index
    %0 = vector.load %arg2[%c0, %c0_0] : memref<8x512xbf16, #tpu.memory_space<vmem>>, vector<8x512xbf16>
    %cst = arith.constant 0.000000e+00 : bf16
    %1 = vector.broadcast %cst : bf16 to vector<8x512xbf16>
    %2 = arith.maximumf %0, %1 : vector<8x512xbf16>
    %c0_1 = arith.constant 0 : index
    %c0_2 = arith.constant 0 : index
    %3 = vector.load %arg3[%c0_1, %c0_2] : memref<512x1024xbf16, #tpu.memory_space<vmem>>, vector<512x1024xbf16>
    %cst_3 = arith.constant dense<0.000000e+00> : vector<8x1024xf32>
    %4 = tpu.matmul %2, %3, %cst_3 {dimension_numbers = #tpu.dot_dimension_numbers<[1], [0], [0], [1], [0, 0, 1, 1], [], []>} : vector<8x512xbf16>, vector<512x1024xbf16>, vector<8x1024xf32> -> vector<8x1024xf32>
    %5 = arith.truncf %4 : vector<8x1024xf32> to vector<8x1024xbf16>
    %c0_4 = arith.constant 0 : index
    %c0_5 = arith.constant 0 : index
    %6 = vector.load %arg4[%c0_4, %c0_5] : memref<8x1024xbf16, #tpu.memory_space<vmem>>, vector<8x1024xbf16>
    tpu.vector_store %arg4[%c0_4, %c0_5], %5 {strides = array<i32>} : memref<8x1024xbf16, #tpu.memory_space<vmem>>, vector<8x1024xbf16>,
    return
  }
  func.func @transform_0(%arg0: i32, %arg1: i32) -> (i32, i32) {
    %c0_i32 = arith.constant 0 : i32
    %c0_i32_0 = arith.constant 0 : i32
    return %arg1, %c0_i32 : i32, i32
  }
  func.func @transform_1(%arg0: i32, %arg1: i32) -> (i32, i32) {
    %c0_i32 = arith.constant 0 : i32
    %c0_i32_0 = arith.constant 0 : i32
    return %c0_i32, %arg0 : i32, i32
  }
  func.func @transform_2(%arg0: i32, %arg1: i32) -> (i32, i32) {
    %c0_i32 = arith.constant 0 : i32
    return %arg1, %arg0 : i32, i32
  }
}

module attributes {stable_mosaic.version = 11 : i64} {
  func.func @_relu_matmul_kernel(%arg0: i32, %arg1: i32, %arg2: memref<32x256xbf16, #tpu.memory_space<vmem>>, %arg3: memref<256x1024xbf16, #tpu.memory_space<vmem>>, %arg4: memref<32x1024xbf16, #tpu.memory_space<vmem>>) attributes {dimension_semantics = [#tpu.dimension_semantics<parallel>, #tpu.dimension_semantics<parallel>], iteration_bounds = array<i64: 2, 1>, scalar_prefetch = 0 : i64, scratch_operands = 0 : i64, tpu.core_type = #tpu.core_type<tc>, window_params = [{transform_indices = @transform_0, window_bounds = array<i64: 32, 256>}, {transform_indices = @transform_1, window_bounds = array<i64: 256, 1024>}, {transform_indices = @transform_2, window_bounds = array<i64: 32, 1024>}]} {
    %c0 = arith.constant 0 : index
    %c0_0 = arith.constant 0 : index
    %0 = vector.load %arg2[%c0, %c0_0] : memref<32x256xbf16, #tpu.memory_space<vmem>>, vector<32x256xbf16>
    %cst = arith.constant 0.000000e+00 : bf16
    %1 = vector.broadcast %cst : bf16 to vector<32x256xbf16>
    %2 = arith.maximumf %0, %1 : vector<32x256xbf16>
    %c0_1 = arith.constant 0 : index
    %c0_2 = arith.constant 0 : index
    %3 = vector.load %arg3[%c0_1, %c0_2] : memref<256x1024xbf16, #tpu.memory_space<vmem>>, vector<256x1024xbf16>
    %cst_3 = arith.constant dense<0.000000e+00> : vector<32x1024xf32>
    %4 = tpu.matmul %2, %3, %cst_3 {dimension_numbers = #tpu.dot_dimension_numbers<[1], [0], [0], [1], [0, 0, 1, 1], [], []>} : vector<32x256xbf16>, vector<256x1024xbf16>, vector<32x1024xf32> -> vector<32x1024xf32>
    %5 = arith.truncf %4 : vector<32x1024xf32> to vector<32x1024xbf16>
    %c0_4 = arith.constant 0 : index
    %c0_5 = arith.constant 0 : index
    %6 = vector.load %arg4[%c0_4, %c0_5] : memref<32x1024xbf16, #tpu.memory_space<vmem>>, vector<32x1024xbf16>
    tpu.vector_store %arg4[%c0_4, %c0_5], %5 {strides = array<i32>} : memref<32x1024xbf16, #tpu.memory_space<vmem>>, vector<32x1024xbf16>,
    return
  }
  func.func @transform_0(%arg0: i32, %arg1: i32) -> (i32, i32) {
    %c0_i32 = arith.constant 0 : i32
    %c0_i32_0 = arith.constant 0 : i32
    return %arg1, %c0_i32 : i32, i32
  }
  func.func @transform_1(%arg0: i32, %arg1: i32) -> (i32, i32) {
    %c0_i32 = arith.constant 0 : i32
    %c0_i32_0 = arith.constant 0 : i32
    return %c0_i32, %arg0 : i32, i32
  }
  func.func @transform_2(%arg0: i32, %arg1: i32) -> (i32, i32) {
    %c0_i32 = arith.constant 0 : i32
    return %arg1, %arg0 : i32, i32
  }
}

module attributes {stable_mosaic.version = 11 : i64} {
  func.func @_relu_matmul_kernel(%arg0: i32, %arg1: i32, %arg2: memref<128x128xbf16, #tpu.memory_space<vmem>>, %arg3: memref<128x1024xbf16, #tpu.memory_space<vmem>>, %arg4: memref<128x1024xbf16, #tpu.memory_space<vmem>>) attributes {dimension_semantics = [#tpu.dimension_semantics<parallel>, #tpu.dimension_semantics<parallel>], iteration_bounds = array<i64: 1, 1>, scalar_prefetch = 0 : i64, scratch_operands = 0 : i64, tpu.core_type = #tpu.core_type<tc>, window_params = [{transform_indices = @transform_0, window_bounds = array<i64: 128, 128>}, {transform_indices = @transform_1, window_bounds = array<i64: 128, 1024>}, {transform_indices = @transform_2, window_bounds = array<i64: 128, 1024>}]} {
    %c0 = arith.constant 0 : index
    %c0_0 = arith.constant 0 : index
    %0 = vector.load %arg2[%c0, %c0_0] : memref<128x128xbf16, #tpu.memory_space<vmem>>, vector<128x128xbf16>
    %cst = arith.constant 0.000000e+00 : bf16
    %1 = vector.broadcast %cst : bf16 to vector<128x128xbf16>
    %2 = arith.maximumf %0, %1 : vector<128x128xbf16>
    %c0_1 = arith.constant 0 : index
    %c0_2 = arith.constant 0 : index
    %3 = vector.load %arg3[%c0_1, %c0_2] : memref<128x1024xbf16, #tpu.memory_space<vmem>>, vector<128x1024xbf16>
    %cst_3 = arith.constant dense<0.000000e+00> : vector<128x1024xf32>
    %4 = tpu.matmul %2, %3, %cst_3 {dimension_numbers = #tpu.dot_dimension_numbers<[1], [0], [0], [1], [0, 0, 1, 1], [], []>} : vector<128x128xbf16>, vector<128x1024xbf16>, vector<128x1024xf32> -> vector<128x1024xf32>
    %5 = arith.truncf %4 : vector<128x1024xf32> to vector<128x1024xbf16>
    %c0_4 = arith.constant 0 : index
    %c0_5 = arith.constant 0 : index
    %6 = vector.load %arg4[%c0_4, %c0_5] : memref<128x1024xbf16, #tpu.memory_space<vmem>>, vector<128x1024xbf16>
    tpu.vector_store %arg4[%c0_4, %c0_5], %5 {strides = array<i32>} : memref<128x1024xbf16, #tpu.memory_space<vmem>>, vector<128x1024xbf16>,
    return
  }
  func.func @transform_0(%arg0: i32, %arg1: i32) -> (i32, i32) {
    %c0_i32 = arith.constant 0 : i32
    %c0_i32_0 = arith.constant 0 : i32
    return %arg1, %c0_i32 : i32, i32
  }
  func.func @transform_1(%arg0: i32, %arg1: i32) -> (i32, i32) {
    %c0_i32 = arith.constant 0 : i32
    %c0_i32_0 = arith.constant 0 : i32
    return %c0_i32, %arg0 : i32, i32
  }
  func.func @transform_2(%arg0: i32, %arg1: i32) -> (i32, i32) {
    %c0_i32 = arith.constant 0 : i32
    return %arg1, %arg0 : i32, i32
  }
}

module attributes {stable_mosaic.version = 11 : i64} {
  func.func @_relu_matmul_kernel(%arg0: i32, %arg1: i32, %arg2: memref<512x64xbf16, #tpu.memory_space<vmem>>, %arg3: memref<64x512xbf16, #tpu.memory_space<vmem>>, %arg4: memref<512x512xbf16, #tpu.memory_space<vmem>>) attributes {dimension_semantics = [#tpu.dimension_semantics<parallel>, #tpu.dimension_semantics<parallel>], iteration_bounds = array<i64: 1, 1>, scalar_prefetch = 0 : i64, scratch_operands = 0 : i64, tpu.core_type = #tpu.core_type<tc>, window_params = [{transform_indices = @transform_0, window_bounds = array<i64: 512, 64>}, {transform_indices = @transform_1, window_bounds = array<i64: 64, 512>}, {transform_indices = @transform_2, window_bounds = array<i64: 512, 512>}]} {
    %c0 = arith.constant 0 : index
    %c0_0 = arith.constant 0 : index
    %0 = vector.load %arg2[%c0, %c0_0] : memref<512x64xbf16, #tpu.memory_space<vmem>>, vector<512x64xbf16>
    %cst = arith.constant 0.000000e+00 : bf16
    %1 = vector.broadcast %cst : bf16 to vector<512x64xbf16>
    %2 = arith.maximumf %0, %1 : vector<512x64xbf16>
    %c0_1 = arith.constant 0 : index
    %c0_2 = arith.constant 0 : index
    %3 = vector.load %arg3[%c0_1, %c0_2] : memref<64x512xbf16, #tpu.memory_space<vmem>>, vector<64x512xbf16>
    %cst_3 = arith.constant dense<0.000000e+00> : vector<512x512xf32>
    %4 = tpu.matmul %2, %3, %cst_3 {dimension_numbers = #tpu.dot_dimension_numbers<[1], [0], [0], [1], [0, 0, 1, 1], [], []>} : vector<512x64xbf16>, vector<64x512xbf16>, vector<512x512xf32> -> vector<512x512xf32>
    %5 = arith.truncf %4 : vector<512x512xf32> to vector<512x512xbf16>
    %c0_4 = arith.constant 0 : index
    %c0_5 = arith.constant 0 : index
    %6 = vector.load %arg4[%c0_4, %c0_5] : memref<512x512xbf16, #tpu.memory_space<vmem>>, vector<512x512xbf16>
    tpu.vector_store %arg4[%c0_4, %c0_5], %5 {strides = array<i32>} : memref<512x512xbf16, #tpu.memory_space<vmem>>, vector<512x512xbf16>,
    return
  }
  func.func @transform_0(%arg0: i32, %arg1: i32) -> (i32, i32) {
    %c0_i32 = arith.constant 0 : i32
    %c0_i32_0 = arith.constant 0 : i32
    return %arg1, %c0_i32 : i32, i32
  }
  func.func @transform_1(%arg0: i32, %arg1: i32) -> (i32, i32) {
    %c0_i32 = arith.constant 0 : i32
    %c0_i32_0 = arith.constant 0 : i32
    return %c0_i32, %arg0 : i32, i32
  }
  func.func @transform_2(%arg0: i32, %arg1: i32) -> (i32, i32) {
    %c0_i32 = arith.constant 0 : i32
    return %arg1, %arg0 : i32, i32
  }
}

module attributes {stable_mosaic.version = 11 : i64} {
  func.func @_relu_matmul_kernel(%arg0: i32, %arg1: i32, %arg2: memref<1024x32xbf16, #tpu.memory_space<vmem>>, %arg3: memref<32x256xbf16, #tpu.memory_space<vmem>>, %arg4: memref<1024x256xbf16, #tpu.memory_space<vmem>>) attributes {dimension_semantics = [#tpu.dimension_semantics<parallel>, #tpu.dimension_semantics<parallel>], iteration_bounds = array<i64: 1, 2>, scalar_prefetch = 0 : i64, scratch_operands = 0 : i64, tpu.core_type = #tpu.core_type<tc>, window_params = [{transform_indices = @transform_0, window_bounds = array<i64: 1024, 32>}, {transform_indices = @transform_1, window_bounds = array<i64: 32, 256>}, {transform_indices = @transform_2, window_bounds = array<i64: 1024, 256>}]} {
    %c0 = arith.constant 0 : index
    %c0_0 = arith.constant 0 : index
    %0 = vector.load %arg2[%c0, %c0_0] : memref<1024x32xbf16, #tpu.memory_space<vmem>>, vector<1024x32xbf16>
    %cst = arith.constant 0.000000e+00 : bf16
    %1 = vector.broadcast %cst : bf16 to vector<1024x32xbf16>
    %2 = arith.maximumf %0, %1 : vector<1024x32xbf16>
    %c0_1 = arith.constant 0 : index
    %c0_2 = arith.constant 0 : index
    %3 = vector.load %arg3[%c0_1, %c0_2] : memref<32x256xbf16, #tpu.memory_space<vmem>>, vector<32x256xbf16>
    %cst_3 = arith.constant dense<0.000000e+00> : vector<1024x256xf32>
    %4 = tpu.matmul %2, %3, %cst_3 {dimension_numbers = #tpu.dot_dimension_numbers<[1], [0], [0], [1], [0, 0, 1, 1], [], []>} : vector<1024x32xbf16>, vector<32x256xbf16>, vector<1024x256xf32> -> vector<1024x256xf32>
    %5 = arith.truncf %4 : vector<1024x256xf32> to vector<1024x256xbf16>
    %c0_4 = arith.constant 0 : index
    %c0_5 = arith.constant 0 : index
    %6 = vector.load %arg4[%c0_4, %c0_5] : memref<1024x256xbf16, #tpu.memory_space<vmem>>, vector<1024x256xbf16>
    tpu.vector_store %arg4[%c0_4, %c0_5], %5 {strides = array<i32>} : memref<1024x256xbf16, #tpu.memory_space<vmem>>, vector<1024x256xbf16>,
    return
  }
  func.func @transform_0(%arg0: i32, %arg1: i32) -> (i32, i32) {
    %c0_i32 = arith.constant 0 : i32
    %c0_i32_0 = arith.constant 0 : i32
    return %arg1, %c0_i32 : i32, i32
  }
  func.func @transform_1(%arg0: i32, %arg1: i32) -> (i32, i32) {
    %c0_i32 = arith.constant 0 : i32
    %c0_i32_0 = arith.constant 0 : i32
    return %c0_i32, %arg0 : i32, i32
  }
  func.func @transform_2(%arg0: i32, %arg1: i32) -> (i32, i32) {
    %c0_i32 = arith.constant 0 : i32
    return %arg1, %arg0 : i32, i32
  }
}

</mosaic_0001>

<bundles_post_ra>
// kernel: net_decoder_forward.5
= control target key start
LH: loop header
LB: loop body
LE: loop exit
PB: predicated region body
PF: predicated region fallthrough
CT: control target
= control target key end

     0   :  { %s3119_s9 = smov 0   ;;  %s3121_s10 = smov 0   ;;  %s4006_s0 = inlined_call_operand.vmem [shape: bf16[8,512], index: 0, kind: input, shape index: {}]   ;;  %s4007_s1 = inlined_call_operand.vmem [shape: bf16[512,4096], index: 1, kind: input, shape index: {}]   ;;  %s4008_s2 = inlined_call_operand.vmem [shape: bf16[8,4096], index: 2, kind: output, shape index: {}]  }
   0x1   :  { %s3123_s11 = smov 0   ;;  %s3125_s12 = smov 0  }
   0x2   :  { %s3127_s13 = smov 0  }
   0x3 LB: > { %s24_s14 = sadd.s32 1, %s3097_s12  ;;  %p64_p1 = scmp.ne.s32.totalorder %s3089_s10, %s3085_s9  ;;  %s3101_s13 = sphi %s3127_s13, %s12_s13   ;;  %s3097_s12 = sphi %s3125_s12, %s4012_s12   ;;  %s3093_s11 = sphi %s3123_s11, %s4011_s11   ;;  %s3089_s10 = sphi %s3121_s10, %s4010_s10   ;;  %s3085_s9 = sphi %s3119_s9, %s4009_s9  }
   0x4   : > { %p26_p0 = scmp.ge.s32.totalorder %s24_s14, 4  ;;  %p65_p2 = scmp.eq.s32.totalorder %s3101_s13, 0 }
   0x5   : > { %s57_s16 = sadd.s32 1, %s3089_s10  ;;  %p2743_p5 = scmp.ge.s32.totalorder %s3101_s13, 4 }
   0x6   : > { %s4014_s14 = smov (%p26_p0, %s24_s14), 0  ;;  %p66_p3 = por %p65_p2, %p64_p1 }
   0x7   : > { %s54_s15 = ssub.s32 %s3097_s12, %s4014_s14  ;;  %126 = sbr.rel (%p2743_p5) target bundleno = 144 (0x90), region = 20 }
   0x8   : > { %p55_p4 = scmp.eq.s32.totalorder %s54_s15, 0 }
   0xa   : > { %s3154_s17 = scalar_select %p55_p4, %s3089_s10, %s57_s16  }
   0xc   : > { %129 = sbr.rel (!%p66_p3) target bundleno = 144 (0x90), region = 24  ;;  %s131_s18 = sand.u32 (%p66_p3), 1, %s3089_s10  }
   0xd   : > { %s3017_s19 = sshll.u32 (%p66_p3), %s3097_s12, 5  ;;  %s2744_s20 = sshll.u32 (%p66_p3), %s131_s18, 11 }
   0xe   : > { %s3162_s23 = scalar_lea.vmem (%p66_p3), %s4007_s1, %s3017_s19  ;;  %s3167_s24 = scalar_lea.vmem (%p66_p3), [#allocation2], %s2744_s20 }
   0xf   : > { %v149_v0 = vld [vmem:[%s3162_s23] sm:$0xff] (%p66_p3)  ;;  %v151_v1 = vld [vmem:[%s3162_s23 + $0x8] sm:$0xff] (%p66_p3)  ;;  %v153_v2 = vld [vmem:[%s3162_s23 + $0x10] sm:$0xff] (%p66_p3) }
  0x10   : > { %150 = vst [vmem:[%s3167_s24] sm:$0xff] (%p66_p3), %v149_v0  ;;  %152 = vst [vmem:[%s3167_s24 + $0x8] sm:$0xff] (%p66_p3), %v151_v1  ;;  %v155_v3 = vld [vmem:[%s3162_s23 + $0x18] sm:$0xff] (%p66_p3)  ;;  %v157_v4 = vld [vmem:[%s3162_s23 + $0x80] sm:$0xff] (%p66_p3) }
  0x11   : > { %154 = vst [vmem:[%s3167_s24 + $0x10] sm:$0xff] %v153_v2  ;;  %v159_v5 = vld [vmem:[%s3162_s23 + $0x88] sm:$0xff]  ;;  %156 = vst [vmem:[%s3167_s24 + $0x18] sm:$0xff] %v155_v3  ;;  %v161_v6 = vld [vmem:[%s3162_s23 + $0x90] sm:$0xff] }
  0x12   : > { %158 = vst [vmem:[%s3167_s24 + $0x20] sm:$0xff] %v157_v4  ;;  %160 = vst [vmem:[%s3167_s24 + $0x28] sm:$0xff] %v159_v5  ;;  %v163_v7 = vld [vmem:[%s3162_s23 + $0x98] sm:$0xff]  ;;  %v165_v8 = vld [vmem:[%s3162_s23 + $0x100] sm:$0xff] }
  0x13   : > { %162 = vst [vmem:[%s3167_s24 + $0x30] sm:$0xff] %v161_v6  ;;  %164 = vst [vmem:[%s3167_s24 + $0x38] sm:$0xff] %v163_v7  ;;  %v167_v9 = vld [vmem:[%s3162_s23 + $0x108] sm:$0xff]  ;;  %v169_v10 = vld [vmem:[%s3162_s23 + $0x110] sm:$0xff] }
  0x14   : > { %166 = vst [vmem:[%s3167_s24 + $0x40] sm:$0xff] %v165_v8  ;;  %v171_v11 = vld [vmem:[%s3162_s23 + $0x118] sm:$0xff]  ;;  %168 = vst [vmem:[%s3167_s24 + $0x48] sm:$0xff] %v167_v9  ;;  %v173_v12 = vld [vmem:[%s3162_s23 + $0x180] sm:$0xff] }
  0x15   : > { %170 = vst [vmem:[%s3167_s24 + $0x50] sm:$0xff] %v169_v10  ;;  %172 = vst [vmem:[%s3167_s24 + $0x58] sm:$0xff] %v171_v11  ;;  %v175_v13 = vld [vmem:[%s3162_s23 + $0x188] sm:$0xff]  ;;  %v177_v14 = vld [vmem:[%s3162_s23 + $0x190] sm:$0xff] }
  0x16   : > { %174 = vst [vmem:[%s3167_s24 + $0x60] sm:$0xff] %v173_v12  ;;  %176 = vst [vmem:[%s3167_s24 + $0x68] sm:$0xff] %v175_v13  ;;  %v179_v15 = vld [vmem:[%s3162_s23 + $0x198] sm:$0xff]  ;;  %v181_v16 = vld [vmem:[%s3162_s23 + $0x200] sm:$0xff] }
  0x17   : > { %178 = vst [vmem:[%s3167_s24 + $0x70] sm:$0xff] %v177_v14  ;;  %v183_v17 = vld [vmem:[%s3162_s23 + $0x208] sm:$0xff]  ;;  %180 = vst [vmem:[%s3167_s24 + $0x78] sm:$0xff] %v179_v15  ;;  %v185_v18 = vld [vmem:[%s3162_s23 + $0x210] sm:$0xff] }
  0x18   : > { %182 = vst [vmem:[%s3167_s24 + $0x80] sm:$0xff] %v181_v16  ;;  %184 = vst [vmem:[%s3167_s24 + $0x88] sm:$0xff] %v183_v17  ;;  %v187_v19 = vld [vmem:[%s3162_s23 + $0x218] sm:$0xff]  ;;  %v189_v20 = vld [vmem:[%s3162_s23 + $0x280] sm:$0xff] }
  0x19   : > { %186 = vst [vmem:[%s3167_s24 + $0x90] sm:$0xff] %v185_v18  ;;  %188 = vst [vmem:[%s3167_s24 + $0x98] sm:$0xff] %v187_v19  ;;  %v191_v21 = vld [vmem:[%s3162_s23 + $0x288] sm:$0xff]  ;;  %v193_v22 = vld [vmem:[%s3162_s23 + $0x290] sm:$0xff] }
  0x1a   : > { %190 = vst [vmem:[%s3167_s24 + $0xa0] sm:$0xff] %v189_v20  ;;  %v195_v23 = vld [vmem:[%s3162_s23 + $0x298] sm:$0xff]  ;;  %192 = vst [vmem:[%s3167_s24 + $0xa8] sm:$0xff] %v191_v21  ;;  %v197_v24 = vld [vmem:[%s3162_s23 + $0x300] sm:$0xff] }
  0x1b   : > { %194 = vst [vmem:[%s3167_s24 + $0xb0] sm:$0xff] %v193_v22  ;;  %196 = vst [vmem:[%s3167_s24 + $0xb8] sm:$0xff] %v195_v23  ;;  %v199_v25 = vld [vmem:[%s3162_s23 + $0x308] sm:$0xff]  ;;  %v201_v26 = vld [vmem:[%s3162_s23 + $0x310] sm:$0xff] }
  0x1c   : > { %198 = vst [vmem:[%s3167_s24 + $0xc0] sm:$0xff] %v197_v24  ;;  %200 = vst [vmem:[%s3167_s24 + $0xc8] sm:$0xff] %v199_v25  ;;  %v203_v27 = vld [vmem:[%s3162_s23 + $0x318] sm:$0xff]  ;;  %v205_v28 = vld [vmem:[%s3162_s23 + $0x380] sm:$0xff] }
  0x1d   : > { %202 = vst [vmem:[%s3167_s24 + $0xd0] sm:$0xff] %v201_v26  ;;  %v207_v29 = vld [vmem:[%s3162_s23 + $0x388] sm:$0xff]  ;;  %204 = vst [vmem:[%s3167_s24 + $0xd8] sm:$0xff] %v203_v27  ;;  %v209_v30 = vld [vmem:[%s3162_s23 + $0x390] sm:$0xff] }
  0x1e   : > { %206 = vst [vmem:[%s3167_s24 + $0xe0] sm:$0xff] %v205_v28  ;;  %208 = vst [vmem:[%s3167_s24 + $0xe8] sm:$0xff] %v207_v29  ;;  %v211_v31 = vld [vmem:[%s3162_s23 + $0x398] sm:$0xff]  ;;  %v213_v32 = vld [vmem:[%s3162_s23 + $0x400] sm:$0xff] }
  0x1f   : > { %210 = vst [vmem:[%s3167_s24 + $0xf0] sm:$0xff] %v209_v30  ;;  %212 = vst [vmem:[%s3167_s24 + $0xf8] sm:$0xff] %v211_v31  ;;  %v215_v33 = vld [vmem:[%s3162_s23 + $0x408] sm:$0xff]  ;;  %v217_v34 = vld [vmem:[%s3162_s23 + $0x410] sm:$0xff] }
  0x20   : > { %214 = vst [vmem:[%s3167_s24 + $0x100] sm:$0xff] %v213_v32  ;;  %v219_v35 = vld [vmem:[%s3162_s23 + $0x418] sm:$0xff]  ;;  %216 = vst [vmem:[%s3167_s24 + $0x108] sm:$0xff] %v215_v33  ;;  %v221_v36 = vld [vmem:[%s3162_s23 + $0x480] sm:$0xff] }
  0x21   : > { %218 = vst [vmem:[%s3167_s24 + $0x110] sm:$0xff] %v217_v34  ;;  %220 = vst [vmem:[%s3167_s24 + $0x118] sm:$0xff] %v219_v35  ;;  %v223_v37 = vld [vmem:[%s3162_s23 + $0x488] sm:$0xff]  ;;  %v225_v38 = vld [vmem:[%s3162_s23 + $0x490] sm:$0xff] }
  0x22   : > { %222 = vst [vmem:[%s3167_s24 + $0x120] sm:$0xff] %v221_v36  ;;  %224 = vst [vmem:[%s3167_s24 + $0x128] sm:$0xff] %v223_v37  ;;  %v227_v39 = vld [vmem:[%s3162_s23 + $0x498] sm:$0xff]  ;;  %v229_v40 = vld [vmem:[%s3162_s23 + $0x500] sm:$0xff] }
  0x23   : > { %226 = vst [vmem:[%s3167_s24 + $0x130] sm:$0xff] %v225_v38  ;;  %v231_v41 = vld [vmem:[%s3162_s23 + $0x508] sm:$0xff]  ;;  %228 = vst [vmem:[%s3167_s24 + $0x138] sm:$0xff] %v227_v39  ;;  %v233_v42 = vld [vmem:[%s3162_s23 + $0x510] sm:$0xff] }
  0x24   : > { %230 = vst [vmem:[%s3167_s24 + $0x140] sm:$0xff] %v229_v40  ;;  %232 = vst [vmem:[%s3167_s24 + $0x148] sm:$0xff] %v231_v41  ;;  %v235_v43 = vld [vmem:[%s3162_s23 + $0x518] sm:$0xff]  ;;  %v237_v44 = vld [vmem:[%s3162_s23 + $0x580] sm:$0xff] }
  0x25   : > { %234 = vst [vmem:[%s3167_s24 + $0x150] sm:$0xff] %v233_v42  ;;  %236 = vst [vmem:[%s3167_s24 + $0x158] sm:$0xff] %v235_v43  ;;  %v239_v45 = vld [vmem:[%s3162_s23 + $0x588] sm:$0xff]  ;;  %v241_v46 = vld [vmem:[%s3162_s23 + $0x590] sm:$0xff] }
  0x26   : > { %238 = vst [vmem:[%s3167_s24 + $0x160] sm:$0xff] %v237_v44  ;;  %v243_v47 = vld [vmem:[%s3162_s23 + $0x598] sm:$0xff]  ;;  %240 = vst [vmem:[%s3167_s24 + $0x168] sm:$0xff] %v239_v45  ;;  %v245_v48 = vld [vmem:[%s3162_s23 + $0x600] sm:$0xff] }
  0x27   : > { %242 = vst [vmem:[%s3167_s24 + $0x170] sm:$0xff] %v241_v46  ;;  %244 = vst [vmem:[%s3167_s24 + $0x178] sm:$0xff] %v243_v47  ;;  %v247_v49 = vld [vmem:[%s3162_s23 + $0x608] sm:$0xff]  ;;  %v249_v50 = vld [vmem:[%s3162_s23 + $0x610] sm:$0xff] }
  0x28   : > { %246 = vst [vmem:[%s3167_s24 + $0x180] sm:$0xff] %v245_v48  ;;  %248 = vst [vmem:[%s3167_s24 + $0x188] sm:$0xff] %v247_v49  ;;  %v251_v51 = vld [vmem:[%s3162_s23 + $0x618] sm:$0xff]  ;;  %v253_v52 = vld [vmem:[%s3162_s23 + $0x680] sm:$0xff] }
  0x29   : > { %250 = vst [vmem:[%s3167_s24 + $0x190] sm:$0xff] %v249_v50  ;;  %v255_v53 = vld [vmem:[%s3162_s23 + $0x688] sm:$0xff]  ;;  %252 = vst [vmem:[%s3167_s24 + $0x198] sm:$0xff] %v251_v51  ;;  %v257_v54 = vld [vmem:[%s3162_s23 + $0x690] sm:$0xff] }
  0x2a   : > { %254 = vst [vmem:[%s3167_s24 + $0x1a0] sm:$0xff] %v253_v52  ;;  %256 = vst [vmem:[%s3167_s24 + $0x1a8] sm:$0xff] %v255_v53  ;;  %v259_v55 = vld [vmem:[%s3162_s23 + $0x698] sm:$0xff]  ;;  %v261_v56 = vld [vmem:[%s3162_s23 + $0x700] sm:$0xff] }
  0x2b   : > { %258 = vst [vmem:[%s3167_s24 + $0x1b0] sm:$0xff] %v257_v54  ;;  %260 = vst [vmem:[%s3167_s24 + $0x1b8] sm:$0xff] %v259_v55  ;;  %v263_v57 = vld [vmem:[%s3162_s23 + $0x708] sm:$0xff]  ;;  %v265_v58 = vld [vmem:[%s3162_s23 + $0x710] sm:$0xff] }
  0x2c   : > { %262 = vst [vmem:[%s3167_s24 + $0x1c0] sm:$0xff] %v261_v56  ;;  %v267_v59 = vld [vmem:[%s3162_s23 + $0x718] sm:$0xff]  ;;  %264 = vst [vmem:[%s3167_s24 + $0x1c8] sm:$0xff] %v263_v57  ;;  %v269_v60 = vld [vmem:[%s3162_s23 + $0x780] sm:$0xff] }
  0x2d   : > { %266 = vst [vmem:[%s3167_s24 + $0x1d0] sm:$0xff] %v265_v58  ;;  %268 = vst [vmem:[%s3167_s24 + $0x1d8] sm:$0xff] %v267_v59  ;;  %v271_v61 = vld [vmem:[%s3162_s23 + $0x788] sm:$0xff]  ;;  %v273_v62 = vld [vmem:[%s3162_s23 + $0x790] sm:$0xff] }
  0x2e   : > { %270 = vst [vmem:[%s3167_s24 + $0x1e0] sm:$0xff] %v269_v60  ;;  %272 = vst [vmem:[%s3167_s24 + $0x1e8] sm:$0xff] %v271_v61  ;;  %v275_v63 = vld [vmem:[%s3162_s23 + $0x798] sm:$0xff]  ;;  %v277_v0 = vld [vmem:[%s3162_s23 + $0x800] sm:$0xff] }
  0x2f   : > { %274 = vst [vmem:[%s3167_s24 + $0x1f0] sm:$0xff] %v273_v62  ;;  %v279_v1 = vld [vmem:[%s3162_s23 + $0x808] sm:$0xff]  ;;  %276 = vst [vmem:[%s3167_s24 + $0x1f8] sm:$0xff] %v275_v63  ;;  %v281_v2 = vld [vmem:[%s3162_s23 + $0x810] sm:$0xff] }
  0x30   : > { %278 = vst [vmem:[%s3167_s24 + $0x200] sm:$0xff] %v277_v0  ;;  %280 = vst [vmem:[%s3167_s24 + $0x208] sm:$0xff] %v279_v1  ;;  %v283_v3 = vld [vmem:[%s3162_s23 + $0x818] sm:$0xff]  ;;  %v285_v4 = vld [vmem:[%s3162_s23 + $0x880] sm:$0xff] }
  0x31   : > { %282 = vst [vmem:[%s3167_s24 + $0x210] sm:$0xff] %v281_v2  ;;  %284 = vst [vmem:[%s3167_s24 + $0x218] sm:$0xff] %v283_v3  ;;  %v287_v5 = vld [vmem:[%s3162_s23 + $0x888] sm:$0xff]  ;;  %v289_v6 = vld [vmem:[%s3162_s23 + $0x890] sm:$0xff] }
  0x32   : > { %286 = vst [vmem:[%s3167_s24 + $0x220] sm:$0xff] %v285_v4  ;;  %v291_v7 = vld [vmem:[%s3162_s23 + $0x898] sm:$0xff]  ;;  %288 = vst [vmem:[%s3167_s24 + $0x228] sm:$0xff] %v287_v5  ;;  %v293_v8 = vld [vmem:[%s3162_s23 + $0x900] sm:$0xff] }
  0x33   : > { %290 = vst [vmem:[%s3167_s24 + $0x230] sm:$0xff] %v289_v6  ;;  %292 = vst [vmem:[%s3167_s24 + $0x238] sm:$0xff] %v291_v7  ;;  %v295_v9 = vld [vmem:[%s3162_s23 + $0x908] sm:$0xff]  ;;  %v297_v10 = vld [vmem:[%s3162_s23 + $0x910] sm:$0xff] }
  0x34   : > { %294 = vst [vmem:[%s3167_s24 + $0x240] sm:$0xff] %v293_v8  ;;  %296 = vst [vmem:[%s3167_s24 + $0x248] sm:$0xff] %v295_v9  ;;  %v299_v11 = vld [vmem:[%s3162_s23 + $0x918] sm:$0xff]  ;;  %v301_v12 = vld [vmem:[%s3162_s23 + $0x980] sm:$0xff] }
  0x35   : > { %298 = vst [vmem:[%s3167_s24 + $0x250] sm:$0xff] %v297_v10  ;;  %v303_v13 = vld [vmem:[%s3162_s23 + $0x988] sm:$0xff]  ;;  %300 = vst [vmem:[%s3167_s24 + $0x258] sm:$0xff] %v299_v11  ;;  %v305_v14 = vld [vmem:[%s3162_s23 + $0x990] sm:$0xff] }
  0x36   : > { %302 = vst [vmem:[%s3167_s24 + $0x260] sm:$0xff] %v301_v12  ;;  %304 = vst [vmem:[%s3167_s24 + $0x268] sm:$0xff] %v303_v13  ;;  %v307_v15 = vld [vmem:[%s3162_s23 + $0x998] sm:$0xff]  ;;  %v309_v16 = vld [vmem:[%s3162_s23 + $0xa00] sm:$0xff] }
  0x37   : > { %306 = vst [vmem:[%s3167_s24 + $0x270] sm:$0xff] %v305_v14  ;;  %308 = vst [vmem:[%s3167_s24 + $0x278] sm:$0xff] %v307_v15  ;;  %v311_v17 = vld [vmem:[%s3162_s23 + $0xa08] sm:$0xff]  ;;  %v313_v18 = vld [vmem:[%s3162_s23 + $0xa10] sm:$0xff] }
  0x38   : > { %310 = vst [vmem:[%s3167_s24 + $0x280] sm:$0xff] %v309_v16  ;;  %v315_v19 = vld [vmem:[%s3162_s23 + $0xa18] sm:$0xff]  ;;  %312 = vst [vmem:[%s3167_s24 + $0x288] sm:$0xff] %v311_v17  ;;  %v317_v20 = vld [vmem:[%s3162_s23 + $0xa80] sm:$0xff] }
  0x39   : > { %314 = vst [vmem:[%s3167_s24 + $0x290] sm:$0xff] %v313_v18  ;;  %316 = vst [vmem:[%s3167_s24 + $0x298] sm:$0xff] %v315_v19  ;;  %v319_v21 = vld [vmem:[%s3162_s23 + $0xa88] sm:$0xff]  ;;  %v321_v22 = vld [vmem:[%s3162_s23 + $0xa90] sm:$0xff] }
  0x3a   : > { %318 = vst [vmem:[%s3167_s24 + $0x2a0] sm:$0xff] %v317_v20  ;;  %320 = vst [vmem:[%s3167_s24 + $0x2a8] sm:$0xff] %v319_v21  ;;  %v323_v23 = vld [vmem:[%s3162_s23 + $0xa98] sm:$0xff]  ;;  %v325_v24 = vld [vmem:[%s3162_s23 + $0xb00] sm:$0xff] }
  0x3b   : > { %322 = vst [vmem:[%s3167_s24 + $0x2b0] sm:$0xff] %v321_v22  ;;  %v327_v25 = vld [vmem:[%s3162_s23 + $0xb08] sm:$0xff]  ;;  %324 = vst [vmem:[%s3167_s24 + $0x2b8] sm:$0xff] %v323_v23  ;;  %v329_v26 = vld [vmem:[%s3162_s23 + $0xb10] sm:$0xff] }
  0x3c   : > { %326 = vst [vmem:[%s3167_s24 + $0x2c0] sm:$0xff] %v325_v24  ;;  %328 = vst [vmem:[%s3167_s24 + $0x2c8] sm:$0xff] %v327_v25  ;;  %v331_v27 = vld [vmem:[%s3162_s23 + $0xb18] sm:$0xff]  ;;  %v333_v28 = vld [vmem:[%s3162_s23 + $0xb80] sm:$0xff] }
  0x3d   : > { %330 = vst [vmem:[%s3167_s24 + $0x2d0] sm:$0xff] %v329_v26  ;;  %332 = vst [vmem:[%s3167_s24 + $0x2d8] sm:$0xff] %v331_v27  ;;  %v335_v29 = vld [vmem:[%s3162_s23 + $0xb88] sm:$0xff]  ;;  %v337_v30 = vld [vmem:[%s3162_s23 + $0xb90] sm:$0xff] }
  0x3e   : > { %334 = vst [vmem:[%s3167_s24 + $0x2e0] sm:$0xff] %v333_v28  ;;  %v339_v31 = vld [vmem:[%s3162_s23 + $0xb98] sm:$0xff]  ;;  %336 = vst [vmem:[%s3167_s24 + $0x2e8] sm:$0xff] %v335_v29  ;;  %v341_v32 = vld [vmem:[%s3162_s23 + $0xc00] sm:$0xff] }
  0x3f   : > { %338 = vst [vmem:[%s3167_s24 + $0x2f0] sm:$0xff] %v337_v30  ;;  %340 = vst [vmem:[%s3167_s24 + $0x2f8] sm:$0xff] %v339_v31  ;;  %v343_v33 = vld [vmem:[%s3162_s23 + $0xc08] sm:$0xff]  ;;  %v345_v34 = vld [vmem:[%s3162_s23 + $0xc10] sm:$0xff] }
  0x40   : > { %342 = vst [vmem:[%s3167_s24 + $0x300] sm:$0xff] %v341_v32  ;;  %344 = vst [vmem:[%s3167_s24 + $0x308] sm:$0xff] %v343_v33  ;;  %v347_v35 = vld [vmem:[%s3162_s23 + $0xc18] sm:$0xff]  ;;  %v349_v36 = vld [vmem:[%s3162_s23 + $0xc80] sm:$0xff] }
  0x41   : > { %346 = vst [vmem:[%s3167_s24 + $0x310] sm:$0xff] %v345_v34  ;;  %v351_v37 = vld [vmem:[%s3162_s23 + $0xc88] sm:$0xff]  ;;  %348 = vst [vmem:[%s3167_s24 + $0x318] sm:$0xff] %v347_v35  ;;  %v353_v38 = vld [vmem:[%s3162_s23 + $0xc90] sm:$0xff] }
  0x42   : > { %350 = vst [vmem:[%s3167_s24 + $0x320] sm:$0xff] %v349_v36  ;;  %352 = vst [vmem:[%s3167_s24 + $0x328] sm:$0xff] %v351_v37  ;;  %v355_v39 = vld [vmem:[%s3162_s23 + $0xc98] sm:$0xff]  ;;  %v357_v40 = vld [vmem:[%s3162_s23 + $0xd00] sm:$0xff] }
  0x43   : > { %354 = vst [vmem:[%s3167_s24 + $0x330] sm:$0xff] %v353_v38  ;;  %356 = vst [vmem:[%s3167_s24 + $0x338] sm:$0xff] %v355_v39  ;;  %v359_v41 = vld [vmem:[%s3162_s23 + $0xd08] sm:$0xff]  ;;  %v361_v42 = vld [vmem:[%s3162_s23 + $0xd10] sm:$0xff] }
  0x44   : > { %358 = vst [vmem:[%s3167_s24 + $0x340] sm:$0xff] %v357_v40  ;;  %v363_v43 = vld [vmem:[%s3162_s23 + $0xd18] sm:$0xff]  ;;  %360 = vst [vmem:[%s3167_s24 + $0x348] sm:$0xff] %v359_v41  ;;  %v365_v44 = vld [vmem:[%s3162_s23 + $0xd80] sm:$0xff] }
  0x45   : > { %362 = vst [vmem:[%s3167_s24 + $0x350] sm:$0xff] %v361_v42  ;;  %364 = vst [vmem:[%s3167_s24 + $0x358] sm:$0xff] %v363_v43  ;;  %v367_v45 = vld [vmem:[%s3162_s23 + $0xd88] sm:$0xff]  ;;  %v369_v46 = vld [vmem:[%s3162_s23 + $0xd90] sm:$0xff] }
  0x46   : > { %366 = vst [vmem:[%s3167_s24 + $0x360] sm:$0xff] %v365_v44  ;;  %368 = vst [vmem:[%s3167_s24 + $0x368] sm:$0xff] %v367_v45  ;;  %v371_v47 = vld [vmem:[%s3162_s23 + $0xd98] sm:$0xff]  ;;  %v373_v48 = vld [vmem:[%s3162_s23 + $0xe00] sm:$0xff] }
  0x47   : > { %370 = vst [vmem:[%s3167_s24 + $0x370] sm:$0xff] %v369_v46  ;;  %v375_v49 = vld [vmem:[%s3162_s23 + $0xe08] sm:$0xff]  ;;  %372 = vst [vmem:[%s3167_s24 + $0x378] sm:$0xff] %v371_v47  ;;  %v377_v50 = vld [vmem:[%s3162_s23 + $0xe10] sm:$0xff] }
  0x48   : > { %374 = vst [vmem:[%s3167_s24 + $0x380] sm:$0xff] %v373_v48  ;;  %376 = vst [vmem:[%s3167_s24 + $0x388] sm:$0xff] %v375_v49  ;;  %v379_v51 = vld [vmem:[%s3162_s23 + $0xe18] sm:$0xff]  ;;  %v381_v52 = vld [vmem:[%s3162_s23 + $0xe80] sm:$0xff] }
  0x49   : > { %378 = vst [vmem:[%s3167_s24 + $0x390] sm:$0xff] %v377_v50  ;;  %380 = vst [vmem:[%s3167_s24 + $0x398] sm:$0xff] %v379_v51  ;;  %v383_v53 = vld [vmem:[%s3162_s23 + $0xe88] sm:$0xff]  ;;  %v385_v54 = vld [vmem:[%s3162_s23 + $0xe90] sm:$0xff] }
  0x4a   : > { %382 = vst [vmem:[%s3167_s24 + $0x3a0] sm:$0xff] %v381_v52  ;;  %v387_v55 = vld [vmem:[%s3162_s23 + $0xe98] sm:$0xff]  ;;  %384 = vst [vmem:[%s3167_s24 + $0x3a8] sm:$0xff] %v383_v53  ;;  %v389_v56 = vld [vmem:[%s3162_s23 + $0xf00] sm:$0xff] }
  0x4b   : > { %386 = vst [vmem:[%s3167_s24 + $0x3b0] sm:$0xff] %v385_v54  ;;  %388 = vst [vmem:[%s3167_s24 + $0x3b8] sm:$0xff] %v387_v55  ;;  %v391_v57 = vld [vmem:[%s3162_s23 + $0xf08] sm:$0xff]  ;;  %v393_v58 = vld [vmem:[%s3162_s23 + $0xf10] sm:$0xff] }
  0x4c   : > { %390 = vst [vmem:[%s3167_s24 + $0x3c0] sm:$0xff] %v389_v56  ;;  %392 = vst [vmem:[%s3167_s24 + $0x3c8] sm:$0xff] %v391_v57  ;;  %v395_v59 = vld [vmem:[%s3162_s23 + $0xf18] sm:$0xff]  ;;  %v397_v60 = vld [vmem:[%s3162_s23 + $0xf80] sm:$0xff] }
  0x4d   : > { %394 = vst [vmem:[%s3167_s24 + $0x3d0] sm:$0xff] %v393_v58  ;;  %v399_v61 = vld [vmem:[%s3162_s23 + $0xf88] sm:$0xff]  ;;  %396 = vst [vmem:[%s3167_s24 + $0x3d8] sm:$0xff] %v395_v59  ;;  %v401_v62 = vld [vmem:[%s3162_s23 + $0xf90] sm:$0xff] }
  0x4e   : > { %398 = vst [vmem:[%s3167_s24 + $0x3e0] sm:$0xff] %v397_v60  ;;  %400 = vst [vmem:[%s3167_s24 + $0x3e8] sm:$0xff] %v399_v61  ;;  %v403_v63 = vld [vmem:[%s3162_s23 + $0xf98] sm:$0xff]  ;;  %v405_v0 = vld [vmem:[%s3162_s23 + $0x1000] sm:$0xff] }
  0x4f   : > { %402 = vst [vmem:[%s3167_s24 + $0x3f0] sm:$0xff] %v401_v62  ;;  %404 = vst [vmem:[%s3167_s24 + $0x3f8] sm:$0xff] %v403_v63  ;;  %v407_v1 = vld [vmem:[%s3162_s23 + $0x1008] sm:$0xff]  ;;  %v409_v2 = vld [vmem:[%s3162_s23 + $0x1010] sm:$0xff] }
  0x50   : > { %406 = vst [vmem:[%s3167_s24 + $0x400] sm:$0xff] %v405_v0  ;;  %v411_v3 = vld [vmem:[%s3162_s23 + $0x1018] sm:$0xff]  ;;  %408 = vst [vmem:[%s3167_s24 + $0x408] sm:$0xff] %v407_v1  ;;  %v413_v4 = vld [vmem:[%s3162_s23 + $0x1080] sm:$0xff] }
  0x51   : > { %410 = vst [vmem:[%s3167_s24 + $0x410] sm:$0xff] %v409_v2  ;;  %412 = vst [vmem:[%s3167_s24 + $0x418] sm:$0xff] %v411_v3  ;;  %v415_v5 = vld [vmem:[%s3162_s23 + $0x1088] sm:$0xff]  ;;  %v417_v6 = vld [vmem:[%s3162_s23 + $0x1090] sm:$0xff] }
  0x52   : > { %414 = vst [vmem:[%s3167_s24 + $0x420] sm:$0xff] %v413_v4  ;;  %416 = vst [vmem:[%s3167_s24 + $0x428] sm:$0xff] %v415_v5  ;;  %v419_v7 = vld [vmem:[%s3162_s23 + $0x1098] sm:$0xff]  ;;  %v421_v8 = vld [vmem:[%s3162_s23 + $0x1100] sm:$0xff] }
  0x53   : > { %418 = vst [vmem:[%s3167_s24 + $0x430] sm:$0xff] %v417_v6  ;;  %v423_v9 = vld [vmem:[%s3162_s23 + $0x1108] sm:$0xff]  ;;  %420 = vst [vmem:[%s3167_s24 + $0x438] sm:$0xff] %v419_v7  ;;  %v425_v10 = vld [vmem:[%s3162_s23 + $0x1110] sm:$0xff] }
  0x54   : > { %422 = vst [vmem:[%s3167_s24 + $0x440] sm:$0xff] %v421_v8  ;;  %424 = vst [vmem:[%s3167_s24 + $0x448] sm:$0xff] %v423_v9  ;;  %v427_v11 = vld [vmem:[%s3162_s23 + $0x1118] sm:$0xff]  ;;  %v429_v12 = vld [vmem:[%s3162_s23 + $0x1180] sm:$0xff] }
  0x55   : > { %426 = vst [vmem:[%s3167_s24 + $0x450] sm:$0xff] %v425_v10  ;;  %428 = vst [vmem:[%s3167_s24 + $0x458] sm:$0xff] %v427_v11  ;;  %v431_v13 = vld [vmem:[%s3162_s23 + $0x1188] sm:$0xff]  ;;  %v433_v14 = vld [vmem:[%s3162_s23 + $0x1190] sm:$0xff] }
  0x56   : > { %430 = vst [vmem:[%s3167_s24 + $0x460] sm:$0xff] %v429_v12  ;;  %v435_v15 = vld [vmem:[%s3162_s23 + $0x1198] sm:$0xff]  ;;  %432 = vst [vmem:[%s3167_s24 + $0x468] sm:$0xff] %v431_v13  ;;  %v437_v16 = vld [vmem:[%s3162_s23 + $0x1200] sm:$0xff] }
  0x57   : > { %434 = vst [vmem:[%s3167_s24 + $0x470] sm:$0xff] %v433_v14  ;;  %436 = vst [vmem:[%s3167_s24 + $0x478] sm:$0xff] %v435_v15  ;;  %v439_v17 = vld [vmem:[%s3162_s23 + $0x1208] sm:$0xff]  ;;  %v441_v18 = vld [vmem:[%s3162_s23 + $0x1210] sm:$0xff] }
  0x58   : > { %438 = vst [vmem:[%s3167_s24 + $0x480] sm:$0xff] %v437_v16  ;;  %440 = vst [vmem:[%s3167_s24 + $0x488] sm:$0xff] %v439_v17  ;;  %v443_v19 = vld [vmem:[%s3162_s23 + $0x1218] sm:$0xff]  ;;  %v445_v20 = vld [vmem:[%s3162_s23 + $0x1280] sm:$0xff] }
  0x59   : > { %442 = vst [vmem:[%s3167_s24 + $0x490] sm:$0xff] %v441_v18  ;;  %v447_v21 = vld [vmem:[%s3162_s23 + $0x1288] sm:$0xff]  ;;  %444 = vst [vmem:[%s3167_s24 + $0x498] sm:$0xff] %v443_v19  ;;  %v449_v22 = vld [vmem:[%s3162_s23 + $0x1290] sm:$0xff] }
  0x5a   : > { %446 = vst [vmem:[%s3167_s24 + $0x4a0] sm:$0xff] %v445_v20  ;;  %448 = vst [vmem:[%s3167_s24 + $0x4a8] sm:$0xff] %v447_v21  ;;  %v451_v23 = vld [vmem:[%s3162_s23 + $0x1298] sm:$0xff]  ;;  %v453_v24 = vld [vmem:[%s3162_s23 + $0x1300] sm:$0xff] }
  0x5b   : > { %450 = vst [vmem:[%s3167_s24 + $0x4b0] sm:$0xff] %v449_v22  ;;  %452 = vst [vmem:[%s3167_s24 + $0x4b8] sm:$0xff] %v451_v23  ;;  %v455_v25 = vld [vmem:[%s3162_s23 + $0x1308] sm:$0xff]  ;;  %v457_v26 = vld [vmem:[%s3162_s23 + $0x1310] sm:$0xff] }
  0x5c   : > { %454 = vst [vmem:[%s3167_s24 + $0x4c0] sm:$0xff] %v453_v24  ;;  %v459_v27 = vld [vmem:[%s3162_s23 + $0x1318] sm:$0xff]  ;;  %456 = vst [vmem:[%s3167_s24 + $0x4c8] sm:$0xff] %v455_v25  ;;  %v461_v28 = vld [vmem:[%s3162_s23 + $0x1380] sm:$0xff] }
  0x5d   : > { %458 = vst [vmem:[%s3167_s24 + $0x4d0] sm:$0xff] %v457_v26  ;;  %460 = vst [vmem:[%s3167_s24 + $0x4d8] sm:$0xff] %v459_v27  ;;  %v463_v29 = vld [vmem:[%s3162_s23 + $0x1388] sm:$0xff]  ;;  %v465_v30 = vld [vmem:[%s3162_s23 + $0x1390] sm:$0xff] }
  0x5e   : > { %462 = vst [vmem:[%s3167_s24 + $0x4e0] sm:$0xff] %v461_v28  ;;  %464 = vst [vmem:[%s3167_s24 + $0x4e8] sm:$0xff] %v463_v29  ;;  %v467_v31 = vld [vmem:[%s3162_s23 + $0x1398] sm:$0xff]  ;;  %v469_v32 = vld [vmem:[%s3162_s23 + $0x1400] sm:$0xff] }
  0x5f   : > { %466 = vst [vmem:[%s3167_s24 + $0x4f0] sm:$0xff] %v465_v30  ;;  %v471_v33 = vld [vmem:[%s3162_s23 + $0x1408] sm:$0xff]  ;;  %468 = vst [vmem:[%s3167_s24 + $0x4f8] sm:$0xff] %v467_v31  ;;  %v473_v34 = vld [vmem:[%s3162_s23 + $0x1410] sm:$0xff] }
  0x60   : > { %470 = vst [vmem:[%s3167_s24 + $0x500] sm:$0xff] %v469_v32  ;;  %472 = vst [vmem:[%s3167_s24 + $0x508] sm:$0xff] %v471_v33  ;;  %v475_v35 = vld [vmem:[%s3162_s23 + $0x1418] sm:$0xff]  ;;  %v477_v36 = vld [vmem:[%s3162_s23 + $0x1480] sm:$0xff] }
  0x61   : > { %474 = vst [vmem:[%s3167_s24 + $0x510] sm:$0xff] %v473_v34  ;;  %476 = vst [vmem:[%s3167_s24 + $0x518] sm:$0xff] %v475_v35  ;;  %v479_v37 = vld [vmem:[%s3162_s23 + $0x1488] sm:$0xff]  ;;  %v481_v38 = vld [vmem:[%s3162_s23 + $0x1490] sm:$0xff] }
  0x62   : > { %478 = vst [vmem:[%s3167_s24 + $0x520] sm:$0xff] %v477_v36  ;;  %v483_v39 = vld [vmem:[%s3162_s23 + $0x1498] sm:$0xff]  ;;  %480 = vst [vmem:[%s3167_s24 + $0x528] sm:$0xff] %v479_v37  ;;  %v485_v40 = vld [vmem:[%s3162_s23 + $0x1500] sm:$0xff] }
  0x63   : > { %482 = vst [vmem:[%s3167_s24 + $0x530] sm:$0xff] %v481_v38  ;;  %484 = vst [vmem:[%s3167_s24 + $0x538] sm:$0xff] %v483_v39  ;;  %v487_v41 = vld [vmem:[%s3162_s23 + $0x1508] sm:$0xff]  ;;  %v489_v42 = vld [vmem:[%s3162_s23 + $0x1510] sm:$0xff] }
  0x64   : > { %486 = vst [vmem:[%s3167_s24 + $0x540] sm:$0xff] %v485_v40  ;;  %488 = vst [vmem:[%s3167_s24 + $0x548] sm:$0xff] %v487_v41  ;;  %v491_v43 = vld [vmem:[%s3162_s23 + $0x1518] sm:$0xff]  ;;  %v493_v44 = vld [vmem:[%s3162_s23 + $0x1580] sm:$0xff] }
  0x65   : > { %490 = vst [vmem:[%s3167_s24 + $0x550] sm:$0xff] %v489_v42  ;;  %v495_v45 = vld [vmem:[%s3162_s23 + $0x1588] sm:$0xff]  ;;  %492 = vst [vmem:[%s3167_s24 + $0x558] sm:$0xff] %v491_v43  ;;  %v497_v46 = vld [vmem:[%s3162_s23 + $0x1590] sm:$0xff] }
  0x66   : > { %494 = vst [vmem:[%s3167_s24 + $0x560] sm:$0xff] %v493_v44  ;;  %496 = vst [vmem:[%s3167_s24 + $0x568] sm:$0xff] %v495_v45  ;;  %v499_v47 = vld [vmem:[%s3162_s23 + $0x1598] sm:$0xff]  ;;  %v501_v48 = vld [vmem:[%s3162_s23 + $0x1600] sm:$0xff] }
  0x67   : > { %498 = vst [vmem:[%s3167_s24 + $0x570] sm:$0xff] %v497_v46  ;;  %500 = vst [vmem:[%s3167_s24 + $0x578] sm:$0xff] %v499_v47  ;;  %v503_v49 = vld [vmem:[%s3162_s23 + $0x1608] sm:$0xff]  ;;  %v505_v50 = vld [vmem:[%s3162_s23 + $0x1610] sm:$0xff] }
  0x68   : > { %502 = vst [vmem:[%s3167_s24 + $0x580] sm:$0xff] %v501_v48  ;;  %v507_v51 = vld [vmem:[%s3162_s23 + $0x1618] sm:$0xff]  ;;  %504 = vst [vmem:[%s3167_s24 + $0x588] sm:$0xff] %v503_v49  ;;  %v509_v52 = vld [vmem:[%s3162_s23 + $0x1680] sm:$0xff] }
  0x69   : > { %506 = vst [vmem:[%s3167_s24 + $0x590] sm:$0xff] %v505_v50  ;;  %508 = vst [vmem:[%s3167_s24 + $0x598] sm:$0xff] %v507_v51  ;;  %v511_v53 = vld [vmem:[%s3162_s23 + $0x1688] sm:$0xff]  ;;  %v513_v54 = vld [vmem:[%s3162_s23 + $0x1690] sm:$0xff] }
  0x6a   : > { %510 = vst [vmem:[%s3167_s24 + $0x5a0] sm:$0xff] %v509_v52  ;;  %512 = vst [vmem:[%s3167_s24 + $0x5a8] sm:$0xff] %v511_v53  ;;  %v515_v55 = vld [vmem:[%s3162_s23 + $0x1698] sm:$0xff]  ;;  %v517_v56 = vld [vmem:[%s3162_s23 + $0x1700] sm:$0xff] }
  0x6b   : > { %514 = vst [vmem:[%s3167_s24 + $0x5b0] sm:$0xff] %v513_v54  ;;  %v519_v57 = vld [vmem:[%s3162_s23 + $0x1708] sm:$0xff]  ;;  %516 = vst [vmem:[%s3167_s24 + $0x5b8] sm:$0xff] %v515_v55  ;;  %v521_v58 = vld [vmem:[%s3162_s23 + $0x1710] sm:$0xff] }
  0x6c   : > { %518 = vst [vmem:[%s3167_s24 + $0x5c0] sm:$0xff] %v517_v56  ;;  %520 = vst [vmem:[%s3167_s24 + $0x5c8] sm:$0xff] %v519_v57  ;;  %v523_v59 = vld [vmem:[%s3162_s23 + $0x1718] sm:$0xff]  ;;  %v525_v60 = vld [vmem:[%s3162_s23 + $0x1780] sm:$0xff] }
  0x6d   : > { %522 = vst [vmem:[%s3167_s24 + $0x5d0] sm:$0xff] %v521_v58  ;;  %524 = vst [vmem:[%s3167_s24 + $0x5d8] sm:$0xff] %v523_v59  ;;  %v527_v61 = vld [vmem:[%s3162_s23 + $0x1788] sm:$0xff]  ;;  %v529_v62 = vld [vmem:[%s3162_s23 + $0x1790] sm:$0xff] }
  0x6e   : > { %526 = vst [vmem:[%s3167_s24 + $0x5e0] sm:$0xff] %v525_v60  ;;  %v531_v63 = vld [vmem:[%s3162_s23 + $0x1798] sm:$0xff]  ;;  %528 = vst [vmem:[%s3167_s24 + $0x5e8] sm:$0xff] %v527_v61  ;;  %v533_v0 = vld [vmem:[%s3162_s23 + $0x1800] sm:$0xff] }
  0x6f   : > { %530 = vst [vmem:[%s3167_s24 + $0x5f0] sm:$0xff] %v529_v62  ;;  %532 = vst [vmem:[%s3167_s24 + $0x5f8] sm:$0xff] %v531_v63  ;;  %v535_v1 = vld [vmem:[%s3162_s23 + $0x1808] sm:$0xff]  ;;  %v537_v2 = vld [vmem:[%s3162_s23 + $0x1810] sm:$0xff] }
  0x70   : > { %534 = vst [vmem:[%s3167_s24 + $0x600] sm:$0xff] %v533_v0  ;;  %536 = vst [vmem:[%s3167_s24 + $0x608] sm:$0xff] %v535_v1  ;;  %v539_v3 = vld [vmem:[%s3162_s23 + $0x1818] sm:$0xff]  ;;  %v541_v4 = vld [vmem:[%s3162_s23 + $0x1880] sm:$0xff] }
  0x71   : > { %538 = vst [vmem:[%s3167_s24 + $0x610] sm:$0xff] %v537_v2  ;;  %v543_v5 = vld [vmem:[%s3162_s23 + $0x1888] sm:$0xff]  ;;  %540 = vst [vmem:[%s3167_s24 + $0x618] sm:$0xff] %v539_v3  ;;  %v545_v6 = vld [vmem:[%s3162_s23 + $0x1890] sm:$0xff] }
  0x72   : > { %542 = vst [vmem:[%s3167_s24 + $0x620] sm:$0xff] %v541_v4  ;;  %544 = vst [vmem:[%s3167_s24 + $0x628] sm:$0xff] %v543_v5  ;;  %v547_v7 = vld [vmem:[%s3162_s23 + $0x1898] sm:$0xff]  ;;  %v549_v8 = vld [vmem:[%s3162_s23 + $0x1900] sm:$0xff] }
  0x73   : > { %546 = vst [vmem:[%s3167_s24 + $0x630] sm:$0xff] %v545_v6  ;;  %548 = vst [vmem:[%s3167_s24 + $0x638] sm:$0xff] %v547_v7  ;;  %v551_v9 = vld [vmem:[%s3162_s23 + $0x1908] sm:$0xff]  ;;  %v553_v10 = vld [vmem:[%s3162_s23 + $0x1910] sm:$0xff] }
  0x74   : > { %550 = vst [vmem:[%s3167_s24 + $0x640] sm:$0xff] %v549_v8  ;;  %v555_v11 = vld [vmem:[%s3162_s23 + $0x1918] sm:$0xff]  ;;  %552 = vst [vmem:[%s3167_s24 + $0x648] sm:$0xff] %v551_v9  ;;  %v557_v12 = vld [vmem:[%s3162_s23 + $0x1980] sm:$0xff] }
  0x75   : > { %554 = vst [vmem:[%s3167_s24 + $0x650] sm:$0xff] %v553_v10  ;;  %556 = vst [vmem:[%s3167_s24 + $0x658] sm:$0xff] %v555_v11  ;;  %v559_v13 = vld [vmem:[%s3162_s23 + $0x1988] sm:$0xff]  ;;  %v561_v14 = vld [vmem:[%s3162_s23 + $0x1990] sm:$0xff] }
  0x76   : > { %558 = vst [vmem:[%s3167_s24 + $0x660] sm:$0xff] %v557_v12  ;;  %560 = vst [vmem:[%s3167_s24 + $0x668] sm:$0xff] %v559_v13  ;;  %v563_v15 = vld [vmem:[%s3162_s23 + $0x1998] sm:$0xff]  ;;  %v565_v16 = vld [vmem:[%s3162_s23 + $0x1a00] sm:$0xff] }
  0x77   : > { %562 = vst [vmem:[%s3167_s24 + $0x670] sm:$0xff] %v561_v14  ;;  %v567_v17 = vld [vmem:[%s3162_s23 + $0x1a08] sm:$0xff]  ;;  %564 = vst [vmem:[%s3167_s24 + $0x678] sm:$0xff] %v563_v15  ;;  %v569_v18 = vld [vmem:[%s3162_s23 + $0x1a10] sm:$0xff] }
  0x78   : > { %566 = vst [vmem:[%s3167_s24 + $0x680] sm:$0xff] %v565_v16  ;;  %568 = vst [vmem:[%s3167_s24 + $0x688] sm:$0xff] %v567_v17  ;;  %v571_v19 = vld [vmem:[%s3162_s23 + $0x1a18] sm:$0xff]  ;;  %v573_v20 = vld [vmem:[%s3162_s23 + $0x1a80] sm:$0xff] }
  0x79   : > { %570 = vst [vmem:[%s3167_s24 + $0x690] sm:$0xff] %v569_v18  ;;  %572 = vst [vmem:[%s3167_s24 + $0x698] sm:$0xff] %v571_v19  ;;  %v575_v21 = vld [vmem:[%s3162_s23 + $0x1a88] sm:$0xff]  ;;  %v577_v22 = vld [vmem:[%s3162_s23 + $0x1a90] sm:$0xff] }
  0x7a   : > { %574 = vst [vmem:[%s3167_s24 + $0x6a0] sm:$0xff] %v573_v20  ;;  %v579_v23 = vld [vmem:[%s3162_s23 + $0x1a98] sm:$0xff]  ;;  %576 = vst [vmem:[%s3167_s24 + $0x6a8] sm:$0xff] %v575_v21  ;;  %v581_v24 = vld [vmem:[%s3162_s23 + $0x1b00] sm:$0xff] }
  0x7b   : > { %578 = vst [vmem:[%s3167_s24 + $0x6b0] sm:$0xff] %v577_v22  ;;  %580 = vst [vmem:[%s3167_s24 + $0x6b8] sm:$0xff] %v579_v23  ;;  %v583_v25 = vld [vmem:[%s3162_s23 + $0x1b08] sm:$0xff]  ;;  %v585_v26 = vld [vmem:[%s3162_s23 + $0x1b10] sm:$0xff] }
  0x7c   : > { %582 = vst [vmem:[%s3167_s24 + $0x6c0] sm:$0xff] %v581_v24  ;;  %584 = vst [vmem:[%s3167_s24 + $0x6c8] sm:$0xff] %v583_v25  ;;  %v587_v27 = vld [vmem:[%s3162_s23 + $0x1b18] sm:$0xff]  ;;  %v589_v28 = vld [vmem:[%s3162_s23 + $0x1b80] sm:$0xff] }
  0x7d   : > { %586 = vst [vmem:[%s3167_s24 + $0x6d0] sm:$0xff] %v585_v26  ;;  %v591_v29 = vld [vmem:[%s3162_s23 + $0x1b88] sm:$0xff]  ;;  %588 = vst [vmem:[%s3167_s24 + $0x6d8] sm:$0xff] %v587_v27  ;;  %v593_v30 = vld [vmem:[%s3162_s23 + $0x1b90] sm:$0xff] }
  0x7e   : > { %590 = vst [vmem:[%s3167_s24 + $0x6e0] sm:$0xff] %v589_v28  ;;  %592 = vst [vmem:[%s3167_s24 + $0x6e8] sm:$0xff] %v591_v29  ;;  %v595_v31 = vld [vmem:[%s3162_s23 + $0x1b98] sm:$0xff]  ;;  %v597_v32 = vld [vmem:[%s3162_s23 + $0x1c00] sm:$0xff] }
  0x7f   : > { %594 = vst [vmem:[%s3167_s24 + $0x6f0] sm:$0xff] %v593_v30  ;;  %596 = vst [vmem:[%s3167_s24 + $0x6f8] sm:$0xff] %v595_v31  ;;  %v599_v33 = vld [vmem:[%s3162_s23 + $0x1c08] sm:$0xff]  ;;  %v601_v34 = vld [vmem:[%s3162_s23 + $0x1c10] sm:$0xff] }
  0x80   : > { %598 = vst [vmem:[%s3167_s24 + $0x700] sm:$0xff] %v597_v32  ;;  %v603_v35 = vld [vmem:[%s3162_s23 + $0x1c18] sm:$0xff]  ;;  %600 = vst [vmem:[%s3167_s24 + $0x708] sm:$0xff] %v599_v33  ;;  %v605_v36 = vld [vmem:[%s3162_s23 + $0x1c80] sm:$0xff] }
  0x81   : > { %602 = vst [vmem:[%s3167_s24 + $0x710] sm:$0xff] %v601_v34  ;;  %604 = vst [vmem:[%s3167_s24 + $0x718] sm:$0xff] %v603_v35  ;;  %v607_v37 = vld [vmem:[%s3162_s23 + $0x1c88] sm:$0xff]  ;;  %v609_v38 = vld [vmem:[%s3162_s23 + $0x1c90] sm:$0xff] }
  0x82   : > { %606 = vst [vmem:[%s3167_s24 + $0x720] sm:$0xff] %v605_v36  ;;  %608 = vst [vmem:[%s3167_s24 + $0x728] sm:$0xff] %v607_v37  ;;  %v611_v39 = vld [vmem:[%s3162_s23 + $0x1c98] sm:$0xff]  ;;  %v613_v40 = vld [vmem:[%s3162_s23 + $0x1d00] sm:$0xff] }
  0x83   : > { %610 = vst [vmem:[%s3167_s24 + $0x730] sm:$0xff] %v609_v38  ;;  %v615_v41 = vld [vmem:[%s3162_s23 + $0x1d08] sm:$0xff]  ;;  %612 = vst [vmem:[%s3167_s24 + $0x738] sm:$0xff] %v611_v39  ;;  %v617_v42 = vld [vmem:[%s3162_s23 + $0x1d10] sm:$0xff] }
  0x84   : > { %614 = vst [vmem:[%s3167_s24 + $0x740] sm:$0xff] %v613_v40  ;;  %616 = vst [vmem:[%s3167_s24 + $0x748] sm:$0xff] %v615_v41  ;;  %v619_v43 = vld [vmem:[%s3162_s23 + $0x1d18] sm:$0xff]  ;;  %v621_v44 = vld [vmem:[%s3162_s23 + $0x1d80] sm:$0xff] }
  0x85   : > { %618 = vst [vmem:[%s3167_s24 + $0x750] sm:$0xff] %v617_v42  ;;  %620 = vst [vmem:[%s3167_s24 + $0x758] sm:$0xff] %v619_v43  ;;  %v623_v45 = vld [vmem:[%s3162_s23 + $0x1d88] sm:$0xff]  ;;  %v625_v46 = vld [vmem:[%s3162_s23 + $0x1d90] sm:$0xff] }
  0x86   : > { %622 = vst [vmem:[%s3167_s24 + $0x760] sm:$0xff] %v621_v44  ;;  %v627_v47 = vld [vmem:[%s3162_s23 + $0x1d98] sm:$0xff]  ;;  %624 = vst [vmem:[%s3167_s24 + $0x768] sm:$0xff] %v623_v45  ;;  %v629_v48 = vld [vmem:[%s3162_s23 + $0x1e00] sm:$0xff] }
  0x87   : > { %626 = vst [vmem:[%s3167_s24 + $0x770] sm:$0xff] %v625_v46  ;;  %628 = vst [vmem:[%s3167_s24 + $0x778] sm:$0xff] %v627_v47  ;;  %v631_v49 = vld [vmem:[%s3162_s23 + $0x1e08] sm:$0xff]  ;;  %v633_v50 = vld [vmem:[%s3162_s23 + $0x1e10] sm:$0xff] }
  0x88   : > { %630 = vst [vmem:[%s3167_s24 + $0x780] sm:$0xff] %v629_v48  ;;  %632 = vst [vmem:[%s3167_s24 + $0x788] sm:$0xff] %v631_v49  ;;  %v635_v51 = vld [vmem:[%s3162_s23 + $0x1e18] sm:$0xff]  ;;  %v637_v52 = vld [vmem:[%s3162_s23 + $0x1e80] sm:$0xff] }
  0x89   : > { %634 = vst [vmem:[%s3167_s24 + $0x790] sm:$0xff] %v633_v50  ;;  %v639_v53 = vld [vmem:[%s3162_s23 + $0x1e88] sm:$0xff]  ;;  %636 = vst [vmem:[%s3167_s24 + $0x798] sm:$0xff] %v635_v51  ;;  %v641_v54 = vld [vmem:[%s3162_s23 + $0x1e90] sm:$0xff] }
  0x8a   : > { %638 = vst [vmem:[%s3167_s24 + $0x7a0] sm:$0xff] %v637_v52  ;;  %640 = vst [vmem:[%s3167_s24 + $0x7a8] sm:$0xff] %v639_v53  ;;  %v643_v55 = vld [vmem:[%s3162_s23 + $0x1e98] sm:$0xff]  ;;  %v645_v56 = vld [vmem:[%s3162_s23 + $0x1f00] sm:$0xff] }
  0x8b   : > { %642 = vst [vmem:[%s3167_s24 + $0x7b0] sm:$0xff] %v641_v54  ;;  %644 = vst [vmem:[%s3167_s24 + $0x7b8] sm:$0xff] %v643_v55  ;;  %v647_v57 = vld [vmem:[%s3162_s23 + $0x1f08] sm:$0xff]  ;;  %v649_v58 = vld [vmem:[%s3162_s23 + $0x1f10] sm:$0xff] }
  0x8c   : > { %646 = vst [vmem:[%s3167_s24 + $0x7c0] sm:$0xff] %v645_v56  ;;  %v651_v59 = vld [vmem:[%s3162_s23 + $0x1f18] sm:$0xff]  ;;  %648 = vst [vmem:[%s3167_s24 + $0x7c8] sm:$0xff] %v647_v57  ;;  %v653_v60 = vld [vmem:[%s3162_s23 + $0x1f80] sm:$0xff] }
  0x8d   : > { %650 = vst [vmem:[%s3167_s24 + $0x7d0] sm:$0xff] %v649_v58  ;;  %652 = vst [vmem:[%s3167_s24 + $0x7d8] sm:$0xff] %v651_v59  ;;  %v655_v61 = vld [vmem:[%s3162_s23 + $0x1f88] sm:$0xff]  ;;  %v657_v62 = vld [vmem:[%s3162_s23 + $0x1f90] sm:$0xff] }
  0x8e   : > { %654 = vst [vmem:[%s3167_s24 + $0x7e0] sm:$0xff] %v653_v60  ;;  %656 = vst [vmem:[%s3167_s24 + $0x7e8] sm:$0xff] %v655_v61  ;;  %v659_v63 = vld [vmem:[%s3162_s23 + $0x1f98] sm:$0xff] }
  0x8f   : > { %658 = vst [vmem:[%s3167_s24 + $0x7f0] sm:$0xff] %v657_v62  ;;  %660 = vst [vmem:[%s3167_s24 + $0x7f8] sm:$0xff] %v659_v63 }
  0x90 PF: > { %p2747_p6 = scmp.ge.s32.totalorder %s3101_s13, 1  ;;  %p665_p7 = scmp.lt.s32.totalorder %s3101_s13, 5 }
  0x92   : > { %p666_p8 = pnand %p2747_p6, %p665_p7 }
  0x93   : > { %s672_s25 = sand.u32 (!%p666_p8), 1, %s3085_s9   ;;  %s2749_s4 = sshll.u32 (!%p666_p8), %s3093_s11, 3 }
  0x94   : > { %669 = sbr.rel (%p666_p8) target bundleno = 616 (0x268), region = 47  ;;  %s2748_s30 = sshll.u32 (!%p666_p8), %s672_s25, 11 }
  0x95   : > { %s3691_s3 = scalar_lea.vmem (!%p666_p8), [#allocation2], %s2748_s30  ;;  %p711_p9 = scmp.lt.s32.totalorder (!%p666_p8), %s2749_s4, 31 }
  0x99   : > { %v719_v0 = vld [vmem:[%s4006_s0] sm:$0xff]  ;;  %v720_v1 = vld [vmem:[%s4006_s0 + $0x8] sm:$0xff]  ;;  %v3103_v2 = vmov 0   ;;  %s4016_s4 = smov (!%p711_p9, %s2749_s4), 31 }
  0x9a   : > { %v3687_v3 = vmax.bf16 %v3103_v2, %v719_v0  ;;  %v3689_v4 = vmax.bf16 %v3103_v2, %v720_v1  ;;  %v779_v5 = vld [vmem:[%s3691_s3 + $0x1c0] sm:$0xff]  ;;  %s2750_s5 = sshll.u32 %s4016_s4, 2 }
  0x9b   : > { %v783_v6 = vld [vmem:[%s3691_s3 + $0x1e0] sm:$0xff]  ;;  %s3985_s8 = scalar_lea.vmem %s4008_s2, %s2750_s5 }
  0x9c   : > { %v907_v7 = vld [vmem:[%s3691_s3 + $0x5c0] sm:$0xff]  ;;  %v3698_v8 = vcombine.high %v3687_v3, %v3687_v3  ;;  %v3702_v9 = vcombine.high %v3689_v4, %v3689_v4  ;;  %v2812_v10 = vcombine.high %v779_v5, %v783_v6  ;;  %v2811_v12 = vcombine.low %v779_v5, %v783_v6 }
  0x9d   : > { %v911_v11 = vld [vmem:[%s3691_s3 + $0x5e0] sm:$0xff] }
  0x9e   : > { %v771_v13 = vld [vmem:[%s3691_s3 + $0x180] sm:$0xff]  ;;  %v2940_v15 = vcombine.high %v907_v7, %v911_v11  ;;  %v2939_v16 = vcombine.low %v907_v7, %v911_v11  ;;  %2305 = vmatprep.mubr.bf16.mxu0 %v3698_v8  ;;  %2273 = vmatprep.subr.bf16.mxu0 %v2812_v10 }
  0x9f   : > { %v775_v14 = vld [vmem:[%s3691_s3 + $0x1a0] sm:$0xff]  ;;  %2346 = vmatprep.mubr.bf16.mxu1 %v3702_v9  ;;  %2274 = vmatpush1.bf16.msra.mxu0 %v2811_v12 }
  0xa0   : > { %v2804_v17 = vcombine.high %v771_v13, %v775_v14  ;;  %v899_v18 = vld [vmem:[%s3691_s3 + $0x580] sm:$0xff]  ;;  %2314 = vmatprep.subr.bf16.mxu1 %v2940_v15  ;;  %v2803_v25 = vcombine.low %v771_v13, %v775_v14 }
  0xa1   : > { %v903_v19 = vld [vmem:[%s3691_s3 + $0x5a0] sm:$0xff]  ;;  %2315 = vmatpush1.bf16.msra.mxu1 %v2939_v16 }
  0xa2   : > { %v763_v20 = vld [vmem:[%s3691_s3 + $0x140] sm:$0xff]  ;;  %v2932_v21 = vcombine.high %v899_v18, %v903_v19  ;;  %2275 = vmatprep.subr.bf16.mxu0 %v2804_v17  ;;  %v2931_v26 = vcombine.low %v899_v18, %v903_v19 }
  0xa3   : > { %v767_v22 = vld [vmem:[%s3691_s3 + $0x160] sm:$0xff]  ;;  %2276 = vmatpush1.bf16.msra.mxu0 %v2803_v25 }
  0xa4   : > { %v891_v23 = vld [vmem:[%s3691_s3 + $0x540] sm:$0xff]  ;;  %v2796_v27 = vcombine.high %v763_v20, %v767_v22  ;;  %2316 = vmatprep.subr.bf16.mxu1 %v2932_v21  ;;  %v2795_v33 = vcombine.low %v763_v20, %v767_v22 }
  0xa5   : > { %v895_v24 = vld [vmem:[%s3691_s3 + $0x560] sm:$0xff]  ;;  %2317 = vmatpush1.bf16.msra.mxu1 %v2931_v26 }
  0xa6   : > { %v2924_v28 = vcombine.high %v891_v23, %v895_v24  ;;  %v755_v29 = vld [vmem:[%s3691_s3 + $0x100] sm:$0xff]  ;;  %2277 = vmatprep.subr.bf16.mxu0 %v2796_v27  ;;  %v2923_v34 = vcombine.low %v891_v23, %v895_v24 }
  0xa7   : > { %v759_v30 = vld [vmem:[%s3691_s3 + $0x120] sm:$0xff]  ;;  %2278 = vmatpush1.bf16.msra.mxu0 %v2795_v33 }
  0xa8   : > { %v883_v31 = vld [vmem:[%s3691_s3 + $0x500] sm:$0xff]  ;;  %v2788_v35 = vcombine.high %v755_v29, %v759_v30  ;;  %2318 = vmatprep.subr.bf16.mxu1 %v2924_v28  ;;  %v2787_v41 = vcombine.low %v755_v29, %v759_v30 }
  0xa9   : > { %v887_v32 = vld [vmem:[%s3691_s3 + $0x520] sm:$0xff]  ;;  %2319 = vmatpush1.bf16.msra.mxu1 %v2923_v34 }
  0xaa   : > { %v2916_v36 = vcombine.high %v883_v31, %v887_v32  ;;  %v747_v37 = vld [vmem:[%s3691_s3 + $0xc0] sm:$0xff]  ;;  %2279 = vmatprep.subr.bf16.mxu0 %v2788_v35  ;;  %v2915_v42 = vcombine.low %v883_v31, %v887_v32 }
  0xab   : > { %v751_v38 = vld [vmem:[%s3691_s3 + $0xe0] sm:$0xff]  ;;  %2280 = vmatpush1.bf16.msra.mxu0 %v2787_v41 }
  0xac   : > { %v875_v39 = vld [vmem:[%s3691_s3 + $0x4c0] sm:$0xff]  ;;  %v2780_v43 = vcombine.high %v747_v37, %v751_v38  ;;  %2320 = vmatprep.subr.bf16.mxu1 %v2916_v36  ;;  %v2779_v49 = vcombine.low %v747_v37, %v751_v38 }
  0xad   : > { %v879_v40 = vld [vmem:[%s3691_s3 + $0x4e0] sm:$0xff]  ;;  %2321 = vmatpush1.bf16.msra.mxu1 %v2915_v42 }
  0xae   : > { %v2908_v44 = vcombine.high %v875_v39, %v879_v40  ;;  %v739_v45 = vld [vmem:[%s3691_s3 + $0x80] sm:$0xff]  ;;  %2281 = vmatprep.subr.bf16.mxu0 %v2780_v43  ;;  %v2907_v50 = vcombine.low %v875_v39, %v879_v40 }
  0xaf   : > { %v743_v46 = vld [vmem:[%s3691_s3 + $0xa0] sm:$0xff]  ;;  %2282 = vmatpush1.bf16.msra.mxu0 %v2779_v49 }
  0xb0   : > { %v867_v47 = vld [vmem:[%s3691_s3 + $0x480] sm:$0xff]  ;;  %v2772_v51 = vcombine.high %v739_v45, %v743_v46  ;;  %2322 = vmatprep.subr.bf16.mxu1 %v2908_v44  ;;  %v2771_v57 = vcombine.low %v739_v45, %v743_v46 }
  0xb1   : > { %v871_v48 = vld [vmem:[%s3691_s3 + $0x4a0] sm:$0xff]  ;;  %2323 = vmatpush1.bf16.msra.mxu1 %v2907_v50 }
  0xb2   : > { %v2900_v52 = vcombine.high %v867_v47, %v871_v48  ;;  %v731_v53 = vld [vmem:[%s3691_s3 + $0x40] sm:$0xff]  ;;  %2283 = vmatprep.subr.bf16.mxu0 %v2772_v51  ;;  %v2899_v58 = vcombine.low %v867_v47, %v871_v48 }
  0xb3   : > { %v735_v54 = vld [vmem:[%s3691_s3 + $0x60] sm:$0xff]  ;;  %2284 = vmatpush1.bf16.msra.mxu0 %v2771_v57 }
  0xb4   : > { %v859_v55 = vld [vmem:[%s3691_s3 + $0x440] sm:$0xff]  ;;  %v2764_v59 = vcombine.high %v731_v53, %v735_v54  ;;  %2324 = vmatprep.subr.bf16.mxu1 %v2900_v52  ;;  %v2763_v1 = vcombine.low %v731_v53, %v735_v54 }
  0xb5   : > { %v863_v56 = vld [vmem:[%s3691_s3 + $0x460] sm:$0xff]  ;;  %2325 = vmatpush1.bf16.msra.mxu1 %v2899_v58 }
  0xb6   : > { %v2892_v60 = vcombine.high %v859_v55, %v863_v56  ;;  %v723_v61 = vld [vmem:[%s3691_s3] sm:$0xff]  ;;  %2285 = vmatprep.subr.bf16.mxu0 %v2764_v59  ;;  %v2891_v2 = vcombine.low %v859_v55, %v863_v56 }
  0xb7   : > { %v727_v62 = vld [vmem:[%s3691_s3 + $0x20] sm:$0xff]  ;;  %2286 = vmatpush1.bf16.msra.mxu0 %v2763_v1 }
  0xb8   : > { %v851_v63 = vld [vmem:[%s3691_s3 + $0x400] sm:$0xff]  ;;  %v2756_v5 = vcombine.high %v723_v61, %v727_v62  ;;  %2326 = vmatprep.subr.bf16.mxu1 %v2892_v60  ;;  %v2755_v13 = vcombine.low %v723_v61, %v727_v62 }
  0xb9   : > { %v855_v0 = vld [vmem:[%s3691_s3 + $0x420] sm:$0xff]  ;;  %2327 = vmatpush1.bf16.msra.mxu1 %v2891_v2 }
  0xba   : > { %v2884_v6 = vcombine.high %v851_v63, %v855_v0  ;;  %v843_v7 = vld [vmem:[%s3691_s3 + $0x3c0] sm:$0xff]  ;;  %2287 = vmatprep.subr.bf16.mxu0 %v2756_v5  ;;  %v2883_v14 = vcombine.low %v851_v63, %v855_v0 }
  0xbb   : > { %v847_v10 = vld [vmem:[%s3691_s3 + $0x3e0] sm:$0xff]  ;;  %2288 = vmatpush1.bf16.msra.mxu0 %v2755_v13  ;;  %v780_v13 = vld [vmem:[%s3691_s3 + $0x1c8] sm:$0xff] }
  0xbc   : > { %v971_v11 = vld [vmem:[%s3691_s3 + $0x7c0] sm:$0xff]  ;;  %v2876_v15 = vcombine.high %v843_v7, %v847_v10  ;;  %2328 = vmatprep.subr.bf16.mxu1 %v2884_v6  ;;  %v2875_v21 = vcombine.low %v843_v7, %v847_v10 }
  0xbd   : > { %v975_v12 = vld [vmem:[%s3691_s3 + $0x7e0] sm:$0xff]  ;;  %2329 = vmatpush1.bf16.msra.mxu1 %v2883_v14  ;;  %v784_v14 = vld [vmem:[%s3691_s3 + $0x1e8] sm:$0xff] }
  0xbe   : > { %v3004_v16 = vcombine.high %v971_v11, %v975_v12  ;;  %v835_v17 = vld [vmem:[%s3691_s3 + $0x380] sm:$0xff]  ;;  %2289 = vmatprep.subr.bf16.mxu0 %v2876_v15  ;;  %v3003_v22 = vcombine.low %v971_v11, %v975_v12  ;;  %v908_v15 = vld [vmem:[%s3691_s3 + $0x5c8] sm:$0xff] }
  0xbf   : > { %v839_v18 = vld [vmem:[%s3691_s3 + $0x3a0] sm:$0xff]  ;;  %2290 = vmatpush2.bf16.msra.mxu0 %v2875_v21  ;;  %v772_v21 = vld [vmem:[%s3691_s3 + $0x188] sm:$0xff] }
  0xc0   : > { %v963_v19 = vld [vmem:[%s3691_s3 + $0x780] sm:$0xff]  ;;  %v2868_v23 = vcombine.high %v835_v17, %v839_v18  ;;  %2330 = vmatprep.subr.bf16.mxu1 %v3004_v16  ;;  %v2867_v29 = vcombine.low %v835_v17, %v839_v18  ;;  %v912_v16 = vld [vmem:[%s3691_s3 + $0x5e8] sm:$0xff] }
  0xc1   : > { %v967_v20 = vld [vmem:[%s3691_s3 + $0x7a0] sm:$0xff]  ;;  %2331 = vmatpush2.bf16.msra.mxu1 %v3003_v22  ;;  %v776_v22 = vld [vmem:[%s3691_s3 + $0x1a8] sm:$0xff] }
  0xc2   : > { %v2996_v24 = vcombine.high %v963_v19, %v967_v20  ;;  %v827_v25 = vld [vmem:[%s3691_s3 + $0x340] sm:$0xff]  ;;  %2291 = vmatprep.subr.bf16.mxu0 %v2868_v23  ;;  %v2995_v30 = vcombine.low %v963_v19, %v967_v20  ;;  %v2814_v19 = vcombine.high %v780_v13, %v784_v14  ;;  %v2942_v20 = vcombine.high %v908_v15, %v912_v16 }
  0xc3   : > { %v831_v26 = vld [vmem:[%s3691_s3 + $0x360] sm:$0xff]  ;;  %2292 = vmatpush2.bf16.msra.mxu0 %v2867_v29  ;;  %v3775_v23 = vcombine.low %v3687_v3, %v3687_v3  ;;  %v2806_v29 = vcombine.high %v772_v21, %v776_v22  ;;  %v768_v3 = vld [vmem:[%s3691_s3 + $0x168] sm:$0xff] }
  0xc4   : > { %v955_v27 = vld [vmem:[%s3691_s3 + $0x740] sm:$0xff]  ;;  %v2860_v31 = vcombine.high %v827_v25, %v831_v26  ;;  %2332 = vmatprep.subr.bf16.mxu1 %v2996_v24  ;;  %v2859_v37 = vcombine.low %v827_v25, %v831_v26  ;;  %v900_v24 = vld [vmem:[%s3691_s3 + $0x588] sm:$0xff]  ;;  %v3781_v26 = vcombine.low %v3689_v4, %v3689_v4  ;;  %v2805_v4 = vcombine.low %v772_v21, %v776_v22 }
  0xc5   : > { %v959_v28 = vld [vmem:[%s3691_s3 + $0x760] sm:$0xff]  ;;  %2333 = vmatpush2.bf16.msra.mxu1 %v2995_v30  ;;  %v904_v25 = vld [vmem:[%s3691_s3 + $0x5a8] sm:$0xff] }
  0xc6   : > { %v2988_v32 = vcombine.high %v955_v27, %v959_v28  ;;  %v819_v33 = vld [vmem:[%s3691_s3 + $0x300] sm:$0xff]  ;;  %2293 = vmatprep.subr.bf16.mxu0 %v2860_v31  ;;  %v2987_v38 = vcombine.low %v955_v27, %v959_v28  ;;  %v2813_v27 = vcombine.low %v780_v13, %v784_v14  ;;  %v2941_v28 = vcombine.low %v908_v15, %v912_v16  ;;  %v764_v31 = vld [vmem:[%s3691_s3 + $0x148] sm:$0xff] }
  0xc7   : > { %v823_v34 = vld [vmem:[%s3691_s3 + $0x320] sm:$0xff]  ;;  %2294 = vmatpush2.bf16.msra.mxu0 %v2859_v37  ;;  %v2934_v30 = vcombine.high %v900_v24, %v904_v25  ;;  %v756_v37 = vld [vmem:[%s3691_s3 + $0x108] sm:$0xff] }
  0xc8   : > { %v947_v35 = vld [vmem:[%s3691_s3 + $0x700] sm:$0xff]  ;;  %v2852_v39 = vcombine.high %v819_v33, %v823_v34  ;;  %2334 = vmatprep.subr.bf16.mxu1 %v2988_v32  ;;  %v2851_v45 = vcombine.low %v819_v33, %v823_v34  ;;  %v892_v32 = vld [vmem:[%s3691_s3 + $0x548] sm:$0xff]  ;;  %v2933_v34 = vcombine.low %v900_v24, %v904_v25 }
  0xc9   : > { %v951_v36 = vld [vmem:[%s3691_s3 + $0x720] sm:$0xff]  ;;  %2335 = vmatpush2.bf16.msra.mxu1 %v2987_v38  ;;  %v896_v33 = vld [vmem:[%s3691_s3 + $0x568] sm:$0xff] }
  0xca   : > { %v2980_v40 = vcombine.high %v947_v35, %v951_v36  ;;  %v811_v41 = vld [vmem:[%s3691_s3 + $0x2c0] sm:$0xff]  ;;  %2295 = vmatprep.subr.bf16.mxu0 %v2852_v39  ;;  %v2979_v46 = vcombine.low %v947_v35, %v951_v36  ;;  %v2798_v35 = vcombine.high %v764_v31, %v768_v3  ;;  %v2926_v36 = vcombine.high %v892_v32, %v896_v33  ;;  %v760_v38 = vld [vmem:[%s3691_s3 + $0x128] sm:$0xff] }
  0xcb   : > { %v815_v42 = vld [vmem:[%s3691_s3 + $0x2e0] sm:$0xff]  ;;  %2296 = vmatpush2.bf16.msra.mxu0 %v2851_v45  ;;  %v884_v39 = vld [vmem:[%s3691_s3 + $0x508] sm:$0xff] }
  0xcc   : > { %v939_v43 = vld [vmem:[%s3691_s3 + $0x6c0] sm:$0xff]  ;;  %v2844_v47 = vcombine.high %v811_v41, %v815_v42  ;;  %2336 = vmatprep.subr.bf16.mxu1 %v2980_v40  ;;  %v2843_v53 = vcombine.low %v811_v41, %v815_v42  ;;  %v888_v40 = vld [vmem:[%s3691_s3 + $0x528] sm:$0xff]  ;;  %v2797_v41 = vcombine.low %v764_v31, %v768_v3  ;;  %v2925_v42 = vcombine.low %v892_v32, %v896_v33 }
  0xcd   : > { %v943_v44 = vld [vmem:[%s3691_s3 + $0x6e0] sm:$0xff]  ;;  %2337 = vmatpush2.bf16.msra.mxu1 %v2979_v46  ;;  %v748_v45 = vld [vmem:[%s3691_s3 + $0xc8] sm:$0xff] }
  0xce   : > { %v2972_v48 = vcombine.high %v939_v43, %v943_v44  ;;  %v803_v49 = vld [vmem:[%s3691_s3 + $0x280] sm:$0xff]  ;;  %2297 = vmatprep.subr.bf16.mxu0 %v2844_v47  ;;  %v2971_v54 = vcombine.low %v939_v43, %v943_v44  ;;  %v2790_v43 = vcombine.high %v756_v37, %v760_v38  ;;  %v2918_v44 = vcombine.high %v884_v39, %v888_v40  ;;  %v752_v46 = vld [vmem:[%s3691_s3 + $0xe8] sm:$0xff] }
  0xcf   : > { %v807_v50 = vld [vmem:[%s3691_s3 + $0x2a0] sm:$0xff]  ;;  %2298 = vmatpush2.bf16.msra.mxu0 %v2843_v53  ;;  %v876_v47 = vld [vmem:[%s3691_s3 + $0x4c8] sm:$0xff] }
  0xd0   : > { %v931_v51 = vld [vmem:[%s3691_s3 + $0x680] sm:$0xff]  ;;  %v2836_v55 = vcombine.high %v803_v49, %v807_v50  ;;  %2338 = vmatprep.subr.bf16.mxu1 %v2972_v48  ;;  %v2835_v61 = vcombine.low %v803_v49, %v807_v50  ;;  %v880_v48 = vld [vmem:[%s3691_s3 + $0x4e8] sm:$0xff]  ;;  %v2789_v49 = vcombine.low %v756_v37, %v760_v38  ;;  %v2917_v50 = vcombine.low %v884_v39, %v888_v40 }
  0xd1   : > { %v935_v52 = vld [vmem:[%s3691_s3 + $0x6a0] sm:$0xff]  ;;  %2339 = vmatpush2.bf16.msra.mxu1 %v2971_v54  ;;  %v740_v53 = vld [vmem:[%s3691_s3 + $0x88] sm:$0xff] }
  0xd2   : > { %v2964_v56 = vcombine.high %v931_v51, %v935_v52  ;;  %v795_v57 = vld [vmem:[%s3691_s3 + $0x240] sm:$0xff]  ;;  %2299 = vmatprep.subr.bf16.mxu0 %v2836_v55  ;;  %v2963_v62 = vcombine.low %v931_v51, %v935_v52  ;;  %v2782_v51 = vcombine.high %v748_v45, %v752_v46  ;;  %v2910_v52 = vcombine.high %v876_v47, %v880_v48  ;;  %v744_v54 = vld [vmem:[%s3691_s3 + $0xa8] sm:$0xff] }
  0xd3   : > { %v799_v58 = vld [vmem:[%s3691_s3 + $0x260] sm:$0xff]  ;;  %2300 = vmatpush2.bf16.msra.mxu0 %v2835_v61  ;;  %v868_v55 = vld [vmem:[%s3691_s3 + $0x488] sm:$0xff] }
  0xd4   : > { %v923_v59 = vld [vmem:[%s3691_s3 + $0x640] sm:$0xff]  ;;  %v2828_v63 = vcombine.high %v795_v57, %v799_v58  ;;  %2340 = vmatprep.subr.bf16.mxu1 %v2964_v56  ;;  %v2827_v7 = vcombine.low %v795_v57, %v799_v58  ;;  %v872_v56 = vld [vmem:[%s3691_s3 + $0x4a8] sm:$0xff]  ;;  %v2781_v57 = vcombine.low %v748_v45, %v752_v46  ;;  %v2909_v58 = vcombine.low %v876_v47, %v880_v48 }
  0xd5   : > { %v927_v60 = vld [vmem:[%s3691_s3 + $0x660] sm:$0xff]  ;;  %2341 = vmatpush2.bf16.msra.mxu1 %v2963_v62  ;;  %v732_v61 = vld [vmem:[%s3691_s3 + $0x48] sm:$0xff] }
  0xd6   : > { %v2956_v0 = vcombine.high %v923_v59, %v927_v60  ;;  %v787_v1 = vld [vmem:[%s3691_s3 + $0x200] sm:$0xff]  ;;  %2301 = vmatprep.subr.bf16.mxu0 %v2828_v63  ;;  %v2955_v10 = vcombine.low %v923_v59, %v927_v60  ;;  %v2774_v59 = vcombine.high %v740_v53, %v744_v54  ;;  %v2902_v60 = vcombine.high %v868_v55, %v872_v56  ;;  %v736_v62 = vld [vmem:[%s3691_s3 + $0x68] sm:$0xff] }
  0xd7   : > { %v791_v2 = vld [vmem:[%s3691_s3 + $0x220] sm:$0xff]  ;;  %2302 = vmatpush2.bf16.msra.mxu0 %v2827_v7  ;;  %v860_v63 = vld [vmem:[%s3691_s3 + $0x448] sm:$0xff]  ;;  %v2765_v13 = vcombine.low %v732_v61, %v736_v62 }
  0xd8   : > { %v915_v5 = vld [vmem:[%s3691_s3 + $0x600] sm:$0xff]  ;;  %v2820_v11 = vcombine.high %v787_v1, %v791_v2  ;;  %2342 = vmatprep.subr.bf16.mxu1 %v2956_v0  ;;  %v2819_v17 = vcombine.low %v787_v1, %v791_v2  ;;  %v864_v0 = vld [vmem:[%s3691_s3 + $0x468] sm:$0xff]  ;;  %v2773_v1 = vcombine.low %v740_v53, %v744_v54  ;;  %v2901_v2 = vcombine.low %v868_v55, %v872_v56 }
  0xd9   : > { %v919_v6 = vld [vmem:[%s3691_s3 + $0x620] sm:$0xff]  ;;  %2343 = vmatpush2.bf16.msra.mxu1 %v2955_v10  ;;  %v724_v7 = vld [vmem:[%s3691_s3 + $0x8] sm:$0xff]  ;;  %v2893_v14 = vcombine.low %v860_v63, %v864_v0 }
  0xda   : > { %v2948_v12 = vcombine.high %v915_v5, %v919_v6  ;;  %2303 = vmatprep.subr.bf16.mxu0 %v2820_v11  ;;  %v2947_v18 = vcombine.low %v915_v5, %v919_v6  ;;  %v2766_v5 = vcombine.high %v732_v61, %v736_v62  ;;  %v2894_v6 = vcombine.high %v860_v63, %v864_v0  ;;  %v728_v10 = vld [vmem:[%s3691_s3 + $0x28] sm:$0xff] }
  0xdb   : > { %2304 = vmatpush2.bf16.msra.mxu0 %v2819_v17  ;;  %v852_v11 = vld [vmem:[%s3691_s3 + $0x408] sm:$0xff]  ;;  %v2758_v15 = vcombine.high %v724_v7, %v728_v10  ;;  %v2757_v21 = vcombine.low %v724_v7, %v728_v10 }
  0xdc   : > { %2344 = vmatprep.subr.bf16.mxu1 %v2948_v12  ;;  %2355 = vmatprep.subr.bf16.mxu0 %v2814_v19  ;;  %v856_v12 = vld [vmem:[%s3691_s3 + $0x428] sm:$0xff] }
  0xdd   : > { %2345 = vmatpush2.bf16.msra.mxu1 %v2947_v18  ;;  %v2886_v16 = vcombine.high %v852_v11, %v856_v12  ;;  %v844_v17 = vld [vmem:[%s3691_s3 + $0x3c8] sm:$0xff]  ;;  %v2885_v22 = vcombine.low %v852_v11, %v856_v12 }
  0xde   : > { %2396 = vmatprep.subr.bf16.mxu1 %v2942_v20  ;;  %2306 = vmatmul.mubr.bf16.vlgmr.msra.gmra.mxu0 %v3775_v23  ;;  %v848_v18 = vld [vmem:[%s3691_s3 + $0x3e8] sm:$0xff] }
  0xdf   : > { %2356 = vmatpush1.bf16.msra.mxu0 %v2813_v27  ;;  %2387 = vmatprep.mubr.bf16.mxu0 %v3698_v8  ;;  %v972_v19 = vld [vmem:[%s3691_s3 + $0x7c8] sm:$0xff]  ;;  %v2878_v24 = vcombine.high %v844_v17, %v848_v18  ;;  %v2877_v31 = vcombine.low %v844_v17, %v848_v18 }
  0xe0   : > { %2347 = vmatmul.mubr.bf16.vlgmr.msra.gmra.mxu1 %v3781_v26  ;;  %2357 = vmatprep.subr.bf16.mxu0 %v2806_v29  ;;  %v976_v20 = vld [vmem:[%s3691_s3 + $0x7e8] sm:$0xff] }
  0xe1   : > { %2397 = vmatpush1.bf16.msra.mxu1 %v2941_v28  ;;  %2428 = vmatprep.mubr.bf16.mxu1 %v3702_v9  ;;  %v3006_v25 = vcombine.high %v972_v19, %v976_v20  ;;  %v836_v27 = vld [vmem:[%s3691_s3 + $0x388] sm:$0xff]  ;;  %v3005_v3 = vcombine.low %v972_v19, %v976_v20 }
  0xe2   : > { %2398 = vmatprep.subr.bf16.mxu1 %v2934_v30  ;;  %v840_v28 = vld [vmem:[%s3691_s3 + $0x3a8] sm:$0xff] }
  0xe3   : > { %2358 = vmatpush1.bf16.msra.mxu0 %v2805_v4  ;;  %v964_v29 = vld [vmem:[%s3691_s3 + $0x788] sm:$0xff]  ;;  %v2870_v32 = vcombine.high %v836_v27, %v840_v28  ;;  %v2869_v37 = vcombine.low %v836_v27, %v840_v28 }
  0xe4   : > { %2359 = vmatprep.subr.bf16.mxu0 %v2798_v35  ;;  %v968_v30 = vld [vmem:[%s3691_s3 + $0x7a8] sm:$0xff] }
  0xe5   : > { %2399 = vmatpush1.bf16.msra.mxu1 %v2933_v34  ;;  %v2998_v33 = vcombine.high %v964_v29, %v968_v30  ;;  %v828_v4 = vld [vmem:[%s3691_s3 + $0x348] sm:$0xff]  ;;  %v2997_v38 = vcombine.low %v964_v29, %v968_v30 }
  0xe6   : > { %2400 = vmatprep.subr.bf16.mxu1 %v2926_v36  ;;  %v832_v34 = vld [vmem:[%s3691_s3 + $0x368] sm:$0xff] }
  0xe7   : > { %2360 = vmatpush1.bf16.msra.mxu0 %v2797_v41  ;;  %v956_v35 = vld [vmem:[%s3691_s3 + $0x748] sm:$0xff]  ;;  %v2862_v39 = vcombine.high %v828_v4, %v832_v34  ;;  %v2861_v45 = vcombine.low %v828_v4, %v832_v34 }
  0xe8   : > { %2361 = vmatprep.subr.bf16.mxu0 %v2790_v43  ;;  %v960_v36 = vld [vmem:[%s3691_s3 + $0x768] sm:$0xff] }
  0xe9   : > { %2401 = vmatpush1.bf16.msra.mxu1 %v2925_v42  ;;  %v2990_v40 = vcombine.high %v956_v35, %v960_v36  ;;  %v820_v41 = vld [vmem:[%s3691_s3 + $0x308] sm:$0xff]  ;;  %v2989_v46 = vcombine.low %v956_v35, %v960_v36 }
  0xea   : > { %2402 = vmatprep.subr.bf16.mxu1 %v2918_v44  ;;  %v824_v42 = vld [vmem:[%s3691_s3 + $0x328] sm:$0xff] }
  0xeb   : > { %2362 = vmatpush1.bf16.msra.mxu0 %v2789_v49  ;;  %v948_v43 = vld [vmem:[%s3691_s3 + $0x708] sm:$0xff]  ;;  %v2854_v47 = vcombine.high %v820_v41, %v824_v42  ;;  %v2853_v53 = vcombine.low %v820_v41, %v824_v42 }
  0xec   : > { %2363 = vmatprep.subr.bf16.mxu0 %v2782_v51  ;;  %v952_v44 = vld [vmem:[%s3691_s3 + $0x728] sm:$0xff] }
  0xed   : > { %2403 = vmatpush1.bf16.msra.mxu1 %v2917_v50  ;;  %v2982_v48 = vcombine.high %v948_v43, %v952_v44  ;;  %v812_v49 = vld [vmem:[%s3691_s3 + $0x2c8] sm:$0xff]  ;;  %v2981_v54 = vcombine.low %v948_v43, %v952_v44 }
  0xee   : > { %2404 = vmatprep.subr.bf16.mxu1 %v2910_v52  ;;  %v816_v50 = vld [vmem:[%s3691_s3 + $0x2e8] sm:$0xff] }
  0xef   : > { %2364 = vmatpush1.bf16.msra.mxu0 %v2781_v57  ;;  %v940_v51 = vld [vmem:[%s3691_s3 + $0x6c8] sm:$0xff]  ;;  %v2846_v55 = vcombine.high %v812_v49, %v816_v50  ;;  %v2845_v61 = vcombine.low %v812_v49, %v816_v50 }
  0xf0   : > { %2365 = vmatprep.subr.bf16.mxu0 %v2774_v59  ;;  %v944_v52 = vld [vmem:[%s3691_s3 + $0x6e8] sm:$0xff] }
  0xf1   : > { %2405 = vmatpush1.bf16.msra.mxu1 %v2909_v58  ;;  %v2974_v56 = vcombine.high %v940_v51, %v944_v52  ;;  %v804_v57 = vld [vmem:[%s3691_s3 + $0x288] sm:$0xff]  ;;  %v2973_v62 = vcombine.low %v940_v51, %v944_v52 }
  0xf2   : > { %2406 = vmatprep.subr.bf16.mxu1 %v2902_v60  ;;  %v808_v58 = vld [vmem:[%s3691_s3 + $0x2a8] sm:$0xff] }
  0xf3   : > { %2366 = vmatpush1.bf16.msra.mxu0 %v2773_v1  ;;  %v932_v59 = vld [vmem:[%s3691_s3 + $0x688] sm:$0xff]  ;;  %v2838_v63 = vcombine.high %v804_v57, %v808_v58  ;;  %v2837_v7 = vcombine.low %v804_v57, %v808_v58 }
  0xf4   : > { %2367 = vmatprep.subr.bf16.mxu0 %v2766_v5  ;;  %v936_v60 = vld [vmem:[%s3691_s3 + $0x6a8] sm:$0xff] }
  0xf5   : > { %2407 = vmatpush1.bf16.msra.mxu1 %v2901_v2  ;;  %v2966_v0 = vcombine.high %v932_v59, %v936_v60  ;;  %v796_v1 = vld [vmem:[%s3691_s3 + $0x248] sm:$0xff]  ;;  %v2965_v10 = vcombine.low %v932_v59, %v936_v60 }
  0xf6   : > { %2408 = vmatprep.subr.bf16.mxu1 %v2894_v6  ;;  %v800_v2 = vld [vmem:[%s3691_s3 + $0x268] sm:$0xff] }
  0xf7   : > { %2368 = vmatpush1.bf16.msra.mxu0 %v2765_v13  ;;  %v924_v5 = vld [vmem:[%s3691_s3 + $0x648] sm:$0xff]  ;;  %v2830_v11 = vcombine.high %v796_v1, %v800_v2  ;;  %v2829_v17 = vcombine.low %v796_v1, %v800_v2 }
  0xf8   : > { %2369 = vmatprep.subr.bf16.mxu0 %v2758_v15  ;;  %v928_v6 = vld [vmem:[%s3691_s3 + $0x668] sm:$0xff] }
  0xf9   : > { %2409 = vmatpush1.bf16.msra.mxu1 %v2893_v14  ;;  %v2958_v12 = vcombine.high %v924_v5, %v928_v6  ;;  %v788_v13 = vld [vmem:[%s3691_s3 + $0x208] sm:$0xff]  ;;  %v2957_v18 = vcombine.low %v924_v5, %v928_v6 }
  0xfa   : > { %2410 = vmatprep.subr.bf16.mxu1 %v2886_v16  ;;  %v792_v14 = vld [vmem:[%s3691_s3 + $0x228] sm:$0xff] }
  0xfb   : > { %2370 = vmatpush1.bf16.msra.mxu0 %v2757_v21  ;;  %v916_v15 = vld [vmem:[%s3691_s3 + $0x608] sm:$0xff]  ;;  %v2822_v19 = vcombine.high %v788_v13, %v792_v14  ;;  %v781_v21 = vld [vmem:[%s3691_s3 + $0x1d0] sm:$0xff]  ;;  %v2821_v27 = vcombine.low %v788_v13, %v792_v14 }
  0xfc   : > { %2371 = vmatprep.subr.bf16.mxu0 %v2878_v24  ;;  %v920_v16 = vld [vmem:[%s3691_s3 + $0x628] sm:$0xff]  ;;  %v909_v24 = vld [vmem:[%s3691_s3 + $0x5d0] sm:$0xff] }
  0xfd   : > { %2411 = vmatpush1.bf16.msra.mxu1 %v2885_v22  ;;  %v2950_v20 = vcombine.high %v916_v15, %v920_v16  ;;  %v785_v22 = vld [vmem:[%s3691_s3 + $0x1f0] sm:$0xff]  ;;  %v2949_v28 = vcombine.low %v916_v15, %v920_v16 }
  0xfe   : > { %2412 = vmatprep.subr.bf16.mxu1 %v3006_v25  ;;  %v913_v25 = vld [vmem:[%s3691_s3 + $0x5f0] sm:$0xff]  ;;  %v2816_v29 = vcombine.high %v781_v21, %v785_v22  ;;  %v2815_v4 = vcombine.low %v781_v21, %v785_v22 }
  0xff   : > { %2372 = vmatpush2.bf16.msra.mxu0 %v2877_v31  ;;  %v2944_v30 = vcombine.high %v909_v24, %v913_v25  ;;  %v773_v31 = vld [vmem:[%s3691_s3 + $0x190] sm:$0xff]  ;;  %v2943_v34 = vcombine.low %v909_v24, %v913_v25 }
 0x100   : > { %2373 = vmatprep.subr.bf16.mxu0 %v2870_v32  ;;  %v901_v32 = vld [vmem:[%s3691_s3 + $0x590] sm:$0xff] }
 0x101   : > { %2413 = vmatpush2.bf16.msra.mxu1 %v3005_v3  ;;  %v777_v3 = vld [vmem:[%s3691_s3 + $0x1b0] sm:$0xff] }
 0x102   : > { %2414 = vmatprep.subr.bf16.mxu1 %v2998_v33  ;;  %v905_v33 = vld [vmem:[%s3691_s3 + $0x5b0] sm:$0xff]  ;;  %v2808_v35 = vcombine.high %v773_v31, %v777_v3  ;;  %v2807_v41 = vcombine.low %v773_v31, %v777_v3 }
 0x103   : > { %2374 = vmatpush2.bf16.msra.mxu0 %v2869_v37  ;;  %v2936_v36 = vcombine.high %v901_v32, %v905_v33  ;;  %v765_v37 = vld [vmem:[%s3691_s3 + $0x150] sm:$0xff]  ;;  %v2935_v42 = vcombine.low %v901_v32, %v905_v33 }
 0x104   : > { %2375 = vmatprep.subr.bf16.mxu0 %v2862_v39  ;;  %v893_v39 = vld [vmem:[%s3691_s3 + $0x550] sm:$0xff] }
 0x105   : > { %2415 = vmatpush2.bf16.msra.mxu1 %v2997_v38  ;;  %v769_v38 = vld [vmem:[%s3691_s3 + $0x170] sm:$0xff] }
 0x106   : > { %2416 = vmatprep.subr.bf16.mxu1 %v2990_v40  ;;  %v897_v40 = vld [vmem:[%s3691_s3 + $0x570] sm:$0xff]  ;;  %v2800_v43 = vcombine.high %v765_v37, %v769_v38  ;;  %v2799_v49 = vcombine.low %v765_v37, %v769_v38 }
 0x107   : > { %2376 = vmatpush2.bf16.msra.mxu0 %v2861_v45  ;;  %v2928_v44 = vcombine.high %v893_v39, %v897_v40  ;;  %v757_v45 = vld [vmem:[%s3691_s3 + $0x110] sm:$0xff]  ;;  %v2927_v50 = vcombine.low %v893_v39, %v897_v40 }
 0x108   : > { %2377 = vmatprep.subr.bf16.mxu0 %v2854_v47  ;;  %v885_v47 = vld [vmem:[%s3691_s3 + $0x510] sm:$0xff] }
 0x109   : > { %2417 = vmatpush2.bf16.msra.mxu1 %v2989_v46  ;;  %v761_v46 = vld [vmem:[%s3691_s3 + $0x130] sm:$0xff] }
 0x10a   : > { %2418 = vmatprep.subr.bf16.mxu1 %v2982_v48  ;;  %v889_v48 = vld [vmem:[%s3691_s3 + $0x530] sm:$0xff]  ;;  %v2792_v51 = vcombine.high %v757_v45, %v761_v46  ;;  %v2791_v57 = vcombine.low %v757_v45, %v761_v46 }
 0x10b   : > { %2378 = vmatpush2.bf16.msra.mxu0 %v2853_v53  ;;  %v2920_v52 = vcombine.high %v885_v47, %v889_v48  ;;  %v749_v53 = vld [vmem:[%s3691_s3 + $0xd0] sm:$0xff]  ;;  %v2919_v58 = vcombine.low %v885_v47, %v889_v48 }
 0x10c   : > { %2379 = vmatprep.subr.bf16.mxu0 %v2846_v55  ;;  %v877_v55 = vld [vmem:[%s3691_s3 + $0x4d0] sm:$0xff] }
 0x10d   : > { %2419 = vmatpush2.bf16.msra.mxu1 %v2981_v54  ;;  %v753_v54 = vld [vmem:[%s3691_s3 + $0xf0] sm:$0xff] }
 0x10e   : > { %2420 = vmatprep.subr.bf16.mxu1 %v2974_v56  ;;  %v881_v56 = vld [vmem:[%s3691_s3 + $0x4f0] sm:$0xff]  ;;  %v2784_v59 = vcombine.high %v749_v53, %v753_v54  ;;  %v2783_v1 = vcombine.low %v749_v53, %v753_v54 }
 0x10f   : > { %2380 = vmatpush2.bf16.msra.mxu0 %v2845_v61  ;;  %v2912_v60 = vcombine.high %v877_v55, %v881_v56  ;;  %v741_v61 = vld [vmem:[%s3691_s3 + $0x90] sm:$0xff]  ;;  %v2911_v2 = vcombine.low %v877_v55, %v881_v56 }
 0x110   : > { %2381 = vmatprep.subr.bf16.mxu0 %v2838_v63  ;;  %v869_v63 = vld [vmem:[%s3691_s3 + $0x490] sm:$0xff] }
 0x111   : > { %2421 = vmatpush2.bf16.msra.mxu1 %v2973_v62  ;;  %v745_v62 = vld [vmem:[%s3691_s3 + $0xb0] sm:$0xff] }
 0x112   : > { %2422 = vmatprep.subr.bf16.mxu1 %v2966_v0  ;;  %v873_v0 = vld [vmem:[%s3691_s3 + $0x4b0] sm:$0xff]  ;;  %v2776_v5 = vcombine.high %v741_v61, %v745_v62  ;;  %v2775_v13 = vcombine.low %v741_v61, %v745_v62 }
 0x113   : > { %2382 = vmatpush2.bf16.msra.mxu0 %v2837_v7  ;;  %v2904_v6 = vcombine.high %v869_v63, %v873_v0  ;;  %v733_v7 = vld [vmem:[%s3691_s3 + $0x50] sm:$0xff]  ;;  %v2903_v14 = vcombine.low %v869_v63, %v873_v0 }
 0x114   : > { %2383 = vmatprep.subr.bf16.mxu0 %v2830_v11  ;;  %v861_v11 = vld [vmem:[%s3691_s3 + $0x450] sm:$0xff] }
 0x115   : > { %2423 = vmatpush2.bf16.msra.mxu1 %v2965_v10  ;;  %v737_v10 = vld [vmem:[%s3691_s3 + $0x70] sm:$0xff] }
 0x116   : > { %2424 = vmatprep.subr.bf16.mxu1 %v2958_v12  ;;  %v865_v12 = vld [vmem:[%s3691_s3 + $0x470] sm:$0xff]  ;;  %v2768_v15 = vcombine.high %v733_v7, %v737_v10  ;;  %v2767_v21 = vcombine.low %v733_v7, %v737_v10 }
 0x117   : > { %2384 = vmatpush2.bf16.msra.mxu0 %v2829_v17  ;;  %v2896_v16 = vcombine.high %v861_v11, %v865_v12  ;;  %v725_v17 = vld [vmem:[%s3691_s3 + $0x10] sm:$0xff]  ;;  %v2895_v22 = vcombine.low %v861_v11, %v865_v12 }
 0x118   : > { %2385 = vmatprep.subr.bf16.mxu0 %v2822_v19  ;;  %v853_v19 = vld [vmem:[%s3691_s3 + $0x410] sm:$0xff] }
 0x119   : > { %2425 = vmatpush2.bf16.msra.mxu1 %v2957_v18  ;;  %v729_v18 = vld [vmem:[%s3691_s3 + $0x30] sm:$0xff] }
 0x11a   : > { %2426 = vmatprep.subr.bf16.mxu1 %v2950_v20  ;;  %v857_v20 = vld [vmem:[%s3691_s3 + $0x430] sm:$0xff]  ;;  %v2760_v24 = vcombine.high %v725_v17, %v729_v18  ;;  %v2759_v31 = vcombine.low %v725_v17, %v729_v18 }
 0x11b   : > { %2386 = vmatpush2.bf16.msra.mxu0 %v2821_v27  ;;  %v2888_v25 = vcombine.high %v853_v19, %v857_v20  ;;  %v845_v27 = vld [vmem:[%s3691_s3 + $0x3d0] sm:$0xff]  ;;  %v2887_v3 = vcombine.low %v853_v19, %v857_v20 }
 0x11c   : > { %2437 = vmatprep.subr.bf16.mxu0 %v2816_v29  ;;  %v973_v29 = vld [vmem:[%s3691_s3 + $0x7d0] sm:$0xff] }
 0x11d   : > { %2427 = vmatpush2.bf16.msra.mxu1 %v2949_v28  ;;  %v849_v28 = vld [vmem:[%s3691_s3 + $0x3f0] sm:$0xff] }
 0x11e   : > { %2478 = vmatprep.subr.bf16.mxu1 %v2944_v30  ;;  %2388 = vmatmul.mubr.bf16.vlgmr.msra.gmra.mxu0 %v3775_v23  ;;  %v977_v30 = vld [vmem:[%s3691_s3 + $0x7f0] sm:$0xff]  ;;  %v2880_v32 = vcombine.high %v845_v27, %v849_v28  ;;  %v2879_v37 = vcombine.low %v845_v27, %v849_v28 }
 0x11f   : > { %2438 = vmatpush1.bf16.msra.mxu0 %v2815_v4  ;;  %2469 = vmatprep.mubr.bf16.mxu0 %v3698_v8  ;;  %v3008_v33 = vcombine.high %v973_v29, %v977_v30  ;;  %v837_v4 = vld [vmem:[%s3691_s3 + $0x390] sm:$0xff]  ;;  %v3007_v38 = vcombine.low %v973_v29, %v977_v30 }
 0x120   : > { %2429 = vmatmul.mubr.bf16.vlgmr.msra.gmra.mxu1 %v3781_v26  ;;  %2439 = vmatprep.subr.bf16.mxu0 %v2808_v35  ;;  %v965_v35 = vld [vmem:[%s3691_s3 + $0x790] sm:$0xff] }
 0x121   : > { %2479 = vmatpush1.bf16.msra.mxu1 %v2943_v34  ;;  %2510 = vmatprep.mubr.bf16.mxu1 %v3702_v9  ;;  %v841_v34 = vld [vmem:[%s3691_s3 + $0x3b0] sm:$0xff] }
 0x122   : > { %2480 = vmatprep.subr.bf16.mxu1 %v2936_v36  ;;  %v969_v36 = vld [vmem:[%s3691_s3 + $0x7b0] sm:$0xff]  ;;  %v2872_v39 = vcombine.high %v837_v4, %v841_v34  ;;  %v2871_v45 = vcombine.low %v837_v4, %v841_v34 }
 0x123   : > { %2440 = vmatpush1.bf16.msra.mxu0 %v2807_v41  ;;  %v3000_v40 = vcombine.high %v965_v35, %v969_v36  ;;  %v829_v41 = vld [vmem:[%s3691_s3 + $0x350] sm:$0xff]  ;;  %v2999_v46 = vcombine.low %v965_v35, %v969_v36 }
 0x124   : > { %2441 = vmatprep.subr.bf16.mxu0 %v2800_v43  ;;  %v957_v43 = vld [vmem:[%s3691_s3 + $0x750] sm:$0xff] }
 0x125   : > { %2481 = vmatpush1.bf16.msra.mxu1 %v2935_v42  ;;  %v833_v42 = vld [vmem:[%s3691_s3 + $0x370] sm:$0xff] }
 0x126   : > { %2482 = vmatprep.subr.bf16.mxu1 %v2928_v44  ;;  %v961_v44 = vld [vmem:[%s3691_s3 + $0x770] sm:$0xff]  ;;  %v2864_v47 = vcombine.high %v829_v41, %v833_v42  ;;  %v2863_v53 = vcombine.low %v829_v41, %v833_v42 }
 0x127   : > { %2442 = vmatpush1.bf16.msra.mxu0 %v2799_v49  ;;  %v2992_v48 = vcombine.high %v957_v43, %v961_v44  ;;  %v821_v49 = vld [vmem:[%s3691_s3 + $0x310] sm:$0xff]  ;;  %v2991_v54 = vcombine.low %v957_v43, %v961_v44 }
 0x128   : > { %2443 = vmatprep.subr.bf16.mxu0 %v2792_v51  ;;  %v949_v51 = vld [vmem:[%s3691_s3 + $0x710] sm:$0xff] }
 0x129   : > { %2483 = vmatpush1.bf16.msra.mxu1 %v2927_v50  ;;  %v825_v50 = vld [vmem:[%s3691_s3 + $0x330] sm:$0xff] }
 0x12a   : > { %2484 = vmatprep.subr.bf16.mxu1 %v2920_v52  ;;  %v953_v52 = vld [vmem:[%s3691_s3 + $0x730] sm:$0xff]  ;;  %v2856_v55 = vcombine.high %v821_v49, %v825_v50  ;;  %v2855_v61 = vcombine.low %v821_v49, %v825_v50 }
 0x12b   : > { %2444 = vmatpush1.bf16.msra.mxu0 %v2791_v57  ;;  %v2984_v56 = vcombine.high %v949_v51, %v953_v52  ;;  %v813_v57 = vld [vmem:[%s3691_s3 + $0x2d0] sm:$0xff]  ;;  %v2983_v62 = vcombine.low %v949_v51, %v953_v52 }
 0x12c   : > { %2445 = vmatprep.subr.bf16.mxu0 %v2784_v59  ;;  %v941_v59 = vld [vmem:[%s3691_s3 + $0x6d0] sm:$0xff] }
 0x12d   : > { %2485 = vmatpush1.bf16.msra.mxu1 %v2919_v58  ;;  %v817_v58 = vld [vmem:[%s3691_s3 + $0x2f0] sm:$0xff] }
 0x12e   : > { %2486 = vmatprep.subr.bf16.mxu1 %v2912_v60  ;;  %v945_v60 = vld [vmem:[%s3691_s3 + $0x6f0] sm:$0xff]  ;;  %v2848_v63 = vcombine.high %v813_v57, %v817_v58  ;;  %v2847_v7 = vcombine.low %v813_v57, %v817_v58 }
 0x12f   : > { %2446 = vmatpush1.bf16.msra.mxu0 %v2783_v1  ;;  %v2976_v0 = vcombine.high %v941_v59, %v945_v60  ;;  %v805_v1 = vld [vmem:[%s3691_s3 + $0x290] sm:$0xff]  ;;  %v2975_v10 = vcombine.low %v941_v59, %v945_v60 }
 0x130   : > { %2447 = vmatprep.subr.bf16.mxu0 %v2776_v5  ;;  %v933_v5 = vld [vmem:[%s3691_s3 + $0x690] sm:$0xff] }
 0x131   : > { %2487 = vmatpush1.bf16.msra.mxu1 %v2911_v2  ;;  %v809_v2 = vld [vmem:[%s3691_s3 + $0x2b0] sm:$0xff] }
 0x132   : > { %2488 = vmatprep.subr.bf16.mxu1 %v2904_v6  ;;  %v937_v6 = vld [vmem:[%s3691_s3 + $0x6b0] sm:$0xff]  ;;  %v2840_v11 = vcombine.high %v805_v1, %v809_v2  ;;  %v2839_v17 = vcombine.low %v805_v1, %v809_v2 }
 0x133   : > { %2448 = vmatpush1.bf16.msra.mxu0 %v2775_v13  ;;  %v2968_v12 = vcombine.high %v933_v5, %v937_v6  ;;  %v797_v13 = vld [vmem:[%s3691_s3 + $0x250] sm:$0xff]  ;;  %v2967_v18 = vcombine.low %v933_v5, %v937_v6  ;;  %v742_v5 = vld [vmem:[%s3691_s3 + $0x98] sm:$0xff] }
 0x134   : > { %2449 = vmatprep.subr.bf16.mxu0 %v2768_v15  ;;  %v925_v15 = vld [vmem:[%s3691_s3 + $0x650] sm:$0xff]  ;;  %v746_v6 = vld [vmem:[%s3691_s3 + $0xb8] sm:$0xff] }
 0x135   : > { %2489 = vmatpush1.bf16.msra.mxu1 %v2903_v14  ;;  %v801_v14 = vld [vmem:[%s3691_s3 + $0x270] sm:$0xff] }
 0x136   : > { %2490 = vmatprep.subr.bf16.mxu1 %v2896_v16  ;;  %v929_v16 = vld [vmem:[%s3691_s3 + $0x670] sm:$0xff]  ;;  %v2832_v19 = vcombine.high %v797_v13, %v801_v14  ;;  %v2831_v27 = vcombine.low %v797_v13, %v801_v14  ;;  %v2778_v13 = vcombine.high %v742_v5, %v746_v6 }
 0x137   : > { %2450 = vmatpush1.bf16.msra.mxu0 %v2767_v21  ;;  %v2960_v20 = vcombine.high %v925_v15, %v929_v16  ;;  %v789_v21 = vld [vmem:[%s3691_s3 + $0x210] sm:$0xff]  ;;  %v2959_v28 = vcombine.low %v925_v15, %v929_v16  ;;  %v734_v15 = vld [vmem:[%s3691_s3 + $0x58] sm:$0xff] }
 0x138   : > { %2451 = vmatprep.subr.bf16.mxu0 %v2760_v24  ;;  %v917_v24 = vld [vmem:[%s3691_s3 + $0x610] sm:$0xff]  ;;  %v738_v16 = vld [vmem:[%s3691_s3 + $0x78] sm:$0xff] }
 0x139   : > { %2491 = vmatpush1.bf16.msra.mxu1 %v2895_v22  ;;  %v793_v22 = vld [vmem:[%s3691_s3 + $0x230] sm:$0xff] }
 0x13a   : > { %2492 = vmatprep.subr.bf16.mxu1 %v2888_v25  ;;  %v921_v25 = vld [vmem:[%s3691_s3 + $0x630] sm:$0xff]  ;;  %v2824_v29 = vcombine.high %v789_v21, %v793_v22  ;;  %v2823_v4 = vcombine.low %v789_v21, %v793_v22  ;;  %v2770_v21 = vcombine.high %v734_v15, %v738_v16 }
 0x13b   : > { %2452 = vmatpush1.bf16.msra.mxu0 %v2759_v31  ;;  %v2952_v30 = vcombine.high %v917_v24, %v921_v25  ;;  %v782_v31 = vld [vmem:[%s3691_s3 + $0x1d8] sm:$0xff]  ;;  %v2951_v34 = vcombine.low %v917_v24, %v921_v25 }
 0x13c   : > { %2453 = vmatprep.subr.bf16.mxu0 %v2880_v32  ;;  %v910_v32 = vld [vmem:[%s3691_s3 + $0x5d8] sm:$0xff] }
 0x13d   : > { %2493 = vmatpush1.bf16.msra.mxu1 %v2887_v3  ;;  %v786_v3 = vld [vmem:[%s3691_s3 + $0x1f8] sm:$0xff] }
 0x13e   : > { %2494 = vmatprep.subr.bf16.mxu1 %v3008_v33  ;;  %v914_v33 = vld [vmem:[%s3691_s3 + $0x5f8] sm:$0xff]  ;;  %v2818_v35 = vcombine.high %v782_v31, %v786_v3  ;;  %v2817_v41 = vcombine.low %v782_v31, %v786_v3 }
 0x13f   : > { %2454 = vmatpush2.bf16.msra.mxu0 %v2879_v37  ;;  %v2946_v36 = vcombine.high %v910_v32, %v914_v33  ;;  %v774_v37 = vld [vmem:[%s3691_s3 + $0x198] sm:$0xff]  ;;  %v2945_v42 = vcombine.low %v910_v32, %v914_v33 }
 0x140   : > { %2455 = vmatprep.subr.bf16.mxu0 %v2872_v39  ;;  %v902_v39 = vld [vmem:[%s3691_s3 + $0x598] sm:$0xff] }
 0x141   : > { %2495 = vmatpush2.bf16.msra.mxu1 %v3007_v38  ;;  %v778_v38 = vld [vmem:[%s3691_s3 + $0x1b8] sm:$0xff] }
 0x142   : > { %2496 = vmatprep.subr.bf16.mxu1 %v3000_v40  ;;  %v906_v40 = vld [vmem:[%s3691_s3 + $0x5b8] sm:$0xff]  ;;  %v2810_v43 = vcombine.high %v774_v37, %v778_v38  ;;  %v2809_v49 = vcombine.low %v774_v37, %v778_v38 }
 0x143   : > { %2456 = vmatpush2.bf16.msra.mxu0 %v2871_v45  ;;  %v2938_v44 = vcombine.high %v902_v39, %v906_v40  ;;  %v766_v45 = vld [vmem:[%s3691_s3 + $0x158] sm:$0xff]  ;;  %v2937_v50 = vcombine.low %v902_v39, %v906_v40 }
 0x144   : > { %2457 = vmatprep.subr.bf16.mxu0 %v2864_v47  ;;  %v894_v47 = vld [vmem:[%s3691_s3 + $0x558] sm:$0xff] }
 0x145   : > { %2497 = vmatpush2.bf16.msra.mxu1 %v2999_v46  ;;  %v770_v46 = vld [vmem:[%s3691_s3 + $0x178] sm:$0xff] }
 0x146   : > { %2498 = vmatprep.subr.bf16.mxu1 %v2992_v48  ;;  %v898_v48 = vld [vmem:[%s3691_s3 + $0x578] sm:$0xff]  ;;  %v2802_v51 = vcombine.high %v766_v45, %v770_v46  ;;  %v2801_v57 = vcombine.low %v766_v45, %v770_v46 }
 0x147   : > { %2458 = vmatpush2.bf16.msra.mxu0 %v2863_v53  ;;  %v2930_v52 = vcombine.high %v894_v47, %v898_v48  ;;  %v758_v53 = vld [vmem:[%s3691_s3 + $0x118] sm:$0xff]  ;;  %v2929_v58 = vcombine.low %v894_v47, %v898_v48 }
 0x148   : > { %2459 = vmatprep.subr.bf16.mxu0 %v2856_v55  ;;  %v886_v55 = vld [vmem:[%s3691_s3 + $0x518] sm:$0xff] }
 0x149   : > { %2499 = vmatpush2.bf16.msra.mxu1 %v2991_v54  ;;  %v762_v54 = vld [vmem:[%s3691_s3 + $0x138] sm:$0xff] }
 0x14a   : > { %2500 = vmatprep.subr.bf16.mxu1 %v2984_v56  ;;  %v890_v56 = vld [vmem:[%s3691_s3 + $0x538] sm:$0xff]  ;;  %v2794_v59 = vcombine.high %v758_v53, %v762_v54 }
 0x14b   : > { %2460 = vmatpush2.bf16.msra.mxu0 %v2855_v61  ;;  %v2922_v60 = vcombine.high %v886_v55, %v890_v56  ;;  %v750_v61 = vld [vmem:[%s3691_s3 + $0xd8] sm:$0xff] }
 0x14c   : > { %2461 = vmatprep.subr.bf16.mxu0 %v2848_v63  ;;  %v878_v63 = vld [vmem:[%s3691_s3 + $0x4d8] sm:$0xff] }
 0x14d   : > { %2501 = vmatpush2.bf16.msra.mxu1 %v2983_v62  ;;  %v754_v62 = vld [vmem:[%s3691_s3 + $0xf8] sm:$0xff] }
 0x14e   : > { %2502 = vmatprep.subr.bf16.mxu1 %v2976_v0  ;;  %v2793_v0 = vcombine.low %v758_v53, %v762_v54  ;;  %v2786_v1 = vcombine.high %v750_v61, %v754_v62  ;;  %v726_v24 = vld [vmem:[%s3691_s3 + $0x18] sm:$0xff] }
 0x14f   : > { %2462 = vmatpush2.bf16.msra.mxu0 %v2847_v7  ;;  %v870_v7 = vld [vmem:[%s3691_s3 + $0x498] sm:$0xff] }
 0x150   : > { %2463 = vmatprep.subr.bf16.mxu0 %v2840_v11  ;;  %v2785_v11 = vcombine.low %v750_v61, %v754_v62  ;;  %v730_v25 = vld [vmem:[%s3691_s3 + $0x38] sm:$0xff] }
 0x151   : > { %2503 = vmatpush2.bf16.msra.mxu1 %v2975_v10  ;;  %v874_v10 = vld [vmem:[%s3691_s3 + $0x4b8] sm:$0xff]  ;;  %v2762_v31 = vcombine.high %v726_v24, %v730_v25 }
 0x152   : > { %2504 = vmatprep.subr.bf16.mxu1 %v2968_v12  ;;  %v2906_v14 = vcombine.high %v870_v7, %v874_v10  ;;  %v846_v32 = vld [vmem:[%s3691_s3 + $0x3d8] sm:$0xff] }
 0x153   : > { %2464 = vmatpush2.bf16.msra.mxu0 %v2839_v17  ;;  %v862_v17 = vld [vmem:[%s3691_s3 + $0x458] sm:$0xff] }
 0x154   : > { %2465 = vmatprep.subr.bf16.mxu0 %v2832_v19  ;;  %v2777_v19 = vcombine.low %v742_v5, %v746_v6  ;;  %v850_v33 = vld [vmem:[%s3691_s3 + $0x3f8] sm:$0xff] }
 0x155   : > { %2505 = vmatpush2.bf16.msra.mxu1 %v2967_v18  ;;  %v866_v18 = vld [vmem:[%s3691_s3 + $0x478] sm:$0xff]  ;;  %v2882_v37 = vcombine.high %v846_v32, %v850_v33 }
 0x156   : > { %2506 = vmatprep.subr.bf16.mxu1 %v2960_v20  ;;  %v2905_v20 = vcombine.low %v870_v7, %v874_v10  ;;  %v2898_v22 = vcombine.high %v862_v17, %v866_v18  ;;  %v838_v39 = vld [vmem:[%s3691_s3 + $0x398] sm:$0xff] }
 0x157   : > { %2466 = vmatpush2.bf16.msra.mxu0 %v2831_v27  ;;  %v854_v27 = vld [vmem:[%s3691_s3 + $0x418] sm:$0xff] }
 0x158   : > { %2467 = vmatprep.subr.bf16.mxu0 %v2824_v29  ;;  %v2769_v29 = vcombine.low %v734_v15, %v738_v16  ;;  %v842_v40 = vld [vmem:[%s3691_s3 + $0x3b8] sm:$0xff] }
 0x159   : > { %2507 = vmatpush2.bf16.msra.mxu1 %v2959_v28  ;;  %v858_v28 = vld [vmem:[%s3691_s3 + $0x438] sm:$0xff]  ;;  %v2874_v45 = vcombine.high %v838_v39, %v842_v40 }
 0x15a   : > { %2508 = vmatprep.subr.bf16.mxu1 %v2952_v30  ;;  %v2897_v30 = vcombine.low %v862_v17, %v866_v18  ;;  %v2890_v3 = vcombine.high %v854_v27, %v858_v28  ;;  %v830_v47 = vld [vmem:[%s3691_s3 + $0x358] sm:$0xff] }
 0x15b   : > { %2468 = vmatpush2.bf16.msra.mxu0 %v2823_v4  ;;  %v974_v4 = vld [vmem:[%s3691_s3 + $0x7d8] sm:$0xff] }
 0x15c   : > { %2519 = vmatprep.subr.bf16.mxu0 %v2818_v35  ;;  %v2761_v35 = vcombine.low %v726_v24, %v730_v25  ;;  %v834_v48 = vld [vmem:[%s3691_s3 + $0x378] sm:$0xff] }
 0x15d   : > { %2509 = vmatpush2.bf16.msra.mxu1 %v2951_v34  ;;  %v978_v34 = vld [vmem:[%s3691_s3 + $0x7f8] sm:$0xff]  ;;  %v2866_v53 = vcombine.high %v830_v47, %v834_v48 }
 0x15e   : > { %2560 = vmatprep.subr.bf16.mxu1 %v2946_v36  ;;  %2470 = vmatmul.mubr.bf16.vlgmr.msra.gmra.mxu0 %v3775_v23  ;;  %v2889_v36 = vcombine.low %v854_v27, %v858_v28  ;;  %v3010_v38 = vcombine.high %v974_v4, %v978_v34  ;;  %v806_v7 = vld [vmem:[%s3691_s3 + $0x298] sm:$0xff] }
 0x15f   : > { %2520 = vmatpush1.bf16.msra.mxu0 %v2817_v41  ;;  %2551 = vmatprep.mubr.bf16.mxu0 %v3698_v8  ;;  %v882_v8 = vld [vmem:[%s3691_s3 + $0x4f8] sm:$0xff] }
 0x160   : > { %2511 = vmatmul.mubr.bf16.vlgmr.msra.gmra.mxu1 %v3781_v26  ;;  %2521 = vmatprep.subr.bf16.mxu0 %v2810_v43  ;;  %v2914_v2 = vcombine.high %v878_v63, %v882_v8  ;;  %v2913_v12 = vcombine.low %v878_v63, %v882_v8  ;;  %v966_v41 = vld [vmem:[%s3691_s3 + $0x798] sm:$0xff]  ;;  %v2881_v43 = vcombine.low %v846_v32, %v850_v33 }
 0x161   : > { %2561 = vmatpush1.bf16.msra.mxu1 %v2945_v42  ;;  %2592 = vmatprep.mubr.bf16.mxu1 %v3702_v9  ;;  %v2921_v9 = vcombine.low %v886_v55, %v890_v56  ;;  %v970_v42 = vld [vmem:[%s3691_s3 + $0x7b8] sm:$0xff] }
 0x162   : > { %2562 = vmatprep.subr.bf16.mxu1 %v2938_v44  ;;  %v3009_v44 = vcombine.low %v974_v4, %v978_v34  ;;  %v3002_v46 = vcombine.high %v966_v41, %v970_v42  ;;  %v822_v55 = vld [vmem:[%s3691_s3 + $0x318] sm:$0xff] }
 0x163   : > { %2522 = vmatpush1.bf16.msra.mxu0 %v2809_v49  ;;  %v958_v49 = vld [vmem:[%s3691_s3 + $0x758] sm:$0xff] }
 0x164   : > { %2523 = vmatprep.subr.bf16.mxu0 %v2802_v51  ;;  %v2873_v51 = vcombine.low %v838_v39, %v842_v40  ;;  %v826_v56 = vld [vmem:[%s3691_s3 + $0x338] sm:$0xff] }
 0x165   : > { %2563 = vmatpush1.bf16.msra.mxu1 %v2937_v50  ;;  %v962_v50 = vld [vmem:[%s3691_s3 + $0x778] sm:$0xff]  ;;  %v2858_v61 = vcombine.high %v822_v55, %v826_v56 }
 0x166   : > { %2564 = vmatprep.subr.bf16.mxu1 %v2930_v52  ;;  %v3001_v52 = vcombine.low %v966_v41, %v970_v42  ;;  %v2994_v54 = vcombine.high %v958_v49, %v962_v50  ;;  %v814_v63 = vld [vmem:[%s3691_s3 + $0x2d8] sm:$0xff] }
 0x167   : > { %2524 = vmatpush1.bf16.msra.mxu0 %v2801_v57  ;;  %v950_v57 = vld [vmem:[%s3691_s3 + $0x718] sm:$0xff] }
 0x168   : > { %2525 = vmatprep.subr.bf16.mxu0 %v2794_v59  ;;  %v2865_v59 = vcombine.low %v830_v47, %v834_v48  ;;  %v818_v8 = vld [vmem:[%s3691_s3 + $0x2f8] sm:$0xff] }
 0x169   : > { %2565 = vmatpush1.bf16.msra.mxu1 %v2929_v58  ;;  %v954_v58 = vld [vmem:[%s3691_s3 + $0x738] sm:$0xff]  ;;  %v2850_v5 = vcombine.high %v814_v63, %v818_v8 }
 0x16a   : > { %2566 = vmatprep.subr.bf16.mxu1 %v2922_v60  ;;  %v2993_v60 = vcombine.low %v958_v49, %v962_v50  ;;  %v2986_v62 = vcombine.high %v950_v57, %v954_v58  ;;  %v810_v10 = vld [vmem:[%s3691_s3 + $0x2b8] sm:$0xff] }
 0x16b   : > { %2526 = vmatpush1.bf16.msra.mxu0 %v2793_v0  ;;  %v942_v0 = vld [vmem:[%s3691_s3 + $0x6d8] sm:$0xff]  ;;  %v2842_v15 = vcombine.high %v806_v7, %v810_v10 }
 0x16c   : > { %2527 = vmatprep.subr.bf16.mxu0 %v2786_v1  ;;  %v2857_v1 = vcombine.low %v822_v55, %v826_v56  ;;  %v798_v17 = vld [vmem:[%s3691_s3 + $0x258] sm:$0xff] }
 0x16d   : > { %2567 = vmatpush1.bf16.msra.mxu1 %v2921_v9  ;;  %v946_v9 = vld [vmem:[%s3691_s3 + $0x6f8] sm:$0xff] }
 0x16e   : > { %2568 = vmatprep.subr.bf16.mxu1 %v2914_v2  ;;  %v2985_v2 = vcombine.low %v950_v57, %v954_v58  ;;  %v2978_v6 = vcombine.high %v942_v0, %v946_v9  ;;  %v802_v18 = vld [vmem:[%s3691_s3 + $0x278] sm:$0xff] }
 0x16f   : > { %2528 = vmatpush1.bf16.msra.mxu0 %v2785_v11  ;;  %v934_v11 = vld [vmem:[%s3691_s3 + $0x698] sm:$0xff]  ;;  %v2834_v24 = vcombine.high %v798_v17, %v802_v18 }
 0x170   : > { %2529 = vmatprep.subr.bf16.mxu0 %v2778_v13  ;;  %v2849_v13 = vcombine.low %v814_v63, %v818_v8  ;;  %v790_v27 = vld [vmem:[%s3691_s3 + $0x218] sm:$0xff] }
 0x171   : > { %2569 = vmatpush1.bf16.msra.mxu1 %v2913_v12  ;;  %v938_v12 = vld [vmem:[%s3691_s3 + $0x6b8] sm:$0xff] }
 0x172   : > { %2570 = vmatprep.subr.bf16.mxu1 %v2906_v14  ;;  %v2977_v14 = vcombine.low %v942_v0, %v946_v9  ;;  %v2970_v16 = vcombine.high %v934_v11, %v938_v12  ;;  %v794_v28 = vld [vmem:[%s3691_s3 + $0x238] sm:$0xff] }
 0x173   : > { %2530 = vmatpush1.bf16.msra.mxu0 %v2777_v19  ;;  %v926_v19 = vld [vmem:[%s3691_s3 + $0x658] sm:$0xff]  ;;  %v2826_v32 = vcombine.high %v790_v27, %v794_v28  ;;  %v2825_v4 = vcombine.low %v790_v27, %v794_v28 }
 0x174   : > { %2531 = vmatprep.subr.bf16.mxu0 %v2770_v21  ;;  %v2841_v21 = vcombine.low %v806_v7, %v810_v10 }
 0x175   : > { %2571 = vmatpush1.bf16.msra.mxu1 %v2905_v20  ;;  %v930_v20 = vld [vmem:[%s3691_s3 + $0x678] sm:$0xff] }
 0x176   : > { %2572 = vmatprep.subr.bf16.mxu1 %v2898_v22  ;;  %v2969_v22 = vcombine.low %v934_v11, %v938_v12  ;;  %v2962_v25 = vcombine.high %v926_v19, %v930_v20 }
 0x177   : > { %2532 = vmatpush1.bf16.msra.mxu0 %v2769_v29  ;;  %v918_v29 = vld [vmem:[%s3691_s3 + $0x618] sm:$0xff] }
 0x178   : > { %2533 = vmatprep.subr.bf16.mxu0 %v2762_v31  ;;  %v2833_v31 = vcombine.low %v798_v17, %v802_v18 }
 0x179   : > { %2573 = vmatpush1.bf16.msra.mxu1 %v2897_v30  ;;  %v922_v30 = vld [vmem:[%s3691_s3 + $0x638] sm:$0xff] }
 0x17a   : > { %2574 = vmatprep.subr.bf16.mxu1 %v2890_v3  ;;  %v2961_v3 = vcombine.low %v926_v19, %v930_v20  ;;  %v2954_v33 = vcombine.high %v918_v29, %v922_v30  ;;  %v2953_v34 = vcombine.low %v918_v29, %v922_v30 }
 0x17b   : > { %2534 = vmatpush1.bf16.msra.mxu0 %v2761_v35 }
 0x17c   : > { %2535 = vmatprep.subr.bf16.mxu0 %v2882_v37 }
 0x17d   : > { %2575 = vmatpush1.bf16.msra.mxu1 %v2889_v36 }
 0x17e   : > { %2576 = vmatprep.subr.bf16.mxu1 %v3010_v38 }
 0x17f   : > { %2536 = vmatpush2.bf16.msra.mxu0 %v2881_v43 }
 0x180   : > { %2537 = vmatprep.subr.bf16.mxu0 %v2874_v45 }
 0x181   : > { %2577 = vmatpush2.bf16.msra.mxu1 %v3009_v44 }
 0x182   : > { %2578 = vmatprep.subr.bf16.mxu1 %v3002_v46 }
 0x183   : > { %2538 = vmatpush2.bf16.msra.mxu0 %v2873_v51 }
 0x184   : > { %2539 = vmatprep.subr.bf16.mxu0 %v2866_v53 }
 0x185   : > { %2579 = vmatpush2.bf16.msra.mxu1 %v3001_v52 }
 0x186   : > { %2580 = vmatprep.subr.bf16.mxu1 %v2994_v54 }
 0x187   : > { %2540 = vmatpush2.bf16.msra.mxu0 %v2865_v59 }
 0x188   : > { %2541 = vmatprep.subr.bf16.mxu0 %v2858_v61 }
 0x189   : > { %2581 = vmatpush2.bf16.msra.mxu1 %v2993_v60 }
 0x18a   : > { %2582 = vmatprep.subr.bf16.mxu1 %v2986_v62 }
 0x18b   : > { %2542 = vmatpush2.bf16.msra.mxu0 %v2857_v1 }
 0x18c   : > { %2543 = vmatprep.subr.bf16.mxu0 %v2850_v5 }
 0x18d   : > { %2583 = vmatpush2.bf16.msra.mxu1 %v2985_v2 }
 0x18e   : > { %2584 = vmatprep.subr.bf16.mxu1 %v2978_v6 }
 0x18f   : > { %2544 = vmatpush2.bf16.msra.mxu0 %v2849_v13 }
 0x190   : > { %2545 = vmatprep.subr.bf16.mxu0 %v2842_v15 }
 0x191   : > { %2585 = vmatpush2.bf16.msra.mxu1 %v2977_v14 }
 0x192   : > { %2586 = vmatprep.subr.bf16.mxu1 %v2970_v16 }
 0x193   : > { %2546 = vmatpush2.bf16.msra.mxu0 %v2841_v21 }
 0x194   : > { %2547 = vmatprep.subr.bf16.mxu0 %v2834_v24 }
 0x195   : > { %2587 = vmatpush2.bf16.msra.mxu1 %v2969_v22 }
 0x196   : > { %2588 = vmatprep.subr.bf16.mxu1 %v2962_v25 }
 0x197   : > { %2548 = vmatpush2.bf16.msra.mxu0 %v2833_v31 }
 0x198   : > { %2549 = vmatprep.subr.bf16.mxu0 %v2826_v32 }
 0x199   : > { %2589 = vmatpush2.bf16.msra.mxu1 %v2961_v3 }
 0x19a   : > { %2590 = vmatprep.subr.bf16.mxu1 %v2954_v33 }
 0x19b   : > { %2550 = vmatpush2.bf16.msra.mxu0 %v2825_v4 }
 0x19d   : > { %2591 = vmatpush2.bf16.msra.mxu1 %v2953_v34 }
 0x19e   : > { %v2307_v35 = vpop.f32.mrf.mxu0  ;;  %2552 = vmatmul.mubr.bf16.vlgmr.msra.gmra.mxu0 %v3775_v23 }
 0x1a0   : > { %v2348_v36 = vpop.f32.mrf.mxu1  ;;  %2593 = vmatmul.mubr.bf16.vlgmr.msra.gmra.mxu1 %v3781_v26  ;;  %v2309_v38 = vpop.f32.mrf.mxu0 }
 0x1a1   : > { %v2349_v37 = vadd.f32 %v2348_v36, %v2307_v35 }
 0x1a2   : > { %v2350_v39 = vpop.f32.mrf.mxu1  ;;  %v2311_v41 = vpop.f32.mrf.mxu0 }
 0x1a3   : > { %v2351_v40 = vadd.f32 %v2350_v39, %v2309_v38 }
 0x1a4   : > { %v2352_v42 = vpop.f32.mrf.mxu1  ;;  %v2312_v44 = vpop.f32.mrf.mxu0 }
 0x1a5   : > { %v3018_v43 = vpack.c.bf16 %v2351_v40, %v2349_v37 }
 0x1a6   : > { %v2353_v23 = vpop.f32.mrf.mxu1 }
 0x1a7   : > { %2633 = vst [vmem:[%s3985_s8] sm:$0xff] %v3018_v43 }
 0x1de   : > { %v2389_v45 = vpop.f32.mrf.mxu0 }
 0x1e0   : > { %v2430_v26 = vpop.f32.mrf.mxu1  ;;  %v2391_v47 = vpop.f32.mrf.mxu0 }
 0x1e1   : > { %v2431_v46 = vadd.f32 %v2430_v26, %v2389_v45 }
 0x1e2   : > { %v2432_v48 = vpop.f32.mrf.mxu1  ;;  %v2393_v50 = vpop.f32.mrf.mxu0 }
 0x1e3   : > { %v2433_v49 = vadd.f32 %v2432_v48, %v2391_v47 }
 0x1e4   : > { %v2434_v51 = vpop.f32.mrf.mxu1  ;;  %v2394_v53 = vpop.f32.mrf.mxu0 }
 0x1e5   : > { %v3019_v52 = vpack.c.bf16 %v2433_v49, %v2431_v46 }
 0x1e6   : > { %v2435_v54 = vpop.f32.mrf.mxu1 }
 0x1e7   : > { %2634 = vst [vmem:[%s3985_s8 + $0x8] sm:$0xff] %v3019_v52 }
 0x21e   : > { %v2471_v55 = vpop.f32.mrf.mxu0 }
 0x220   : > { %v2512_v56 = vpop.f32.mrf.mxu1  ;;  %v2473_v58 = vpop.f32.mrf.mxu0 }
 0x221   : > { %v2513_v57 = vadd.f32 %v2512_v56, %v2471_v55 }
 0x222   : > { %v2514_v59 = vpop.f32.mrf.mxu1  ;;  %v2475_v61 = vpop.f32.mrf.mxu0 }
 0x223   : > { %v2515_v60 = vadd.f32 %v2514_v59, %v2473_v58 }
 0x224   : > { %v2516_v62 = vpop.f32.mrf.mxu1  ;;  %v2476_v8 = vpop.f32.mrf.mxu0 }
 0x225   : > { %v3020_v63 = vpack.c.bf16 %v2515_v60, %v2513_v57 }
 0x226   : > { %v2517_v0 = vpop.f32.mrf.mxu1 }
 0x227   : > { %2635 = vst [vmem:[%s3985_s8 + $0x10] sm:$0xff] %v3020_v63 }
 0x25e   : > { %v2553_v9 = vpop.f32.mrf.mxu0 }
 0x260   : > { %v2594_v1 = vpop.f32.mrf.mxu1  ;;  %v2555_v2 = vpop.f32.mrf.mxu0 }
 0x261   : > { %v2595_v6 = vadd.f32 %v2594_v1, %v2553_v9 }
 0x262   : > { %v2596_v5 = vpop.f32.mrf.mxu1  ;;  %v2557_v10 = vpop.f32.mrf.mxu0 }
 0x263   : > { %v2597_v7 = vadd.f32 %v2596_v5, %v2555_v2 }
 0x264   : > { %v2598_v11 = vpop.f32.mrf.mxu1  ;;  %v2558_v13 = vpop.f32.mrf.mxu0 }
 0x265   : > { %v3021_v12 = vpack.c.bf16 %v2597_v7, %v2595_v6 }
 0x266   : > { %v2599_v14 = vpop.f32.mrf.mxu1 }
 0x267   : > { %2636 = vst [vmem:[%s3985_s8 + $0x18] sm:$0xff] %v3021_v12 }
 0x268 PF: > { %s12_s13 = sadd.s32 1, %s3101_s13   ;;  %s4009_s9 = smov %s3089_s10 }
 0x269   : > { %p9_p10 = scmp.ge.s32.totalorder %s12_s13, 6   ;;  %s4010_s10 = smov %s3154_s17 }
 0x26a   : > { %s4011_s11 = smov %s3097_s12  ;;  %s4012_s12 = smov %s4014_s14 }
 0x26b   :  { %11 = sbr.rel (!%p9_p10) target bundleno = 3 (0x3), region = 89 }

// kernel: net_decoder_forward.6
= control target key start
LH: loop header
LB: loop body
LE: loop exit
PB: predicated region body
PF: predicated region fallthrough
CT: control target
= control target key end

     0   :  { %s1997_s9 = smov 0   ;;  %s1999_s10 = smov 0   ;;  %s2537_s0 = inlined_call_operand.vmem [shape: bf16[32,256], index: 0, kind: input, shape index: {}]   ;;  %s2538_s1 = inlined_call_operand.vmem [shape: bf16[256,2048], index: 1, kind: input, shape index: {}]   ;;  %s2539_s2 = inlined_call_operand.vmem [shape: bf16[32,2048], index: 2, kind: output, shape index: {}]  }
   0x1   :  { %s2001_s11 = smov 0   ;;  %s2003_s12 = smov 0  }
   0x2   :  { %s2005_s13 = smov 0  }
   0x3 LB: > { %s24_s14 = sadd.s32 1, %s1975_s12  ;;  %s1718_s15 = sadd.s32 4294967295, %s1979_s13   ;;  %s1979_s13 = sphi %s2005_s13, %s12_s13   ;;  %s1975_s12 = sphi %s2003_s12, %s2544_s12   ;;  %s1971_s11 = sphi %s2001_s11, %s2543_s11   ;;  %s1967_s10 = sphi %s1999_s10, %s2542_s10   ;;  %s1963_s9 = sphi %s1997_s9, %s2541_s9  }
   0x4   : > { %p26_p0 = scmp.ge.s32.totalorder %s24_s14, 2  ;;  %p64_p1 = scmp.ne.s32.totalorder %s1967_s10, %s1963_s9 }
   0x5   : > { %p65_p2 = scmp.eq.s32.totalorder %s1979_s13, 0  ;;  %p96_p4 = scmp.eq.s32.totalorder %s1718_s15, 1 }
   0x6   : > { %s2546_s14 = smov (%p26_p0, %s24_s14), 0  ;;  %s57_s17 = sadd.s32 1, %s1967_s10 }
   0x7   : > { %p66_p3 = por %p65_p2, %p64_p1  ;;  %s54_s16 = ssub.s32 %s1975_s12, %s2546_s14 }
   0x8   : > { %p55_p5 = scmp.eq.s32.totalorder %s54_s16, 0  ;;  %p2032_p6 = por %p96_p4, %p64_p1 }
   0x9   : > { %p1722_p7 = scmp.ge.s32.totalorder %s1979_s13, 2 }
   0xa   : > { %s2037_s19 = scalar_select %p55_p5, %s1967_s10, %s57_s17  }
   0xb   : > { %128 = sbr.rel (%p1722_p7) target bundleno = 84 (0x54), region = 20 }
  0x10   : > { %131 = sbr.rel (!%p66_p3) target bundleno = 84 (0x54), region = 24  ;;  %s133_s20 = sand.u32 (%p66_p3), 1, %s1967_s10  }
  0x11   : > { %s1882_s21 = sshll.u32 (%p66_p3), %s1975_s12, 5  ;;  %s1723_s22 = sshll.u32 (%p66_p3), %s133_s20, 10 }
  0x12   : > { %s2045_s25 = scalar_lea.vmem (%p66_p3), %s2538_s1, %s1882_s21  ;;  %s2050_s26 = scalar_lea.vmem (%p66_p3), [#allocation2], %s1723_s22 }
  0x13   : > { %v151_v0 = vld [vmem:[%s2045_s25] sm:$0xff] (%p66_p3)  ;;  %v153_v1 = vld [vmem:[%s2045_s25 + $0x8] sm:$0xff] (%p66_p3)  ;;  %v155_v2 = vld [vmem:[%s2045_s25 + $0x10] sm:$0xff] (%p66_p3) }
  0x14   : > { %152 = vst [vmem:[%s2050_s26] sm:$0xff] (%p66_p3), %v151_v0  ;;  %154 = vst [vmem:[%s2050_s26 + $0x8] sm:$0xff] (%p66_p3), %v153_v1  ;;  %v157_v3 = vld [vmem:[%s2045_s25 + $0x18] sm:$0xff] (%p66_p3)  ;;  %v159_v4 = vld [vmem:[%s2045_s25 + $0x40] sm:$0xff] (%p66_p3) }
  0x15   : > { %156 = vst [vmem:[%s2050_s26 + $0x10] sm:$0xff] %v155_v2  ;;  %v161_v5 = vld [vmem:[%s2045_s25 + $0x48] sm:$0xff]  ;;  %158 = vst [vmem:[%s2050_s26 + $0x18] sm:$0xff] %v157_v3  ;;  %v163_v6 = vld [vmem:[%s2045_s25 + $0x50] sm:$0xff] }
  0x16   : > { %160 = vst [vmem:[%s2050_s26 + $0x20] sm:$0xff] %v159_v4  ;;  %162 = vst [vmem:[%s2050_s26 + $0x28] sm:$0xff] %v161_v5  ;;  %v165_v7 = vld [vmem:[%s2045_s25 + $0x58] sm:$0xff]  ;;  %v167_v8 = vld [vmem:[%s2045_s25 + $0x80] sm:$0xff] }
  0x17   : > { %164 = vst [vmem:[%s2050_s26 + $0x30] sm:$0xff] %v163_v6  ;;  %166 = vst [vmem:[%s2050_s26 + $0x38] sm:$0xff] %v165_v7  ;;  %v169_v9 = vld [vmem:[%s2045_s25 + $0x88] sm:$0xff]  ;;  %v171_v10 = vld [vmem:[%s2045_s25 + $0x90] sm:$0xff] }
  0x18   : > { %168 = vst [vmem:[%s2050_s26 + $0x40] sm:$0xff] %v167_v8  ;;  %v173_v11 = vld [vmem:[%s2045_s25 + $0x98] sm:$0xff]  ;;  %170 = vst [vmem:[%s2050_s26 + $0x48] sm:$0xff] %v169_v9  ;;  %v175_v12 = vld [vmem:[%s2045_s25 + $0xc0] sm:$0xff] }
  0x19   : > { %172 = vst [vmem:[%s2050_s26 + $0x50] sm:$0xff] %v171_v10  ;;  %174 = vst [vmem:[%s2050_s26 + $0x58] sm:$0xff] %v173_v11  ;;  %v177_v13 = vld [vmem:[%s2045_s25 + $0xc8] sm:$0xff]  ;;  %v179_v14 = vld [vmem:[%s2045_s25 + $0xd0] sm:$0xff] }
  0x1a   : > { %176 = vst [vmem:[%s2050_s26 + $0x60] sm:$0xff] %v175_v12  ;;  %178 = vst [vmem:[%s2050_s26 + $0x68] sm:$0xff] %v177_v13  ;;  %v181_v15 = vld [vmem:[%s2045_s25 + $0xd8] sm:$0xff]  ;;  %v183_v16 = vld [vmem:[%s2045_s25 + $0x100] sm:$0xff] }
  0x1b   : > { %180 = vst [vmem:[%s2050_s26 + $0x70] sm:$0xff] %v179_v14  ;;  %v185_v17 = vld [vmem:[%s2045_s25 + $0x108] sm:$0xff]  ;;  %182 = vst [vmem:[%s2050_s26 + $0x78] sm:$0xff] %v181_v15  ;;  %v187_v18 = vld [vmem:[%s2045_s25 + $0x110] sm:$0xff] }
  0x1c   : > { %184 = vst [vmem:[%s2050_s26 + $0x80] sm:$0xff] %v183_v16  ;;  %186 = vst [vmem:[%s2050_s26 + $0x88] sm:$0xff] %v185_v17  ;;  %v189_v19 = vld [vmem:[%s2045_s25 + $0x118] sm:$0xff]  ;;  %v191_v20 = vld [vmem:[%s2045_s25 + $0x140] sm:$0xff] }
  0x1d   : > { %188 = vst [vmem:[%s2050_s26 + $0x90] sm:$0xff] %v187_v18  ;;  %190 = vst [vmem:[%s2050_s26 + $0x98] sm:$0xff] %v189_v19  ;;  %v193_v21 = vld [vmem:[%s2045_s25 + $0x148] sm:$0xff]  ;;  %v195_v22 = vld [vmem:[%s2045_s25 + $0x150] sm:$0xff] }
  0x1e   : > { %192 = vst [vmem:[%s2050_s26 + $0xa0] sm:$0xff] %v191_v20  ;;  %v197_v23 = vld [vmem:[%s2045_s25 + $0x158] sm:$0xff]  ;;  %194 = vst [vmem:[%s2050_s26 + $0xa8] sm:$0xff] %v193_v21  ;;  %v199_v24 = vld [vmem:[%s2045_s25 + $0x180] sm:$0xff] }
  0x1f   : > { %196 = vst [vmem:[%s2050_s26 + $0xb0] sm:$0xff] %v195_v22  ;;  %198 = vst [vmem:[%s2050_s26 + $0xb8] sm:$0xff] %v197_v23  ;;  %v201_v25 = vld [vmem:[%s2045_s25 + $0x188] sm:$0xff]  ;;  %v203_v26 = vld [vmem:[%s2045_s25 + $0x190] sm:$0xff] }
  0x20   : > { %200 = vst [vmem:[%s2050_s26 + $0xc0] sm:$0xff] %v199_v24  ;;  %202 = vst [vmem:[%s2050_s26 + $0xc8] sm:$0xff] %v201_v25  ;;  %v205_v27 = vld [vmem:[%s2045_s25 + $0x198] sm:$0xff]  ;;  %v207_v28 = vld [vmem:[%s2045_s25 + $0x1c0] sm:$0xff] }
  0x21   : > { %204 = vst [vmem:[%s2050_s26 + $0xd0] sm:$0xff] %v203_v26  ;;  %v209_v29 = vld [vmem:[%s2045_s25 + $0x1c8] sm:$0xff]  ;;  %206 = vst [vmem:[%s2050_s26 + $0xd8] sm:$0xff] %v205_v27  ;;  %v211_v30 = vld [vmem:[%s2045_s25 + $0x1d0] sm:$0xff] }
  0x22   : > { %208 = vst [vmem:[%s2050_s26 + $0xe0] sm:$0xff] %v207_v28  ;;  %210 = vst [vmem:[%s2050_s26 + $0xe8] sm:$0xff] %v209_v29  ;;  %v213_v31 = vld [vmem:[%s2045_s25 + $0x1d8] sm:$0xff]  ;;  %v215_v32 = vld [vmem:[%s2045_s25 + $0x200] sm:$0xff] }
  0x23   : > { %212 = vst [vmem:[%s2050_s26 + $0xf0] sm:$0xff] %v211_v30  ;;  %214 = vst [vmem:[%s2050_s26 + $0xf8] sm:$0xff] %v213_v31  ;;  %v217_v33 = vld [vmem:[%s2045_s25 + $0x208] sm:$0xff]  ;;  %v219_v34 = vld [vmem:[%s2045_s25 + $0x210] sm:$0xff] }
  0x24   : > { %216 = vst [vmem:[%s2050_s26 + $0x100] sm:$0xff] %v215_v32  ;;  %v221_v35 = vld [vmem:[%s2045_s25 + $0x218] sm:$0xff]  ;;  %218 = vst [vmem:[%s2050_s26 + $0x108] sm:$0xff] %v217_v33  ;;  %v223_v36 = vld [vmem:[%s2045_s25 + $0x240] sm:$0xff] }
  0x25   : > { %220 = vst [vmem:[%s2050_s26 + $0x110] sm:$0xff] %v219_v34  ;;  %222 = vst [vmem:[%s2050_s26 + $0x118] sm:$0xff] %v221_v35  ;;  %v225_v37 = vld [vmem:[%s2045_s25 + $0x248] sm:$0xff]  ;;  %v227_v38 = vld [vmem:[%s2045_s25 + $0x250] sm:$0xff] }
  0x26   : > { %224 = vst [vmem:[%s2050_s26 + $0x120] sm:$0xff] %v223_v36  ;;  %226 = vst [vmem:[%s2050_s26 + $0x128] sm:$0xff] %v225_v37  ;;  %v229_v39 = vld [vmem:[%s2045_s25 + $0x258] sm:$0xff]  ;;  %v231_v40 = vld [vmem:[%s2045_s25 + $0x280] sm:$0xff] }
  0x27   : > { %228 = vst [vmem:[%s2050_s26 + $0x130] sm:$0xff] %v227_v38  ;;  %v233_v41 = vld [vmem:[%s2045_s25 + $0x288] sm:$0xff]  ;;  %230 = vst [vmem:[%s2050_s26 + $0x138] sm:$0xff] %v229_v39  ;;  %v235_v42 = vld [vmem:[%s2045_s25 + $0x290] sm:$0xff] }
  0x28   : > { %232 = vst [vmem:[%s2050_s26 + $0x140] sm:$0xff] %v231_v40  ;;  %234 = vst [vmem:[%s2050_s26 + $0x148] sm:$0xff] %v233_v41  ;;  %v237_v43 = vld [vmem:[%s2045_s25 + $0x298] sm:$0xff]  ;;  %v239_v44 = vld [vmem:[%s2045_s25 + $0x2c0] sm:$0xff] }
  0x29   : > { %236 = vst [vmem:[%s2050_s26 + $0x150] sm:$0xff] %v235_v42  ;;  %238 = vst [vmem:[%s2050_s26 + $0x158] sm:$0xff] %v237_v43  ;;  %v241_v45 = vld [vmem:[%s2045_s25 + $0x2c8] sm:$0xff]  ;;  %v243_v46 = vld [vmem:[%s2045_s25 + $0x2d0] sm:$0xff] }
  0x2a   : > { %240 = vst [vmem:[%s2050_s26 + $0x160] sm:$0xff] %v239_v44  ;;  %v245_v47 = vld [vmem:[%s2045_s25 + $0x2d8] sm:$0xff]  ;;  %242 = vst [vmem:[%s2050_s26 + $0x168] sm:$0xff] %v241_v45  ;;  %v247_v48 = vld [vmem:[%s2045_s25 + $0x300] sm:$0xff] }
  0x2b   : > { %244 = vst [vmem:[%s2050_s26 + $0x170] sm:$0xff] %v243_v46  ;;  %246 = vst [vmem:[%s2050_s26 + $0x178] sm:$0xff] %v245_v47  ;;  %v249_v49 = vld [vmem:[%s2045_s25 + $0x308] sm:$0xff]  ;;  %v251_v50 = vld [vmem:[%s2045_s25 + $0x310] sm:$0xff] }
  0x2c   : > { %248 = vst [vmem:[%s2050_s26 + $0x180] sm:$0xff] %v247_v48  ;;  %250 = vst [vmem:[%s2050_s26 + $0x188] sm:$0xff] %v249_v49  ;;  %v253_v51 = vld [vmem:[%s2045_s25 + $0x318] sm:$0xff]  ;;  %v255_v52 = vld [vmem:[%s2045_s25 + $0x340] sm:$0xff] }
  0x2d   : > { %252 = vst [vmem:[%s2050_s26 + $0x190] sm:$0xff] %v251_v50  ;;  %v257_v53 = vld [vmem:[%s2045_s25 + $0x348] sm:$0xff]  ;;  %254 = vst [vmem:[%s2050_s26 + $0x198] sm:$0xff] %v253_v51  ;;  %v259_v54 = vld [vmem:[%s2045_s25 + $0x350] sm:$0xff] }
  0x2e   : > { %256 = vst [vmem:[%s2050_s26 + $0x1a0] sm:$0xff] %v255_v52  ;;  %258 = vst [vmem:[%s2050_s26 + $0x1a8] sm:$0xff] %v257_v53  ;;  %v261_v55 = vld [vmem:[%s2045_s25 + $0x358] sm:$0xff]  ;;  %v263_v56 = vld [vmem:[%s2045_s25 + $0x380] sm:$0xff] }
  0x2f   : > { %260 = vst [vmem:[%s2050_s26 + $0x1b0] sm:$0xff] %v259_v54  ;;  %262 = vst [vmem:[%s2050_s26 + $0x1b8] sm:$0xff] %v261_v55  ;;  %v265_v57 = vld [vmem:[%s2045_s25 + $0x388] sm:$0xff]  ;;  %v267_v58 = vld [vmem:[%s2045_s25 + $0x390] sm:$0xff] }
  0x30   : > { %264 = vst [vmem:[%s2050_s26 + $0x1c0] sm:$0xff] %v263_v56  ;;  %v269_v59 = vld [vmem:[%s2045_s25 + $0x398] sm:$0xff]  ;;  %266 = vst [vmem:[%s2050_s26 + $0x1c8] sm:$0xff] %v265_v57  ;;  %v271_v60 = vld [vmem:[%s2045_s25 + $0x3c0] sm:$0xff] }
  0x31   : > { %268 = vst [vmem:[%s2050_s26 + $0x1d0] sm:$0xff] %v267_v58  ;;  %270 = vst [vmem:[%s2050_s26 + $0x1d8] sm:$0xff] %v269_v59  ;;  %v273_v61 = vld [vmem:[%s2045_s25 + $0x3c8] sm:$0xff]  ;;  %v275_v62 = vld [vmem:[%s2045_s25 + $0x3d0] sm:$0xff] }
  0x32   : > { %272 = vst [vmem:[%s2050_s26 + $0x1e0] sm:$0xff] %v271_v60  ;;  %274 = vst [vmem:[%s2050_s26 + $0x1e8] sm:$0xff] %v273_v61  ;;  %v277_v63 = vld [vmem:[%s2045_s25 + $0x3d8] sm:$0xff]  ;;  %v279_v0 = vld [vmem:[%s2045_s25 + $0x400] sm:$0xff] }
  0x33   : > { %276 = vst [vmem:[%s2050_s26 + $0x1f0] sm:$0xff] %v275_v62  ;;  %v281_v1 = vld [vmem:[%s2045_s25 + $0x408] sm:$0xff]  ;;  %278 = vst [vmem:[%s2050_s26 + $0x1f8] sm:$0xff] %v277_v63  ;;  %v283_v2 = vld [vmem:[%s2045_s25 + $0x410] sm:$0xff] }
  0x34   : > { %280 = vst [vmem:[%s2050_s26 + $0x200] sm:$0xff] %v279_v0  ;;  %282 = vst [vmem:[%s2050_s26 + $0x208] sm:$0xff] %v281_v1  ;;  %v285_v3 = vld [vmem:[%s2045_s25 + $0x418] sm:$0xff]  ;;  %v287_v4 = vld [vmem:[%s2045_s25 + $0x440] sm:$0xff] }
  0x35   : > { %284 = vst [vmem:[%s2050_s26 + $0x210] sm:$0xff] %v283_v2  ;;  %286 = vst [vmem:[%s2050_s26 + $0x218] sm:$0xff] %v285_v3  ;;  %v289_v5 = vld [vmem:[%s2045_s25 + $0x448] sm:$0xff]  ;;  %v291_v6 = vld [vmem:[%s2045_s25 + $0x450] sm:$0xff] }
  0x36   : > { %288 = vst [vmem:[%s2050_s26 + $0x220] sm:$0xff] %v287_v4  ;;  %v293_v7 = vld [vmem:[%s2045_s25 + $0x458] sm:$0xff]  ;;  %290 = vst [vmem:[%s2050_s26 + $0x228] sm:$0xff] %v289_v5  ;;  %v295_v8 = vld [vmem:[%s2045_s25 + $0x480] sm:$0xff] }
  0x37   : > { %292 = vst [vmem:[%s2050_s26 + $0x230] sm:$0xff] %v291_v6  ;;  %294 = vst [vmem:[%s2050_s26 + $0x238] sm:$0xff] %v293_v7  ;;  %v297_v9 = vld [vmem:[%s2045_s25 + $0x488] sm:$0xff]  ;;  %v299_v10 = vld [vmem:[%s2045_s25 + $0x490] sm:$0xff] }
  0x38   : > { %296 = vst [vmem:[%s2050_s26 + $0x240] sm:$0xff] %v295_v8  ;;  %298 = vst [vmem:[%s2050_s26 + $0x248] sm:$0xff] %v297_v9  ;;  %v301_v11 = vld [vmem:[%s2045_s25 + $0x498] sm:$0xff]  ;;  %v303_v12 = vld [vmem:[%s2045_s25 + $0x4c0] sm:$0xff] }
  0x39   : > { %300 = vst [vmem:[%s2050_s26 + $0x250] sm:$0xff] %v299_v10  ;;  %v305_v13 = vld [vmem:[%s2045_s25 + $0x4c8] sm:$0xff]  ;;  %302 = vst [vmem:[%s2050_s26 + $0x258] sm:$0xff] %v301_v11  ;;  %v307_v14 = vld [vmem:[%s2045_s25 + $0x4d0] sm:$0xff] }
  0x3a   : > { %304 = vst [vmem:[%s2050_s26 + $0x260] sm:$0xff] %v303_v12  ;;  %306 = vst [vmem:[%s2050_s26 + $0x268] sm:$0xff] %v305_v13  ;;  %v309_v15 = vld [vmem:[%s2045_s25 + $0x4d8] sm:$0xff]  ;;  %v311_v16 = vld [vmem:[%s2045_s25 + $0x500] sm:$0xff] }
  0x3b   : > { %308 = vst [vmem:[%s2050_s26 + $0x270] sm:$0xff] %v307_v14  ;;  %310 = vst [vmem:[%s2050_s26 + $0x278] sm:$0xff] %v309_v15  ;;  %v313_v17 = vld [vmem:[%s2045_s25 + $0x508] sm:$0xff]  ;;  %v315_v18 = vld [vmem:[%s2045_s25 + $0x510] sm:$0xff] }
  0x3c   : > { %312 = vst [vmem:[%s2050_s26 + $0x280] sm:$0xff] %v311_v16  ;;  %v317_v19 = vld [vmem:[%s2045_s25 + $0x518] sm:$0xff]  ;;  %314 = vst [vmem:[%s2050_s26 + $0x288] sm:$0xff] %v313_v17  ;;  %v319_v20 = vld [vmem:[%s2045_s25 + $0x540] sm:$0xff] }
  0x3d   : > { %316 = vst [vmem:[%s2050_s26 + $0x290] sm:$0xff] %v315_v18  ;;  %318 = vst [vmem:[%s2050_s26 + $0x298] sm:$0xff] %v317_v19  ;;  %v321_v21 = vld [vmem:[%s2045_s25 + $0x548] sm:$0xff]  ;;  %v323_v22 = vld [vmem:[%s2045_s25 + $0x550] sm:$0xff] }
  0x3e   : > { %320 = vst [vmem:[%s2050_s26 + $0x2a0] sm:$0xff] %v319_v20  ;;  %322 = vst [vmem:[%s2050_s26 + $0x2a8] sm:$0xff] %v321_v21  ;;  %v325_v23 = vld [vmem:[%s2045_s25 + $0x558] sm:$0xff]  ;;  %v327_v24 = vld [vmem:[%s2045_s25 + $0x580] sm:$0xff] }
  0x3f   : > { %324 = vst [vmem:[%s2050_s26 + $0x2b0] sm:$0xff] %v323_v22  ;;  %v329_v25 = vld [vmem:[%s2045_s25 + $0x588] sm:$0xff]  ;;  %326 = vst [vmem:[%s2050_s26 + $0x2b8] sm:$0xff] %v325_v23  ;;  %v331_v26 = vld [vmem:[%s2045_s25 + $0x590] sm:$0xff] }
  0x40   : > { %328 = vst [vmem:[%s2050_s26 + $0x2c0] sm:$0xff] %v327_v24  ;;  %330 = vst [vmem:[%s2050_s26 + $0x2c8] sm:$0xff] %v329_v25  ;;  %v333_v27 = vld [vmem:[%s2045_s25 + $0x598] sm:$0xff]  ;;  %v335_v28 = vld [vmem:[%s2045_s25 + $0x5c0] sm:$0xff] }
  0x41   : > { %332 = vst [vmem:[%s2050_s26 + $0x2d0] sm:$0xff] %v331_v26  ;;  %334 = vst [vmem:[%s2050_s26 + $0x2d8] sm:$0xff] %v333_v27  ;;  %v337_v29 = vld [vmem:[%s2045_s25 + $0x5c8] sm:$0xff]  ;;  %v339_v30 = vld [vmem:[%s2045_s25 + $0x5d0] sm:$0xff] }
  0x42   : > { %336 = vst [vmem:[%s2050_s26 + $0x2e0] sm:$0xff] %v335_v28  ;;  %v341_v31 = vld [vmem:[%s2045_s25 + $0x5d8] sm:$0xff]  ;;  %338 = vst [vmem:[%s2050_s26 + $0x2e8] sm:$0xff] %v337_v29  ;;  %v343_v32 = vld [vmem:[%s2045_s25 + $0x600] sm:$0xff] }
  0x43   : > { %340 = vst [vmem:[%s2050_s26 + $0x2f0] sm:$0xff] %v339_v30  ;;  %342 = vst [vmem:[%s2050_s26 + $0x2f8] sm:$0xff] %v341_v31  ;;  %v345_v33 = vld [vmem:[%s2045_s25 + $0x608] sm:$0xff]  ;;  %v347_v34 = vld [vmem:[%s2045_s25 + $0x610] sm:$0xff] }
  0x44   : > { %344 = vst [vmem:[%s2050_s26 + $0x300] sm:$0xff] %v343_v32  ;;  %346 = vst [vmem:[%s2050_s26 + $0x308] sm:$0xff] %v345_v33  ;;  %v349_v35 = vld [vmem:[%s2045_s25 + $0x618] sm:$0xff]  ;;  %v351_v36 = vld [vmem:[%s2045_s25 + $0x640] sm:$0xff] }
  0x45   : > { %348 = vst [vmem:[%s2050_s26 + $0x310] sm:$0xff] %v347_v34  ;;  %v353_v37 = vld [vmem:[%s2045_s25 + $0x648] sm:$0xff]  ;;  %350 = vst [vmem:[%s2050_s26 + $0x318] sm:$0xff] %v349_v35  ;;  %v355_v38 = vld [vmem:[%s2045_s25 + $0x650] sm:$0xff] }
  0x46   : > { %352 = vst [vmem:[%s2050_s26 + $0x320] sm:$0xff] %v351_v36  ;;  %354 = vst [vmem:[%s2050_s26 + $0x328] sm:$0xff] %v353_v37  ;;  %v357_v39 = vld [vmem:[%s2045_s25 + $0x658] sm:$0xff]  ;;  %v359_v40 = vld [vmem:[%s2045_s25 + $0x680] sm:$0xff] }
  0x47   : > { %356 = vst [vmem:[%s2050_s26 + $0x330] sm:$0xff] %v355_v38  ;;  %358 = vst [vmem:[%s2050_s26 + $0x338] sm:$0xff] %v357_v39  ;;  %v361_v41 = vld [vmem:[%s2045_s25 + $0x688] sm:$0xff]  ;;  %v363_v42 = vld [vmem:[%s2045_s25 + $0x690] sm:$0xff] }
  0x48   : > { %360 = vst [vmem:[%s2050_s26 + $0x340] sm:$0xff] %v359_v40  ;;  %v365_v43 = vld [vmem:[%s2045_s25 + $0x698] sm:$0xff]  ;;  %362 = vst [vmem:[%s2050_s26 + $0x348] sm:$0xff] %v361_v41  ;;  %v367_v44 = vld [vmem:[%s2045_s25 + $0x6c0] sm:$0xff] }
  0x49   : > { %364 = vst [vmem:[%s2050_s26 + $0x350] sm:$0xff] %v363_v42  ;;  %366 = vst [vmem:[%s2050_s26 + $0x358] sm:$0xff] %v365_v43  ;;  %v369_v45 = vld [vmem:[%s2045_s25 + $0x6c8] sm:$0xff]  ;;  %v371_v46 = vld [vmem:[%s2045_s25 + $0x6d0] sm:$0xff] }
  0x4a   : > { %368 = vst [vmem:[%s2050_s26 + $0x360] sm:$0xff] %v367_v44  ;;  %370 = vst [vmem:[%s2050_s26 + $0x368] sm:$0xff] %v369_v45  ;;  %v373_v47 = vld [vmem:[%s2045_s25 + $0x6d8] sm:$0xff]  ;;  %v375_v48 = vld [vmem:[%s2045_s25 + $0x700] sm:$0xff] }
  0x4b   : > { %372 = vst [vmem:[%s2050_s26 + $0x370] sm:$0xff] %v371_v46  ;;  %v377_v49 = vld [vmem:[%s2045_s25 + $0x708] sm:$0xff]  ;;  %374 = vst [vmem:[%s2050_s26 + $0x378] sm:$0xff] %v373_v47  ;;  %v379_v50 = vld [vmem:[%s2045_s25 + $0x710] sm:$0xff] }
  0x4c   : > { %376 = vst [vmem:[%s2050_s26 + $0x380] sm:$0xff] %v375_v48  ;;  %378 = vst [vmem:[%s2050_s26 + $0x388] sm:$0xff] %v377_v49  ;;  %v381_v51 = vld [vmem:[%s2045_s25 + $0x718] sm:$0xff]  ;;  %v383_v52 = vld [vmem:[%s2045_s25 + $0x740] sm:$0xff] }
  0x4d   : > { %380 = vst [vmem:[%s2050_s26 + $0x390] sm:$0xff] %v379_v50  ;;  %382 = vst [vmem:[%s2050_s26 + $0x398] sm:$0xff] %v381_v51  ;;  %v385_v53 = vld [vmem:[%s2045_s25 + $0x748] sm:$0xff]  ;;  %v387_v54 = vld [vmem:[%s2045_s25 + $0x750] sm:$0xff] }
  0x4e   : > { %384 = vst [vmem:[%s2050_s26 + $0x3a0] sm:$0xff] %v383_v52  ;;  %v389_v55 = vld [vmem:[%s2045_s25 + $0x758] sm:$0xff]  ;;  %386 = vst [vmem:[%s2050_s26 + $0x3a8] sm:$0xff] %v385_v53  ;;  %v391_v56 = vld [vmem:[%s2045_s25 + $0x780] sm:$0xff] }
  0x4f   : > { %388 = vst [vmem:[%s2050_s26 + $0x3b0] sm:$0xff] %v387_v54  ;;  %390 = vst [vmem:[%s2050_s26 + $0x3b8] sm:$0xff] %v389_v55  ;;  %v393_v57 = vld [vmem:[%s2045_s25 + $0x788] sm:$0xff]  ;;  %v395_v58 = vld [vmem:[%s2045_s25 + $0x790] sm:$0xff] }
  0x50   : > { %392 = vst [vmem:[%s2050_s26 + $0x3c0] sm:$0xff] %v391_v56  ;;  %394 = vst [vmem:[%s2050_s26 + $0x3c8] sm:$0xff] %v393_v57  ;;  %v397_v59 = vld [vmem:[%s2045_s25 + $0x798] sm:$0xff]  ;;  %v399_v60 = vld [vmem:[%s2045_s25 + $0x7c0] sm:$0xff] }
  0x51   : > { %396 = vst [vmem:[%s2050_s26 + $0x3d0] sm:$0xff] %v395_v58  ;;  %v401_v61 = vld [vmem:[%s2045_s25 + $0x7c8] sm:$0xff]  ;;  %398 = vst [vmem:[%s2050_s26 + $0x3d8] sm:$0xff] %v397_v59  ;;  %v403_v62 = vld [vmem:[%s2045_s25 + $0x7d0] sm:$0xff] }
  0x52   : > { %400 = vst [vmem:[%s2050_s26 + $0x3e0] sm:$0xff] %v399_v60  ;;  %402 = vst [vmem:[%s2050_s26 + $0x3e8] sm:$0xff] %v401_v61  ;;  %v405_v63 = vld [vmem:[%s2045_s25 + $0x7d8] sm:$0xff] }
  0x53   : > { %404 = vst [vmem:[%s2050_s26 + $0x3f0] sm:$0xff] %v403_v62  ;;  %406 = vst [vmem:[%s2050_s26 + $0x3f8] sm:$0xff] %v405_v63 }
  0x54 PF: > { %p1726_p8 = scmp.ge.s32.totalorder %s1979_s13, 1  ;;  %p411_p9 = scmp.lt.s32.totalorder %s1979_s13, 3 }
  0x56   : > { %p412_p10 = pnand %p1726_p8, %p411_p9 }
  0x57   : > { %s418_s27 = sand.u32 (!%p412_p10), 1, %s1963_s9  }
  0x58   : > { %415 = sbr.rel (%p412_p10) target bundleno = 445 (0x1bd), region = 47  ;;  %s1727_s4 = sshll.u32 (!%p412_p10), %s418_s27, 10 }
  0x59   : > { %s2318_s5 = scalar_lea.vmem (!%p412_p10), [#allocation2], %s1727_s4  ;;  %s1728_s16 = sshll.u32 (!%p412_p10), %s418_s27, 7 }
  0x5a   : > { %s2482_s17 = scalar_lea.vmem (!%p412_p10), [#allocation3], %s1728_s16 }
  0x5d   : > { %v455_v0 = vld [vmem:[%s2537_s0] sm:$0xff]  ;;  %v456_v1 = vld [vmem:[%s2537_s0 + $0x8] sm:$0xff]  ;;  %v1981_v2 = vmov 0   ;;  %s1899_s9 = sshll.u32 (%p2032_p6), %s1971_s11, 5 }
  0x5e   : > { %v459_v3 = vmax.bf16 %v1981_v2, %v455_v0  ;;  %v460_v4 = vmax.bf16 %v1981_v2, %v456_v1  ;;  %v519_v5 = vld [vmem:[%s2318_s5 + $0x1c0] sm:$0xff]  ;;  %v520_v7 = vld [vmem:[%s2318_s5 + $0x1c8] sm:$0xff]  ;;  %s1587_s22 = scalar_lea.vmem (%p2032_p6), %s2539_s2, %s1899_s9 }
  0x5f   : > { %v523_v6 = vld [vmem:[%s2318_s5 + $0x1e0] sm:$0xff]  ;;  %v524_v11 = vld [vmem:[%s2318_s5 + $0x1e8] sm:$0xff] }
  0x60   : > { %v2323_v8 = vcombine.high %v459_v3, %v460_v4  ;;  %v2325_v9 = vcombine.low %v459_v3, %v460_v4  ;;  %v1790_v10 = vcombine.high %v519_v5, %v523_v6  ;;  %v1789_v12 = vcombine.low %v519_v5, %v523_v6  ;;  %v511_v13 = vld [vmem:[%s2318_s5 + $0x180] sm:$0xff]  ;;  %v512_v18 = vld [vmem:[%s2318_s5 + $0x188] sm:$0xff] }
  0x61   : > { %v515_v14 = vld [vmem:[%s2318_s5 + $0x1a0] sm:$0xff]  ;;  %v1792_v15 = vcombine.high %v520_v7, %v524_v11  ;;  %v1791_v16 = vcombine.low %v520_v7, %v524_v11  ;;  %v516_v19 = vld [vmem:[%s2318_s5 + $0x1a8] sm:$0xff] }
  0x62   : > { %v1782_v17 = vcombine.high %v511_v13, %v515_v14  ;;  %v503_v20 = vld [vmem:[%s2318_s5 + $0x140] sm:$0xff]  ;;  %1283 = vmatprep.mubr.bf16.mxu0 %v2323_v8  ;;  %1251 = vmatprep.subr.bf16.mxu0 %v1790_v10  ;;  %v1784_v21 = vcombine.high %v512_v18, %v516_v19  ;;  %v504_v23 = vld [vmem:[%s2318_s5 + $0x148] sm:$0xff]  ;;  %v1781_v25 = vcombine.low %v511_v13, %v515_v14 }
  0x63   : > { %v507_v22 = vld [vmem:[%s2318_s5 + $0x160] sm:$0xff]  ;;  %v508_v24 = vld [vmem:[%s2318_s5 + $0x168] sm:$0xff]  ;;  %1336 = vmatprep.mubr.bf16.mxu1 %v2323_v8  ;;  %1304 = vmatprep.subr.bf16.mxu1 %v1792_v15  ;;  %v1783_v26 = vcombine.low %v512_v18, %v516_v19 }
  0x64   : > { %1252 = vmatpush1.bf16.msra.mxu0 %v1789_v12  ;;  %1305 = vmatpush1.bf16.msra.mxu1 %v1791_v16  ;;  %v1774_v27 = vcombine.high %v503_v20, %v507_v22  ;;  %v1776_v28 = vcombine.high %v504_v23, %v508_v24  ;;  %v495_v29 = vld [vmem:[%s2318_s5 + $0x100] sm:$0xff]  ;;  %v496_v31 = vld [vmem:[%s2318_s5 + $0x108] sm:$0xff]  ;;  %v1773_v33 = vcombine.low %v503_v20, %v507_v22 }
  0x65   : > { %1253 = vmatprep.subr.bf16.mxu0 %v1782_v17  ;;  %1306 = vmatprep.subr.bf16.mxu1 %v1784_v21  ;;  %v499_v30 = vld [vmem:[%s2318_s5 + $0x120] sm:$0xff]  ;;  %v500_v32 = vld [vmem:[%s2318_s5 + $0x128] sm:$0xff]  ;;  %v1775_v34 = vcombine.low %v504_v23, %v508_v24 }
  0x66   : > { %v1766_v35 = vcombine.high %v495_v29, %v499_v30  ;;  %v1768_v36 = vcombine.high %v496_v31, %v500_v32  ;;  %v487_v37 = vld [vmem:[%s2318_s5 + $0xc0] sm:$0xff]  ;;  %v488_v39 = vld [vmem:[%s2318_s5 + $0xc8] sm:$0xff]  ;;  %v1765_v41 = vcombine.low %v495_v29, %v499_v30  ;;  %v1767_v42 = vcombine.low %v496_v31, %v500_v32 }
  0x67   : > { %v491_v38 = vld [vmem:[%s2318_s5 + $0xe0] sm:$0xff]  ;;  %v492_v40 = vld [vmem:[%s2318_s5 + $0xe8] sm:$0xff] }
  0x68   : > { %1254 = vmatpush1.bf16.msra.mxu0 %v1781_v25  ;;  %1307 = vmatpush1.bf16.msra.mxu1 %v1783_v26  ;;  %v1758_v43 = vcombine.high %v487_v37, %v491_v38  ;;  %v1760_v44 = vcombine.high %v488_v39, %v492_v40  ;;  %v479_v45 = vld [vmem:[%s2318_s5 + $0x80] sm:$0xff]  ;;  %v480_v47 = vld [vmem:[%s2318_s5 + $0x88] sm:$0xff]  ;;  %v1757_v49 = vcombine.low %v487_v37, %v491_v38 }
  0x69   : > { %1255 = vmatprep.subr.bf16.mxu0 %v1774_v27  ;;  %1308 = vmatprep.subr.bf16.mxu1 %v1776_v28  ;;  %v483_v46 = vld [vmem:[%s2318_s5 + $0xa0] sm:$0xff]  ;;  %v484_v48 = vld [vmem:[%s2318_s5 + $0xa8] sm:$0xff]  ;;  %v1759_v50 = vcombine.low %v488_v39, %v492_v40 }
  0x6a   : > { %v1750_v51 = vcombine.high %v479_v45, %v483_v46  ;;  %v1752_v52 = vcombine.high %v480_v47, %v484_v48  ;;  %v471_v53 = vld [vmem:[%s2318_s5 + $0x40] sm:$0xff]  ;;  %v472_v55 = vld [vmem:[%s2318_s5 + $0x48] sm:$0xff]  ;;  %v1749_v57 = vcombine.low %v479_v45, %v483_v46  ;;  %v1751_v58 = vcombine.low %v480_v47, %v484_v48 }
  0x6b   : > { %v475_v54 = vld [vmem:[%s2318_s5 + $0x60] sm:$0xff]  ;;  %v476_v56 = vld [vmem:[%s2318_s5 + $0x68] sm:$0xff] }
  0x6c   : > { %1256 = vmatpush1.bf16.msra.mxu0 %v1773_v33  ;;  %1309 = vmatpush1.bf16.msra.mxu1 %v1775_v34  ;;  %v1742_v59 = vcombine.high %v471_v53, %v475_v54  ;;  %v1744_v60 = vcombine.high %v472_v55, %v476_v56  ;;  %v463_v61 = vld [vmem:[%s2318_s5] sm:$0xff]  ;;  %v464_v63 = vld [vmem:[%s2318_s5 + $0x8] sm:$0xff]  ;;  %v1741_v1 = vcombine.low %v471_v53, %v475_v54 }
  0x6d   : > { %1257 = vmatprep.subr.bf16.mxu0 %v1766_v35  ;;  %1310 = vmatprep.subr.bf16.mxu1 %v1768_v36  ;;  %v467_v62 = vld [vmem:[%s2318_s5 + $0x20] sm:$0xff]  ;;  %v468_v0 = vld [vmem:[%s2318_s5 + $0x28] sm:$0xff]  ;;  %v1743_v3 = vcombine.low %v472_v55, %v476_v56 }
  0x6e   : > { %v1734_v4 = vcombine.high %v463_v61, %v467_v62  ;;  %v1736_v5 = vcombine.high %v464_v63, %v468_v0  ;;  %v583_v6 = vld [vmem:[%s2318_s5 + $0x3c0] sm:$0xff]  ;;  %v584_v10 = vld [vmem:[%s2318_s5 + $0x3c8] sm:$0xff]  ;;  %v1733_v12 = vcombine.low %v463_v61, %v467_v62  ;;  %v1735_v13 = vcombine.low %v464_v63, %v468_v0 }
  0x6f   : > { %v587_v7 = vld [vmem:[%s2318_s5 + $0x3e0] sm:$0xff]  ;;  %v588_v11 = vld [vmem:[%s2318_s5 + $0x3e8] sm:$0xff] }
  0x70   : > { %1258 = vmatpush1.bf16.msra.mxu0 %v1765_v41  ;;  %1311 = vmatpush1.bf16.msra.mxu1 %v1767_v42  ;;  %v1854_v14 = vcombine.high %v583_v6, %v587_v7  ;;  %v1856_v15 = vcombine.high %v584_v10, %v588_v11  ;;  %v575_v16 = vld [vmem:[%s2318_s5 + $0x380] sm:$0xff]  ;;  %v576_v18 = vld [vmem:[%s2318_s5 + $0x388] sm:$0xff]  ;;  %v1853_v20 = vcombine.low %v583_v6, %v587_v7 }
  0x71   : > { %1259 = vmatprep.subr.bf16.mxu0 %v1758_v43  ;;  %1312 = vmatprep.subr.bf16.mxu1 %v1760_v44  ;;  %v579_v17 = vld [vmem:[%s2318_s5 + $0x3a0] sm:$0xff]  ;;  %v580_v19 = vld [vmem:[%s2318_s5 + $0x3a8] sm:$0xff]  ;;  %v1855_v21 = vcombine.low %v584_v10, %v588_v11  ;;  %v521_v11 = vld [vmem:[%s2318_s5 + $0x1d0] sm:$0xff] }
  0x72   : > { %v1846_v22 = vcombine.high %v575_v16, %v579_v17  ;;  %v1848_v23 = vcombine.high %v576_v18, %v580_v19  ;;  %v567_v24 = vld [vmem:[%s2318_s5 + $0x340] sm:$0xff]  ;;  %v568_v26 = vld [vmem:[%s2318_s5 + $0x348] sm:$0xff]  ;;  %v1845_v28 = vcombine.low %v575_v16, %v579_v17  ;;  %v1847_v29 = vcombine.low %v576_v18, %v580_v19  ;;  %v458_v16 = vld [vmem:[%s2537_s0 + $0x18] sm:$0xff] }
  0x73   : > { %v571_v25 = vld [vmem:[%s2318_s5 + $0x360] sm:$0xff]  ;;  %v572_v27 = vld [vmem:[%s2318_s5 + $0x368] sm:$0xff] }
  0x74   : > { %1260 = vmatpush1.bf16.msra.mxu0 %v1757_v49  ;;  %1313 = vmatpush1.bf16.msra.mxu1 %v1759_v50  ;;  %v1838_v30 = vcombine.high %v567_v24, %v571_v25  ;;  %v1840_v31 = vcombine.high %v568_v26, %v572_v27  ;;  %v559_v32 = vld [vmem:[%s2318_s5 + $0x300] sm:$0xff]  ;;  %v560_v34 = vld [vmem:[%s2318_s5 + $0x308] sm:$0xff]  ;;  %v1837_v36 = vcombine.low %v567_v24, %v571_v25  ;;  %v514_v25 = vld [vmem:[%s2318_s5 + $0x198] sm:$0xff] }
  0x75   : > { %1261 = vmatprep.subr.bf16.mxu0 %v1750_v51  ;;  %1314 = vmatprep.subr.bf16.mxu1 %v1752_v52  ;;  %v563_v33 = vld [vmem:[%s2318_s5 + $0x320] sm:$0xff]  ;;  %v564_v35 = vld [vmem:[%s2318_s5 + $0x328] sm:$0xff]  ;;  %v1839_v37 = vcombine.low %v568_v26, %v572_v27  ;;  %v462_v24 = vmax.bf16 %v1981_v2, %v458_v16  ;;  %v518_v26 = vld [vmem:[%s2318_s5 + $0x1b8] sm:$0xff] }
  0x76   : > { %v1830_v38 = vcombine.high %v559_v32, %v563_v33  ;;  %v1832_v39 = vcombine.high %v560_v34, %v564_v35  ;;  %v551_v40 = vld [vmem:[%s2318_s5 + $0x2c0] sm:$0xff]  ;;  %v552_v42 = vld [vmem:[%s2318_s5 + $0x2c8] sm:$0xff]  ;;  %v1829_v44 = vcombine.low %v559_v32, %v563_v33  ;;  %v1831_v45 = vcombine.low %v560_v34, %v564_v35  ;;  %v509_v32 = vld [vmem:[%s2318_s5 + $0x170] sm:$0xff] }
  0x77   : > { %v555_v41 = vld [vmem:[%s2318_s5 + $0x2e0] sm:$0xff]  ;;  %v556_v43 = vld [vmem:[%s2318_s5 + $0x2e8] sm:$0xff]  ;;  %v510_v34 = vld [vmem:[%s2318_s5 + $0x178] sm:$0xff] }
  0x78   : > { %1262 = vmatpush1.bf16.msra.mxu0 %v1749_v57  ;;  %1315 = vmatpush1.bf16.msra.mxu1 %v1751_v58  ;;  %v1822_v46 = vcombine.high %v551_v40, %v555_v41  ;;  %v1824_v47 = vcombine.high %v552_v42, %v556_v43  ;;  %v543_v48 = vld [vmem:[%s2318_s5 + $0x280] sm:$0xff]  ;;  %v544_v50 = vld [vmem:[%s2318_s5 + $0x288] sm:$0xff]  ;;  %v1821_v52 = vcombine.low %v551_v40, %v555_v41  ;;  %v501_v40 = vld [vmem:[%s2318_s5 + $0x130] sm:$0xff] }
  0x79   : > { %1263 = vmatprep.subr.bf16.mxu0 %v1742_v59  ;;  %1316 = vmatprep.subr.bf16.mxu1 %v1744_v60  ;;  %v547_v49 = vld [vmem:[%s2318_s5 + $0x2a0] sm:$0xff]  ;;  %v548_v51 = vld [vmem:[%s2318_s5 + $0x2a8] sm:$0xff]  ;;  %v1823_v53 = vcombine.low %v552_v42, %v556_v43  ;;  %v498_v41 = vld [vmem:[%s2318_s5 + $0x118] sm:$0xff] }
  0x7a   : > { %v1814_v54 = vcombine.high %v543_v48, %v547_v49  ;;  %v1816_v55 = vcombine.high %v544_v50, %v548_v51  ;;  %v535_v56 = vld [vmem:[%s2318_s5 + $0x240] sm:$0xff]  ;;  %v536_v58 = vld [vmem:[%s2318_s5 + $0x248] sm:$0xff]  ;;  %v1813_v60 = vcombine.low %v543_v48, %v547_v49  ;;  %v1815_v61 = vcombine.low %v544_v50, %v548_v51  ;;  %v502_v42 = vld [vmem:[%s2318_s5 + $0x138] sm:$0xff] }
  0x7b   : > { %v539_v57 = vld [vmem:[%s2318_s5 + $0x260] sm:$0xff]  ;;  %v540_v59 = vld [vmem:[%s2318_s5 + $0x268] sm:$0xff]  ;;  %v489_v48 = vld [vmem:[%s2318_s5 + $0xd0] sm:$0xff] }
  0x7c   : > { %1264 = vmatpush1.bf16.msra.mxu0 %v1741_v1  ;;  %1317 = vmatpush1.bf16.msra.mxu1 %v1743_v3  ;;  %v1806_v62 = vcombine.high %v535_v56, %v539_v57  ;;  %v1808_v63 = vcombine.high %v536_v58, %v540_v59  ;;  %v527_v0 = vld [vmem:[%s2318_s5 + $0x200] sm:$0xff]  ;;  %v528_v3 = vld [vmem:[%s2318_s5 + $0x208] sm:$0xff]  ;;  %v1807_v6 = vcombine.low %v536_v58, %v540_v59  ;;  %v493_v49 = vld [vmem:[%s2318_s5 + $0xf0] sm:$0xff] }
  0x7d   : > { %1265 = vmatprep.subr.bf16.mxu0 %v1734_v4  ;;  %1318 = vmatprep.subr.bf16.mxu1 %v1736_v5  ;;  %v531_v1 = vld [vmem:[%s2318_s5 + $0x220] sm:$0xff]  ;;  %v532_v4 = vld [vmem:[%s2318_s5 + $0x228] sm:$0xff]  ;;  %v1805_v5 = vcombine.low %v535_v56, %v539_v57  ;;  %v490_v50 = vld [vmem:[%s2318_s5 + $0xd8] sm:$0xff] }
  0x7e   : > { %v1798_v7 = vcombine.high %v527_v0, %v531_v1  ;;  %v1800_v10 = vcombine.high %v528_v3, %v532_v4  ;;  %v1797_v17 = vcombine.low %v527_v0, %v531_v1  ;;  %v1799_v18 = vcombine.low %v528_v3, %v532_v4  ;;  %v494_v51 = vld [vmem:[%s2318_s5 + $0xf8] sm:$0xff]  ;;  %v481_v56 = vld [vmem:[%s2318_s5 + $0x90] sm:$0xff] }
  0x7f   : > { %v485_v57 = vld [vmem:[%s2318_s5 + $0xb0] sm:$0xff]  ;;  %v482_v58 = vld [vmem:[%s2318_s5 + $0x98] sm:$0xff] }
  0x80   : > { %1266 = vmatpush1.bf16.msra.mxu0 %v1733_v12  ;;  %1319 = vmatpush1.bf16.msra.mxu1 %v1735_v13  ;;  %v525_v12 = vld [vmem:[%s2318_s5 + $0x1f0] sm:$0xff]  ;;  %v486_v59 = vld [vmem:[%s2318_s5 + $0xb8] sm:$0xff] }
  0x81   : > { %1267 = vmatprep.subr.bf16.mxu0 %v1854_v14  ;;  %1320 = vmatprep.subr.bf16.mxu1 %v1856_v15  ;;  %v457_v13 = vld [vmem:[%s2537_s0 + $0x10] sm:$0xff]  ;;  %v522_v14 = vld [vmem:[%s2318_s5 + $0x1d8] sm:$0xff]  ;;  %v1794_v19 = vcombine.high %v521_v11, %v525_v12  ;;  %v1793_v27 = vcombine.low %v521_v11, %v525_v12 }
  0x82   : > { %v526_v15 = vld [vmem:[%s2318_s5 + $0x1f8] sm:$0xff]  ;;  %v473_v0 = vld [vmem:[%s2318_s5 + $0x50] sm:$0xff] }
  0x83   : > { %v477_v1 = vld [vmem:[%s2318_s5 + $0x70] sm:$0xff]  ;;  %v474_v3 = vld [vmem:[%s2318_s5 + $0x58] sm:$0xff] }
  0x84   : > { %1268 = vmatpush2.bf16.msra.mxu0 %v1853_v20  ;;  %1321 = vmatpush2.bf16.msra.mxu1 %v1855_v21  ;;  %v1796_v20 = vcombine.high %v522_v14, %v526_v15  ;;  %v513_v21 = vld [vmem:[%s2318_s5 + $0x190] sm:$0xff]  ;;  %v478_v4 = vld [vmem:[%s2318_s5 + $0x78] sm:$0xff] }
  0x85   : > { %1269 = vmatprep.subr.bf16.mxu0 %v1846_v22  ;;  %1322 = vmatprep.subr.bf16.mxu1 %v1848_v23  ;;  %v517_v22 = vld [vmem:[%s2318_s5 + $0x1b0] sm:$0xff]  ;;  %v461_v23 = vmax.bf16 %v1981_v2, %v457_v13  ;;  %v506_v2 = vld [vmem:[%s2318_s5 + $0x158] sm:$0xff] }
  0x86   : > { %v1785_v35 = vcombine.low %v513_v21, %v517_v22  ;;  %v469_v11 = vld [vmem:[%s2318_s5 + $0x30] sm:$0xff]  ;;  %v466_v12 = vld [vmem:[%s2318_s5 + $0x18] sm:$0xff] }
  0x87   : > { %v2408_v33 = vcombine.high %v461_v23, %v462_v24  ;;  %v2420_v43 = vcombine.low %v461_v23, %v462_v24  ;;  %v470_v13 = vld [vmem:[%s2318_s5 + $0x38] sm:$0xff] }
  0x88   : > { %1270 = vmatpush2.bf16.msra.mxu0 %v1845_v28  ;;  %1323 = vmatpush2.bf16.msra.mxu1 %v1847_v29  ;;  %v1795_v28 = vcombine.low %v522_v14, %v526_v15  ;;  %v1786_v29 = vcombine.high %v513_v21, %v517_v22  ;;  %v1745_v14 = vcombine.low %v473_v0, %v477_v1  ;;  %v590_v21 = vld [vmem:[%s2318_s5 + $0x3f8] sm:$0xff] }
  0x89   : > { %1271 = vmatprep.subr.bf16.mxu0 %v1838_v30  ;;  %1324 = vmatprep.subr.bf16.mxu1 %v1840_v31  ;;  %v1788_v30 = vcombine.high %v514_v25, %v518_v26  ;;  %v505_v31 = vld [vmem:[%s2318_s5 + $0x150] sm:$0xff]  ;;  %v1747_v15 = vcombine.low %v474_v3, %v478_v4  ;;  %v1739_v23 = vcombine.low %v466_v12, %v470_v13 }
  0x8c   : > { %1272 = vmatpush2.bf16.msra.mxu0 %v1837_v36  ;;  %1325 = vmatpush2.bf16.msra.mxu1 %v1839_v37  ;;  %v1787_v36 = vcombine.low %v514_v25, %v518_v26  ;;  %v1778_v37 = vcombine.high %v505_v31, %v509_v32  ;;  %v577_v26 = vld [vmem:[%s2318_s5 + $0x390] sm:$0xff] }
  0x8d   : > { %1273 = vmatprep.subr.bf16.mxu0 %v1830_v38  ;;  %1326 = vmatprep.subr.bf16.mxu1 %v1832_v39  ;;  %v1780_v38 = vcombine.high %v506_v2, %v510_v34  ;;  %v497_v39 = vld [vmem:[%s2318_s5 + $0x110] sm:$0xff] }
  0x90   : > { %1274 = vmatpush2.bf16.msra.mxu0 %v1829_v44  ;;  %1327 = vmatpush2.bf16.msra.mxu1 %v1831_v45  ;;  %v1777_v44 = vcombine.low %v505_v31, %v509_v32  ;;  %v1779_v45 = vcombine.low %v506_v2, %v510_v34  ;;  %v569_v34 = vld [vmem:[%s2318_s5 + $0x350] sm:$0xff] }
  0x91   : > { %1275 = vmatprep.subr.bf16.mxu0 %v1822_v46  ;;  %1328 = vmatprep.subr.bf16.mxu1 %v1824_v47  ;;  %v1770_v46 = vcombine.high %v497_v39, %v501_v40  ;;  %v1772_v47 = vcombine.high %v498_v41, %v502_v42 }
  0x94   : > { %1276 = vmatpush2.bf16.msra.mxu0 %v1821_v52  ;;  %1329 = vmatpush2.bf16.msra.mxu1 %v1823_v53  ;;  %v1769_v52 = vcombine.low %v497_v39, %v501_v40  ;;  %v1771_v53 = vcombine.low %v498_v41, %v502_v42  ;;  %v561_v42 = vld [vmem:[%s2318_s5 + $0x310] sm:$0xff] }
  0x95   : > { %1277 = vmatprep.subr.bf16.mxu0 %v1814_v54  ;;  %1330 = vmatprep.subr.bf16.mxu1 %v1816_v55  ;;  %v1762_v54 = vcombine.high %v489_v48, %v493_v49  ;;  %v1764_v55 = vcombine.high %v490_v50, %v494_v51 }
  0x98   : > { %1278 = vmatpush2.bf16.msra.mxu0 %v1813_v60  ;;  %1331 = vmatpush2.bf16.msra.mxu1 %v1815_v61  ;;  %v1761_v60 = vcombine.low %v489_v48, %v493_v49  ;;  %v1763_v61 = vcombine.low %v490_v50, %v494_v51  ;;  %v553_v51 = vld [vmem:[%s2318_s5 + $0x2d0] sm:$0xff] }
  0x99   : > { %1279 = vmatprep.subr.bf16.mxu0 %v1806_v62  ;;  %1332 = vmatprep.subr.bf16.mxu1 %v1808_v63  ;;  %v1754_v62 = vcombine.high %v481_v56, %v485_v57  ;;  %v1756_v63 = vcombine.high %v482_v58, %v486_v59 }
  0x9c   : > { %1280 = vmatpush2.bf16.msra.mxu0 %v1805_v5  ;;  %1333 = vmatpush2.bf16.msra.mxu1 %v1807_v6  ;;  %v1753_v5 = vcombine.low %v481_v56, %v485_v57  ;;  %v1746_v6 = vcombine.high %v473_v0, %v477_v1 }
  0x9d   : > { %1281 = vmatprep.subr.bf16.mxu0 %v1798_v7  ;;  %1334 = vmatprep.subr.bf16.mxu1 %v1800_v10  ;;  %v1748_v7 = vcombine.high %v474_v3, %v478_v4  ;;  %v465_v10 = vld [vmem:[%s2318_s5 + $0x10] sm:$0xff] }
  0x9e   : > { %v1738_v16 = vcombine.high %v465_v10, %v469_v11  ;;  %v1737_v22 = vcombine.low %v465_v10, %v469_v11  ;;  %v537_v4 = vld [vmem:[%s2318_s5 + $0x250] sm:$0xff] }
  0xa0   : > { %1282 = vmatpush2.bf16.msra.mxu0 %v1797_v17  ;;  %1335 = vmatpush2.bf16.msra.mxu1 %v1799_v18  ;;  %v1740_v17 = vcombine.high %v466_v12, %v470_v13  ;;  %v585_v18 = vld [vmem:[%s2318_s5 + $0x3d0] sm:$0xff] }
  0xa1   : > { %1357 = vmatprep.subr.bf16.mxu0 %v1794_v19  ;;  %1410 = vmatprep.subr.bf16.mxu1 %v1796_v20  ;;  %v589_v19 = vld [vmem:[%s2318_s5 + $0x3f0] sm:$0xff]  ;;  %v586_v20 = vld [vmem:[%s2318_s5 + $0x3d8] sm:$0xff] }
  0xa2   : > { %v1858_v24 = vcombine.high %v585_v18, %v589_v19  ;;  %v1860_v25 = vcombine.high %v586_v20, %v590_v21  ;;  %v1859_v31 = vcombine.low %v586_v20, %v590_v21  ;;  %v529_v13 = vld [vmem:[%s2318_s5 + $0x210] sm:$0xff] }
  0xa3   : > { %1284 = vmatmul.mubr.bf16.vlgmr.msra.gmra.mxu0 %v2325_v9  ;;  %1337 = vmatmul.mubr.bf16.vlgmr.msra.gmra.mxu1 %v2325_v9 }
  0xa4   : > { %1358 = vmatpush1.bf16.msra.mxu0 %v1793_v27  ;;  %1411 = vmatpush1.bf16.msra.mxu1 %v1795_v28  ;;  %v581_v27 = vld [vmem:[%s2318_s5 + $0x3b0] sm:$0xff]  ;;  %v578_v28 = vld [vmem:[%s2318_s5 + $0x398] sm:$0xff] }
  0xa5   : > { %1359 = vmatprep.subr.bf16.mxu0 %v1786_v29  ;;  %1412 = vmatprep.subr.bf16.mxu1 %v1788_v30  ;;  %v582_v29 = vld [vmem:[%s2318_s5 + $0x3b8] sm:$0xff]  ;;  %v1857_v30 = vcombine.low %v585_v18, %v589_v19  ;;  %v1850_v32 = vcombine.high %v577_v26, %v581_v27 }
  0xa6   : > { %1293 = vmatprep.mubr.bf16.mxu0 %v2408_v33  ;;  %1346 = vmatprep.mubr.bf16.mxu1 %v2408_v33  ;;  %v1852_v2 = vcombine.high %v578_v28, %v582_v29  ;;  %v1851_v39 = vcombine.low %v578_v28, %v582_v29 }
  0xa8   : > { %1360 = vmatpush1.bf16.msra.mxu0 %v1785_v35  ;;  %1413 = vmatpush1.bf16.msra.mxu1 %v1787_v36  ;;  %v573_v35 = vld [vmem:[%s2318_s5 + $0x370] sm:$0xff]  ;;  %v570_v36 = vld [vmem:[%s2318_s5 + $0x358] sm:$0xff] }
  0xa9   : > { %1361 = vmatprep.subr.bf16.mxu0 %v1778_v37  ;;  %1414 = vmatprep.subr.bf16.mxu1 %v1780_v38  ;;  %v574_v37 = vld [vmem:[%s2318_s5 + $0x378] sm:$0xff]  ;;  %v1849_v38 = vcombine.low %v577_v26, %v581_v27  ;;  %v1842_v40 = vcombine.high %v569_v34, %v573_v35 }
  0xaa   : > { %v1844_v41 = vcombine.high %v570_v36, %v574_v37  ;;  %v1843_v48 = vcombine.low %v570_v36, %v574_v37 }
  0xab   : > { %1294 = vmatmul.mubr.bf16.gmra.mxu0 %v2420_v43  ;;  %1347 = vmatmul.mubr.bf16.gmra.mxu1 %v2420_v43 }
  0xac   : > { %1362 = vmatpush1.bf16.msra.mxu0 %v1777_v44  ;;  %1415 = vmatpush1.bf16.msra.mxu1 %v1779_v45  ;;  %v565_v44 = vld [vmem:[%s2318_s5 + $0x330] sm:$0xff]  ;;  %v562_v45 = vld [vmem:[%s2318_s5 + $0x318] sm:$0xff] }
  0xad   : > { %1363 = vmatprep.subr.bf16.mxu0 %v1770_v46  ;;  %1416 = vmatprep.subr.bf16.mxu1 %v1772_v47  ;;  %v566_v46 = vld [vmem:[%s2318_s5 + $0x338] sm:$0xff]  ;;  %v1841_v47 = vcombine.low %v569_v34, %v573_v35  ;;  %v1834_v49 = vcombine.high %v561_v42, %v565_v44 }
  0xae   : > { %1389 = vmatprep.mubr.bf16.mxu0 %v2323_v8  ;;  %1442 = vmatprep.mubr.bf16.mxu1 %v2323_v8  ;;  %v1755_v8 = vcombine.low %v482_v58, %v486_v59  ;;  %v1836_v50 = vcombine.high %v562_v45, %v566_v46  ;;  %v1835_v56 = vcombine.low %v562_v45, %v566_v46  ;;  %v545_v59 = vld [vmem:[%s2318_s5 + $0x290] sm:$0xff] }
  0xb0   : > { %1364 = vmatpush1.bf16.msra.mxu0 %v1769_v52  ;;  %1417 = vmatpush1.bf16.msra.mxu1 %v1771_v53  ;;  %v557_v52 = vld [vmem:[%s2318_s5 + $0x2f0] sm:$0xff]  ;;  %v554_v53 = vld [vmem:[%s2318_s5 + $0x2d8] sm:$0xff] }
  0xb1   : > { %1365 = vmatprep.subr.bf16.mxu0 %v1762_v54  ;;  %1418 = vmatprep.subr.bf16.mxu1 %v1764_v55  ;;  %v558_v54 = vld [vmem:[%s2318_s5 + $0x2f8] sm:$0xff]  ;;  %v1833_v55 = vcombine.low %v561_v42, %v565_v44  ;;  %v1826_v57 = vcombine.high %v553_v51, %v557_v52 }
  0xb2   : > { %v1828_v58 = vcombine.high %v554_v53, %v558_v54  ;;  %v1827_v0 = vcombine.low %v554_v53, %v558_v54 }
  0xb4   : > { %1366 = vmatpush1.bf16.msra.mxu0 %v1761_v60  ;;  %1419 = vmatpush1.bf16.msra.mxu1 %v1763_v61  ;;  %v549_v60 = vld [vmem:[%s2318_s5 + $0x2b0] sm:$0xff]  ;;  %v546_v61 = vld [vmem:[%s2318_s5 + $0x298] sm:$0xff] }
  0xb5   : > { %1367 = vmatprep.subr.bf16.mxu0 %v1754_v62  ;;  %1420 = vmatprep.subr.bf16.mxu1 %v1756_v63  ;;  %v550_v62 = vld [vmem:[%s2318_s5 + $0x2b8] sm:$0xff]  ;;  %v1825_v63 = vcombine.low %v553_v51, %v557_v52  ;;  %v1818_v1 = vcombine.high %v545_v59, %v549_v60 }
  0xb6   : > { %v1820_v3 = vcombine.high %v546_v61, %v550_v62  ;;  %v1819_v10 = vcombine.low %v546_v61, %v550_v62 }
  0xb8   : > { %1368 = vmatpush1.bf16.msra.mxu0 %v1753_v5  ;;  %1421 = vmatpush1.bf16.msra.mxu1 %v1755_v8  ;;  %v541_v5 = vld [vmem:[%s2318_s5 + $0x270] sm:$0xff]  ;;  %v538_v8 = vld [vmem:[%s2318_s5 + $0x258] sm:$0xff] }
  0xb9   : > { %1369 = vmatprep.subr.bf16.mxu0 %v1746_v6  ;;  %1422 = vmatprep.subr.bf16.mxu1 %v1748_v7  ;;  %v542_v6 = vld [vmem:[%s2318_s5 + $0x278] sm:$0xff]  ;;  %v1817_v7 = vcombine.low %v545_v59, %v549_v60  ;;  %v1810_v11 = vcombine.high %v537_v4, %v541_v5 }
  0xba   : > { %v1812_v12 = vcombine.high %v538_v8, %v542_v6  ;;  %v1811_v18 = vcombine.low %v538_v8, %v542_v6 }
  0xbc   : > { %1370 = vmatpush1.bf16.msra.mxu0 %v1745_v14  ;;  %1423 = vmatpush1.bf16.msra.mxu1 %v1747_v15  ;;  %v533_v14 = vld [vmem:[%s2318_s5 + $0x230] sm:$0xff]  ;;  %v530_v15 = vld [vmem:[%s2318_s5 + $0x218] sm:$0xff] }
  0xbd   : > { %1371 = vmatprep.subr.bf16.mxu0 %v1738_v16  ;;  %1424 = vmatprep.subr.bf16.mxu1 %v1740_v17  ;;  %v534_v16 = vld [vmem:[%s2318_s5 + $0x238] sm:$0xff]  ;;  %v1809_v17 = vcombine.low %v537_v4, %v541_v5  ;;  %v1802_v19 = vcombine.high %v529_v13, %v533_v14  ;;  %v1801_v21 = vcombine.low %v529_v13, %v533_v14 }
  0xbe   : > { %v1804_v20 = vcombine.high %v530_v15, %v534_v16 }
  0xc0   : > { %1372 = vmatpush1.bf16.msra.mxu0 %v1737_v22  ;;  %1425 = vmatpush1.bf16.msra.mxu1 %v1739_v23  ;;  %v1803_v22 = vcombine.low %v530_v15, %v534_v16 }
  0xc1   : > { %1373 = vmatprep.subr.bf16.mxu0 %v1858_v24  ;;  %1426 = vmatprep.subr.bf16.mxu1 %v1860_v25 }
  0xc4   : > { %1374 = vmatpush2.bf16.msra.mxu0 %v1857_v30  ;;  %1427 = vmatpush2.bf16.msra.mxu1 %v1859_v31 }
  0xc5   : > { %1375 = vmatprep.subr.bf16.mxu0 %v1850_v32  ;;  %1428 = vmatprep.subr.bf16.mxu1 %v1852_v2 }
  0xc8   : > { %1376 = vmatpush2.bf16.msra.mxu0 %v1849_v38  ;;  %1429 = vmatpush2.bf16.msra.mxu1 %v1851_v39 }
  0xc9   : > { %1377 = vmatprep.subr.bf16.mxu0 %v1842_v40  ;;  %1430 = vmatprep.subr.bf16.mxu1 %v1844_v41 }
  0xcc   : > { %1378 = vmatpush2.bf16.msra.mxu0 %v1841_v47  ;;  %1431 = vmatpush2.bf16.msra.mxu1 %v1843_v48 }
  0xcd   : > { %1379 = vmatprep.subr.bf16.mxu0 %v1834_v49  ;;  %1432 = vmatprep.subr.bf16.mxu1 %v1836_v50 }
  0xd0   : > { %1380 = vmatpush2.bf16.msra.mxu0 %v1833_v55  ;;  %1433 = vmatpush2.bf16.msra.mxu1 %v1835_v56 }
  0xd1   : > { %1381 = vmatprep.subr.bf16.mxu0 %v1826_v57  ;;  %1434 = vmatprep.subr.bf16.mxu1 %v1828_v58 }
  0xd4   : > { %1382 = vmatpush2.bf16.msra.mxu0 %v1825_v63  ;;  %1435 = vmatpush2.bf16.msra.mxu1 %v1827_v0 }
  0xd5   : > { %1383 = vmatprep.subr.bf16.mxu0 %v1818_v1  ;;  %1436 = vmatprep.subr.bf16.mxu1 %v1820_v3 }
  0xd8   : > { %1384 = vmatpush2.bf16.msra.mxu0 %v1817_v7  ;;  %1437 = vmatpush2.bf16.msra.mxu1 %v1819_v10 }
  0xd9   : > { %1385 = vmatprep.subr.bf16.mxu0 %v1810_v11  ;;  %1438 = vmatprep.subr.bf16.mxu1 %v1812_v12 }
  0xdc   : > { %1386 = vmatpush2.bf16.msra.mxu0 %v1809_v17  ;;  %1439 = vmatpush2.bf16.msra.mxu1 %v1811_v18 }
  0xdd   : > { %1387 = vmatprep.subr.bf16.mxu0 %v1802_v19  ;;  %1440 = vmatprep.subr.bf16.mxu1 %v1804_v20 }
  0xe0   : > { %1388 = vmatpush2.bf16.msra.mxu0 %v1801_v21  ;;  %1441 = vmatpush2.bf16.msra.mxu1 %v1803_v22 }
  0xe3   : > { %1390 = vmatmul.mubr.bf16.vlgmr.msra.gmra.mxu0 %v2325_v9  ;;  %1443 = vmatmul.mubr.bf16.vlgmr.msra.gmra.mxu1 %v2325_v9 }
  0xe4   : > { %1399 = vmatprep.mubr.bf16.mxu0 %v2408_v33  ;;  %1452 = vmatprep.mubr.bf16.mxu1 %v2408_v33 }
  0xeb   : > { %1400 = vmatmul.mubr.bf16.gmra.mxu0 %v2420_v43  ;;  %1453 = vmatmul.mubr.bf16.gmra.mxu1 %v2420_v43 }
 0x163   : > { %v1285_v23 = vpop.f32.mrf.mxu0  ;;  %v1338_v24 = vpop.f32.mrf.mxu1 }
 0x165   : > { %v1287_v25 = vpop.f32.mrf.mxu0  ;;  %v1340_v27 = vpop.f32.mrf.mxu1 }
 0x166   : > { %v1883_v26 = vpack.c.bf16 %v1287_v25, %v1285_v23  ;;  %v1884_v28 = vpack.c.bf16 %v1340_v27, %v1338_v24 }
 0x167   : > { %v1289_v29 = vpop.f32.mrf.mxu0  ;;  %v1342_v9 = vpop.f32.mrf.mxu1 }
 0x168   : > { %1559 = vst [vmem:[%s2482_s17] sm:$0xff] %v1883_v26  ;;  %1560 = vst [vmem:[%s2482_s17 + $0x8] sm:$0xff] %v1884_v28 }
 0x169   : > { %v1291_v33 = vpop.f32.mrf.mxu0  ;;  %v1344_v30 = vpop.f32.mrf.mxu1 }
 0x16a   : > { %v1887_v43 = vpack.c.bf16 %v1291_v33, %v1289_v29  ;;  %v1888_v31 = vpack.c.bf16 %v1344_v30, %v1342_v9 }
 0x16b   : > { %v1295_v32 = vpop.f32.mrf.mxu0  ;;  %v1348_v2 = vpop.f32.mrf.mxu1 }
 0x16c   : > { %1563 = vst [vmem:[%s2482_s17 + $0x20] sm:$0xff] %v1887_v43  ;;  %1564 = vst [vmem:[%s2482_s17 + $0x28] sm:$0xff] %v1888_v31 }
 0x16d   : > { %v1297_v34 = vpop.f32.mrf.mxu0  ;;  %v1350_v36 = vpop.f32.mrf.mxu1 }
 0x16e   : > { %v1891_v35 = vpack.c.bf16 %v1297_v34, %v1295_v32  ;;  %v1892_v37 = vpack.c.bf16 %v1350_v36, %v1348_v2 }
 0x16f   : > { %v1299_v38 = vpop.f32.mrf.mxu0  ;;  %v1352_v39 = vpop.f32.mrf.mxu1  ;;  %v1600_v8 = vld [vmem:[%s2482_s17] sm:$0xff] (%p2032_p6)  ;;  %v1602_v6 = vld [vmem:[%s2482_s17 + $0x8] sm:$0xff] (%p2032_p6) }
 0x170   : > { %1567 = vst [vmem:[%s2482_s17 + $0x40] sm:$0xff] %v1891_v35  ;;  %1568 = vst [vmem:[%s2482_s17 + $0x48] sm:$0xff] %v1892_v37 }
 0x171   : > { %v1301_v40 = vpop.f32.mrf.mxu0  ;;  %v1354_v42 = vpop.f32.mrf.mxu1  ;;  %1601 = vst [vmem:[%s1587_s22] sm:$0xff] (%p2032_p6), %v1600_v8  ;;  %1603 = vst [vmem:[%s1587_s22 + $0x8] sm:$0xff] (%p2032_p6), %v1602_v6 }
 0x172   : > { %v1895_v41 = vpack.c.bf16 %v1301_v40, %v1299_v38  ;;  %v1896_v44 = vpack.c.bf16 %v1354_v42, %v1352_v39 }
 0x173   : > { %v1608_v11 = vld [vmem:[%s2482_s17 + $0x20] sm:$0xff] (%p2032_p6)  ;;  %v1610_v12 = vld [vmem:[%s2482_s17 + $0x28] sm:$0xff] (%p2032_p6) }
 0x174   : > { %1571 = vst [vmem:[%s2482_s17 + $0x60] sm:$0xff] %v1895_v41  ;;  %1572 = vst [vmem:[%s2482_s17 + $0x68] sm:$0xff] %v1896_v44 }
 0x175   : > { %1609 = vst [vmem:[%s1587_s22 + $0x40] sm:$0xff] (%p2032_p6), %v1608_v11  ;;  %1611 = vst [vmem:[%s1587_s22 + $0x48] sm:$0xff] (%p2032_p6), %v1610_v12 }
 0x177   : > { %v1616_v15 = vld [vmem:[%s2482_s17 + $0x40] sm:$0xff] (%p2032_p6)  ;;  %v1618_v16 = vld [vmem:[%s2482_s17 + $0x48] sm:$0xff] (%p2032_p6) }
 0x178   : > { %1617 = vst [vmem:[%s1587_s22 + $0x80] sm:$0xff] (%p2032_p6), %v1616_v15  ;;  %1619 = vst [vmem:[%s1587_s22 + $0x88] sm:$0xff] (%p2032_p6), %v1618_v16 }
 0x17b   : > { %v1624_v19 = vld [vmem:[%s2482_s17 + $0x60] sm:$0xff] (%p2032_p6)  ;;  %v1626_v20 = vld [vmem:[%s2482_s17 + $0x68] sm:$0xff] (%p2032_p6) }
 0x17c   : > { %1625 = vst [vmem:[%s1587_s22 + $0xc0] sm:$0xff] (%p2032_p6), %v1624_v19  ;;  %1627 = vst [vmem:[%s1587_s22 + $0xc8] sm:$0xff] (%p2032_p6), %v1626_v20 }
 0x1a3   : > { %v1391_v45 = vpop.f32.mrf.mxu0  ;;  %v1444_v46 = vpop.f32.mrf.mxu1 }
 0x1a5   : > { %v1393_v47 = vpop.f32.mrf.mxu0  ;;  %v1446_v49 = vpop.f32.mrf.mxu1 }
 0x1a6   : > { %v1885_v48 = vpack.c.bf16 %v1393_v47, %v1391_v45  ;;  %v1886_v50 = vpack.c.bf16 %v1446_v49, %v1444_v46 }
 0x1a7   : > { %v1395_v51 = vpop.f32.mrf.mxu0  ;;  %v1448_v52 = vpop.f32.mrf.mxu1 }
 0x1a8   : > { %1561 = vst [vmem:[%s2482_s17 + $0x10] sm:$0xff] %v1885_v48  ;;  %1562 = vst [vmem:[%s2482_s17 + $0x18] sm:$0xff] %v1886_v50 }
 0x1a9   : > { %v1397_v53 = vpop.f32.mrf.mxu0  ;;  %v1450_v55 = vpop.f32.mrf.mxu1 }
 0x1aa   : > { %v1889_v54 = vpack.c.bf16 %v1397_v53, %v1395_v51  ;;  %v1890_v56 = vpack.c.bf16 %v1450_v55, %v1448_v52 }
 0x1ab   : > { %v1401_v57 = vpop.f32.mrf.mxu0  ;;  %v1454_v58 = vpop.f32.mrf.mxu1 }
 0x1ac   : > { %1565 = vst [vmem:[%s2482_s17 + $0x30] sm:$0xff] %v1889_v54  ;;  %1566 = vst [vmem:[%s2482_s17 + $0x38] sm:$0xff] %v1890_v56 }
 0x1ad   : > { %v1403_v59 = vpop.f32.mrf.mxu0  ;;  %v1456_v61 = vpop.f32.mrf.mxu1 }
 0x1ae   : > { %v1893_v60 = vpack.c.bf16 %v1403_v59, %v1401_v57  ;;  %v1894_v62 = vpack.c.bf16 %v1456_v61, %v1454_v58 }
 0x1af   : > { %v1405_v63 = vpop.f32.mrf.mxu0  ;;  %v1458_v0 = vpop.f32.mrf.mxu1  ;;  %v1604_v7 = vld [vmem:[%s2482_s17 + $0x10] sm:$0xff] (%p2032_p6)  ;;  %v1606_v10 = vld [vmem:[%s2482_s17 + $0x18] sm:$0xff] (%p2032_p6) }
 0x1b0   : > { %1569 = vst [vmem:[%s2482_s17 + $0x50] sm:$0xff] %v1893_v60  ;;  %1570 = vst [vmem:[%s2482_s17 + $0x58] sm:$0xff] %v1894_v62  ;;  %1581 = sbr.rel (!%p2032_p6) target bundleno = 445 (0x1bd), region = 55 }
 0x1b1   : > { %v1407_v1 = vpop.f32.mrf.mxu0  ;;  %v1460_v4 = vpop.f32.mrf.mxu1  ;;  %1605 = vst [vmem:[%s1587_s22 + $0x10] sm:$0xff] (%p2032_p6), %v1604_v7  ;;  %1607 = vst [vmem:[%s1587_s22 + $0x18] sm:$0xff] (%p2032_p6), %v1606_v10 }
 0x1b2   : > { %v1897_v3 = vpack.c.bf16 %v1407_v1, %v1405_v63  ;;  %v1898_v5 = vpack.c.bf16 %v1460_v4, %v1458_v0 }
 0x1b3   : > { %v1612_v13 = vld [vmem:[%s2482_s17 + $0x30] sm:$0xff] (%p2032_p6)  ;;  %v1614_v14 = vld [vmem:[%s2482_s17 + $0x38] sm:$0xff] (%p2032_p6) }
 0x1b4   : > { %1573 = vst [vmem:[%s2482_s17 + $0x70] sm:$0xff] %v1897_v3  ;;  %1574 = vst [vmem:[%s2482_s17 + $0x78] sm:$0xff] %v1898_v5 }
 0x1b5   : > { %1613 = vst [vmem:[%s1587_s22 + $0x50] sm:$0xff] %v1612_v13  ;;  %1615 = vst [vmem:[%s1587_s22 + $0x58] sm:$0xff] %v1614_v14 }
 0x1b7   : > { %v1620_v17 = vld [vmem:[%s2482_s17 + $0x50] sm:$0xff]  ;;  %v1622_v18 = vld [vmem:[%s2482_s17 + $0x58] sm:$0xff] }
 0x1b8   : > { %1621 = vst [vmem:[%s1587_s22 + $0x90] sm:$0xff] %v1620_v17  ;;  %1623 = vst [vmem:[%s1587_s22 + $0x98] sm:$0xff] %v1622_v18 }
 0x1bb   : > { %v1628_v21 = vld [vmem:[%s2482_s17 + $0x70] sm:$0xff]  ;;  %v1630_v22 = vld [vmem:[%s2482_s17 + $0x78] sm:$0xff] }
 0x1bc   : > { %1629 = vst [vmem:[%s1587_s22 + $0xd0] sm:$0xff] %v1628_v21  ;;  %1631 = vst [vmem:[%s1587_s22 + $0xd8] sm:$0xff] %v1630_v22 }
 0x1bd PF: > { %s12_s13 = sadd.s32 1, %s1979_s13   ;;  %s2541_s9 = smov %s1967_s10 }
 0x1be   : > { %p9_p11 = scmp.ge.s32.totalorder %s12_s13, 4   ;;  %s2542_s10 = smov %s2037_s19 }
 0x1bf   : > { %s2543_s11 = smov %s1975_s12  ;;  %s2544_s12 = smov %s2546_s14 }
 0x1c0   :  { %11 = sbr.rel (!%p9_p11) target bundleno = 3 (0x3), region = 112 }

// kernel: net_decoder_forward.7
= control target key start
LH: loop header
LB: loop body
LE: loop exit
PB: predicated region body
PF: predicated region fallthrough
CT: control target
= control target key end

     0   :  { %v1581_v3 = vmov 0   ;;  %s2101_s1 = inlined_call_operand.vmem [shape: bf16[128,1024], index: 1, kind: input, shape index: {}]   ;;  %s2102_s0 = inlined_call_operand.vmem [shape: bf16[128,128], index: 0, kind: input, shape index: {}]   ;;  %s2103_s2 = inlined_call_operand.vmem [shape: bf16[128,1024], index: 2, kind: output, shape index: {}]  }
   0x1   :  { %v100_v0 = vld [vmem:[%s2101_s1 + $0x1c0] sm:$0xff]  ;;  %v101_v2 = vld [vmem:[%s2101_s1 + $0x1c8] sm:$0xff]  ;;  %508 = vmatprep.mubr.bf16.mxu0 %v1581_v3  ;;  %621 = vmatprep.mubr.bf16.mxu1 %v1581_v3 }
   0x2   :  { %v104_v1 = vld [vmem:[%s2101_s1 + $0x1e0] sm:$0xff]  ;;  %v105_v5 = vld [vmem:[%s2101_s1 + $0x1e8] sm:$0xff] }
   0x3   :  { %v1445_v4 = vcombine.high %v100_v0, %v104_v1  ;;  %v1444_v6 = vcombine.low %v100_v0, %v104_v1  ;;  %v92_v7 = vld [vmem:[%s2101_s1 + $0x180] sm:$0xff]  ;;  %v1447_v9 = vcombine.high %v101_v2, %v105_v5  ;;  %v1446_v10 = vcombine.low %v101_v2, %v105_v5  ;;  %v93_v12 = vld [vmem:[%s2101_s1 + $0x188] sm:$0xff]  ;;  %v102_v1 = vld [vmem:[%s2101_s1 + $0x1d0] sm:$0xff] }
   0x4   :  { %v96_v8 = vld [vmem:[%s2101_s1 + $0x1a0] sm:$0xff]  ;;  %v97_v13 = vld [vmem:[%s2101_s1 + $0x1a8] sm:$0xff]  ;;  %v106_v2 = vld [vmem:[%s2101_s1 + $0x1f0] sm:$0xff] }
   0x5   :  { %v1437_v11 = vcombine.high %v92_v7, %v96_v8  ;;  %v84_v14 = vld [vmem:[%s2101_s1 + $0x140] sm:$0xff]  ;;  %476 = vmatprep.subr.bf16.mxu0 %v1445_v4  ;;  %v1439_v15 = vcombine.high %v93_v12, %v97_v13  ;;  %v85_v17 = vld [vmem:[%s2101_s1 + $0x148] sm:$0xff]  ;;  %589 = vmatprep.subr.bf16.mxu1 %v1447_v9  ;;  %v1436_v19 = vcombine.low %v92_v7, %v96_v8  ;;  %v107_v7 = vld [vmem:[%s2101_s1 + $0x1f8] sm:$0xff] }
   0x6   :  { %v88_v16 = vld [vmem:[%s2101_s1 + $0x160] sm:$0xff]  ;;  %v89_v18 = vld [vmem:[%s2101_s1 + $0x168] sm:$0xff]  ;;  %477 = vmatpush1.bf16.msra.mxu0 %v1444_v6  ;;  %590 = vmatpush1.bf16.msra.mxu1 %v1446_v10  ;;  %v1438_v20 = vcombine.low %v93_v12, %v97_v13  ;;  %v103_v6 = vld [vmem:[%s2101_s1 + $0x1d8] sm:$0xff]  ;;  %v1449_v10 = vcombine.high %v102_v1, %v106_v2 }
   0x7   :  { %478 = vmatprep.subr.bf16.mxu0 %v1437_v11  ;;  %v1429_v21 = vcombine.high %v84_v14, %v88_v16  ;;  %591 = vmatprep.subr.bf16.mxu1 %v1439_v15  ;;  %v1431_v22 = vcombine.high %v85_v17, %v89_v18  ;;  %v76_v23 = vld [vmem:[%s2101_s1 + $0x100] sm:$0xff]  ;;  %v77_v25 = vld [vmem:[%s2101_s1 + $0x108] sm:$0xff]  ;;  %v1428_v27 = vcombine.low %v84_v14, %v88_v16  ;;  %v94_v14 = vld [vmem:[%s2101_s1 + $0x190] sm:$0xff] }
   0x8   :  { %v80_v24 = vld [vmem:[%s2101_s1 + $0x120] sm:$0xff]  ;;  %v81_v26 = vld [vmem:[%s2101_s1 + $0x128] sm:$0xff]  ;;  %v1430_v28 = vcombine.low %v85_v17, %v89_v18  ;;  %v1451_v11 = vcombine.high %v103_v6, %v107_v7  ;;  %v98_v15 = vld [vmem:[%s2101_s1 + $0x1b0] sm:$0xff]  ;;  %v1448_v16 = vcombine.low %v102_v1, %v106_v2 }
   0x9   :  { %v1421_v29 = vcombine.high %v76_v23, %v80_v24  ;;  %v1423_v30 = vcombine.high %v77_v25, %v81_v26  ;;  %v68_v31 = vld [vmem:[%s2101_s1 + $0xc0] sm:$0xff]  ;;  %v69_v33 = vld [vmem:[%s2101_s1 + $0xc8] sm:$0xff]  ;;  %v1420_v35 = vcombine.low %v76_v23, %v80_v24  ;;  %v1422_v36 = vcombine.low %v77_v25, %v81_v26  ;;  %v95_v18 = vld [vmem:[%s2101_s1 + $0x198] sm:$0xff] }
   0xa   :  { %479 = vmatpush1.bf16.msra.mxu0 %v1436_v19  ;;  %592 = vmatpush1.bf16.msra.mxu1 %v1438_v20  ;;  %v72_v32 = vld [vmem:[%s2101_s1 + $0xe0] sm:$0xff]  ;;  %v73_v34 = vld [vmem:[%s2101_s1 + $0xe8] sm:$0xff]  ;;  %v99_v19 = vld [vmem:[%s2101_s1 + $0x1b8] sm:$0xff]  ;;  %v1450_v20 = vcombine.low %v103_v6, %v107_v7 }
   0xb   :  { %480 = vmatprep.subr.bf16.mxu0 %v1429_v21  ;;  %593 = vmatprep.subr.bf16.mxu1 %v1431_v22  ;;  %v1413_v37 = vcombine.high %v68_v31, %v72_v32  ;;  %v1415_v38 = vcombine.high %v69_v33, %v73_v34  ;;  %v60_v39 = vld [vmem:[%s2101_s1 + $0x80] sm:$0xff]  ;;  %v61_v41 = vld [vmem:[%s2101_s1 + $0x88] sm:$0xff]  ;;  %v1412_v43 = vcombine.low %v68_v31, %v72_v32  ;;  %v86_v22 = vld [vmem:[%s2101_s1 + $0x150] sm:$0xff] }
   0xc   :  { %v64_v40 = vld [vmem:[%s2101_s1 + $0xa0] sm:$0xff]  ;;  %v65_v42 = vld [vmem:[%s2101_s1 + $0xa8] sm:$0xff]  ;;  %v1414_v44 = vcombine.low %v69_v33, %v73_v34  ;;  %v1441_v21 = vcombine.high %v94_v14, %v98_v15  ;;  %v90_v23 = vld [vmem:[%s2101_s1 + $0x170] sm:$0xff]  ;;  %v1443_v26 = vcombine.high %v95_v18, %v99_v19 }
   0xd   :  { %v1405_v45 = vcombine.high %v60_v39, %v64_v40  ;;  %v1407_v46 = vcombine.high %v61_v41, %v65_v42  ;;  %v52_v47 = vld [vmem:[%s2101_s1 + $0x40] sm:$0xff]  ;;  %v53_v49 = vld [vmem:[%s2101_s1 + $0x48] sm:$0xff]  ;;  %v1404_v51 = vcombine.low %v60_v39, %v64_v40  ;;  %v1406_v52 = vcombine.low %v61_v41, %v65_v42  ;;  %v16_v34 = vld [vmem:[%s2102_s0 + $0x10] sm:$0xf] }
   0xe   :  { %481 = vmatpush1.bf16.msra.mxu0 %v1428_v27  ;;  %594 = vmatpush1.bf16.msra.mxu1 %v1430_v28  ;;  %v56_v48 = vld [vmem:[%s2101_s1 + $0x60] sm:$0xff]  ;;  %v57_v50 = vld [vmem:[%s2101_s1 + $0x68] sm:$0xff]  ;;  %v87_v27 = vld [vmem:[%s2101_s1 + $0x158] sm:$0xff]  ;;  %v1433_v31 = vcombine.high %v86_v22, %v90_v23  ;;  %v1432_v40 = vcombine.low %v86_v22, %v90_v23 }
   0xf   :  { %482 = vmatprep.subr.bf16.mxu0 %v1421_v29  ;;  %595 = vmatprep.subr.bf16.mxu1 %v1423_v30  ;;  %v1397_v53 = vcombine.high %v52_v47, %v56_v48  ;;  %v1399_v54 = vcombine.high %v53_v49, %v57_v50  ;;  %v44_v55 = vld [vmem:[%s2101_s1] sm:$0xff]  ;;  %v45_v57 = vld [vmem:[%s2101_s1 + $0x8] sm:$0xff]  ;;  %v1396_v59 = vcombine.low %v52_v47, %v56_v48  ;;  %v91_v28 = vld [vmem:[%s2101_s1 + $0x178] sm:$0xff] }
  0x10   :  { %v48_v56 = vld [vmem:[%s2101_s1 + $0x20] sm:$0xff]  ;;  %v49_v58 = vld [vmem:[%s2101_s1 + $0x28] sm:$0xff]  ;;  %v1398_v62 = vcombine.low %v53_v49, %v57_v50  ;;  %v1440_v29 = vcombine.low %v94_v14, %v98_v15  ;;  %v1442_v30 = vcombine.low %v95_v18, %v99_v19  ;;  %v1435_v32 = vcombine.high %v87_v27, %v91_v28  ;;  %v83_v39 = vld [vmem:[%s2101_s1 + $0x138] sm:$0xff] }
  0x11   :  { %v12_v60 = vld [vmem:[%s2102_s0] sm:$0xf]  ;;  %v13_v61 = vld [vmem:[%s2102_s0 + $0x4] sm:$0xf]  ;;  %v1389_v63 = vcombine.high %v44_v55, %v48_v56  ;;  %v1391_v0 = vcombine.high %v45_v57, %v49_v58  ;;  %v1388_v8 = vcombine.low %v44_v55, %v48_v56  ;;  %v1390_v9 = vcombine.low %v45_v57, %v49_v58  ;;  %v14_v13 = vld [vmem:[%s2102_s0 + $0x8] sm:$0xf] }
  0x12   :  { %483 = vmatpush1.bf16.msra.mxu0 %v1420_v35  ;;  %596 = vmatpush1.bf16.msra.mxu1 %v1422_v36  ;;  %v28_v4 = vmax.bf16 %v1581_v3, %v12_v60  ;;  %v29_v5 = vmax.bf16 %v1581_v3, %v13_v61  ;;  %v15_v17 = vld [vmem:[%s2102_s0 + $0xc] sm:$0xf]  ;;  %v30_v24 = vmax.bf16 %v1581_v3, %v14_v13  ;;  %v78_v35 = vld [vmem:[%s2101_s1 + $0x110] sm:$0xff]  ;;  %v71_v48 = vld [vmem:[%s2101_s1 + $0xd8] sm:$0xff] }
  0x13   :  { %484 = vmatprep.subr.bf16.mxu0 %v1413_v37  ;;  %597 = vmatprep.subr.bf16.mxu1 %v1415_v38  ;;  %v31_v25 = vmax.bf16 %v1581_v3, %v15_v17  ;;  %v82_v36 = vld [vmem:[%s2101_s1 + $0x130] sm:$0xff]  ;;  %v79_v38 = vld [vmem:[%s2101_s1 + $0x118] sm:$0xff]  ;;  %v1434_v41 = vcombine.low %v87_v27, %v91_v28  ;;  %v20_v13 = vld [vmem:[%s2102_s0 + $0x20] sm:$0xf] }
  0x14   :  { %v1715_v12 = vcombine.low %v28_v4, %v29_v5  ;;  %v17_v37 = vld [vmem:[%s2102_s0 + $0x14] sm:$0xf]  ;;  %v1425_v42 = vcombine.high %v78_v35, %v82_v36  ;;  %v75_v49 = vld [vmem:[%s2101_s1 + $0xf8] sm:$0xff]  ;;  %v1424_v50 = vcombine.low %v78_v35, %v82_v36  ;;  %v21_v17 = vld [vmem:[%s2102_s0 + $0x24] sm:$0xf]  ;;  %v36_v23 = vmax.bf16 %v1581_v3, %v20_v13 }
  0x15   :  { %v1753_v33 = vcombine.low %v30_v24, %v31_v25  ;;  %v74_v47 = vld [vmem:[%s2101_s1 + $0xf0] sm:$0xff]  ;;  %v1419_v55 = vcombine.high %v71_v48, %v75_v49  ;;  %v19_v58 = vld [vmem:[%s2102_s0 + $0x1c] sm:$0xf]  ;;  %v37_v24 = vmax.bf16 %v1581_v3, %v21_v17 }
  0x16   :  { %485 = vmatpush1.bf16.msra.mxu0 %v1412_v43  ;;  %598 = vmatpush1.bf16.msra.mxu1 %v1414_v44  ;;  %v32_v43 = vmax.bf16 %v1581_v3, %v16_v34  ;;  %v33_v44 = vmax.bf16 %v1581_v3, %v17_v37  ;;  %v62_v56 = vld [vmem:[%s2101_s1 + $0x90] sm:$0xff]  ;;  %v67_v60 = vld [vmem:[%s2101_s1 + $0xb8] sm:$0xff]  ;;  %v35_v1 = vmax.bf16 %v1581_v3, %v19_v58 }
  0x17   :  { %486 = vmatprep.subr.bf16.mxu0 %v1405_v45  ;;  %599 = vmatprep.subr.bf16.mxu1 %v1407_v46  ;;  %v1427_v45 = vcombine.high %v79_v38, %v83_v39  ;;  %v70_v46 = vld [vmem:[%s2101_s1 + $0xd0] sm:$0xff]  ;;  %v55_v6 = vld [vmem:[%s2101_s1 + $0x58] sm:$0xff]  ;;  %v1384_v28 = vcombine.low %v36_v23, %v37_v24 }
  0x18   :  { %v66_v57 = vld [vmem:[%s2101_s1 + $0xb0] sm:$0xff]  ;;  %v1416_v61 = vcombine.low %v70_v46, %v74_v47  ;;  %v59_v7 = vld [vmem:[%s2101_s1 + $0x78] sm:$0xff] }
  0x19   :  { %v54_v4 = vld [vmem:[%s2101_s1 + $0x50] sm:$0xff]  ;;  %v1403_v14 = vcombine.high %v55_v6, %v59_v7  ;;  %v47_v18 = vld [vmem:[%s2101_s1 + $0x18] sm:$0xff] }
  0x1a   :  { %487 = vmatpush1.bf16.msra.mxu0 %v1404_v51  ;;  %600 = vmatpush1.bf16.msra.mxu1 %v1406_v52  ;;  %v1426_v51 = vcombine.low %v79_v38, %v83_v39  ;;  %v1417_v52 = vcombine.high %v70_v46, %v74_v47  ;;  %v58_v5 = vld [vmem:[%s2101_s1 + $0x70] sm:$0xff]  ;;  %v51_v19 = vld [vmem:[%s2101_s1 + $0x38] sm:$0xff] }
  0x1b   :  { %488 = vmatprep.subr.bf16.mxu0 %v1397_v53  ;;  %601 = vmatprep.subr.bf16.mxu1 %v1399_v54  ;;  %v1791_v53 = vcombine.low %v32_v43, %v33_v44  ;;  %v18_v54 = vld [vmem:[%s2102_s0 + $0x18] sm:$0xf]  ;;  %v46_v15 = vld [vmem:[%s2101_s1 + $0x10] sm:$0xff]  ;;  %v1395_v25 = vcombine.high %v47_v18, %v51_v19  ;;  %v1394_v27 = vcombine.low %v47_v18, %v51_v19 }
  0x1c   :  { %v24_v35 = vld [vmem:[%s2102_s0 + $0x30] sm:$0xf]  ;;  %v25_v36 = vld [vmem:[%s2102_s0 + $0x34] sm:$0xf] }
  0x1d   :  { %v40_v37 = vmax.bf16 %v1581_v3, %v24_v35  ;;  %v41_v38 = vmax.bf16 %v1581_v3, %v25_v36 }
  0x1e   :  { %489 = vmatpush1.bf16.msra.mxu0 %v1396_v59  ;;  %602 = vmatpush1.bf16.msra.mxu1 %v1398_v62  ;;  %v63_v59 = vld [vmem:[%s2101_s1 + $0x98] sm:$0xff]  ;;  %v1418_v62 = vcombine.low %v71_v48, %v75_v49 }
  0x1f   :  { %490 = vmatprep.subr.bf16.mxu0 %v1389_v63  ;;  %603 = vmatprep.subr.bf16.mxu1 %v1391_v0  ;;  %v1409_v63 = vcombine.high %v62_v56, %v66_v57  ;;  %v34_v0 = vmax.bf16 %v1581_v3, %v18_v54  ;;  %v1411_v2 = vcombine.high %v63_v59, %v67_v60 }
  0x20   :  { %v1386_v39 = vcombine.low %v40_v37, %v41_v38 }
  0x22   :  { %491 = vmatpush1.bf16.msra.mxu0 %v1388_v8  ;;  %604 = vmatpush1.bf16.msra.mxu1 %v1390_v9  ;;  %v1408_v8 = vcombine.low %v62_v56, %v66_v57  ;;  %v1410_v9 = vcombine.low %v63_v59, %v67_v60 }
  0x23   :  { %702 = vmatprep.subr.bf16.mxu0 %v1449_v10  ;;  %815 = vmatprep.subr.bf16.mxu1 %v1451_v11  ;;  %v1401_v10 = vcombine.high %v54_v4, %v58_v5  ;;  %v1829_v11 = vcombine.low %v34_v0, %v35_v1 }
  0x25   :  { %509 = vmatmul.mubr.bf16.vlgmr.msra.gmra.mxu0 %v1715_v12  ;;  %622 = vmatmul.mubr.bf16.vlgmr.msra.gmra.mxu1 %v1715_v12 }
  0x26   :  { %703 = vmatpush1.bf16.msra.mxu0 %v1448_v16  ;;  %816 = vmatpush1.bf16.msra.mxu1 %v1450_v20  ;;  %v50_v16 = vld [vmem:[%s2101_s1 + $0x30] sm:$0xff]  ;;  %v1400_v20 = vcombine.low %v54_v4, %v58_v5 }
  0x27   :  { %518 = vmatprep.mubr.bf16.mxu0 %v1581_v3  ;;  %631 = vmatprep.mubr.bf16.mxu1 %v1581_v3  ;;  %v1393_v22 = vcombine.high %v46_v15, %v50_v16 }
  0x28   :  { %704 = vmatprep.subr.bf16.mxu0 %v1441_v21  ;;  %817 = vmatprep.subr.bf16.mxu1 %v1443_v26  ;;  %v1402_v21 = vcombine.low %v55_v6, %v59_v7  ;;  %v1392_v26 = vcombine.low %v46_v15, %v50_v16 }
  0x2a   :  { %705 = vmatpush1.bf16.msra.mxu0 %v1440_v29  ;;  %818 = vmatpush1.bf16.msra.mxu1 %v1442_v30  ;;  %v22_v29 = vld [vmem:[%s2102_s0 + $0x28] sm:$0xf]  ;;  %v23_v30 = vld [vmem:[%s2102_s0 + $0x2c] sm:$0xf] }
  0x2b   :  { %706 = vmatprep.subr.bf16.mxu0 %v1433_v31  ;;  %819 = vmatprep.subr.bf16.mxu1 %v1435_v32  ;;  %v38_v31 = vmax.bf16 %v1581_v3, %v22_v29  ;;  %v39_v32 = vmax.bf16 %v1581_v3, %v23_v30 }
  0x2d   :  { %519 = vmatmul.mubr.bf16.gmra.mxu0 %v1753_v33  ;;  %632 = vmatmul.mubr.bf16.gmra.mxu1 %v1753_v33  ;;  %v1385_v34 = vcombine.low %v38_v31, %v39_v32 }
  0x2e   :  { %528 = vmatprep.mubr.bf16.mxu0 %v1581_v3  ;;  %641 = vmatprep.mubr.bf16.mxu1 %v1581_v3 }
  0x2f   :  { %707 = vmatpush1.bf16.msra.mxu0 %v1432_v40  ;;  %820 = vmatpush1.bf16.msra.mxu1 %v1434_v41  ;;  %v26_v40 = vld [vmem:[%s2102_s0 + $0x38] sm:$0xf]  ;;  %v27_v41 = vld [vmem:[%s2102_s0 + $0x3c] sm:$0xf] }
  0x30   :  { %708 = vmatprep.subr.bf16.mxu0 %v1425_v42  ;;  %821 = vmatprep.subr.bf16.mxu1 %v1427_v45  ;;  %v42_v42 = vmax.bf16 %v1581_v3, %v26_v40  ;;  %v43_v43 = vmax.bf16 %v1581_v3, %v27_v41 }
  0x32   :  { %v1387_v44 = vcombine.low %v42_v42, %v43_v43 }
  0x33   :  { %709 = vmatpush1.bf16.msra.mxu0 %v1424_v50  ;;  %822 = vmatpush1.bf16.msra.mxu1 %v1426_v51 }
  0x34   :  { %710 = vmatprep.subr.bf16.mxu0 %v1417_v52  ;;  %823 = vmatprep.subr.bf16.mxu1 %v1419_v55 }
  0x35   :  { %529 = vmatmul.mubr.bf16.gmra.mxu0 %v1791_v53  ;;  %642 = vmatmul.mubr.bf16.gmra.mxu1 %v1791_v53 }
  0x36   :  { %538 = vmatprep.mubr.bf16.mxu0 %v1581_v3  ;;  %651 = vmatprep.mubr.bf16.mxu1 %v1581_v3 }
  0x37   :  { %711 = vmatpush1.bf16.msra.mxu0 %v1416_v61  ;;  %824 = vmatpush1.bf16.msra.mxu1 %v1418_v62 }
  0x38   :  { %712 = vmatprep.subr.bf16.mxu0 %v1409_v63  ;;  %825 = vmatprep.subr.bf16.mxu1 %v1411_v2 }
  0x3b   :  { %713 = vmatpush1.bf16.msra.mxu0 %v1408_v8  ;;  %826 = vmatpush1.bf16.msra.mxu1 %v1410_v9 }
  0x3c   :  { %714 = vmatprep.subr.bf16.mxu0 %v1401_v10  ;;  %827 = vmatprep.subr.bf16.mxu1 %v1403_v14 }
  0x3d   :  { %539 = vmatmul.mubr.bf16.gmra.mxu0 %v1829_v11  ;;  %652 = vmatmul.mubr.bf16.gmra.mxu1 %v1829_v11 }
  0x3e   :  { %548 = vmatprep.mubr.bf16.mxu0 %v1581_v3  ;;  %661 = vmatprep.mubr.bf16.mxu1 %v1581_v3 }
  0x3f   :  { %715 = vmatpush1.bf16.msra.mxu0 %v1400_v20  ;;  %828 = vmatpush1.bf16.msra.mxu1 %v1402_v21 }
  0x40   :  { %716 = vmatprep.subr.bf16.mxu0 %v1393_v22  ;;  %829 = vmatprep.subr.bf16.mxu1 %v1395_v25 }
  0x43   :  { %717 = vmatpush1.bf16.msra.mxu0 %v1392_v26  ;;  %830 = vmatpush1.bf16.msra.mxu1 %v1394_v27 }
  0x45   :  { %549 = vmatmul.mubr.bf16.gmra.mxu0 %v1384_v28  ;;  %662 = vmatmul.mubr.bf16.gmra.mxu1 %v1384_v28 }
  0x46   :  { %558 = vmatprep.mubr.bf16.mxu0 %v1581_v3  ;;  %671 = vmatprep.mubr.bf16.mxu1 %v1581_v3 }
  0x4d   :  { %559 = vmatmul.mubr.bf16.gmra.mxu0 %v1385_v34  ;;  %672 = vmatmul.mubr.bf16.gmra.mxu1 %v1385_v34 }
  0x4e   :  { %568 = vmatprep.mubr.bf16.mxu0 %v1581_v3  ;;  %681 = vmatprep.mubr.bf16.mxu1 %v1581_v3 }
  0x55   :  { %569 = vmatmul.mubr.bf16.gmra.mxu0 %v1386_v39  ;;  %682 = vmatmul.mubr.bf16.gmra.mxu1 %v1386_v39 }
  0x56   :  { %578 = vmatprep.mubr.bf16.mxu0 %v1581_v3  ;;  %691 = vmatprep.mubr.bf16.mxu1 %v1581_v3 }
  0x5d   :  { %579 = vmatmul.mubr.bf16.gmra.mxu0 %v1387_v44  ;;  %692 = vmatmul.mubr.bf16.gmra.mxu1 %v1387_v44 }
  0x5e   :  { %734 = vmatprep.mubr.bf16.mxu0 %v1581_v3  ;;  %847 = vmatprep.mubr.bf16.mxu1 %v1581_v3 }
  0x65   :  { %735 = vmatmul.mubr.bf16.vlgmr.msra.gmra.mxu0 %v1715_v12  ;;  %848 = vmatmul.mubr.bf16.vlgmr.msra.gmra.mxu1 %v1715_v12 }
  0x66   :  { %744 = vmatprep.mubr.bf16.mxu0 %v1581_v3  ;;  %857 = vmatprep.mubr.bf16.mxu1 %v1581_v3 }
  0x6d   :  { %745 = vmatmul.mubr.bf16.gmra.mxu0 %v1753_v33  ;;  %858 = vmatmul.mubr.bf16.gmra.mxu1 %v1753_v33 }
  0x6e   :  { %754 = vmatprep.mubr.bf16.mxu0 %v1581_v3  ;;  %867 = vmatprep.mubr.bf16.mxu1 %v1581_v3 }
  0x75   :  { %755 = vmatmul.mubr.bf16.gmra.mxu0 %v1791_v53  ;;  %868 = vmatmul.mubr.bf16.gmra.mxu1 %v1791_v53 }
  0x76   :  { %764 = vmatprep.mubr.bf16.mxu0 %v1581_v3  ;;  %877 = vmatprep.mubr.bf16.mxu1 %v1581_v3 }
  0x7d   :  { %765 = vmatmul.mubr.bf16.gmra.mxu0 %v1829_v11  ;;  %878 = vmatmul.mubr.bf16.gmra.mxu1 %v1829_v11 }
  0x7e   :  { %774 = vmatprep.mubr.bf16.mxu0 %v1581_v3  ;;  %887 = vmatprep.mubr.bf16.mxu1 %v1581_v3 }
  0x85   :  { %775 = vmatmul.mubr.bf16.gmra.mxu0 %v1384_v28  ;;  %888 = vmatmul.mubr.bf16.gmra.mxu1 %v1384_v28 }
  0x86   :  { %784 = vmatprep.mubr.bf16.mxu0 %v1581_v3  ;;  %897 = vmatprep.mubr.bf16.mxu1 %v1581_v3 }
  0x8d   :  { %785 = vmatmul.mubr.bf16.gmra.mxu0 %v1385_v34  ;;  %898 = vmatmul.mubr.bf16.gmra.mxu1 %v1385_v34 }
  0x8e   :  { %794 = vmatprep.mubr.bf16.mxu0 %v1581_v3  ;;  %907 = vmatprep.mubr.bf16.mxu1 %v1581_v3 }
  0x95   :  { %795 = vmatmul.mubr.bf16.gmra.mxu0 %v1386_v39  ;;  %908 = vmatmul.mubr.bf16.gmra.mxu1 %v1386_v39 }
  0x96   :  { %804 = vmatprep.mubr.bf16.mxu0 %v1581_v3  ;;  %917 = vmatprep.mubr.bf16.mxu1 %v1581_v3 }
  0x9d   :  { %805 = vmatmul.mubr.bf16.gmra.mxu0 %v1387_v44  ;;  %918 = vmatmul.mubr.bf16.gmra.mxu1 %v1387_v44 }
  0xe5   :  { %v510_v12 = vpop.f32.mrf.mxu0  ;;  %v623_v33 = vpop.f32.mrf.mxu1 }
  0xe7   :  { %v512_v45 = vpop.f32.mrf.mxu0  ;;  %v625_v47 = vpop.f32.mrf.mxu1 }
  0xe8   :  { %v1516_v46 = vpack.c.bf16 %v512_v45, %v510_v12  ;;  %v1517_v48 = vpack.c.bf16 %v625_v47, %v623_v33 }
  0xe9   :  { %v514_v49 = vpop.f32.mrf.mxu0  ;;  %v627_v50 = vpop.f32.mrf.mxu1 }
  0xea   :  { %1312 = vst [vmem:[%s2103_s2] sm:$0xff] %v1516_v46  ;;  %1313 = vst [vmem:[%s2103_s2 + $0x8] sm:$0xff] %v1517_v48 }
  0xeb   :  { %v516_v51 = vpop.f32.mrf.mxu0  ;;  %v629_v52 = vpop.f32.mrf.mxu1 }
  0xec   :  { %v1520_v3 = vpack.c.bf16 %v516_v51, %v514_v49  ;;  %v1521_v53 = vpack.c.bf16 %v629_v52, %v627_v50 }
  0xed   :  { %v520_v54 = vpop.f32.mrf.mxu0  ;;  %v633_v55 = vpop.f32.mrf.mxu1 }
  0xee   :  { %1316 = vst [vmem:[%s2103_s2 + $0x20] sm:$0xff] %v1520_v3  ;;  %1317 = vst [vmem:[%s2103_s2 + $0x28] sm:$0xff] %v1521_v53 }
  0xef   :  { %v522_v56 = vpop.f32.mrf.mxu0  ;;  %v635_v58 = vpop.f32.mrf.mxu1 }
  0xf0   :  { %v1524_v57 = vpack.c.bf16 %v522_v56, %v520_v54  ;;  %v1525_v59 = vpack.c.bf16 %v635_v58, %v633_v55 }
  0xf1   :  { %v524_v60 = vpop.f32.mrf.mxu0  ;;  %v637_v61 = vpop.f32.mrf.mxu1 }
  0xf2   :  { %1320 = vst [vmem:[%s2103_s2 + $0x40] sm:$0xff] %v1524_v57  ;;  %1321 = vst [vmem:[%s2103_s2 + $0x48] sm:$0xff] %v1525_v59 }
  0xf3   :  { %v526_v62 = vpop.f32.mrf.mxu0  ;;  %v639_v0 = vpop.f32.mrf.mxu1 }
  0xf4   :  { %v1528_v63 = vpack.c.bf16 %v526_v62, %v524_v60  ;;  %v1529_v1 = vpack.c.bf16 %v639_v0, %v637_v61 }
  0xf5   :  { %v530_v2 = vpop.f32.mrf.mxu0  ;;  %v643_v4 = vpop.f32.mrf.mxu1 }
  0xf6   :  { %1324 = vst [vmem:[%s2103_s2 + $0x60] sm:$0xff] %v1528_v63  ;;  %1325 = vst [vmem:[%s2103_s2 + $0x68] sm:$0xff] %v1529_v1 }
  0xf7   :  { %v532_v5 = vpop.f32.mrf.mxu0  ;;  %v645_v7 = vpop.f32.mrf.mxu1 }
  0xf8   :  { %v1532_v6 = vpack.c.bf16 %v532_v5, %v530_v2  ;;  %v1533_v8 = vpack.c.bf16 %v645_v7, %v643_v4 }
  0xf9   :  { %v534_v9 = vpop.f32.mrf.mxu0  ;;  %v647_v10 = vpop.f32.mrf.mxu1 }
  0xfa   :  { %1328 = vst [vmem:[%s2103_s2 + $0x80] sm:$0xff] %v1532_v6  ;;  %1329 = vst [vmem:[%s2103_s2 + $0x88] sm:$0xff] %v1533_v8 }
  0xfb   :  { %v536_v11 = vpop.f32.mrf.mxu0  ;;  %v649_v14 = vpop.f32.mrf.mxu1 }
  0xfc   :  { %v1536_v13 = vpack.c.bf16 %v536_v11, %v534_v9  ;;  %v1537_v15 = vpack.c.bf16 %v649_v14, %v647_v10 }
  0xfd   :  { %v540_v16 = vpop.f32.mrf.mxu0  ;;  %v653_v17 = vpop.f32.mrf.mxu1 }
  0xfe   :  { %1332 = vst [vmem:[%s2103_s2 + $0xa0] sm:$0xff] %v1536_v13  ;;  %1333 = vst [vmem:[%s2103_s2 + $0xa8] sm:$0xff] %v1537_v15 }
  0xff   :  { %v542_v18 = vpop.f32.mrf.mxu0  ;;  %v655_v20 = vpop.f32.mrf.mxu1 }
 0x100   :  { %v1540_v19 = vpack.c.bf16 %v542_v18, %v540_v16  ;;  %v1541_v21 = vpack.c.bf16 %v655_v20, %v653_v17 }
 0x101   :  { %v544_v22 = vpop.f32.mrf.mxu0  ;;  %v657_v23 = vpop.f32.mrf.mxu1 }
 0x102   :  { %1336 = vst [vmem:[%s2103_s2 + $0xc0] sm:$0xff] %v1540_v19  ;;  %1337 = vst [vmem:[%s2103_s2 + $0xc8] sm:$0xff] %v1541_v21 }
 0x103   :  { %v546_v24 = vpop.f32.mrf.mxu0  ;;  %v659_v26 = vpop.f32.mrf.mxu1 }
 0x104   :  { %v1544_v25 = vpack.c.bf16 %v546_v24, %v544_v22  ;;  %v1545_v27 = vpack.c.bf16 %v659_v26, %v657_v23 }
 0x105   :  { %v550_v28 = vpop.f32.mrf.mxu0  ;;  %v663_v29 = vpop.f32.mrf.mxu1 }
 0x106   :  { %1340 = vst [vmem:[%s2103_s2 + $0xe0] sm:$0xff] %v1544_v25  ;;  %1341 = vst [vmem:[%s2103_s2 + $0xe8] sm:$0xff] %v1545_v27 }
 0x107   :  { %v552_v30 = vpop.f32.mrf.mxu0  ;;  %v665_v32 = vpop.f32.mrf.mxu1 }
 0x108   :  { %v1548_v31 = vpack.c.bf16 %v552_v30, %v550_v28  ;;  %v1549_v34 = vpack.c.bf16 %v665_v32, %v663_v29 }
 0x109   :  { %v554_v35 = vpop.f32.mrf.mxu0  ;;  %v667_v36 = vpop.f32.mrf.mxu1 }
 0x10a   :  { %1344 = vst [vmem:[%s2103_s2 + $0x100] sm:$0xff] %v1548_v31  ;;  %1345 = vst [vmem:[%s2103_s2 + $0x108] sm:$0xff] %v1549_v34 }
 0x10b   :  { %v556_v37 = vpop.f32.mrf.mxu0  ;;  %v669_v39 = vpop.f32.mrf.mxu1 }
 0x10c   :  { %v1552_v38 = vpack.c.bf16 %v556_v37, %v554_v35  ;;  %v1553_v40 = vpack.c.bf16 %v669_v39, %v667_v36 }
 0x10d   :  { %v560_v41 = vpop.f32.mrf.mxu0  ;;  %v673_v42 = vpop.f32.mrf.mxu1 }
 0x10e   :  { %1348 = vst [vmem:[%s2103_s2 + $0x120] sm:$0xff] %v1552_v38  ;;  %1349 = vst [vmem:[%s2103_s2 + $0x128] sm:$0xff] %v1553_v40 }
 0x10f   :  { %v562_v43 = vpop.f32.mrf.mxu0  ;;  %v675_v12 = vpop.f32.mrf.mxu1 }
 0x110   :  { %v1556_v44 = vpack.c.bf16 %v562_v43, %v560_v41  ;;  %v1557_v33 = vpack.c.bf16 %v675_v12, %v673_v42 }
 0x111   :  { %v564_v45 = vpop.f32.mrf.mxu0  ;;  %v677_v46 = vpop.f32.mrf.mxu1 }
 0x112   :  { %1352 = vst [vmem:[%s2103_s2 + $0x140] sm:$0xff] %v1556_v44  ;;  %1353 = vst [vmem:[%s2103_s2 + $0x148] sm:$0xff] %v1557_v33 }
 0x113   :  { %v566_v47 = vpop.f32.mrf.mxu0  ;;  %v679_v49 = vpop.f32.mrf.mxu1 }
 0x114   :  { %v1560_v48 = vpack.c.bf16 %v566_v47, %v564_v45  ;;  %v1561_v50 = vpack.c.bf16 %v679_v49, %v677_v46 }
 0x115   :  { %v570_v51 = vpop.f32.mrf.mxu0  ;;  %v683_v3 = vpop.f32.mrf.mxu1 }
 0x116   :  { %1356 = vst [vmem:[%s2103_s2 + $0x160] sm:$0xff] %v1560_v48  ;;  %1357 = vst [vmem:[%s2103_s2 + $0x168] sm:$0xff] %v1561_v50 }
 0x117   :  { %v572_v52 = vpop.f32.mrf.mxu0  ;;  %v685_v54 = vpop.f32.mrf.mxu1 }
 0x118   :  { %v1564_v53 = vpack.c.bf16 %v572_v52, %v570_v51  ;;  %v1565_v55 = vpack.c.bf16 %v685_v54, %v683_v3 }
 0x119   :  { %v574_v56 = vpop.f32.mrf.mxu0  ;;  %v687_v57 = vpop.f32.mrf.mxu1 }
 0x11a   :  { %1360 = vst [vmem:[%s2103_s2 + $0x180] sm:$0xff] %v1564_v53  ;;  %1361 = vst [vmem:[%s2103_s2 + $0x188] sm:$0xff] %v1565_v55 }
 0x11b   :  { %v576_v58 = vpop.f32.mrf.mxu0  ;;  %v689_v60 = vpop.f32.mrf.mxu1 }
 0x11c   :  { %v1568_v59 = vpack.c.bf16 %v576_v58, %v574_v56  ;;  %v1569_v61 = vpack.c.bf16 %v689_v60, %v687_v57 }
 0x11d   :  { %v580_v62 = vpop.f32.mrf.mxu0  ;;  %v693_v63 = vpop.f32.mrf.mxu1 }
 0x11e   :  { %1364 = vst [vmem:[%s2103_s2 + $0x1a0] sm:$0xff] %v1568_v59  ;;  %1365 = vst [vmem:[%s2103_s2 + $0x1a8] sm:$0xff] %v1569_v61 }
 0x11f   :  { %v582_v0 = vpop.f32.mrf.mxu0  ;;  %v695_v2 = vpop.f32.mrf.mxu1 }
 0x120   :  { %v1572_v1 = vpack.c.bf16 %v582_v0, %v580_v62  ;;  %v1573_v4 = vpack.c.bf16 %v695_v2, %v693_v63 }
 0x121   :  { %v584_v5 = vpop.f32.mrf.mxu0  ;;  %v697_v6 = vpop.f32.mrf.mxu1 }
 0x122   :  { %1368 = vst [vmem:[%s2103_s2 + $0x1c0] sm:$0xff] %v1572_v1  ;;  %1369 = vst [vmem:[%s2103_s2 + $0x1c8] sm:$0xff] %v1573_v4 }
 0x123   :  { %v586_v7 = vpop.f32.mrf.mxu0  ;;  %v699_v9 = vpop.f32.mrf.mxu1 }
 0x124   :  { %v1576_v8 = vpack.c.bf16 %v586_v7, %v584_v5  ;;  %v1577_v10 = vpack.c.bf16 %v699_v9, %v697_v6 }
 0x125   :  { %v736_v11 = vpop.f32.mrf.mxu0  ;;  %v849_v13 = vpop.f32.mrf.mxu1 }
 0x126   :  { %1372 = vst [vmem:[%s2103_s2 + $0x1e0] sm:$0xff] %v1576_v8  ;;  %1373 = vst [vmem:[%s2103_s2 + $0x1e8] sm:$0xff] %v1577_v10 }
 0x127   :  { %v738_v14 = vpop.f32.mrf.mxu0  ;;  %v851_v16 = vpop.f32.mrf.mxu1 }
 0x128   :  { %v1518_v15 = vpack.c.bf16 %v738_v14, %v736_v11  ;;  %v1519_v17 = vpack.c.bf16 %v851_v16, %v849_v13 }
 0x129   :  { %v740_v18 = vpop.f32.mrf.mxu0  ;;  %v853_v19 = vpop.f32.mrf.mxu1 }
 0x12a   :  { %1314 = vst [vmem:[%s2103_s2 + $0x10] sm:$0xff] %v1518_v15  ;;  %1315 = vst [vmem:[%s2103_s2 + $0x18] sm:$0xff] %v1519_v17 }
 0x12b   :  { %v742_v20 = vpop.f32.mrf.mxu0  ;;  %v855_v22 = vpop.f32.mrf.mxu1 }
 0x12c   :  { %v1522_v21 = vpack.c.bf16 %v742_v20, %v740_v18  ;;  %v1523_v23 = vpack.c.bf16 %v855_v22, %v853_v19 }
 0x12d   :  { %v746_v24 = vpop.f32.mrf.mxu0  ;;  %v859_v25 = vpop.f32.mrf.mxu1 }
 0x12e   :  { %1318 = vst [vmem:[%s2103_s2 + $0x30] sm:$0xff] %v1522_v21  ;;  %1319 = vst [vmem:[%s2103_s2 + $0x38] sm:$0xff] %v1523_v23 }
 0x12f   :  { %v748_v26 = vpop.f32.mrf.mxu0  ;;  %v861_v28 = vpop.f32.mrf.mxu1 }
 0x130   :  { %v1526_v27 = vpack.c.bf16 %v748_v26, %v746_v24  ;;  %v1527_v29 = vpack.c.bf16 %v861_v28, %v859_v25 }
 0x131   :  { %v750_v30 = vpop.f32.mrf.mxu0  ;;  %v863_v31 = vpop.f32.mrf.mxu1 }
 0x132   :  { %1322 = vst [vmem:[%s2103_s2 + $0x50] sm:$0xff] %v1526_v27  ;;  %1323 = vst [vmem:[%s2103_s2 + $0x58] sm:$0xff] %v1527_v29 }
 0x133   :  { %v752_v32 = vpop.f32.mrf.mxu0  ;;  %v865_v35 = vpop.f32.mrf.mxu1 }
 0x134   :  { %v1530_v34 = vpack.c.bf16 %v752_v32, %v750_v30  ;;  %v1531_v36 = vpack.c.bf16 %v865_v35, %v863_v31 }
 0x135   :  { %v756_v37 = vpop.f32.mrf.mxu0  ;;  %v869_v38 = vpop.f32.mrf.mxu1 }
 0x136   :  { %1326 = vst [vmem:[%s2103_s2 + $0x70] sm:$0xff] %v1530_v34  ;;  %1327 = vst [vmem:[%s2103_s2 + $0x78] sm:$0xff] %v1531_v36 }
 0x137   :  { %v758_v39 = vpop.f32.mrf.mxu0  ;;  %v871_v41 = vpop.f32.mrf.mxu1 }
 0x138   :  { %v1534_v40 = vpack.c.bf16 %v758_v39, %v756_v37  ;;  %v1535_v42 = vpack.c.bf16 %v871_v41, %v869_v38 }
 0x139   :  { %v760_v43 = vpop.f32.mrf.mxu0  ;;  %v873_v44 = vpop.f32.mrf.mxu1 }
 0x13a   :  { %1330 = vst [vmem:[%s2103_s2 + $0x90] sm:$0xff] %v1534_v40  ;;  %1331 = vst [vmem:[%s2103_s2 + $0x98] sm:$0xff] %v1535_v42 }
 0x13b   :  { %v762_v12 = vpop.f32.mrf.mxu0  ;;  %v875_v45 = vpop.f32.mrf.mxu1 }
 0x13c   :  { %v1538_v33 = vpack.c.bf16 %v762_v12, %v760_v43  ;;  %v1539_v46 = vpack.c.bf16 %v875_v45, %v873_v44 }
 0x13d   :  { %v766_v47 = vpop.f32.mrf.mxu0  ;;  %v879_v48 = vpop.f32.mrf.mxu1 }
 0x13e   :  { %1334 = vst [vmem:[%s2103_s2 + $0xb0] sm:$0xff] %v1538_v33  ;;  %1335 = vst [vmem:[%s2103_s2 + $0xb8] sm:$0xff] %v1539_v46 }
 0x13f   :  { %v768_v49 = vpop.f32.mrf.mxu0  ;;  %v881_v51 = vpop.f32.mrf.mxu1 }
 0x140   :  { %v1542_v50 = vpack.c.bf16 %v768_v49, %v766_v47  ;;  %v1543_v3 = vpack.c.bf16 %v881_v51, %v879_v48 }
 0x141   :  { %v770_v52 = vpop.f32.mrf.mxu0  ;;  %v883_v53 = vpop.f32.mrf.mxu1 }
 0x142   :  { %1338 = vst [vmem:[%s2103_s2 + $0xd0] sm:$0xff] %v1542_v50  ;;  %1339 = vst [vmem:[%s2103_s2 + $0xd8] sm:$0xff] %v1543_v3 }
 0x143   :  { %v772_v54 = vpop.f32.mrf.mxu0  ;;  %v885_v56 = vpop.f32.mrf.mxu1 }
 0x144   :  { %v1546_v55 = vpack.c.bf16 %v772_v54, %v770_v52  ;;  %v1547_v57 = vpack.c.bf16 %v885_v56, %v883_v53 }
 0x145   :  { %v776_v58 = vpop.f32.mrf.mxu0  ;;  %v889_v59 = vpop.f32.mrf.mxu1 }
 0x146   :  { %1342 = vst [vmem:[%s2103_s2 + $0xf0] sm:$0xff] %v1546_v55  ;;  %1343 = vst [vmem:[%s2103_s2 + $0xf8] sm:$0xff] %v1547_v57 }
 0x147   :  { %v778_v60 = vpop.f32.mrf.mxu0  ;;  %v891_v62 = vpop.f32.mrf.mxu1 }
 0x148   :  { %v1550_v61 = vpack.c.bf16 %v778_v60, %v776_v58  ;;  %v1551_v63 = vpack.c.bf16 %v891_v62, %v889_v59 }
 0x149   :  { %v780_v0 = vpop.f32.mrf.mxu0  ;;  %v893_v1 = vpop.f32.mrf.mxu1 }
 0x14a   :  { %1346 = vst [vmem:[%s2103_s2 + $0x110] sm:$0xff] %v1550_v61  ;;  %1347 = vst [vmem:[%s2103_s2 + $0x118] sm:$0xff] %v1551_v63 }
 0x14b   :  { %v782_v2 = vpop.f32.mrf.mxu0  ;;  %v895_v5 = vpop.f32.mrf.mxu1 }
 0x14c   :  { %v1554_v4 = vpack.c.bf16 %v782_v2, %v780_v0  ;;  %v1555_v6 = vpack.c.bf16 %v895_v5, %v893_v1 }
 0x14d   :  { %v786_v7 = vpop.f32.mrf.mxu0  ;;  %v899_v8 = vpop.f32.mrf.mxu1 }
 0x14e   :  { %1350 = vst [vmem:[%s2103_s2 + $0x130] sm:$0xff] %v1554_v4  ;;  %1351 = vst [vmem:[%s2103_s2 + $0x138] sm:$0xff] %v1555_v6 }
 0x14f   :  { %v788_v9 = vpop.f32.mrf.mxu0  ;;  %v901_v11 = vpop.f32.mrf.mxu1 }
 0x150   :  { %v1558_v10 = vpack.c.bf16 %v788_v9, %v786_v7  ;;  %v1559_v13 = vpack.c.bf16 %v901_v11, %v899_v8 }
 0x151   :  { %v790_v14 = vpop.f32.mrf.mxu0  ;;  %v903_v15 = vpop.f32.mrf.mxu1 }
 0x152   :  { %1354 = vst [vmem:[%s2103_s2 + $0x150] sm:$0xff] %v1558_v10  ;;  %1355 = vst [vmem:[%s2103_s2 + $0x158] sm:$0xff] %v1559_v13 }
 0x153   :  { %v792_v16 = vpop.f32.mrf.mxu0  ;;  %v905_v18 = vpop.f32.mrf.mxu1 }
 0x154   :  { %v1562_v17 = vpack.c.bf16 %v792_v16, %v790_v14  ;;  %v1563_v19 = vpack.c.bf16 %v905_v18, %v903_v15 }
 0x155   :  { %v796_v20 = vpop.f32.mrf.mxu0  ;;  %v909_v21 = vpop.f32.mrf.mxu1 }
 0x156   :  { %1358 = vst [vmem:[%s2103_s2 + $0x170] sm:$0xff] %v1562_v17  ;;  %1359 = vst [vmem:[%s2103_s2 + $0x178] sm:$0xff] %v1563_v19 }
 0x157   :  { %v798_v22 = vpop.f32.mrf.mxu0  ;;  %v911_v24 = vpop.f32.mrf.mxu1 }
 0x158   :  { %v1566_v23 = vpack.c.bf16 %v798_v22, %v796_v20  ;;  %v1567_v25 = vpack.c.bf16 %v911_v24, %v909_v21 }
 0x159   :  { %v800_v26 = vpop.f32.mrf.mxu0  ;;  %v913_v27 = vpop.f32.mrf.mxu1 }
 0x15a   :  { %1362 = vst [vmem:[%s2103_s2 + $0x190] sm:$0xff] %v1566_v23  ;;  %1363 = vst [vmem:[%s2103_s2 + $0x198] sm:$0xff] %v1567_v25 }
 0x15b   :  { %v802_v28 = vpop.f32.mrf.mxu0  ;;  %v915_v30 = vpop.f32.mrf.mxu1 }
 0x15c   :  { %v1570_v29 = vpack.c.bf16 %v802_v28, %v800_v26  ;;  %v1571_v31 = vpack.c.bf16 %v915_v30, %v913_v27 }
 0x15d   :  { %v806_v32 = vpop.f32.mrf.mxu0  ;;  %v919_v34 = vpop.f32.mrf.mxu1 }
 0x15e   :  { %1366 = vst [vmem:[%s2103_s2 + $0x1b0] sm:$0xff] %v1570_v29  ;;  %1367 = vst [vmem:[%s2103_s2 + $0x1b8] sm:$0xff] %v1571_v31 }
 0x15f   :  { %v808_v35 = vpop.f32.mrf.mxu0  ;;  %v921_v37 = vpop.f32.mrf.mxu1 }
 0x160   :  { %v1574_v36 = vpack.c.bf16 %v808_v35, %v806_v32  ;;  %v1575_v38 = vpack.c.bf16 %v921_v37, %v919_v34 }
 0x161   :  { %v810_v39 = vpop.f32.mrf.mxu0  ;;  %v923_v40 = vpop.f32.mrf.mxu1 }
 0x162   :  { %1370 = vst [vmem:[%s2103_s2 + $0x1d0] sm:$0xff] %v1574_v36  ;;  %1371 = vst [vmem:[%s2103_s2 + $0x1d8] sm:$0xff] %v1575_v38 }
 0x163   :  { %v812_v41 = vpop.f32.mrf.mxu0  ;;  %v925_v43 = vpop.f32.mrf.mxu1 }
 0x164   :  { %v1578_v42 = vpack.c.bf16 %v812_v41, %v810_v39  ;;  %v1579_v44 = vpack.c.bf16 %v925_v43, %v923_v40 }
 0x166   :  { %1374 = vst [vmem:[%s2103_s2 + $0x1f0] sm:$0xff] %v1578_v42  ;;  %1375 = vst [vmem:[%s2103_s2 + $0x1f8] sm:$0xff] %v1579_v44 }

// kernel: net_decoder_forward.8
= control target key start
LH: loop header
LB: loop body
LE: loop exit
PB: predicated region body
PF: predicated region fallthrough
CT: control target
= control target key end

     0   :  { %v2492_v1 = vmov 0   ;;  %vm396_vm0 = vcmask 523264   ;;  %s3324_s1 = inlined_call_operand.vmem [shape: bf16[64,512], index: 1, kind: input, shape index: {}]   ;;  %s3325_s0 = inlined_call_operand.vmem [shape: bf16[512,64], index: 0, kind: input, shape index: {}]   ;;  %s3326_s2 = inlined_call_operand.vmem [shape: bf16[512,512], index: 2, kind: output, shape index: {}]  }
   0x1   :  { %v2468_v0 = vld [vmem:[%s3324_s1 + $0x64] ss:$16 sps:$4 sm:$0xff]   ;;  %525 = vmatprep.mubr.bf16.mxu0 %v2492_v1  ;;  %878 = vmatprep.mubr.bf16.mxu1 %v2492_v1  ;;  %v2470_v2 = vld [vmem:[%s3324_s1 + $0x6c] ss:$16 sps:$4 sm:$0xff]   ;;  %v2472_v3 = vld [vmem:[%s3324_s1 + $0x60] ss:$16 sps:$4 sm:$0xff]  }
   0x2   :  { %501 = vmatprep.subr.bf16.mxu0 %v2468_v0  ;;  %v2473_v4 = vld [vmem:[%s3324_s1 + $0x68] ss:$16 sps:$4 sm:$0xff]   ;;  %854 = vmatprep.subr.bf16.mxu1 %v2470_v2  ;;  %v2474_v5 = vld [vmem:[%s3324_s1 + $0x44] ss:$16 sps:$4 sm:$0xff]   ;;  %v2476_v6 = vld [vmem:[%s3324_s1 + $0x4c] ss:$16 sps:$4 sm:$0xff]  }
   0x3   :  { %502 = vmatpush1.bf16.msra.mxu0 %v2472_v3  ;;  %855 = vmatpush1.bf16.msra.mxu1 %v2473_v4  ;;  %v2478_v7 = vld [vmem:[%s3324_s1 + $0x40] ss:$16 sps:$4 sm:$0xff]   ;;  %v2479_v8 = vld [vmem:[%s3324_s1 + $0x48] ss:$16 sps:$4 sm:$0xff]   ;;  %v2480_v9 = vld [vmem:[%s3324_s1 + $0x24] ss:$16 sps:$4 sm:$0xff]  }
   0x4   :  { %503 = vmatprep.subr.bf16.mxu0 %v2474_v5  ;;  %856 = vmatprep.subr.bf16.mxu1 %v2476_v6  ;;  %v2482_v10 = vld [vmem:[%s3324_s1 + $0x2c] ss:$16 sps:$4 sm:$0xff]   ;;  %v2484_v11 = vld [vmem:[%s3324_s1 + $0x20] ss:$16 sps:$4 sm:$0xff]   ;;  %v2485_v12 = vld [vmem:[%s3324_s1 + $0x28] ss:$16 sps:$4 sm:$0xff]  }
   0x5   :  { %v2486_v13 = vld [vmem:[%s3324_s1 + $0x4] ss:$16 sps:$4 sm:$0xff]   ;;  %v2488_v14 = vld [vmem:[%s3324_s1 + $0xc] ss:$16 sps:$4 sm:$0xff]   ;;  %v12_v15 = vld [vmem:[%s3325_s0] sm:$0xf] }
   0x6   :  { %v13_v16 = vld [vmem:[%s3325_s0 + $0x4] sm:$0xf]  ;;  %v76_v17 = vmax.bf16 %v2492_v1, %v12_v15  ;;  %v2490_v18 = vld [vmem:[%s3324_s1] ss:$16 sps:$4 sm:$0xff]   ;;  %v2491_v19 = vld [vmem:[%s3324_s1 + $0x8] ss:$16 sps:$4 sm:$0xff]  }
   0x7   :  { %504 = vmatpush1.bf16.msra.mxu0 %v2478_v7  ;;  %857 = vmatpush1.bf16.msra.mxu1 %v2479_v8  ;;  %v77_v20 = vmax.bf16 %v2492_v1, %v13_v16  ;;  %v14_v22 = vld [vmem:[%s3325_s0 + $0x8] sm:$0xf]  ;;  %v15_v23 = vld [vmem:[%s3325_s0 + $0xc] sm:$0xf]  ;;  %v16_v27 = vld [vmem:[%s3325_s0 + $0x10] sm:$0xf] }
   0x8   :  { %505 = vmatprep.subr.bf16.mxu0 %v2480_v9  ;;  %858 = vmatprep.subr.bf16.mxu1 %v2482_v10  ;;  %v78_v24 = vmax.bf16 %v2492_v1, %v14_v22  ;;  %v79_v25 = vmax.bf16 %v2492_v1, %v15_v23  ;;  %v17_v28 = vld [vmem:[%s3325_s0 + $0x14] sm:$0xf]  ;;  %v80_v29 = vmax.bf16 %v2492_v1, %v16_v27  ;;  %v18_v32 = vld [vmem:[%s3325_s0 + $0x18] sm:$0xf]  ;;  %v19_v33 = vld [vmem:[%s3325_s0 + $0x1c] sm:$0xf] }
   0x9   :  { %v2099_v21 = vcombine.low %v76_v17, %v77_v20  ;;  %v81_v30 = vmax.bf16 %v2492_v1, %v17_v28  ;;  %v82_v34 = vmax.bf16 %v2492_v1, %v18_v32  ;;  %v83_v35 = vmax.bf16 %v2492_v1, %v19_v33  ;;  %v20_v37 = vld [vmem:[%s3325_s0 + $0x20] sm:$0xf]  ;;  %v21_v38 = vld [vmem:[%s3325_s0 + $0x24] sm:$0xf]  ;;  %v22_v42 = vld [vmem:[%s3325_s0 + $0x28] sm:$0xf] }
   0xa   :  { %v2100_v26 = vcombine.low %v78_v24, %v79_v25  ;;  %v84_v39 = vmax.bf16 %v2492_v1, %v20_v37  ;;  %v85_v40 = vmax.bf16 %v2492_v1, %v21_v38  ;;  %v23_v43 = vld [vmem:[%s3325_s0 + $0x2c] sm:$0xf]  ;;  %v86_v44 = vmax.bf16 %v2492_v1, %v22_v42  ;;  %v24_v47 = vld [vmem:[%s3325_s0 + $0x30] sm:$0xf]  ;;  %v25_v48 = vld [vmem:[%s3325_s0 + $0x34] sm:$0xf] }
   0xb   :  { %506 = vmatpush1.bf16.msra.mxu0 %v2484_v11  ;;  %859 = vmatpush1.bf16.msra.mxu1 %v2485_v12  ;;  %v2101_v31 = vcombine.low %v80_v29, %v81_v30  ;;  %v2102_v36 = vcombine.low %v82_v34, %v83_v35  ;;  %v87_v45 = vmax.bf16 %v2492_v1, %v23_v43  ;;  %v26_v52 = vld [vmem:[%s3325_s0 + $0x38] sm:$0xf]  ;;  %v27_v53 = vld [vmem:[%s3325_s0 + $0x3c] sm:$0xf]  ;;  %v28_v57 = vld [vmem:[%s3325_s0 + $0x40] sm:$0xf] }
   0xc   :  { %507 = vmatprep.subr.bf16.mxu0 %v2486_v13  ;;  %860 = vmatprep.subr.bf16.mxu1 %v2488_v14  ;;  %v2103_v41 = vcombine.low %v84_v39, %v85_v40  ;;  %v88_v49 = vmax.bf16 %v2492_v1, %v24_v47  ;;  %v89_v50 = vmax.bf16 %v2492_v1, %v25_v48  ;;  %v29_v58 = vld [vmem:[%s3325_s0 + $0x44] sm:$0xf]  ;;  %v30_v62 = vld [vmem:[%s3325_s0 + $0x48] sm:$0xf]  ;;  %v31_v63 = vld [vmem:[%s3325_s0 + $0x4c] sm:$0xf] }
   0xd   :  { %v2104_v46 = vcombine.low %v86_v44, %v87_v45  ;;  %v90_v54 = vmax.bf16 %v2492_v1, %v26_v52  ;;  %v91_v55 = vmax.bf16 %v2492_v1, %v27_v53  ;;  %v92_v59 = vmax.bf16 %v2492_v1, %v28_v57  ;;  %v32_v4 = vld [vmem:[%s3325_s0 + $0x50] sm:$0xf]  ;;  %v33_v5 = vld [vmem:[%s3325_s0 + $0x54] sm:$0xf]  ;;  %v34_v9 = vld [vmem:[%s3325_s0 + $0x58] sm:$0xf] }
   0xe   :  { %v2105_v51 = vcombine.low %v88_v49, %v89_v50  ;;  %v93_v60 = vmax.bf16 %v2492_v1, %v29_v58  ;;  %v94_v0 = vmax.bf16 %v2492_v1, %v30_v62  ;;  %v95_v2 = vmax.bf16 %v2492_v1, %v31_v63  ;;  %v35_v10 = vld [vmem:[%s3325_s0 + $0x5c] sm:$0xf]  ;;  %v36_v14 = vld [vmem:[%s3325_s0 + $0x60] sm:$0xf]  ;;  %v37_v15 = vld [vmem:[%s3325_s0 + $0x64] sm:$0xf] }
   0xf   :  { %508 = vmatpush1.bf16.msra.mxu0 %v2490_v18  ;;  %861 = vmatpush1.bf16.msra.mxu1 %v2491_v19  ;;  %v2106_v56 = vcombine.low %v90_v54, %v91_v55  ;;  %v96_v6 = vmax.bf16 %v2492_v1, %v32_v4  ;;  %v97_v7 = vmax.bf16 %v2492_v1, %v33_v5  ;;  %v38_v19 = vld [vmem:[%s3325_s0 + $0x68] sm:$0xf]  ;;  %v39_v20 = vld [vmem:[%s3325_s0 + $0x6c] sm:$0xf]  ;;  %v40_v24 = vld [vmem:[%s3325_s0 + $0x70] sm:$0xf] }
  0x10   :  { %v2107_v61 = vcombine.low %v92_v59, %v93_v60  ;;  %v2108_v3 = vcombine.low %v94_v0, %v95_v2  ;;  %v98_v11 = vmax.bf16 %v2492_v1, %v34_v9  ;;  %v99_v12 = vmax.bf16 %v2492_v1, %v35_v10  ;;  %v41_v25 = vld [vmem:[%s3325_s0 + $0x74] sm:$0xf]  ;;  %v42_v29 = vld [vmem:[%s3325_s0 + $0x78] sm:$0xf]  ;;  %v43_v30 = vld [vmem:[%s3325_s0 + $0x7c] sm:$0xf] }
  0x11   :  { %v2109_v8 = vcombine.low %v96_v6, %v97_v7  ;;  %v100_v16 = vmax.bf16 %v2492_v1, %v36_v14  ;;  %v101_v17 = vmax.bf16 %v2492_v1, %v37_v15  ;;  %v103_v22 = vmax.bf16 %v2492_v1, %v39_v20  ;;  %v44_v34 = vld [vmem:[%s3325_s0 + $0x80] sm:$0xf]  ;;  %v45_v35 = vld [vmem:[%s3325_s0 + $0x84] sm:$0xf]  ;;  %v46_v39 = vld [vmem:[%s3325_s0 + $0x88] sm:$0xf] }
  0x12   :  { %2147 = vmatmul.mubr.msk.bf16.vlgmr.msra.gmra.mxu0 %vm396_vm0, %v2099_v21  ;;  %2179 = vmatmul.mubr.msk.bf16.vlgmr.msra.gmra.mxu1 %vm396_vm0, %v2099_v21  ;;  %v2110_v13 = vcombine.low %v98_v11, %v99_v12  ;;  %v102_v21 = vmax.bf16 %v2492_v1, %v38_v19  ;;  %v105_v27 = vmax.bf16 %v2492_v1, %v41_v25  ;;  %v47_v40 = vld [vmem:[%s3325_s0 + $0x8c] sm:$0xf]  ;;  %v48_v44 = vld [vmem:[%s3325_s0 + $0x90] sm:$0xf]  ;;  %v49_v45 = vld [vmem:[%s3325_s0 + $0x94] sm:$0xf] }
  0x13   :  { %535 = vmatprep.mubr.bf16.mxu0 %v2492_v1  ;;  %888 = vmatprep.mubr.bf16.mxu1 %v2492_v1  ;;  %v2111_v18 = vcombine.low %v100_v16, %v101_v17  ;;  %v107_v32 = vmax.bf16 %v2492_v1, %v43_v30  ;;  %v109_v37 = vmax.bf16 %v2492_v1, %v45_v35  ;;  %v50_v49 = vld [vmem:[%s3325_s0 + $0x98] sm:$0xf]  ;;  %v51_v50 = vld [vmem:[%s3325_s0 + $0x9c] sm:$0xf]  ;;  %v52_v54 = vld [vmem:[%s3325_s0 + $0xa0] sm:$0xf] }
  0x14   :  { %v2112_v23 = vcombine.low %v102_v21, %v103_v22  ;;  %v111_v42 = vmax.bf16 %v2492_v1, %v47_v40  ;;  %v113_v47 = vmax.bf16 %v2492_v1, %v49_v45  ;;  %v115_v52 = vmax.bf16 %v2492_v1, %v51_v50  ;;  %v53_v55 = vld [vmem:[%s3325_s0 + $0xa4] sm:$0xf]  ;;  %v54_v59 = vld [vmem:[%s3325_s0 + $0xa8] sm:$0xf]  ;;  %v55_v60 = vld [vmem:[%s3325_s0 + $0xac] sm:$0xf] }
  0x15   :  { %v117_v57 = vmax.bf16 %v2492_v1, %v53_v55  ;;  %v119_v62 = vmax.bf16 %v2492_v1, %v55_v60  ;;  %v56_v0 = vld [vmem:[%s3325_s0 + $0xb0] sm:$0xf]  ;;  %v57_v2 = vld [vmem:[%s3325_s0 + $0xb4] sm:$0xf]  ;;  %v58_v6 = vld [vmem:[%s3325_s0 + $0xb8] sm:$0xf] }
  0x16   :  { %v121_v4 = vmax.bf16 %v2492_v1, %v57_v2  ;;  %v59_v7 = vld [vmem:[%s3325_s0 + $0xbc] sm:$0xf]  ;;  %v60_v11 = vld [vmem:[%s3325_s0 + $0xc0] sm:$0xf]  ;;  %v61_v12 = vld [vmem:[%s3325_s0 + $0xc4] sm:$0xf] }
  0x17   :  { %v123_v9 = vmax.bf16 %v2492_v1, %v59_v7  ;;  %v125_v14 = vmax.bf16 %v2492_v1, %v61_v12  ;;  %v62_v16 = vld [vmem:[%s3325_s0 + $0xc8] sm:$0xf]  ;;  %v63_v17 = vld [vmem:[%s3325_s0 + $0xcc] sm:$0xf]  ;;  %v65_v30 = vld [vmem:[%s3325_s0 + $0xd4] sm:$0xf] }
  0x18   :  { %v126_v20 = vmax.bf16 %v2492_v1, %v62_v16  ;;  %v127_v21 = vmax.bf16 %v2492_v1, %v63_v17  ;;  %v70_v17 = vld [vmem:[%s3325_s0 + $0xe8] sm:$0xf] }
  0x1a   :  { %2148 = vmatmul.mubr.msk.bf16.gmra.mxu0 %vm396_vm0, %v2100_v26  ;;  %2180 = vmatmul.mubr.msk.bf16.gmra.mxu1 %vm396_vm0, %v2100_v26  ;;  %v104_v26 = vmax.bf16 %v2492_v1, %v40_v24 }
  0x1b   :  { %545 = vmatprep.mubr.bf16.mxu0 %v2492_v1  ;;  %898 = vmatprep.mubr.bf16.mxu1 %v2492_v1 }
  0x1c   :  { %v2113_v28 = vcombine.low %v104_v26, %v105_v27 }
  0x22   :  { %2149 = vmatmul.mubr.msk.bf16.gmra.mxu0 %vm396_vm0, %v2101_v31  ;;  %2181 = vmatmul.mubr.msk.bf16.gmra.mxu1 %vm396_vm0, %v2101_v31  ;;  %v106_v31 = vmax.bf16 %v2492_v1, %v42_v29  ;;  %v64_v29 = vld [vmem:[%s3325_s0 + $0xd0] sm:$0xf] }
  0x23   :  { %555 = vmatprep.mubr.bf16.mxu0 %v2492_v1  ;;  %908 = vmatprep.mubr.bf16.mxu1 %v2492_v1 }
  0x24   :  { %v2114_v33 = vcombine.low %v106_v31, %v107_v32 }
  0x2a   :  { %2150 = vmatmul.mubr.msk.bf16.gmra.mxu0 %vm396_vm0, %v2102_v36  ;;  %2182 = vmatmul.mubr.msk.bf16.gmra.mxu1 %vm396_vm0, %v2102_v36  ;;  %v108_v36 = vmax.bf16 %v2492_v1, %v44_v34 }
  0x2b   :  { %565 = vmatprep.mubr.bf16.mxu0 %v2492_v1  ;;  %918 = vmatprep.mubr.bf16.mxu1 %v2492_v1 }
  0x2c   :  { %v2115_v38 = vcombine.low %v108_v36, %v109_v37  ;;  %v128_v37 = vmax.bf16 %v2492_v1, %v64_v29 }
  0x32   :  { %2151 = vmatmul.mubr.msk.bf16.gmra.mxu0 %vm396_vm0, %v2103_v41  ;;  %2183 = vmatmul.mubr.msk.bf16.gmra.mxu1 %vm396_vm0, %v2103_v41  ;;  %v110_v41 = vmax.bf16 %v2492_v1, %v46_v39 }
  0x33   :  { %575 = vmatprep.mubr.bf16.mxu0 %v2492_v1  ;;  %928 = vmatprep.mubr.bf16.mxu1 %v2492_v1 }
  0x34   :  { %v2116_v43 = vcombine.low %v110_v41, %v111_v42 }
  0x3a   :  { %2152 = vmatmul.mubr.msk.bf16.gmra.mxu0 %vm396_vm0, %v2104_v46  ;;  %2184 = vmatmul.mubr.msk.bf16.gmra.mxu1 %vm396_vm0, %v2104_v46  ;;  %v112_v46 = vmax.bf16 %v2492_v1, %v48_v44 }
  0x3b   :  { %585 = vmatprep.mubr.bf16.mxu0 %v2492_v1  ;;  %938 = vmatprep.mubr.bf16.mxu1 %v2492_v1 }
  0x3c   :  { %v2117_v48 = vcombine.low %v112_v46, %v113_v47  ;;  %v66_v46 = vld [vmem:[%s3325_s0 + $0xd8] sm:$0xf]  ;;  %v67_v47 = vld [vmem:[%s3325_s0 + $0xdc] sm:$0xf] }
  0x3d   :  { %v131_v55 = vmax.bf16 %v2492_v1, %v67_v47 }
  0x42   :  { %2153 = vmatmul.mubr.msk.bf16.gmra.mxu0 %vm396_vm0, %v2105_v51  ;;  %2185 = vmatmul.mubr.msk.bf16.gmra.mxu1 %vm396_vm0, %v2105_v51  ;;  %v114_v51 = vmax.bf16 %v2492_v1, %v50_v49 }
  0x43   :  { %595 = vmatprep.mubr.bf16.mxu0 %v2492_v1  ;;  %948 = vmatprep.mubr.bf16.mxu1 %v2492_v1 }
  0x44   :  { %v2118_v53 = vcombine.low %v114_v51, %v115_v52 }
  0x4a   :  { %2154 = vmatmul.mubr.msk.bf16.gmra.mxu0 %vm396_vm0, %v2106_v56  ;;  %2186 = vmatmul.mubr.msk.bf16.gmra.mxu1 %vm396_vm0, %v2106_v56  ;;  %v116_v56 = vmax.bf16 %v2492_v1, %v52_v54  ;;  %v130_v54 = vmax.bf16 %v2492_v1, %v66_v46 }
  0x4b   :  { %605 = vmatprep.mubr.bf16.mxu0 %v2492_v1  ;;  %958 = vmatprep.mubr.bf16.mxu1 %v2492_v1 }
  0x4c   :  { %v2119_v58 = vcombine.low %v116_v56, %v117_v57 }
  0x52   :  { %2155 = vmatmul.mubr.msk.bf16.gmra.mxu0 %vm396_vm0, %v2107_v61  ;;  %2187 = vmatmul.mubr.msk.bf16.gmra.mxu1 %vm396_vm0, %v2107_v61  ;;  %v118_v61 = vmax.bf16 %v2492_v1, %v54_v59 }
  0x53   :  { %615 = vmatprep.mubr.bf16.mxu0 %v2492_v1  ;;  %968 = vmatprep.mubr.bf16.mxu1 %v2492_v1 }
  0x54   :  { %v2120_v63 = vcombine.low %v118_v61, %v119_v62  ;;  %v2126_v62 = vcombine.low %v130_v54, %v131_v55 }
  0x5a   :  { %2156 = vmatmul.mubr.msk.bf16.gmra.mxu0 %vm396_vm0, %v2108_v3  ;;  %2188 = vmatmul.mubr.msk.bf16.gmra.mxu1 %vm396_vm0, %v2108_v3  ;;  %v120_v3 = vmax.bf16 %v2492_v1, %v56_v0  ;;  %v69_v0 = vld [vmem:[%s3325_s0 + $0xe4] sm:$0xf] }
  0x5b   :  { %625 = vmatprep.mubr.bf16.mxu0 %v2492_v1  ;;  %978 = vmatprep.mubr.bf16.mxu1 %v2492_v1 }
  0x5c   :  { %v2121_v5 = vcombine.low %v120_v3, %v121_v4 }
  0x62   :  { %2157 = vmatmul.mubr.msk.bf16.gmra.mxu0 %vm396_vm0, %v2109_v8  ;;  %2189 = vmatmul.mubr.msk.bf16.gmra.mxu1 %vm396_vm0, %v2109_v8  ;;  %v122_v8 = vmax.bf16 %v2492_v1, %v58_v6 }
  0x63   :  { %635 = vmatprep.mubr.bf16.mxu0 %v2492_v1  ;;  %988 = vmatprep.mubr.bf16.mxu1 %v2492_v1 }
  0x64   :  { %v2122_v10 = vcombine.low %v122_v8, %v123_v9  ;;  %v133_v9 = vmax.bf16 %v2492_v1, %v69_v0 }
  0x6a   :  { %2158 = vmatmul.mubr.msk.bf16.gmra.mxu0 %vm396_vm0, %v2110_v13  ;;  %2190 = vmatmul.mubr.msk.bf16.gmra.mxu1 %vm396_vm0, %v2110_v13  ;;  %v124_v13 = vmax.bf16 %v2492_v1, %v60_v11 }
  0x6b   :  { %645 = vmatprep.mubr.bf16.mxu0 %v2492_v1  ;;  %998 = vmatprep.mubr.bf16.mxu1 %v2492_v1 }
  0x6c   :  { %v2123_v15 = vcombine.low %v124_v13, %v125_v14 }
  0x72   :  { %2159 = vmatmul.mubr.msk.bf16.gmra.mxu0 %vm396_vm0, %v2111_v18  ;;  %2191 = vmatmul.mubr.msk.bf16.gmra.mxu1 %vm396_vm0, %v2111_v18 }
  0x73   :  { %655 = vmatprep.mubr.bf16.mxu0 %v2492_v1  ;;  %1008 = vmatprep.mubr.bf16.mxu1 %v2492_v1 }
  0x7a   :  { %2160 = vmatmul.mubr.msk.bf16.gmra.mxu0 %vm396_vm0, %v2112_v23  ;;  %2192 = vmatmul.mubr.msk.bf16.gmra.mxu1 %vm396_vm0, %v2112_v23 }
  0x7b   :  { %665 = vmatprep.mubr.bf16.mxu0 %v2492_v1  ;;  %1018 = vmatprep.mubr.bf16.mxu1 %v2492_v1 }
  0x82   :  { %2161 = vmatmul.mubr.msk.bf16.gmra.mxu0 %vm396_vm0, %v2113_v28  ;;  %2193 = vmatmul.mubr.msk.bf16.gmra.mxu1 %vm396_vm0, %v2113_v28  ;;  %v2124_v28 = vcombine.low %v126_v20, %v127_v21 }
  0x83   :  { %675 = vmatprep.mubr.bf16.mxu0 %v2492_v1  ;;  %1028 = vmatprep.mubr.bf16.mxu1 %v2492_v1 }
  0x8a   :  { %2162 = vmatmul.mubr.msk.bf16.gmra.mxu0 %vm396_vm0, %v2114_v33  ;;  %2194 = vmatmul.mubr.msk.bf16.gmra.mxu1 %vm396_vm0, %v2114_v33 }
  0x8b   :  { %685 = vmatprep.mubr.bf16.mxu0 %v2492_v1  ;;  %1038 = vmatprep.mubr.bf16.mxu1 %v2492_v1 }
  0x92   :  { %2163 = vmatmul.mubr.msk.bf16.gmra.mxu0 %vm396_vm0, %v2115_v38  ;;  %2195 = vmatmul.mubr.msk.bf16.gmra.mxu1 %vm396_vm0, %v2115_v38  ;;  %v129_v38 = vmax.bf16 %v2492_v1, %v65_v30 }
  0x93   :  { %695 = vmatprep.mubr.bf16.mxu0 %v2492_v1  ;;  %1048 = vmatprep.mubr.bf16.mxu1 %v2492_v1 }
  0x94   :  { %v2125_v45 = vcombine.low %v128_v37, %v129_v38 }
  0x9a   :  { %2164 = vmatmul.mubr.msk.bf16.gmra.mxu0 %vm396_vm0, %v2116_v43  ;;  %2196 = vmatmul.mubr.msk.bf16.gmra.mxu1 %vm396_vm0, %v2116_v43 }
  0x9b   :  { %705 = vmatprep.mubr.bf16.mxu0 %v2492_v1  ;;  %1058 = vmatprep.mubr.bf16.mxu1 %v2492_v1 }
  0xa2   :  { %2165 = vmatmul.mubr.msk.bf16.gmra.mxu0 %vm396_vm0, %v2117_v48  ;;  %2197 = vmatmul.mubr.msk.bf16.gmra.mxu1 %vm396_vm0, %v2117_v48 }
  0xa3   :  { %715 = vmatprep.mubr.bf16.mxu0 %v2492_v1  ;;  %1068 = vmatprep.mubr.bf16.mxu1 %v2492_v1 }
  0xaa   :  { %2166 = vmatmul.mubr.msk.bf16.gmra.mxu0 %vm396_vm0, %v2118_v53  ;;  %2198 = vmatmul.mubr.msk.bf16.gmra.mxu1 %vm396_vm0, %v2118_v53 }
  0xab   :  { %725 = vmatprep.mubr.bf16.mxu0 %v2492_v1  ;;  %1078 = vmatprep.mubr.bf16.mxu1 %v2492_v1 }
  0xb2   :  { %2167 = vmatmul.mubr.msk.bf16.gmra.mxu0 %vm396_vm0, %v2119_v58  ;;  %2199 = vmatmul.mubr.msk.bf16.gmra.mxu1 %vm396_vm0, %v2119_v58 }
  0xb3   :  { %735 = vmatprep.mubr.bf16.mxu0 %v2492_v1  ;;  %1088 = vmatprep.mubr.bf16.mxu1 %v2492_v1 }
  0xba   :  { %2168 = vmatmul.mubr.msk.bf16.gmra.mxu0 %vm396_vm0, %v2120_v63  ;;  %2200 = vmatmul.mubr.msk.bf16.gmra.mxu1 %vm396_vm0, %v2120_v63  ;;  %v68_v63 = vld [vmem:[%s3325_s0 + $0xe0] sm:$0xf] }
  0xbb   :  { %745 = vmatprep.mubr.bf16.mxu0 %v2492_v1  ;;  %1098 = vmatprep.mubr.bf16.mxu1 %v2492_v1  ;;  %v132_v8 = vmax.bf16 %v2492_v1, %v68_v63 }
  0xbd   :  { %v2127_v16 = vcombine.low %v132_v8, %v133_v9 }
  0xc2   :  { %2169 = vmatmul.mubr.msk.bf16.gmra.mxu0 %vm396_vm0, %v2121_v5  ;;  %2201 = vmatmul.mubr.msk.bf16.gmra.mxu1 %vm396_vm0, %v2121_v5 }
  0xc3   :  { %755 = vmatprep.mubr.bf16.mxu0 %v2492_v1  ;;  %1108 = vmatprep.mubr.bf16.mxu1 %v2492_v1 }
  0xca   :  { %2170 = vmatmul.mubr.msk.bf16.gmra.mxu0 %vm396_vm0, %v2122_v10  ;;  %2202 = vmatmul.mubr.msk.bf16.gmra.mxu1 %vm396_vm0, %v2122_v10 }
  0xcb   :  { %765 = vmatprep.mubr.bf16.mxu0 %v2492_v1  ;;  %1118 = vmatprep.mubr.bf16.mxu1 %v2492_v1 }
  0xd2   :  { %v527_v18 = vpop.f32.mrf.mxu0  ;;  %2171 = vmatmul.mubr.msk.bf16.gmra.mxu0 %vm396_vm0, %v2123_v15  ;;  %v880_v19 = vpop.f32.mrf.mxu1  ;;  %2203 = vmatmul.mubr.msk.bf16.gmra.mxu1 %vm396_vm0, %v2123_v15 }
  0xd3   :  { %775 = vmatprep.mubr.bf16.mxu0 %v2492_v1  ;;  %1128 = vmatprep.mubr.bf16.mxu1 %v2492_v1 }
  0xd4   :  { %v529_v22 = vpop.f32.mrf.mxu0  ;;  %v882_v23 = vpop.f32.mrf.mxu1 }
  0xd5   :  { %v2339_v24 = vpack.c.bf16 %v529_v22, %v527_v18  ;;  %v2340_v25 = vpack.c.bf16 %v882_v23, %v880_v19  ;;  %v71_v18 = vld [vmem:[%s3325_s0 + $0xec] sm:$0xf] }
  0xd6   :  { %v531_v26 = vpop.f32.mrf.mxu0  ;;  %v884_v27 = vpop.f32.mrf.mxu1 }
  0xd7   :  { %1967 = vst [vmem:[%s3326_s2] sm:$0xff] %v2339_v24  ;;  %1968 = vst [vmem:[%s3326_s2 + $0x8] sm:$0xff] %v2340_v25  ;;  %v134_v25 = vmax.bf16 %v2492_v1, %v70_v17 }
  0xd8   :  { %v533_v31 = vpop.f32.mrf.mxu0  ;;  %v886_v32 = vpop.f32.mrf.mxu1 }
  0xd9   :  { %v2341_v33 = vpack.c.bf16 %v533_v31, %v531_v26  ;;  %v2342_v34 = vpack.c.bf16 %v886_v32, %v884_v27  ;;  %v135_v26 = vmax.bf16 %v2492_v1, %v71_v18 }
  0xda   :  { %v537_v35 = vpop.f32.mrf.mxu0  ;;  %2172 = vmatmul.mubr.msk.bf16.gmra.mxu0 %vm396_vm0, %v2124_v28  ;;  %v890_v36 = vpop.f32.mrf.mxu1  ;;  %2204 = vmatmul.mubr.msk.bf16.gmra.mxu1 %vm396_vm0, %v2124_v28 }
  0xdb   :  { %1969 = vst [vmem:[%s3326_s2 + $0x10] sm:$0xff] %v2341_v33  ;;  %1970 = vst [vmem:[%s3326_s2 + $0x18] sm:$0xff] %v2342_v34  ;;  %785 = vmatprep.mubr.bf16.mxu0 %v2492_v1  ;;  %1138 = vmatprep.mubr.bf16.mxu1 %v2492_v1  ;;  %v2128_v33 = vcombine.low %v134_v25, %v135_v26  ;;  %v72_v34 = vld [vmem:[%s3325_s0 + $0xf0] sm:$0xf] }
  0xdc   :  { %v539_v39 = vpop.f32.mrf.mxu0  ;;  %v892_v40 = vpop.f32.mrf.mxu1 }
  0xdd   :  { %v2343_v41 = vpack.c.bf16 %v539_v39, %v537_v35  ;;  %v2344_v42 = vpack.c.bf16 %v892_v40, %v890_v36  ;;  %v73_v35 = vld [vmem:[%s3325_s0 + $0xf4] sm:$0xf] }
  0xde   :  { %v541_v43 = vpop.f32.mrf.mxu0  ;;  %v894_v44 = vpop.f32.mrf.mxu1 }
  0xdf   :  { %1971 = vst [vmem:[%s3326_s2 + $0x20] sm:$0xff] %v2343_v41  ;;  %1972 = vst [vmem:[%s3326_s2 + $0x28] sm:$0xff] %v2344_v42  ;;  %v136_v42 = vmax.bf16 %v2492_v1, %v72_v34 }
  0xe0   :  { %v543_v48 = vpop.f32.mrf.mxu0  ;;  %v896_v49 = vpop.f32.mrf.mxu1 }
  0xe1   :  { %v2345_v50 = vpack.c.bf16 %v543_v48, %v541_v43  ;;  %v2346_v51 = vpack.c.bf16 %v896_v49, %v894_v44  ;;  %v137_v43 = vmax.bf16 %v2492_v1, %v73_v35 }
  0xe2   :  { %v547_v52 = vpop.f32.mrf.mxu0  ;;  %2173 = vmatmul.mubr.msk.bf16.gmra.mxu0 %vm396_vm0, %v2125_v45  ;;  %v900_v53 = vpop.f32.mrf.mxu1  ;;  %2205 = vmatmul.mubr.msk.bf16.gmra.mxu1 %vm396_vm0, %v2125_v45 }
  0xe3   :  { %1973 = vst [vmem:[%s3326_s2 + $0x30] sm:$0xff] %v2345_v50  ;;  %1974 = vst [vmem:[%s3326_s2 + $0x38] sm:$0xff] %v2346_v51  ;;  %795 = vmatprep.mubr.bf16.mxu0 %v2492_v1  ;;  %1148 = vmatprep.mubr.bf16.mxu1 %v2492_v1  ;;  %v2129_v50 = vcombine.low %v136_v42, %v137_v43  ;;  %v74_v51 = vld [vmem:[%s3325_s0 + $0xf8] sm:$0xf] }
  0xe4   :  { %v549_v56 = vpop.f32.mrf.mxu0  ;;  %v902_v57 = vpop.f32.mrf.mxu1 }
  0xe5   :  { %v2347_v58 = vpack.c.bf16 %v549_v56, %v547_v52  ;;  %v2348_v59 = vpack.c.bf16 %v902_v57, %v900_v53  ;;  %v75_v52 = vld [vmem:[%s3325_s0 + $0xfc] sm:$0xf] }
  0xe6   :  { %v551_v60 = vpop.f32.mrf.mxu0  ;;  %v904_v61 = vpop.f32.mrf.mxu1 }
  0xe7   :  { %1975 = vst [vmem:[%s3326_s2 + $0x40] sm:$0xff] %v2347_v58  ;;  %1976 = vst [vmem:[%s3326_s2 + $0x48] sm:$0xff] %v2348_v59  ;;  %v138_v59 = vmax.bf16 %v2492_v1, %v74_v51 }
  0xe8   :  { %v553_v2 = vpop.f32.mrf.mxu0  ;;  %v906_v3 = vpop.f32.mrf.mxu1 }
  0xe9   :  { %v2349_v4 = vpack.c.bf16 %v553_v2, %v551_v60  ;;  %v2350_v5 = vpack.c.bf16 %v906_v3, %v904_v61  ;;  %v139_v60 = vmax.bf16 %v2492_v1, %v75_v52 }
  0xea   :  { %v557_v6 = vpop.f32.mrf.mxu0  ;;  %2174 = vmatmul.mubr.msk.bf16.gmra.mxu0 %vm396_vm0, %v2126_v62  ;;  %v910_v7 = vpop.f32.mrf.mxu1  ;;  %2206 = vmatmul.mubr.msk.bf16.gmra.mxu1 %vm396_vm0, %v2126_v62 }
  0xeb   :  { %1977 = vst [vmem:[%s3326_s2 + $0x50] sm:$0xff] %v2349_v4  ;;  %1978 = vst [vmem:[%s3326_s2 + $0x58] sm:$0xff] %v2350_v5  ;;  %805 = vmatprep.mubr.bf16.mxu0 %v2492_v1  ;;  %1158 = vmatprep.mubr.bf16.mxu1 %v2492_v1  ;;  %v2130_v4 = vcombine.low %v138_v59, %v139_v60 }
  0xec   :  { %v559_v10 = vpop.f32.mrf.mxu0  ;;  %v912_v11 = vpop.f32.mrf.mxu1 }
  0xed   :  { %v2351_v12 = vpack.c.bf16 %v559_v10, %v557_v6  ;;  %v2352_v13 = vpack.c.bf16 %v912_v11, %v910_v7 }
  0xee   :  { %v561_v14 = vpop.f32.mrf.mxu0  ;;  %v914_v15 = vpop.f32.mrf.mxu1 }
  0xef   :  { %1979 = vst [vmem:[%s3326_s2 + $0x60] sm:$0xff] %v2351_v12  ;;  %1980 = vst [vmem:[%s3326_s2 + $0x68] sm:$0xff] %v2352_v13 }
  0xf0   :  { %v563_v19 = vpop.f32.mrf.mxu0  ;;  %v916_v20 = vpop.f32.mrf.mxu1 }
  0xf1   :  { %v2353_v21 = vpack.c.bf16 %v563_v19, %v561_v14  ;;  %v2354_v22 = vpack.c.bf16 %v916_v20, %v914_v15 }
  0xf2   :  { %v567_v23 = vpop.f32.mrf.mxu0  ;;  %2175 = vmatmul.mubr.msk.bf16.gmra.mxu0 %vm396_vm0, %v2127_v16  ;;  %v920_v24 = vpop.f32.mrf.mxu1  ;;  %2207 = vmatmul.mubr.msk.bf16.gmra.mxu1 %vm396_vm0, %v2127_v16 }
  0xf3   :  { %1981 = vst [vmem:[%s3326_s2 + $0x70] sm:$0xff] %v2353_v21  ;;  %1982 = vst [vmem:[%s3326_s2 + $0x78] sm:$0xff] %v2354_v22  ;;  %815 = vmatprep.mubr.bf16.mxu0 %v2492_v1  ;;  %1168 = vmatprep.mubr.bf16.mxu1 %v2492_v1 }
  0xf4   :  { %v569_v27 = vpop.f32.mrf.mxu0  ;;  %v922_v28 = vpop.f32.mrf.mxu1 }
  0xf5   :  { %v2355_v29 = vpack.c.bf16 %v569_v27, %v567_v23  ;;  %v2356_v30 = vpack.c.bf16 %v922_v28, %v920_v24 }
  0xf6   :  { %v571_v31 = vpop.f32.mrf.mxu0  ;;  %v924_v32 = vpop.f32.mrf.mxu1 }
  0xf7   :  { %1983 = vst [vmem:[%s3326_s2 + $0x80] sm:$0xff] %v2355_v29  ;;  %1984 = vst [vmem:[%s3326_s2 + $0x88] sm:$0xff] %v2356_v30 }
  0xf8   :  { %v573_v36 = vpop.f32.mrf.mxu0  ;;  %v926_v37 = vpop.f32.mrf.mxu1 }
  0xf9   :  { %v2357_v38 = vpack.c.bf16 %v573_v36, %v571_v31  ;;  %v2358_v39 = vpack.c.bf16 %v926_v37, %v924_v32 }
  0xfa   :  { %v577_v40 = vpop.f32.mrf.mxu0  ;;  %2176 = vmatmul.mubr.msk.bf16.gmra.mxu0 %vm396_vm0, %v2128_v33  ;;  %v930_v41 = vpop.f32.mrf.mxu1  ;;  %2208 = vmatmul.mubr.msk.bf16.gmra.mxu1 %vm396_vm0, %v2128_v33 }
  0xfb   :  { %1985 = vst [vmem:[%s3326_s2 + $0x90] sm:$0xff] %v2357_v38  ;;  %1986 = vst [vmem:[%s3326_s2 + $0x98] sm:$0xff] %v2358_v39  ;;  %825 = vmatprep.mubr.bf16.mxu0 %v2492_v1  ;;  %1178 = vmatprep.mubr.bf16.mxu1 %v2492_v1 }
  0xfc   :  { %v579_v44 = vpop.f32.mrf.mxu0  ;;  %v932_v45 = vpop.f32.mrf.mxu1 }
  0xfd   :  { %v2359_v46 = vpack.c.bf16 %v579_v44, %v577_v40  ;;  %v2360_v47 = vpack.c.bf16 %v932_v45, %v930_v41 }
  0xfe   :  { %v581_v48 = vpop.f32.mrf.mxu0  ;;  %v934_v49 = vpop.f32.mrf.mxu1 }
  0xff   :  { %1987 = vst [vmem:[%s3326_s2 + $0xa0] sm:$0xff] %v2359_v46  ;;  %1988 = vst [vmem:[%s3326_s2 + $0xa8] sm:$0xff] %v2360_v47 }
 0x100   :  { %v583_v53 = vpop.f32.mrf.mxu0  ;;  %v936_v54 = vpop.f32.mrf.mxu1 }
 0x101   :  { %v2361_v55 = vpack.c.bf16 %v583_v53, %v581_v48  ;;  %v2362_v56 = vpack.c.bf16 %v936_v54, %v934_v49 }
 0x102   :  { %v587_v57 = vpop.f32.mrf.mxu0  ;;  %2177 = vmatmul.mubr.msk.bf16.gmra.mxu0 %vm396_vm0, %v2129_v50  ;;  %v940_v58 = vpop.f32.mrf.mxu1  ;;  %2209 = vmatmul.mubr.msk.bf16.gmra.mxu1 %vm396_vm0, %v2129_v50 }
 0x103   :  { %1989 = vst [vmem:[%s3326_s2 + $0xb0] sm:$0xff] %v2361_v55  ;;  %1990 = vst [vmem:[%s3326_s2 + $0xb8] sm:$0xff] %v2362_v56  ;;  %835 = vmatprep.mubr.bf16.mxu0 %v2492_v1  ;;  %1188 = vmatprep.mubr.bf16.mxu1 %v2492_v1 }
 0x104   :  { %v589_v61 = vpop.f32.mrf.mxu0  ;;  %v942_v62 = vpop.f32.mrf.mxu1 }
 0x105   :  { %v2363_v63 = vpack.c.bf16 %v589_v61, %v587_v57  ;;  %v2364_v0 = vpack.c.bf16 %v942_v62, %v940_v58 }
 0x106   :  { %v591_v2 = vpop.f32.mrf.mxu0  ;;  %v944_v3 = vpop.f32.mrf.mxu1 }
 0x107   :  { %1991 = vst [vmem:[%s3326_s2 + $0xc0] sm:$0xff] %v2363_v63  ;;  %1992 = vst [vmem:[%s3326_s2 + $0xc8] sm:$0xff] %v2364_v0 }
 0x108   :  { %v593_v5 = vpop.f32.mrf.mxu0  ;;  %v946_v6 = vpop.f32.mrf.mxu1 }
 0x109   :  { %v2365_v7 = vpack.c.bf16 %v593_v5, %v591_v2  ;;  %v2366_v8 = vpack.c.bf16 %v946_v6, %v944_v3 }
 0x10a   :  { %v597_v1 = vpop.f32.mrf.mxu0  ;;  %2178 = vmatmul.mubr.msk.bf16.gmra.mxu0 %vm396_vm0, %v2130_v4  ;;  %v950_v9 = vpop.f32.mrf.mxu1  ;;  %2210 = vmatmul.mubr.msk.bf16.gmra.mxu1 %vm396_vm0, %v2130_v4 }
 0x10b   :  { %1993 = vst [vmem:[%s3326_s2 + $0xd0] sm:$0xff] %v2365_v7  ;;  %1994 = vst [vmem:[%s3326_s2 + $0xd8] sm:$0xff] %v2366_v8 }
 0x10c   :  { %v599_v10 = vpop.f32.mrf.mxu0  ;;  %v952_v11 = vpop.f32.mrf.mxu1 }
 0x10d   :  { %v2367_v12 = vpack.c.bf16 %v599_v10, %v597_v1  ;;  %v2368_v13 = vpack.c.bf16 %v952_v11, %v950_v9 }
 0x10e   :  { %v601_v14 = vpop.f32.mrf.mxu0  ;;  %v954_v15 = vpop.f32.mrf.mxu1 }
 0x10f   :  { %1995 = vst [vmem:[%s3326_s2 + $0xe0] sm:$0xff] %v2367_v12  ;;  %1996 = vst [vmem:[%s3326_s2 + $0xe8] sm:$0xff] %v2368_v13 }
 0x110   :  { %v603_v16 = vpop.f32.mrf.mxu0  ;;  %v956_v17 = vpop.f32.mrf.mxu1 }
 0x111   :  { %v2369_v18 = vpack.c.bf16 %v603_v16, %v601_v14  ;;  %v2370_v19 = vpack.c.bf16 %v956_v17, %v954_v15 }
 0x112   :  { %v607_v20 = vpop.f32.mrf.mxu0  ;;  %v960_v21 = vpop.f32.mrf.mxu1 }
 0x113   :  { %1997 = vst [vmem:[%s3326_s2 + $0xf0] sm:$0xff] %v2369_v18  ;;  %1998 = vst [vmem:[%s3326_s2 + $0xf8] sm:$0xff] %v2370_v19 }
 0x114   :  { %v609_v22 = vpop.f32.mrf.mxu0  ;;  %v962_v23 = vpop.f32.mrf.mxu1 }
 0x115   :  { %v2371_v24 = vpack.c.bf16 %v609_v22, %v607_v20  ;;  %v2372_v25 = vpack.c.bf16 %v962_v23, %v960_v21 }
 0x116   :  { %v611_v26 = vpop.f32.mrf.mxu0  ;;  %v964_v27 = vpop.f32.mrf.mxu1 }
 0x117   :  { %1999 = vst [vmem:[%s3326_s2 + $0x100] sm:$0xff] %v2371_v24  ;;  %2000 = vst [vmem:[%s3326_s2 + $0x108] sm:$0xff] %v2372_v25 }
 0x118   :  { %v613_v28 = vpop.f32.mrf.mxu0  ;;  %v966_v29 = vpop.f32.mrf.mxu1 }
 0x119   :  { %v2373_v30 = vpack.c.bf16 %v613_v28, %v611_v26  ;;  %v2374_v31 = vpack.c.bf16 %v966_v29, %v964_v27 }
 0x11a   :  { %v617_v32 = vpop.f32.mrf.mxu0  ;;  %v970_v33 = vpop.f32.mrf.mxu1 }
 0x11b   :  { %2001 = vst [vmem:[%s3326_s2 + $0x110] sm:$0xff] %v2373_v30  ;;  %2002 = vst [vmem:[%s3326_s2 + $0x118] sm:$0xff] %v2374_v31 }
 0x11c   :  { %v619_v34 = vpop.f32.mrf.mxu0  ;;  %v972_v35 = vpop.f32.mrf.mxu1 }
 0x11d   :  { %v2375_v36 = vpack.c.bf16 %v619_v34, %v617_v32  ;;  %v2376_v37 = vpack.c.bf16 %v972_v35, %v970_v33 }
 0x11e   :  { %v621_v38 = vpop.f32.mrf.mxu0  ;;  %v974_v39 = vpop.f32.mrf.mxu1 }
 0x11f   :  { %2003 = vst [vmem:[%s3326_s2 + $0x120] sm:$0xff] %v2375_v36  ;;  %2004 = vst [vmem:[%s3326_s2 + $0x128] sm:$0xff] %v2376_v37 }
 0x120   :  { %v623_v40 = vpop.f32.mrf.mxu0  ;;  %v976_v41 = vpop.f32.mrf.mxu1 }
 0x121   :  { %v2377_v42 = vpack.c.bf16 %v623_v40, %v621_v38  ;;  %v2378_v43 = vpack.c.bf16 %v976_v41, %v974_v39 }
 0x122   :  { %v627_v44 = vpop.f32.mrf.mxu0  ;;  %v980_v45 = vpop.f32.mrf.mxu1 }
 0x123   :  { %2005 = vst [vmem:[%s3326_s2 + $0x130] sm:$0xff] %v2377_v42  ;;  %2006 = vst [vmem:[%s3326_s2 + $0x138] sm:$0xff] %v2378_v43 }
 0x124   :  { %v629_v46 = vpop.f32.mrf.mxu0  ;;  %v982_v47 = vpop.f32.mrf.mxu1 }
 0x125   :  { %v2379_v48 = vpack.c.bf16 %v629_v46, %v627_v44  ;;  %v2380_v49 = vpack.c.bf16 %v982_v47, %v980_v45 }
 0x126   :  { %v631_v50 = vpop.f32.mrf.mxu0  ;;  %v984_v51 = vpop.f32.mrf.mxu1 }
 0x127   :  { %2007 = vst [vmem:[%s3326_s2 + $0x140] sm:$0xff] %v2379_v48  ;;  %2008 = vst [vmem:[%s3326_s2 + $0x148] sm:$0xff] %v2380_v49 }
 0x128   :  { %v633_v52 = vpop.f32.mrf.mxu0  ;;  %v986_v53 = vpop.f32.mrf.mxu1 }
 0x129   :  { %v2381_v54 = vpack.c.bf16 %v633_v52, %v631_v50  ;;  %v2382_v55 = vpack.c.bf16 %v986_v53, %v984_v51 }
 0x12a   :  { %v637_v56 = vpop.f32.mrf.mxu0  ;;  %v990_v57 = vpop.f32.mrf.mxu1 }
 0x12b   :  { %2009 = vst [vmem:[%s3326_s2 + $0x150] sm:$0xff] %v2381_v54  ;;  %2010 = vst [vmem:[%s3326_s2 + $0x158] sm:$0xff] %v2382_v55 }
 0x12c   :  { %v639_v58 = vpop.f32.mrf.mxu0  ;;  %v992_v59 = vpop.f32.mrf.mxu1 }
 0x12d   :  { %v2383_v60 = vpack.c.bf16 %v639_v58, %v637_v56  ;;  %v2384_v61 = vpack.c.bf16 %v992_v59, %v990_v57 }
 0x12e   :  { %v641_v62 = vpop.f32.mrf.mxu0  ;;  %v994_v63 = vpop.f32.mrf.mxu1 }
 0x12f   :  { %2011 = vst [vmem:[%s3326_s2 + $0x160] sm:$0xff] %v2383_v60  ;;  %2012 = vst [vmem:[%s3326_s2 + $0x168] sm:$0xff] %v2384_v61 }
 0x130   :  { %v643_v0 = vpop.f32.mrf.mxu0  ;;  %v996_v2 = vpop.f32.mrf.mxu1 }
 0x131   :  { %v2385_v3 = vpack.c.bf16 %v643_v0, %v641_v62  ;;  %v2386_v4 = vpack.c.bf16 %v996_v2, %v994_v63 }
 0x132   :  { %v647_v5 = vpop.f32.mrf.mxu0  ;;  %v1000_v6 = vpop.f32.mrf.mxu1 }
 0x133   :  { %2013 = vst [vmem:[%s3326_s2 + $0x170] sm:$0xff] %v2385_v3  ;;  %2014 = vst [vmem:[%s3326_s2 + $0x178] sm:$0xff] %v2386_v4 }
 0x134   :  { %v649_v7 = vpop.f32.mrf.mxu0  ;;  %v1002_v8 = vpop.f32.mrf.mxu1 }
 0x135   :  { %v2387_v1 = vpack.c.bf16 %v649_v7, %v647_v5  ;;  %v2388_v9 = vpack.c.bf16 %v1002_v8, %v1000_v6 }
 0x136   :  { %v651_v10 = vpop.f32.mrf.mxu0  ;;  %v1004_v11 = vpop.f32.mrf.mxu1 }
 0x137   :  { %2015 = vst [vmem:[%s3326_s2 + $0x180] sm:$0xff] %v2387_v1  ;;  %2016 = vst [vmem:[%s3326_s2 + $0x188] sm:$0xff] %v2388_v9 }
 0x138   :  { %v653_v12 = vpop.f32.mrf.mxu0  ;;  %v1006_v13 = vpop.f32.mrf.mxu1 }
 0x139   :  { %v2389_v14 = vpack.c.bf16 %v653_v12, %v651_v10  ;;  %v2390_v15 = vpack.c.bf16 %v1006_v13, %v1004_v11 }
 0x13a   :  { %v657_v16 = vpop.f32.mrf.mxu0  ;;  %v1010_v17 = vpop.f32.mrf.mxu1 }
 0x13b   :  { %2017 = vst [vmem:[%s3326_s2 + $0x190] sm:$0xff] %v2389_v14  ;;  %2018 = vst [vmem:[%s3326_s2 + $0x198] sm:$0xff] %v2390_v15 }
 0x13c   :  { %v659_v18 = vpop.f32.mrf.mxu0  ;;  %v1012_v19 = vpop.f32.mrf.mxu1 }
 0x13d   :  { %v2391_v20 = vpack.c.bf16 %v659_v18, %v657_v16  ;;  %v2392_v21 = vpack.c.bf16 %v1012_v19, %v1010_v17 }
 0x13e   :  { %v661_v22 = vpop.f32.mrf.mxu0  ;;  %v1014_v23 = vpop.f32.mrf.mxu1 }
 0x13f   :  { %2019 = vst [vmem:[%s3326_s2 + $0x1a0] sm:$0xff] %v2391_v20  ;;  %2020 = vst [vmem:[%s3326_s2 + $0x1a8] sm:$0xff] %v2392_v21 }
 0x140   :  { %v663_v24 = vpop.f32.mrf.mxu0  ;;  %v1016_v25 = vpop.f32.mrf.mxu1 }
 0x141   :  { %v2393_v26 = vpack.c.bf16 %v663_v24, %v661_v22  ;;  %v2394_v27 = vpack.c.bf16 %v1016_v25, %v1014_v23 }
 0x142   :  { %v667_v28 = vpop.f32.mrf.mxu0  ;;  %v1020_v29 = vpop.f32.mrf.mxu1 }
 0x143   :  { %2021 = vst [vmem:[%s3326_s2 + $0x1b0] sm:$0xff] %v2393_v26  ;;  %2022 = vst [vmem:[%s3326_s2 + $0x1b8] sm:$0xff] %v2394_v27 }
 0x144   :  { %v669_v30 = vpop.f32.mrf.mxu0  ;;  %v1022_v31 = vpop.f32.mrf.mxu1 }
 0x145   :  { %v2395_v32 = vpack.c.bf16 %v669_v30, %v667_v28  ;;  %v2396_v33 = vpack.c.bf16 %v1022_v31, %v1020_v29 }
 0x146   :  { %v671_v34 = vpop.f32.mrf.mxu0  ;;  %v1024_v35 = vpop.f32.mrf.mxu1 }
 0x147   :  { %2023 = vst [vmem:[%s3326_s2 + $0x1c0] sm:$0xff] %v2395_v32  ;;  %2024 = vst [vmem:[%s3326_s2 + $0x1c8] sm:$0xff] %v2396_v33 }
 0x148   :  { %v673_v36 = vpop.f32.mrf.mxu0  ;;  %v1026_v37 = vpop.f32.mrf.mxu1 }
 0x149   :  { %v2397_v38 = vpack.c.bf16 %v673_v36, %v671_v34  ;;  %v2398_v39 = vpack.c.bf16 %v1026_v37, %v1024_v35 }
 0x14a   :  { %v677_v40 = vpop.f32.mrf.mxu0  ;;  %v1030_v41 = vpop.f32.mrf.mxu1 }
 0x14b   :  { %2025 = vst [vmem:[%s3326_s2 + $0x1d0] sm:$0xff] %v2397_v38  ;;  %2026 = vst [vmem:[%s3326_s2 + $0x1d8] sm:$0xff] %v2398_v39 }
 0x14c   :  { %v679_v42 = vpop.f32.mrf.mxu0  ;;  %v1032_v43 = vpop.f32.mrf.mxu1 }
 0x14d   :  { %v2399_v44 = vpack.c.bf16 %v679_v42, %v677_v40  ;;  %v2400_v45 = vpack.c.bf16 %v1032_v43, %v1030_v41 }
 0x14e   :  { %v681_v46 = vpop.f32.mrf.mxu0  ;;  %v1034_v47 = vpop.f32.mrf.mxu1 }
 0x14f   :  { %2027 = vst [vmem:[%s3326_s2 + $0x1e0] sm:$0xff] %v2399_v44  ;;  %2028 = vst [vmem:[%s3326_s2 + $0x1e8] sm:$0xff] %v2400_v45 }
 0x150   :  { %v683_v48 = vpop.f32.mrf.mxu0  ;;  %v1036_v49 = vpop.f32.mrf.mxu1 }
 0x151   :  { %v2401_v50 = vpack.c.bf16 %v683_v48, %v681_v46  ;;  %v2402_v51 = vpack.c.bf16 %v1036_v49, %v1034_v47 }
 0x152   :  { %v687_v52 = vpop.f32.mrf.mxu0  ;;  %v1040_v53 = vpop.f32.mrf.mxu1 }
 0x153   :  { %2029 = vst [vmem:[%s3326_s2 + $0x1f0] sm:$0xff] %v2401_v50  ;;  %2030 = vst [vmem:[%s3326_s2 + $0x1f8] sm:$0xff] %v2402_v51 }
 0x154   :  { %v689_v54 = vpop.f32.mrf.mxu0  ;;  %v1042_v55 = vpop.f32.mrf.mxu1 }
 0x155   :  { %v2403_v56 = vpack.c.bf16 %v689_v54, %v687_v52  ;;  %v2404_v57 = vpack.c.bf16 %v1042_v55, %v1040_v53 }
 0x156   :  { %v691_v58 = vpop.f32.mrf.mxu0  ;;  %v1044_v59 = vpop.f32.mrf.mxu1 }
 0x157   :  { %2031 = vst [vmem:[%s3326_s2 + $0x200] sm:$0xff] %v2403_v56  ;;  %2032 = vst [vmem:[%s3326_s2 + $0x208] sm:$0xff] %v2404_v57 }
 0x158   :  { %v693_v60 = vpop.f32.mrf.mxu0  ;;  %v1046_v61 = vpop.f32.mrf.mxu1 }
 0x159   :  { %v2405_v62 = vpack.c.bf16 %v693_v60, %v691_v58  ;;  %v2406_v63 = vpack.c.bf16 %v1046_v61, %v1044_v59 }
 0x15a   :  { %v697_v0 = vpop.f32.mrf.mxu0  ;;  %v1050_v2 = vpop.f32.mrf.mxu1 }
 0x15b   :  { %2033 = vst [vmem:[%s3326_s2 + $0x210] sm:$0xff] %v2405_v62  ;;  %2034 = vst [vmem:[%s3326_s2 + $0x218] sm:$0xff] %v2406_v63 }
 0x15c   :  { %v699_v3 = vpop.f32.mrf.mxu0  ;;  %v1052_v4 = vpop.f32.mrf.mxu1 }
 0x15d   :  { %v2407_v5 = vpack.c.bf16 %v699_v3, %v697_v0  ;;  %v2408_v6 = vpack.c.bf16 %v1052_v4, %v1050_v2 }
 0x15e   :  { %v701_v7 = vpop.f32.mrf.mxu0  ;;  %v1054_v8 = vpop.f32.mrf.mxu1 }
 0x15f   :  { %2035 = vst [vmem:[%s3326_s2 + $0x220] sm:$0xff] %v2407_v5  ;;  %2036 = vst [vmem:[%s3326_s2 + $0x228] sm:$0xff] %v2408_v6 }
 0x160   :  { %v703_v1 = vpop.f32.mrf.mxu0  ;;  %v1056_v9 = vpop.f32.mrf.mxu1 }
 0x161   :  { %v2409_v10 = vpack.c.bf16 %v703_v1, %v701_v7  ;;  %v2410_v11 = vpack.c.bf16 %v1056_v9, %v1054_v8 }
 0x162   :  { %v707_v12 = vpop.f32.mrf.mxu0  ;;  %v1060_v13 = vpop.f32.mrf.mxu1 }
 0x163   :  { %2037 = vst [vmem:[%s3326_s2 + $0x230] sm:$0xff] %v2409_v10  ;;  %2038 = vst [vmem:[%s3326_s2 + $0x238] sm:$0xff] %v2410_v11 }
 0x164   :  { %v709_v14 = vpop.f32.mrf.mxu0  ;;  %v1062_v15 = vpop.f32.mrf.mxu1 }
 0x165   :  { %v2411_v16 = vpack.c.bf16 %v709_v14, %v707_v12  ;;  %v2412_v17 = vpack.c.bf16 %v1062_v15, %v1060_v13 }
 0x166   :  { %v711_v18 = vpop.f32.mrf.mxu0  ;;  %v1064_v19 = vpop.f32.mrf.mxu1 }
 0x167   :  { %2039 = vst [vmem:[%s3326_s2 + $0x240] sm:$0xff] %v2411_v16  ;;  %2040 = vst [vmem:[%s3326_s2 + $0x248] sm:$0xff] %v2412_v17 }
 0x168   :  { %v713_v20 = vpop.f32.mrf.mxu0  ;;  %v1066_v21 = vpop.f32.mrf.mxu1 }
 0x169   :  { %v2413_v22 = vpack.c.bf16 %v713_v20, %v711_v18  ;;  %v2414_v23 = vpack.c.bf16 %v1066_v21, %v1064_v19 }
 0x16a   :  { %v717_v24 = vpop.f32.mrf.mxu0  ;;  %v1070_v25 = vpop.f32.mrf.mxu1 }
 0x16b   :  { %2041 = vst [vmem:[%s3326_s2 + $0x250] sm:$0xff] %v2413_v22  ;;  %2042 = vst [vmem:[%s3326_s2 + $0x258] sm:$0xff] %v2414_v23 }
 0x16c   :  { %v719_v26 = vpop.f32.mrf.mxu0  ;;  %v1072_v27 = vpop.f32.mrf.mxu1 }
 0x16d   :  { %v2415_v28 = vpack.c.bf16 %v719_v26, %v717_v24  ;;  %v2416_v29 = vpack.c.bf16 %v1072_v27, %v1070_v25 }
 0x16e   :  { %v721_v30 = vpop.f32.mrf.mxu0  ;;  %v1074_v31 = vpop.f32.mrf.mxu1 }
 0x16f   :  { %2043 = vst [vmem:[%s3326_s2 + $0x260] sm:$0xff] %v2415_v28  ;;  %2044 = vst [vmem:[%s3326_s2 + $0x268] sm:$0xff] %v2416_v29 }
 0x170   :  { %v723_v32 = vpop.f32.mrf.mxu0  ;;  %v1076_v33 = vpop.f32.mrf.mxu1 }
 0x171   :  { %v2417_v34 = vpack.c.bf16 %v723_v32, %v721_v30  ;;  %v2418_v35 = vpack.c.bf16 %v1076_v33, %v1074_v31 }
 0x172   :  { %v727_v36 = vpop.f32.mrf.mxu0  ;;  %v1080_v37 = vpop.f32.mrf.mxu1 }
 0x173   :  { %2045 = vst [vmem:[%s3326_s2 + $0x270] sm:$0xff] %v2417_v34  ;;  %2046 = vst [vmem:[%s3326_s2 + $0x278] sm:$0xff] %v2418_v35 }
 0x174   :  { %v729_v38 = vpop.f32.mrf.mxu0  ;;  %v1082_v39 = vpop.f32.mrf.mxu1 }
 0x175   :  { %v2419_v40 = vpack.c.bf16 %v729_v38, %v727_v36  ;;  %v2420_v41 = vpack.c.bf16 %v1082_v39, %v1080_v37 }
 0x176   :  { %v731_v42 = vpop.f32.mrf.mxu0  ;;  %v1084_v43 = vpop.f32.mrf.mxu1 }
 0x177   :  { %2047 = vst [vmem:[%s3326_s2 + $0x280] sm:$0xff] %v2419_v40  ;;  %2048 = vst [vmem:[%s3326_s2 + $0x288] sm:$0xff] %v2420_v41 }
 0x178   :  { %v733_v44 = vpop.f32.mrf.mxu0  ;;  %v1086_v45 = vpop.f32.mrf.mxu1 }
 0x179   :  { %v2421_v46 = vpack.c.bf16 %v733_v44, %v731_v42  ;;  %v2422_v47 = vpack.c.bf16 %v1086_v45, %v1084_v43 }
 0x17a   :  { %v737_v48 = vpop.f32.mrf.mxu0  ;;  %v1090_v49 = vpop.f32.mrf.mxu1 }
 0x17b   :  { %2049 = vst [vmem:[%s3326_s2 + $0x290] sm:$0xff] %v2421_v46  ;;  %2050 = vst [vmem:[%s3326_s2 + $0x298] sm:$0xff] %v2422_v47 }
 0x17c   :  { %v739_v50 = vpop.f32.mrf.mxu0  ;;  %v1092_v51 = vpop.f32.mrf.mxu1 }
 0x17d   :  { %v2423_v52 = vpack.c.bf16 %v739_v50, %v737_v48  ;;  %v2424_v53 = vpack.c.bf16 %v1092_v51, %v1090_v49 }
 0x17e   :  { %v741_v54 = vpop.f32.mrf.mxu0  ;;  %v1094_v55 = vpop.f32.mrf.mxu1 }
 0x17f   :  { %2051 = vst [vmem:[%s3326_s2 + $0x2a0] sm:$0xff] %v2423_v52  ;;  %2052 = vst [vmem:[%s3326_s2 + $0x2a8] sm:$0xff] %v2424_v53 }
 0x180   :  { %v743_v56 = vpop.f32.mrf.mxu0  ;;  %v1096_v57 = vpop.f32.mrf.mxu1 }
 0x181   :  { %v2425_v58 = vpack.c.bf16 %v743_v56, %v741_v54  ;;  %v2426_v59 = vpack.c.bf16 %v1096_v57, %v1094_v55 }
 0x182   :  { %v747_v60 = vpop.f32.mrf.mxu0  ;;  %v1100_v61 = vpop.f32.mrf.mxu1 }
 0x183   :  { %2053 = vst [vmem:[%s3326_s2 + $0x2b0] sm:$0xff] %v2425_v58  ;;  %2054 = vst [vmem:[%s3326_s2 + $0x2b8] sm:$0xff] %v2426_v59 }
 0x184   :  { %v749_v62 = vpop.f32.mrf.mxu0  ;;  %v1102_v63 = vpop.f32.mrf.mxu1 }
 0x185   :  { %v2427_v0 = vpack.c.bf16 %v749_v62, %v747_v60  ;;  %v2428_v2 = vpack.c.bf16 %v1102_v63, %v1100_v61 }
 0x186   :  { %v751_v3 = vpop.f32.mrf.mxu0  ;;  %v1104_v4 = vpop.f32.mrf.mxu1 }
 0x187   :  { %2055 = vst [vmem:[%s3326_s2 + $0x2c0] sm:$0xff] %v2427_v0  ;;  %2056 = vst [vmem:[%s3326_s2 + $0x2c8] sm:$0xff] %v2428_v2 }
 0x188   :  { %v753_v5 = vpop.f32.mrf.mxu0  ;;  %v1106_v6 = vpop.f32.mrf.mxu1 }
 0x189   :  { %v2429_v7 = vpack.c.bf16 %v753_v5, %v751_v3  ;;  %v2430_v8 = vpack.c.bf16 %v1106_v6, %v1104_v4 }
 0x18a   :  { %v757_v1 = vpop.f32.mrf.mxu0  ;;  %v1110_v9 = vpop.f32.mrf.mxu1 }
 0x18b   :  { %2057 = vst [vmem:[%s3326_s2 + $0x2d0] sm:$0xff] %v2429_v7  ;;  %2058 = vst [vmem:[%s3326_s2 + $0x2d8] sm:$0xff] %v2430_v8 }
 0x18c   :  { %v759_v10 = vpop.f32.mrf.mxu0  ;;  %v1112_v11 = vpop.f32.mrf.mxu1 }
 0x18d   :  { %v2431_v12 = vpack.c.bf16 %v759_v10, %v757_v1  ;;  %v2432_v13 = vpack.c.bf16 %v1112_v11, %v1110_v9 }
 0x18e   :  { %v761_v14 = vpop.f32.mrf.mxu0  ;;  %v1114_v15 = vpop.f32.mrf.mxu1 }
 0x18f   :  { %2059 = vst [vmem:[%s3326_s2 + $0x2e0] sm:$0xff] %v2431_v12  ;;  %2060 = vst [vmem:[%s3326_s2 + $0x2e8] sm:$0xff] %v2432_v13 }
 0x190   :  { %v763_v16 = vpop.f32.mrf.mxu0  ;;  %v1116_v17 = vpop.f32.mrf.mxu1 }
 0x191   :  { %v2433_v18 = vpack.c.bf16 %v763_v16, %v761_v14  ;;  %v2434_v19 = vpack.c.bf16 %v1116_v17, %v1114_v15 }
 0x192   :  { %v767_v20 = vpop.f32.mrf.mxu0  ;;  %v1120_v21 = vpop.f32.mrf.mxu1 }
 0x193   :  { %2061 = vst [vmem:[%s3326_s2 + $0x2f0] sm:$0xff] %v2433_v18  ;;  %2062 = vst [vmem:[%s3326_s2 + $0x2f8] sm:$0xff] %v2434_v19 }
 0x194   :  { %v769_v22 = vpop.f32.mrf.mxu0  ;;  %v1122_v23 = vpop.f32.mrf.mxu1 }
 0x195   :  { %v2435_v24 = vpack.c.bf16 %v769_v22, %v767_v20  ;;  %v2436_v25 = vpack.c.bf16 %v1122_v23, %v1120_v21 }
 0x196   :  { %v771_v26 = vpop.f32.mrf.mxu0  ;;  %v1124_v27 = vpop.f32.mrf.mxu1 }
 0x197   :  { %2063 = vst [vmem:[%s3326_s2 + $0x300] sm:$0xff] %v2435_v24  ;;  %2064 = vst [vmem:[%s3326_s2 + $0x308] sm:$0xff] %v2436_v25 }
 0x198   :  { %v773_v28 = vpop.f32.mrf.mxu0  ;;  %v1126_v29 = vpop.f32.mrf.mxu1 }
 0x199   :  { %v2437_v30 = vpack.c.bf16 %v773_v28, %v771_v26  ;;  %v2438_v31 = vpack.c.bf16 %v1126_v29, %v1124_v27 }
 0x19a   :  { %v777_v32 = vpop.f32.mrf.mxu0  ;;  %v1130_v33 = vpop.f32.mrf.mxu1 }
 0x19b   :  { %2065 = vst [vmem:[%s3326_s2 + $0x310] sm:$0xff] %v2437_v30  ;;  %2066 = vst [vmem:[%s3326_s2 + $0x318] sm:$0xff] %v2438_v31 }
 0x19c   :  { %v779_v34 = vpop.f32.mrf.mxu0  ;;  %v1132_v35 = vpop.f32.mrf.mxu1 }
 0x19d   :  { %v2439_v36 = vpack.c.bf16 %v779_v34, %v777_v32  ;;  %v2440_v37 = vpack.c.bf16 %v1132_v35, %v1130_v33 }
 0x19e   :  { %v781_v38 = vpop.f32.mrf.mxu0  ;;  %v1134_v39 = vpop.f32.mrf.mxu1 }
 0x19f   :  { %2067 = vst [vmem:[%s3326_s2 + $0x320] sm:$0xff] %v2439_v36  ;;  %2068 = vst [vmem:[%s3326_s2 + $0x328] sm:$0xff] %v2440_v37 }
 0x1a0   :  { %v783_v40 = vpop.f32.mrf.mxu0  ;;  %v1136_v41 = vpop.f32.mrf.mxu1 }
 0x1a1   :  { %v2441_v42 = vpack.c.bf16 %v783_v40, %v781_v38  ;;  %v2442_v43 = vpack.c.bf16 %v1136_v41, %v1134_v39 }
 0x1a2   :  { %v787_v44 = vpop.f32.mrf.mxu0  ;;  %v1140_v45 = vpop.f32.mrf.mxu1 }
 0x1a3   :  { %2069 = vst [vmem:[%s3326_s2 + $0x330] sm:$0xff] %v2441_v42  ;;  %2070 = vst [vmem:[%s3326_s2 + $0x338] sm:$0xff] %v2442_v43 }
 0x1a4   :  { %v789_v46 = vpop.f32.mrf.mxu0  ;;  %v1142_v47 = vpop.f32.mrf.mxu1 }
 0x1a5   :  { %v2443_v48 = vpack.c.bf16 %v789_v46, %v787_v44  ;;  %v2444_v49 = vpack.c.bf16 %v1142_v47, %v1140_v45 }
 0x1a6   :  { %v791_v50 = vpop.f32.mrf.mxu0  ;;  %v1144_v51 = vpop.f32.mrf.mxu1 }
 0x1a7   :  { %2071 = vst [vmem:[%s3326_s2 + $0x340] sm:$0xff] %v2443_v48  ;;  %2072 = vst [vmem:[%s3326_s2 + $0x348] sm:$0xff] %v2444_v49 }
 0x1a8   :  { %v793_v52 = vpop.f32.mrf.mxu0  ;;  %v1146_v53 = vpop.f32.mrf.mxu1 }
 0x1a9   :  { %v2445_v54 = vpack.c.bf16 %v793_v52, %v791_v50  ;;  %v2446_v55 = vpack.c.bf16 %v1146_v53, %v1144_v51 }
 0x1aa   :  { %v797_v56 = vpop.f32.mrf.mxu0  ;;  %v1150_v57 = vpop.f32.mrf.mxu1 }
 0x1ab   :  { %2073 = vst [vmem:[%s3326_s2 + $0x350] sm:$0xff] %v2445_v54  ;;  %2074 = vst [vmem:[%s3326_s2 + $0x358] sm:$0xff] %v2446_v55 }
 0x1ac   :  { %v799_v58 = vpop.f32.mrf.mxu0  ;;  %v1152_v59 = vpop.f32.mrf.mxu1 }
 0x1ad   :  { %v2447_v60 = vpack.c.bf16 %v799_v58, %v797_v56  ;;  %v2448_v61 = vpack.c.bf16 %v1152_v59, %v1150_v57 }
 0x1ae   :  { %v801_v62 = vpop.f32.mrf.mxu0  ;;  %v1154_v63 = vpop.f32.mrf.mxu1 }
 0x1af   :  { %2075 = vst [vmem:[%s3326_s2 + $0x360] sm:$0xff] %v2447_v60  ;;  %2076 = vst [vmem:[%s3326_s2 + $0x368] sm:$0xff] %v2448_v61 }
 0x1b0   :  { %v803_v0 = vpop.f32.mrf.mxu0  ;;  %v1156_v2 = vpop.f32.mrf.mxu1 }
 0x1b1   :  { %v2449_v3 = vpack.c.bf16 %v803_v0, %v801_v62  ;;  %v2450_v4 = vpack.c.bf16 %v1156_v2, %v1154_v63 }
 0x1b2   :  { %v807_v5 = vpop.f32.mrf.mxu0  ;;  %v1160_v6 = vpop.f32.mrf.mxu1 }
 0x1b3   :  { %2077 = vst [vmem:[%s3326_s2 + $0x370] sm:$0xff] %v2449_v3  ;;  %2078 = vst [vmem:[%s3326_s2 + $0x378] sm:$0xff] %v2450_v4 }
 0x1b4   :  { %v809_v7 = vpop.f32.mrf.mxu0  ;;  %v1162_v8 = vpop.f32.mrf.mxu1 }
 0x1b5   :  { %v2451_v1 = vpack.c.bf16 %v809_v7, %v807_v5  ;;  %v2452_v9 = vpack.c.bf16 %v1162_v8, %v1160_v6 }
 0x1b6   :  { %v811_v10 = vpop.f32.mrf.mxu0  ;;  %v1164_v11 = vpop.f32.mrf.mxu1 }
 0x1b7   :  { %2079 = vst [vmem:[%s3326_s2 + $0x380] sm:$0xff] %v2451_v1  ;;  %2080 = vst [vmem:[%s3326_s2 + $0x388] sm:$0xff] %v2452_v9 }
 0x1b8   :  { %v813_v12 = vpop.f32.mrf.mxu0  ;;  %v1166_v13 = vpop.f32.mrf.mxu1 }
 0x1b9   :  { %v2453_v14 = vpack.c.bf16 %v813_v12, %v811_v10  ;;  %v2454_v15 = vpack.c.bf16 %v1166_v13, %v1164_v11 }
 0x1ba   :  { %v817_v16 = vpop.f32.mrf.mxu0  ;;  %v1170_v17 = vpop.f32.mrf.mxu1 }
 0x1bb   :  { %2081 = vst [vmem:[%s3326_s2 + $0x390] sm:$0xff] %v2453_v14  ;;  %2082 = vst [vmem:[%s3326_s2 + $0x398] sm:$0xff] %v2454_v15 }
 0x1bc   :  { %v819_v18 = vpop.f32.mrf.mxu0  ;;  %v1172_v19 = vpop.f32.mrf.mxu1 }
 0x1bd   :  { %v2455_v20 = vpack.c.bf16 %v819_v18, %v817_v16  ;;  %v2456_v21 = vpack.c.bf16 %v1172_v19, %v1170_v17 }
 0x1be   :  { %v821_v22 = vpop.f32.mrf.mxu0  ;;  %v1174_v23 = vpop.f32.mrf.mxu1 }
 0x1bf   :  { %2083 = vst [vmem:[%s3326_s2 + $0x3a0] sm:$0xff] %v2455_v20  ;;  %2084 = vst [vmem:[%s3326_s2 + $0x3a8] sm:$0xff] %v2456_v21 }
 0x1c0   :  { %v823_v24 = vpop.f32.mrf.mxu0  ;;  %v1176_v25 = vpop.f32.mrf.mxu1 }
 0x1c1   :  { %v2457_v26 = vpack.c.bf16 %v823_v24, %v821_v22  ;;  %v2458_v27 = vpack.c.bf16 %v1176_v25, %v1174_v23 }
 0x1c2   :  { %v827_v28 = vpop.f32.mrf.mxu0  ;;  %v1180_v29 = vpop.f32.mrf.mxu1 }
 0x1c3   :  { %2085 = vst [vmem:[%s3326_s2 + $0x3b0] sm:$0xff] %v2457_v26  ;;  %2086 = vst [vmem:[%s3326_s2 + $0x3b8] sm:$0xff] %v2458_v27 }
 0x1c4   :  { %v829_v30 = vpop.f32.mrf.mxu0  ;;  %v1182_v31 = vpop.f32.mrf.mxu1 }
 0x1c5   :  { %v2459_v32 = vpack.c.bf16 %v829_v30, %v827_v28  ;;  %v2460_v33 = vpack.c.bf16 %v1182_v31, %v1180_v29 }
 0x1c6   :  { %v831_v34 = vpop.f32.mrf.mxu0  ;;  %v1184_v35 = vpop.f32.mrf.mxu1 }
 0x1c7   :  { %2087 = vst [vmem:[%s3326_s2 + $0x3c0] sm:$0xff] %v2459_v32  ;;  %2088 = vst [vmem:[%s3326_s2 + $0x3c8] sm:$0xff] %v2460_v33 }
 0x1c8   :  { %v833_v36 = vpop.f32.mrf.mxu0  ;;  %v1186_v37 = vpop.f32.mrf.mxu1 }
 0x1c9   :  { %v2461_v38 = vpack.c.bf16 %v833_v36, %v831_v34  ;;  %v2462_v39 = vpack.c.bf16 %v1186_v37, %v1184_v35 }
 0x1ca   :  { %v837_v40 = vpop.f32.mrf.mxu0  ;;  %v1190_v41 = vpop.f32.mrf.mxu1 }
 0x1cb   :  { %2089 = vst [vmem:[%s3326_s2 + $0x3d0] sm:$0xff] %v2461_v38  ;;  %2090 = vst [vmem:[%s3326_s2 + $0x3d8] sm:$0xff] %v2462_v39 }
 0x1cc   :  { %v839_v42 = vpop.f32.mrf.mxu0  ;;  %v1192_v43 = vpop.f32.mrf.mxu1 }
 0x1cd   :  { %v2463_v44 = vpack.c.bf16 %v839_v42, %v837_v40  ;;  %v2464_v45 = vpack.c.bf16 %v1192_v43, %v1190_v41 }
 0x1ce   :  { %v841_v46 = vpop.f32.mrf.mxu0  ;;  %v1194_v47 = vpop.f32.mrf.mxu1 }
 0x1cf   :  { %2091 = vst [vmem:[%s3326_s2 + $0x3e0] sm:$0xff] %v2463_v44  ;;  %2092 = vst [vmem:[%s3326_s2 + $0x3e8] sm:$0xff] %v2464_v45 }
 0x1d0   :  { %v843_v48 = vpop.f32.mrf.mxu0  ;;  %v1196_v49 = vpop.f32.mrf.mxu1 }
 0x1d1   :  { %v2465_v50 = vpack.c.bf16 %v843_v48, %v841_v46  ;;  %v2466_v51 = vpack.c.bf16 %v1196_v49, %v1194_v47 }
 0x1d3   :  { %2093 = vst [vmem:[%s3326_s2 + $0x3f0] sm:$0xff] %v2465_v50  ;;  %2094 = vst [vmem:[%s3326_s2 + $0x3f8] sm:$0xff] %v2466_v51 }

// kernel: net_decoder_forward.9
= control target key start
LH: loop header
LB: loop body
LE: loop exit
PB: predicated region body
PF: predicated region fallthrough
CT: control target
= control target key end

     0   :  { %s3133_s9 = smov 0   ;;  %s3135_s10 = smov 0   ;;  %s3698_s0 = inlined_call_operand.vmem [shape: bf16[2048,32], index: 0, kind: input, shape index: {}]   ;;  %s3699_s1 = inlined_call_operand.vmem [shape: bf16[32,256], index: 1, kind: input, shape index: {}]   ;;  %s3700_s2 = inlined_call_operand.vmem [shape: bf16[2048,256], index: 2, kind: output, shape index: {}]  }
   0x1   :  { %s3137_s11 = smov 0  }
   0x2 LB: > { %s21_s12 = sadd.s32 1, %s3111_s10  ;;  %p2661_p0 = scmp.ge.s32.totalorder %s3115_s11, 1  ;;  %s3115_s11 = sphi %s3137_s11, %s12_s11   ;;  %s3111_s10 = sphi %s3135_s10, %s3702_s10   ;;  %s3107_s9 = sphi %s3133_s9, %s3701_s9  }
   0x3   : > { %p22_p1 = scmp.ge.s32.totalorder %s21_s12, 2  ;;  %p138_p2 = scmp.lt.s32.totalorder %s3115_s11, 3 }
   0x5   : > { %s3704_s12 = smov (%p22_p1, %s21_s12), 0  ;;  %p139_p3 = pnand %p2661_p0, %p138_p2 }
   0x6   : > { %s2662_s15 = sshll.u32 (!%p139_p3), %s3107_s9, 7 }
   0x7   : > { %142 = sbr.rel (%p139_p3) target bundleno = 472 (0x1d8), region = 28  ;;  %p171_p4 = scmp.lt.s32.totalorder (!%p139_p3), %s2662_s15, 255 }
   0xc   : > { %v3087_v0 = vld [vmem:[%s3699_s1 + $0x14] ss:$8 sps:$4 sm:$0xff]   ;;  %v3089_v1 = vld [vmem:[%s3699_s1 + $0x10] ss:$8 sps:$4 sm:$0xff]   ;;  %v3117_v2 = vmov 0   ;;  %s3706_s15 = smov (!%p171_p4, %s2662_s15), 255 }
   0xd   : > { %1020 = vmatprep.mubr.bf16.mxu0 %v3117_v2  ;;  %1340 = vmatprep.mubr.bf16.mxu1 %v3117_v2  ;;  %v3090_v3 = vld [vmem:[%s3699_s1 + $0x4] ss:$8 sps:$4 sm:$0xff]   ;;  %v3092_v4 = vld [vmem:[%s3699_s1] ss:$8 sps:$4 sm:$0xff]   ;;  %s2663_s22 = sshll.u32 %s3706_s15, 2  ;;  %vm795_vm0 = vcmask 261120  }
   0xe   : > { %1000 = vmatprep.subr.bf16.mxu0 %v3087_v0  ;;  %3058 = vmatprep.subr.bf16.mxu1 %v3087_v0  ;;  %s3171_s25 = scalar_lea.vmem %s3698_s0, %s2663_s22  ;;  %s2929_s26 = sshll.u32 %s3706_s15, 3 }
   0xf   : > { %1001 = vmatpush1.bf16.msra.mxu0 %v3089_v1  ;;  %3060 = vmatpush1.bf16.msra.mxu1 %v3089_v1  ;;  %v195_v5 = vld [vmem:[%s3171_s25] sm:$0xf]  ;;  %v196_v6 = vld [vmem:[%s3171_s25 + $0x4] sm:$0xf]  ;;  %v197_v13 = vld [vmem:[%s3171_s25 + $0x8] sm:$0xf]  ;;  %s3484_s29 = scalar_lea.vmem %s3700_s2, %s2929_s26 }
  0x10   : > { %1002 = vmatprep.subr.bf16.mxu0 %v3090_v3  ;;  %3059 = vmatprep.subr.bf16.mxu1 %v3090_v3  ;;  %v259_v7 = vld [vmem:[%s3171_s25 + $0x100] sm:$0xf]  ;;  %v323_v8 = vmax.bf16 %v3117_v2, %v195_v5  ;;  %v324_v9 = vmax.bf16 %v3117_v2, %v196_v6  ;;  %v260_v10 = vld [vmem:[%s3171_s25 + $0x104] sm:$0xf]  ;;  %v198_v14 = vld [vmem:[%s3171_s25 + $0xc] sm:$0xf]  ;;  %v325_v19 = vmax.bf16 %v3117_v2, %v197_v13 }
  0x11   : > { %v387_v11 = vmax.bf16 %v3117_v2, %v259_v7  ;;  %v388_v12 = vmax.bf16 %v3117_v2, %v260_v10  ;;  %v261_v16 = vld [vmem:[%s3171_s25 + $0x108] sm:$0xf]  ;;  %v262_v17 = vld [vmem:[%s3171_s25 + $0x10c] sm:$0xf]  ;;  %v326_v20 = vmax.bf16 %v3117_v2, %v198_v14  ;;  %v199_v25 = vld [vmem:[%s3171_s25 + $0x10] sm:$0xf] }
  0x12   : > { %v2667_v15 = vcombine.low %v323_v8, %v324_v9  ;;  %v389_v21 = vmax.bf16 %v3117_v2, %v261_v16  ;;  %v390_v22 = vmax.bf16 %v3117_v2, %v262_v17  ;;  %v200_v26 = vld [vmem:[%s3171_s25 + $0x14] sm:$0xf]  ;;  %v263_v27 = vld [vmem:[%s3171_s25 + $0x110] sm:$0xf]  ;;  %v327_v29 = vmax.bf16 %v3117_v2, %v199_v25  ;;  %v201_v35 = vld [vmem:[%s3171_s25 + $0x18] sm:$0xf] }
  0x13   : > { %1003 = vmatpush1.bf16.msra.mxu0 %v3092_v4  ;;  %3061 = vmatpush1.bf16.msra.mxu1 %v3092_v4  ;;  %v2699_v18 = vcombine.low %v387_v11, %v388_v12  ;;  %v2668_v23 = vcombine.low %v325_v19, %v326_v20  ;;  %v264_v28 = vld [vmem:[%s3171_s25 + $0x114] sm:$0xf]  ;;  %v328_v30 = vmax.bf16 %v3117_v2, %v200_v26  ;;  %v202_v36 = vld [vmem:[%s3171_s25 + $0x1c] sm:$0xf]  ;;  %v265_v37 = vld [vmem:[%s3171_s25 + $0x118] sm:$0xf] }
  0x14   : > { %v2700_v24 = vcombine.low %v389_v21, %v390_v22  ;;  %v391_v31 = vmax.bf16 %v3117_v2, %v263_v27  ;;  %v392_v32 = vmax.bf16 %v3117_v2, %v264_v28  ;;  %v266_v38 = vld [vmem:[%s3171_s25 + $0x11c] sm:$0xf]  ;;  %v329_v39 = vmax.bf16 %v3117_v2, %v201_v35  ;;  %v203_v45 = vld [vmem:[%s3171_s25 + $0x20] sm:$0xf]  ;;  %v204_v46 = vld [vmem:[%s3171_s25 + $0x24] sm:$0xf] }
  0x15   : > { %v2669_v33 = vcombine.low %v327_v29, %v328_v30  ;;  %v330_v40 = vmax.bf16 %v3117_v2, %v202_v36  ;;  %v393_v41 = vmax.bf16 %v3117_v2, %v265_v37  ;;  %v394_v42 = vmax.bf16 %v3117_v2, %v266_v38  ;;  %v267_v47 = vld [vmem:[%s3171_s25 + $0x120] sm:$0xf]  ;;  %v268_v48 = vld [vmem:[%s3171_s25 + $0x124] sm:$0xf]  ;;  %v205_v55 = vld [vmem:[%s3171_s25 + $0x28] sm:$0xf] }
  0x16   : > { %2735 = vmatmul.mubr.msk.bf16.vlgmr.msra.gmra.mxu0 %vm795_vm0, %v2667_v15  ;;  %2767 = vmatmul.mubr.msk.bf16.vlgmr.msra.gmra.mxu1 %vm795_vm0, %v2699_v18  ;;  %v2701_v34 = vcombine.low %v391_v31, %v392_v32  ;;  %v331_v49 = vmax.bf16 %v3117_v2, %v203_v45  ;;  %v332_v50 = vmax.bf16 %v3117_v2, %v204_v46  ;;  %v206_v56 = vld [vmem:[%s3171_s25 + $0x2c] sm:$0xf]  ;;  %v269_v57 = vld [vmem:[%s3171_s25 + $0x128] sm:$0xf]  ;;  %v207_v1 = vld [vmem:[%s3171_s25 + $0x30] sm:$0xf] }
  0x17   : > { %1030 = vmatprep.mubr.bf16.mxu0 %v3117_v2  ;;  %1350 = vmatprep.mubr.bf16.mxu1 %v3117_v2  ;;  %v2670_v43 = vcombine.low %v329_v39, %v330_v40  ;;  %v2702_v44 = vcombine.low %v393_v41, %v394_v42  ;;  %v395_v51 = vmax.bf16 %v3117_v2, %v267_v47  ;;  %v270_v58 = vld [vmem:[%s3171_s25 + $0x12c] sm:$0xf]  ;;  %v208_v3 = vld [vmem:[%s3171_s25 + $0x34] sm:$0xf]  ;;  %v271_v4 = vld [vmem:[%s3171_s25 + $0x130] sm:$0xf] }
  0x18   : > { %v396_v52 = vmax.bf16 %v3117_v2, %v268_v48  ;;  %v2671_v53 = vcombine.low %v331_v49, %v332_v50  ;;  %v333_v59 = vmax.bf16 %v3117_v2, %v205_v55  ;;  %v334_v60 = vmax.bf16 %v3117_v2, %v206_v56  ;;  %v272_v5 = vld [vmem:[%s3171_s25 + $0x134] sm:$0xf]  ;;  %v209_v12 = vld [vmem:[%s3171_s25 + $0x38] sm:$0xf]  ;;  %v210_v13 = vld [vmem:[%s3171_s25 + $0x3c] sm:$0xf] }
  0x19   : > { %v397_v61 = vmax.bf16 %v3117_v2, %v269_v57  ;;  %v398_v62 = vmax.bf16 %v3117_v2, %v270_v58  ;;  %v335_v6 = vmax.bf16 %v3117_v2, %v207_v1  ;;  %v336_v7 = vmax.bf16 %v3117_v2, %v208_v3  ;;  %v273_v14 = vld [vmem:[%s3171_s25 + $0x138] sm:$0xf]  ;;  %v274_v15 = vld [vmem:[%s3171_s25 + $0x13c] sm:$0xf]  ;;  %v211_v22 = vld [vmem:[%s3171_s25 + $0x40] sm:$0xf] }
  0x1a   : > { %v2703_v54 = vcombine.low %v395_v51, %v396_v52  ;;  %v2672_v63 = vcombine.low %v333_v59, %v334_v60  ;;  %v399_v8 = vmax.bf16 %v3117_v2, %v271_v4  ;;  %v400_v9 = vmax.bf16 %v3117_v2, %v272_v5  ;;  %v276_v25 = vld [vmem:[%s3171_s25 + $0x144] sm:$0xf]  ;;  %v213_v32 = vld [vmem:[%s3171_s25 + $0x48] sm:$0xf]  ;;  %v278_v35 = vld [vmem:[%s3171_s25 + $0x14c] sm:$0xf] }
  0x1b   : > { %v2704_v0 = vcombine.low %v397_v61, %v398_v62  ;;  %v2673_v10 = vcombine.low %v335_v6, %v336_v7  ;;  %v337_v16 = vmax.bf16 %v3117_v2, %v209_v12  ;;  %v338_v17 = vmax.bf16 %v3117_v2, %v210_v13  ;;  %v215_v42 = vld [vmem:[%s3171_s25 + $0x50] sm:$0xf]  ;;  %v280_v45 = vld [vmem:[%s3171_s25 + $0x154] sm:$0xf]  ;;  %v217_v52 = vld [vmem:[%s3171_s25 + $0x58] sm:$0xf] }
  0x1c   : > { %v2705_v11 = vcombine.low %v399_v8, %v400_v9  ;;  %v401_v18 = vmax.bf16 %v3117_v2, %v273_v14  ;;  %v402_v19 = vmax.bf16 %v3117_v2, %v274_v15  ;;  %v339_v26 = vmax.bf16 %v3117_v2, %v211_v22  ;;  %v282_v55 = vld [vmem:[%s3171_s25 + $0x15c] sm:$0xf]  ;;  %v219_v62 = vld [vmem:[%s3171_s25 + $0x60] sm:$0xf]  ;;  %v284_v1 = vld [vmem:[%s3171_s25 + $0x164] sm:$0xf] }
  0x1d   : > { %v2674_v20 = vcombine.low %v337_v16, %v338_v17  ;;  %v404_v29 = vmax.bf16 %v3117_v2, %v276_v25  ;;  %v341_v36 = vmax.bf16 %v3117_v2, %v213_v32  ;;  %v406_v39 = vmax.bf16 %v3117_v2, %v278_v35  ;;  %v221_v9 = vld [vmem:[%s3171_s25 + $0x68] sm:$0xf]  ;;  %v286_v12 = vld [vmem:[%s3171_s25 + $0x16c] sm:$0xf]  ;;  %v288_v22 = vld [vmem:[%s3171_s25 + $0x174] sm:$0xf] }
  0x1e   : > { %2736 = vmatmul.mubr.msk.bf16.gmra.mxu0 %vm795_vm0, %v2668_v23  ;;  %2768 = vmatmul.mubr.msk.bf16.gmra.mxu1 %vm795_vm0, %v2700_v24  ;;  %v2706_v21 = vcombine.low %v401_v18, %v402_v19  ;;  %v212_v23 = vld [vmem:[%s3171_s25 + $0x44] sm:$0xf]  ;;  %v275_v24 = vld [vmem:[%s3171_s25 + $0x140] sm:$0xf]  ;;  %v343_v46 = vmax.bf16 %v3117_v2, %v215_v42  ;;  %v408_v49 = vmax.bf16 %v3117_v2, %v280_v45  ;;  %v223_v19 = vld [vmem:[%s3171_s25 + $0x70] sm:$0xf] }
  0x1f   : > { %1040 = vmatprep.mubr.bf16.mxu0 %v3117_v2  ;;  %1360 = vmatprep.mubr.bf16.mxu1 %v3117_v2  ;;  %v340_v27 = vmax.bf16 %v3117_v2, %v212_v23  ;;  %v403_v28 = vmax.bf16 %v3117_v2, %v275_v24  ;;  %v345_v56 = vmax.bf16 %v3117_v2, %v217_v52  ;;  %v290_v32 = vld [vmem:[%s3171_s25 + $0x17c] sm:$0xf]  ;;  %v292_v42 = vld [vmem:[%s3171_s25 + $0x184] sm:$0xf]  ;;  %v294_v52 = vld [vmem:[%s3171_s25 + $0x18c] sm:$0xf] }
  0x20   : > { %v410_v59 = vmax.bf16 %v3117_v2, %v282_v55  ;;  %v347_v3 = vmax.bf16 %v3117_v2, %v219_v62  ;;  %v412_v6 = vmax.bf16 %v3117_v2, %v284_v1  ;;  %v349_v13 = vmax.bf16 %v3117_v2, %v221_v9  ;;  %v296_v62 = vld [vmem:[%s3171_s25 + $0x194] sm:$0xf]  ;;  %v298_v9 = vld [vmem:[%s3171_s25 + $0x19c] sm:$0xf] }
  0x21   : > { %v2675_v30 = vcombine.low %v339_v26, %v340_v27  ;;  %v2707_v31 = vcombine.low %v403_v28, %v404_v29  ;;  %v414_v16 = vmax.bf16 %v3117_v2, %v286_v12  ;;  %v351_v23 = vmax.bf16 %v3117_v2, %v223_v19  ;;  %v225_v29 = vld [vmem:[%s3171_s25 + $0x78] sm:$0xf]  ;;  %v300_v19 = vld [vmem:[%s3171_s25 + $0x1a4] sm:$0xf] }
  0x22   : > { %v416_v26 = vmax.bf16 %v3117_v2, %v288_v22 }
  0x26   : > { %2737 = vmatmul.mubr.msk.bf16.gmra.mxu0 %vm795_vm0, %v2669_v33  ;;  %2769 = vmatmul.mubr.msk.bf16.gmra.mxu1 %vm795_vm0, %v2701_v34  ;;  %v214_v33 = vld [vmem:[%s3171_s25 + $0x4c] sm:$0xf]  ;;  %v277_v34 = vld [vmem:[%s3171_s25 + $0x148] sm:$0xf] }
  0x27   : > { %1050 = vmatprep.mubr.bf16.mxu0 %v3117_v2  ;;  %1370 = vmatprep.mubr.bf16.mxu1 %v3117_v2  ;;  %v342_v37 = vmax.bf16 %v3117_v2, %v214_v33  ;;  %v405_v38 = vmax.bf16 %v3117_v2, %v277_v34  ;;  %v353_v33 = vmax.bf16 %v3117_v2, %v225_v29  ;;  %v302_v29 = vld [vmem:[%s3171_s25 + $0x1ac] sm:$0xf] }
  0x29   : > { %v2676_v40 = vcombine.low %v341_v36, %v342_v37  ;;  %v2708_v41 = vcombine.low %v405_v38, %v406_v39  ;;  %v418_v36 = vmax.bf16 %v3117_v2, %v290_v32  ;;  %v227_v39 = vld [vmem:[%s3171_s25 + $0x80] sm:$0xf] }
  0x2e   : > { %2738 = vmatmul.mubr.msk.bf16.gmra.mxu0 %vm795_vm0, %v2670_v43  ;;  %2770 = vmatmul.mubr.msk.bf16.gmra.mxu1 %vm795_vm0, %v2702_v44  ;;  %v216_v43 = vld [vmem:[%s3171_s25 + $0x54] sm:$0xf]  ;;  %v279_v44 = vld [vmem:[%s3171_s25 + $0x150] sm:$0xf] }
  0x2f   : > { %1060 = vmatprep.mubr.bf16.mxu0 %v3117_v2  ;;  %1380 = vmatprep.mubr.bf16.mxu1 %v3117_v2  ;;  %v344_v47 = vmax.bf16 %v3117_v2, %v216_v43  ;;  %v407_v48 = vmax.bf16 %v3117_v2, %v279_v44  ;;  %v355_v43 = vmax.bf16 %v3117_v2, %v227_v39  ;;  %v304_v39 = vld [vmem:[%s3171_s25 + $0x1b4] sm:$0xf] }
  0x31   : > { %v2677_v50 = vcombine.low %v343_v46, %v344_v47  ;;  %v2709_v51 = vcombine.low %v407_v48, %v408_v49  ;;  %v420_v46 = vmax.bf16 %v3117_v2, %v292_v42  ;;  %v229_v49 = vld [vmem:[%s3171_s25 + $0x88] sm:$0xf] }
  0x36   : > { %2739 = vmatmul.mubr.msk.bf16.gmra.mxu0 %vm795_vm0, %v2671_v53  ;;  %2771 = vmatmul.mubr.msk.bf16.gmra.mxu1 %vm795_vm0, %v2703_v54  ;;  %v218_v53 = vld [vmem:[%s3171_s25 + $0x5c] sm:$0xf]  ;;  %v281_v54 = vld [vmem:[%s3171_s25 + $0x158] sm:$0xf] }
  0x37   : > { %1070 = vmatprep.mubr.bf16.mxu0 %v3117_v2  ;;  %1390 = vmatprep.mubr.bf16.mxu1 %v3117_v2  ;;  %v346_v57 = vmax.bf16 %v3117_v2, %v218_v53  ;;  %v409_v58 = vmax.bf16 %v3117_v2, %v281_v54  ;;  %v357_v53 = vmax.bf16 %v3117_v2, %v229_v49  ;;  %v306_v49 = vld [vmem:[%s3171_s25 + $0x1bc] sm:$0xf] }
  0x39   : > { %v2678_v60 = vcombine.low %v345_v56, %v346_v57  ;;  %v2710_v61 = vcombine.low %v409_v58, %v410_v59  ;;  %v422_v56 = vmax.bf16 %v3117_v2, %v294_v52  ;;  %v231_v59 = vld [vmem:[%s3171_s25 + $0x90] sm:$0xf] }
  0x3e   : > { %2740 = vmatmul.mubr.msk.bf16.gmra.mxu0 %vm795_vm0, %v2672_v63  ;;  %2772 = vmatmul.mubr.msk.bf16.gmra.mxu1 %vm795_vm0, %v2704_v0  ;;  %v220_v63 = vld [vmem:[%s3171_s25 + $0x64] sm:$0xf]  ;;  %v283_v0 = vld [vmem:[%s3171_s25 + $0x160] sm:$0xf] }
  0x3f   : > { %1080 = vmatprep.mubr.bf16.mxu0 %v3117_v2  ;;  %1400 = vmatprep.mubr.bf16.mxu1 %v3117_v2  ;;  %v348_v4 = vmax.bf16 %v3117_v2, %v220_v63  ;;  %v411_v5 = vmax.bf16 %v3117_v2, %v283_v0  ;;  %v359_v63 = vmax.bf16 %v3117_v2, %v231_v59  ;;  %v308_v59 = vld [vmem:[%s3171_s25 + $0x1c4] sm:$0xf] }
  0x41   : > { %v2679_v7 = vcombine.low %v347_v3, %v348_v4  ;;  %v2711_v8 = vcombine.low %v411_v5, %v412_v6  ;;  %v424_v3 = vmax.bf16 %v3117_v2, %v296_v62  ;;  %v233_v6 = vld [vmem:[%s3171_s25 + $0x98] sm:$0xf] }
  0x46   : > { %2741 = vmatmul.mubr.msk.bf16.gmra.mxu0 %vm795_vm0, %v2673_v10  ;;  %2773 = vmatmul.mubr.msk.bf16.gmra.mxu1 %vm795_vm0, %v2705_v11  ;;  %v222_v10 = vld [vmem:[%s3171_s25 + $0x6c] sm:$0xf]  ;;  %v285_v11 = vld [vmem:[%s3171_s25 + $0x168] sm:$0xf] }
  0x47   : > { %1090 = vmatprep.mubr.bf16.mxu0 %v3117_v2  ;;  %1410 = vmatprep.mubr.bf16.mxu1 %v3117_v2  ;;  %v350_v14 = vmax.bf16 %v3117_v2, %v222_v10  ;;  %v413_v15 = vmax.bf16 %v3117_v2, %v285_v11  ;;  %v361_v10 = vmax.bf16 %v3117_v2, %v233_v6  ;;  %v310_v6 = vld [vmem:[%s3171_s25 + $0x1cc] sm:$0xf] }
  0x49   : > { %v2680_v17 = vcombine.low %v349_v13, %v350_v14  ;;  %v2712_v18 = vcombine.low %v413_v15, %v414_v16  ;;  %v426_v13 = vmax.bf16 %v3117_v2, %v298_v9  ;;  %v235_v16 = vld [vmem:[%s3171_s25 + $0xa0] sm:$0xf] }
  0x4e   : > { %2742 = vmatmul.mubr.msk.bf16.gmra.mxu0 %vm795_vm0, %v2674_v20  ;;  %2774 = vmatmul.mubr.msk.bf16.gmra.mxu1 %vm795_vm0, %v2706_v21  ;;  %v224_v20 = vld [vmem:[%s3171_s25 + $0x74] sm:$0xf]  ;;  %v287_v21 = vld [vmem:[%s3171_s25 + $0x170] sm:$0xf] }
  0x4f   : > { %1100 = vmatprep.mubr.bf16.mxu0 %v3117_v2  ;;  %1420 = vmatprep.mubr.bf16.mxu1 %v3117_v2  ;;  %v352_v24 = vmax.bf16 %v3117_v2, %v224_v20  ;;  %v415_v25 = vmax.bf16 %v3117_v2, %v287_v21  ;;  %v363_v20 = vmax.bf16 %v3117_v2, %v235_v16 }
  0x51   : > { %v2681_v27 = vcombine.low %v351_v23, %v352_v24  ;;  %v2713_v28 = vcombine.low %v415_v25, %v416_v26  ;;  %v428_v23 = vmax.bf16 %v3117_v2, %v300_v19  ;;  %v237_v26 = vld [vmem:[%s3171_s25 + $0xa8] sm:$0xf] }
  0x56   : > { %2743 = vmatmul.mubr.msk.bf16.gmra.mxu0 %vm795_vm0, %v2675_v30  ;;  %2775 = vmatmul.mubr.msk.bf16.gmra.mxu1 %vm795_vm0, %v2707_v31  ;;  %v226_v30 = vld [vmem:[%s3171_s25 + $0x7c] sm:$0xf]  ;;  %v289_v31 = vld [vmem:[%s3171_s25 + $0x178] sm:$0xf] }
  0x57   : > { %1110 = vmatprep.mubr.bf16.mxu0 %v3117_v2  ;;  %1430 = vmatprep.mubr.bf16.mxu1 %v3117_v2  ;;  %v354_v34 = vmax.bf16 %v3117_v2, %v226_v30  ;;  %v417_v35 = vmax.bf16 %v3117_v2, %v289_v31  ;;  %v365_v30 = vmax.bf16 %v3117_v2, %v237_v26 }
  0x59   : > { %v2682_v37 = vcombine.low %v353_v33, %v354_v34  ;;  %v2714_v38 = vcombine.low %v417_v35, %v418_v36  ;;  %v430_v33 = vmax.bf16 %v3117_v2, %v302_v29  ;;  %v239_v36 = vld [vmem:[%s3171_s25 + $0xb0] sm:$0xf] }
  0x5e   : > { %2744 = vmatmul.mubr.msk.bf16.gmra.mxu0 %vm795_vm0, %v2676_v40  ;;  %2776 = vmatmul.mubr.msk.bf16.gmra.mxu1 %vm795_vm0, %v2708_v41  ;;  %v228_v40 = vld [vmem:[%s3171_s25 + $0x84] sm:$0xf]  ;;  %v291_v41 = vld [vmem:[%s3171_s25 + $0x180] sm:$0xf] }
  0x5f   : > { %1120 = vmatprep.mubr.bf16.mxu0 %v3117_v2  ;;  %1440 = vmatprep.mubr.bf16.mxu1 %v3117_v2  ;;  %v356_v44 = vmax.bf16 %v3117_v2, %v228_v40  ;;  %v419_v45 = vmax.bf16 %v3117_v2, %v291_v41  ;;  %v367_v40 = vmax.bf16 %v3117_v2, %v239_v36 }
  0x61   : > { %v2683_v47 = vcombine.low %v355_v43, %v356_v44  ;;  %v2715_v48 = vcombine.low %v419_v45, %v420_v46  ;;  %v432_v43 = vmax.bf16 %v3117_v2, %v304_v39  ;;  %v241_v46 = vld [vmem:[%s3171_s25 + $0xb8] sm:$0xf] }
  0x66   : > { %2745 = vmatmul.mubr.msk.bf16.gmra.mxu0 %vm795_vm0, %v2677_v50  ;;  %2777 = vmatmul.mubr.msk.bf16.gmra.mxu1 %vm795_vm0, %v2709_v51  ;;  %v230_v50 = vld [vmem:[%s3171_s25 + $0x8c] sm:$0xf]  ;;  %v293_v51 = vld [vmem:[%s3171_s25 + $0x188] sm:$0xf] }
  0x67   : > { %1130 = vmatprep.mubr.bf16.mxu0 %v3117_v2  ;;  %1450 = vmatprep.mubr.bf16.mxu1 %v3117_v2  ;;  %v358_v54 = vmax.bf16 %v3117_v2, %v230_v50  ;;  %v421_v55 = vmax.bf16 %v3117_v2, %v293_v51  ;;  %v369_v50 = vmax.bf16 %v3117_v2, %v241_v46  ;;  %v313_v46 = vld [vmem:[%s3171_s25 + $0x1d8] sm:$0xf] }
  0x69   : > { %v2684_v57 = vcombine.low %v357_v53, %v358_v54  ;;  %v2716_v58 = vcombine.low %v421_v55, %v422_v56  ;;  %v434_v53 = vmax.bf16 %v3117_v2, %v306_v49  ;;  %v243_v56 = vld [vmem:[%s3171_s25 + $0xc0] sm:$0xf] }
  0x6e   : > { %2746 = vmatmul.mubr.msk.bf16.gmra.mxu0 %vm795_vm0, %v2678_v60  ;;  %2778 = vmatmul.mubr.msk.bf16.gmra.mxu1 %vm795_vm0, %v2710_v61  ;;  %v232_v60 = vld [vmem:[%s3171_s25 + $0x94] sm:$0xf]  ;;  %v295_v61 = vld [vmem:[%s3171_s25 + $0x190] sm:$0xf] }
  0x6f   : > { %1140 = vmatprep.mubr.bf16.mxu0 %v3117_v2  ;;  %1460 = vmatprep.mubr.bf16.mxu1 %v3117_v2  ;;  %v360_v0 = vmax.bf16 %v3117_v2, %v232_v60  ;;  %v423_v1 = vmax.bf16 %v3117_v2, %v295_v61  ;;  %v371_v60 = vmax.bf16 %v3117_v2, %v243_v56 }
  0x71   : > { %v2685_v4 = vcombine.low %v359_v63, %v360_v0  ;;  %v2717_v5 = vcombine.low %v423_v1, %v424_v3  ;;  %v436_v63 = vmax.bf16 %v3117_v2, %v308_v59  ;;  %v245_v3 = vld [vmem:[%s3171_s25 + $0xc8] sm:$0xf] }
  0x76   : > { %2747 = vmatmul.mubr.msk.bf16.gmra.mxu0 %vm795_vm0, %v2679_v7  ;;  %2779 = vmatmul.mubr.msk.bf16.gmra.mxu1 %vm795_vm0, %v2711_v8  ;;  %v234_v7 = vld [vmem:[%s3171_s25 + $0x9c] sm:$0xf]  ;;  %v297_v8 = vld [vmem:[%s3171_s25 + $0x198] sm:$0xf] }
  0x77   : > { %1150 = vmatprep.mubr.bf16.mxu0 %v3117_v2  ;;  %1470 = vmatprep.mubr.bf16.mxu1 %v3117_v2  ;;  %v362_v11 = vmax.bf16 %v3117_v2, %v234_v7  ;;  %v425_v12 = vmax.bf16 %v3117_v2, %v297_v8  ;;  %v373_v8 = vmax.bf16 %v3117_v2, %v245_v3  ;;  %v252_v3 = vld [vmem:[%s3171_s25 + $0xe4] sm:$0xf] }
  0x79   : > { %v2686_v14 = vcombine.low %v361_v10, %v362_v11  ;;  %v2718_v15 = vcombine.low %v425_v12, %v426_v13  ;;  %v438_v12 = vmax.bf16 %v3117_v2, %v310_v6  ;;  %v316_v6 = vld [vmem:[%s3171_s25 + $0x1e4] sm:$0xf] }
  0x7e   : > { %2748 = vmatmul.mubr.msk.bf16.gmra.mxu0 %vm795_vm0, %v2680_v17  ;;  %2780 = vmatmul.mubr.msk.bf16.gmra.mxu1 %vm795_vm0, %v2712_v18  ;;  %v236_v17 = vld [vmem:[%s3171_s25 + $0xa4] sm:$0xf]  ;;  %v299_v18 = vld [vmem:[%s3171_s25 + $0x1a0] sm:$0xf] }
  0x7f   : > { %1160 = vmatprep.mubr.bf16.mxu0 %v3117_v2  ;;  %1480 = vmatprep.mubr.bf16.mxu1 %v3117_v2  ;;  %v364_v21 = vmax.bf16 %v3117_v2, %v236_v17  ;;  %v427_v22 = vmax.bf16 %v3117_v2, %v299_v18 }
  0x81   : > { %v2687_v24 = vcombine.low %v363_v20, %v364_v21  ;;  %v2719_v25 = vcombine.low %v427_v22, %v428_v23  ;;  %v247_v21 = vld [vmem:[%s3171_s25 + $0xd0] sm:$0xf]  ;;  %v248_v22 = vld [vmem:[%s3171_s25 + $0xd4] sm:$0xf] }
  0x86   : > { %2749 = vmatmul.mubr.msk.bf16.gmra.mxu0 %vm795_vm0, %v2681_v27  ;;  %2781 = vmatmul.mubr.msk.bf16.gmra.mxu1 %vm795_vm0, %v2713_v28  ;;  %v238_v27 = vld [vmem:[%s3171_s25 + $0xac] sm:$0xf]  ;;  %v301_v28 = vld [vmem:[%s3171_s25 + $0x1a8] sm:$0xf] }
  0x87   : > { %1170 = vmatprep.mubr.bf16.mxu0 %v3117_v2  ;;  %1490 = vmatprep.mubr.bf16.mxu1 %v3117_v2  ;;  %v366_v31 = vmax.bf16 %v3117_v2, %v238_v27  ;;  %v429_v32 = vmax.bf16 %v3117_v2, %v301_v28 }
  0x89   : > { %v2688_v34 = vcombine.low %v365_v30, %v366_v31  ;;  %v2720_v35 = vcombine.low %v429_v32, %v430_v33  ;;  %v375_v30 = vmax.bf16 %v3117_v2, %v247_v21  ;;  %v376_v31 = vmax.bf16 %v3117_v2, %v248_v22 }
  0x8e   : > { %2750 = vmatmul.mubr.msk.bf16.gmra.mxu0 %vm795_vm0, %v2682_v37  ;;  %2782 = vmatmul.mubr.msk.bf16.gmra.mxu1 %vm795_vm0, %v2714_v38  ;;  %v240_v37 = vld [vmem:[%s3171_s25 + $0xb4] sm:$0xf]  ;;  %v303_v38 = vld [vmem:[%s3171_s25 + $0x1b0] sm:$0xf] }
  0x8f   : > { %1180 = vmatprep.mubr.bf16.mxu0 %v3117_v2  ;;  %1500 = vmatprep.mubr.bf16.mxu1 %v3117_v2  ;;  %v368_v41 = vmax.bf16 %v3117_v2, %v240_v37  ;;  %v431_v42 = vmax.bf16 %v3117_v2, %v303_v38 }
  0x91   : > { %v2689_v44 = vcombine.low %v367_v40, %v368_v41  ;;  %v2721_v45 = vcombine.low %v431_v42, %v432_v43  ;;  %v2693_v40 = vcombine.low %v375_v30, %v376_v31  ;;  %v249_v43 = vld [vmem:[%s3171_s25 + $0xd8] sm:$0xf] }
  0x96   : > { %2751 = vmatmul.mubr.msk.bf16.gmra.mxu0 %vm795_vm0, %v2683_v47  ;;  %2783 = vmatmul.mubr.msk.bf16.gmra.mxu1 %vm795_vm0, %v2715_v48  ;;  %v242_v47 = vld [vmem:[%s3171_s25 + $0xbc] sm:$0xf]  ;;  %v305_v48 = vld [vmem:[%s3171_s25 + $0x1b8] sm:$0xf] }
  0x97   : > { %1190 = vmatprep.mubr.bf16.mxu0 %v3117_v2  ;;  %1510 = vmatprep.mubr.bf16.mxu1 %v3117_v2  ;;  %v370_v51 = vmax.bf16 %v3117_v2, %v242_v47  ;;  %v433_v52 = vmax.bf16 %v3117_v2, %v305_v48  ;;  %v314_v47 = vld [vmem:[%s3171_s25 + $0x1dc] sm:$0xf] }
  0x98   : > { %v442_v56 = vmax.bf16 %v3117_v2, %v314_v47  ;;  %v256_v47 = vld [vmem:[%s3171_s25 + $0xf4] sm:$0xf] }
  0x99   : > { %v2690_v54 = vcombine.low %v369_v50, %v370_v51  ;;  %v2722_v55 = vcombine.low %v433_v52, %v434_v53  ;;  %v377_v52 = vmax.bf16 %v3117_v2, %v249_v43 }
  0x9e   : > { %2752 = vmatmul.mubr.msk.bf16.gmra.mxu0 %vm795_vm0, %v2684_v57  ;;  %2784 = vmatmul.mubr.msk.bf16.gmra.mxu1 %vm795_vm0, %v2716_v58  ;;  %v244_v57 = vld [vmem:[%s3171_s25 + $0xc4] sm:$0xf]  ;;  %v307_v58 = vld [vmem:[%s3171_s25 + $0x1c0] sm:$0xf] }
  0x9f   : > { %1200 = vmatprep.mubr.bf16.mxu0 %v3117_v2  ;;  %1520 = vmatprep.mubr.bf16.mxu1 %v3117_v2  ;;  %v372_v61 = vmax.bf16 %v3117_v2, %v244_v57  ;;  %v435_v62 = vmax.bf16 %v3117_v2, %v307_v58 }
  0xa1   : > { %v2691_v0 = vcombine.low %v371_v60, %v372_v61  ;;  %v2723_v1 = vcombine.low %v435_v62, %v436_v63 }
  0xa6   : > { %2753 = vmatmul.mubr.msk.bf16.gmra.mxu0 %vm795_vm0, %v2685_v4  ;;  %2785 = vmatmul.mubr.msk.bf16.gmra.mxu1 %vm795_vm0, %v2717_v5  ;;  %v246_v4 = vld [vmem:[%s3171_s25 + $0xcc] sm:$0xf]  ;;  %v309_v5 = vld [vmem:[%s3171_s25 + $0x1c8] sm:$0xf] }
  0xa7   : > { %1210 = vmatprep.mubr.bf16.mxu0 %v3117_v2  ;;  %1530 = vmatprep.mubr.bf16.mxu1 %v3117_v2  ;;  %v374_v9 = vmax.bf16 %v3117_v2, %v246_v4  ;;  %v437_v11 = vmax.bf16 %v3117_v2, %v309_v5  ;;  %v315_v5 = vld [vmem:[%s3171_s25 + $0x1e0] sm:$0xf] }
  0xa9   : > { %v2692_v18 = vcombine.low %v373_v8, %v374_v9  ;;  %v2724_v20 = vcombine.low %v437_v11, %v438_v12  ;;  %v380_v12 = vmax.bf16 %v3117_v2, %v252_v3 }
  0xae   : > { %2754 = vmatmul.mubr.msk.bf16.gmra.mxu0 %vm795_vm0, %v2686_v14  ;;  %2786 = vmatmul.mubr.msk.bf16.gmra.mxu1 %vm795_vm0, %v2718_v15 }
  0xaf   : > { %1220 = vmatprep.mubr.bf16.mxu0 %v3117_v2  ;;  %1540 = vmatprep.mubr.bf16.mxu1 %v3117_v2 }
  0xb6   : > { %2755 = vmatmul.mubr.msk.bf16.gmra.mxu0 %vm795_vm0, %v2687_v24  ;;  %2787 = vmatmul.mubr.msk.bf16.gmra.mxu1 %vm795_vm0, %v2719_v25  ;;  %v311_v24 = vld [vmem:[%s3171_s25 + $0x1d0] sm:$0xf]  ;;  %v312_v25 = vld [vmem:[%s3171_s25 + $0x1d4] sm:$0xf] }
  0xb7   : > { %1230 = vmatprep.mubr.bf16.mxu0 %v3117_v2  ;;  %1550 = vmatprep.mubr.bf16.mxu1 %v3117_v2  ;;  %v439_v33 = vmax.bf16 %v3117_v2, %v311_v24  ;;  %v253_v24 = vld [vmem:[%s3171_s25 + $0xe8] sm:$0xf] }
  0xbe   : > { %2756 = vmatmul.mubr.msk.bf16.gmra.mxu0 %vm795_vm0, %v2688_v34  ;;  %2788 = vmatmul.mubr.msk.bf16.gmra.mxu1 %vm795_vm0, %v2720_v35  ;;  %v440_v34 = vmax.bf16 %v3117_v2, %v312_v25  ;;  %v254_v25 = vld [vmem:[%s3171_s25 + $0xec] sm:$0xf] }
  0xbf   : > { %1240 = vmatprep.mubr.bf16.mxu0 %v3117_v2  ;;  %1560 = vmatprep.mubr.bf16.mxu1 %v3117_v2 }
  0xc0   : > { %v2725_v42 = vcombine.low %v439_v33, %v440_v34  ;;  %v381_v33 = vmax.bf16 %v3117_v2, %v253_v24  ;;  %v382_v34 = vmax.bf16 %v3117_v2, %v254_v25 }
  0xc2   : > { %v2696_v43 = vcombine.low %v381_v33, %v382_v34 }
  0xc6   : > { %2757 = vmatmul.mubr.msk.bf16.gmra.mxu0 %vm795_vm0, %v2689_v44  ;;  %2789 = vmatmul.mubr.msk.bf16.gmra.mxu1 %vm795_vm0, %v2721_v45  ;;  %v250_v44 = vld [vmem:[%s3171_s25 + $0xdc] sm:$0xf] }
  0xc7   : > { %1250 = vmatprep.mubr.bf16.mxu0 %v3117_v2  ;;  %1570 = vmatprep.mubr.bf16.mxu1 %v3117_v2  ;;  %v378_v53 = vmax.bf16 %v3117_v2, %v250_v44 }
  0xc9   : > { %v2694_v62 = vcombine.low %v377_v52, %v378_v53 }
  0xce   : > { %2758 = vmatmul.mubr.msk.bf16.gmra.mxu0 %vm795_vm0, %v2690_v54  ;;  %2790 = vmatmul.mubr.msk.bf16.gmra.mxu1 %vm795_vm0, %v2722_v55  ;;  %v441_v55 = vmax.bf16 %v3117_v2, %v313_v46  ;;  %v255_v46 = vld [vmem:[%s3171_s25 + $0xf0] sm:$0xf] }
  0xcf   : > { %1260 = vmatprep.mubr.bf16.mxu0 %v3117_v2  ;;  %1580 = vmatprep.mubr.bf16.mxu1 %v3117_v2 }
  0xd6   : > { %v1022_v7 = vpop.f32.mrf.mxu0  ;;  %2759 = vmatmul.mubr.msk.bf16.gmra.mxu0 %vm795_vm0, %v2691_v0  ;;  %v1342_v10 = vpop.f32.mrf.mxu1  ;;  %2791 = vmatmul.mubr.msk.bf16.gmra.mxu1 %vm795_vm0, %v2723_v1  ;;  %v2726_v0 = vcombine.low %v441_v55, %v442_v56  ;;  %v251_v1 = vld [vmem:[%s3171_s25 + $0xe0] sm:$0xf]  ;;  %v383_v55 = vmax.bf16 %v3117_v2, %v255_v46  ;;  %v384_v56 = vmax.bf16 %v3117_v2, %v256_v47 }
  0xd7   : > { %1270 = vmatprep.mubr.bf16.mxu0 %v3117_v2  ;;  %1590 = vmatprep.mubr.bf16.mxu1 %v3117_v2  ;;  %v379_v11 = vmax.bf16 %v3117_v2, %v251_v1 }
  0xd8   : > { %v1024_v13 = vpop.f32.mrf.mxu0  ;;  %v1344_v15 = vpop.f32.mrf.mxu1  ;;  %v2697_v1 = vcombine.low %v383_v55, %v384_v56 }
  0xd9   : > { %v2930_v14 = vpack.c.bf16 %v1024_v13, %v1022_v7  ;;  %v2994_v16 = vpack.c.bf16 %v1344_v15, %v1342_v10  ;;  %v444_v15 = vmax.bf16 %v3117_v2, %v316_v6  ;;  %v2695_v21 = vcombine.low %v379_v11, %v380_v12  ;;  %v258_v6 = vld [vmem:[%s3171_s25 + $0xfc] sm:$0xf] }
  0xda   : > { %v1026_v17 = vpop.f32.mrf.mxu0  ;;  %v1346_v19 = vpop.f32.mrf.mxu1 }
  0xdb   : > { %2429 = vst [vmem:[%s3484_s29] sm:$0xff] %v2930_v14  ;;  %2493 = vst [vmem:[%s3484_s29 + $0x200] sm:$0xff] %v2994_v16  ;;  %v443_v14 = vmax.bf16 %v3117_v2, %v315_v5  ;;  %v257_v5 = vld [vmem:[%s3171_s25 + $0xf8] sm:$0xf] }
  0xdc   : > { %v1028_v23 = vpop.f32.mrf.mxu0  ;;  %v1348_v27 = vpop.f32.mrf.mxu1 }
  0xdd   : > { %v2931_v26 = vpack.c.bf16 %v1028_v23, %v1026_v17  ;;  %v2995_v28 = vpack.c.bf16 %v1348_v27, %v1346_v19  ;;  %v2727_v23 = vcombine.low %v443_v14, %v444_v15  ;;  %v317_v27 = vld [vmem:[%s3171_s25 + $0x1e8] sm:$0xf]  ;;  %v385_v14 = vmax.bf16 %v3117_v2, %v257_v5 }
  0xde   : > { %v1032_v29 = vpop.f32.mrf.mxu0  ;;  %2760 = vmatmul.mubr.msk.bf16.gmra.mxu0 %vm795_vm0, %v2692_v18  ;;  %v1352_v32 = vpop.f32.mrf.mxu1  ;;  %2792 = vmatmul.mubr.msk.bf16.gmra.mxu1 %vm795_vm0, %v2724_v20  ;;  %v386_v15 = vmax.bf16 %v3117_v2, %v258_v6 }
  0xdf   : > { %2430 = vst [vmem:[%s3484_s29 + $0x8] sm:$0xff] %v2931_v26  ;;  %1280 = vmatprep.mubr.bf16.mxu0 %v3117_v2  ;;  %2494 = vst [vmem:[%s3484_s29 + $0x208] sm:$0xff] %v2995_v28  ;;  %1600 = vmatprep.mubr.bf16.mxu1 %v3117_v2  ;;  %v318_v28 = vld [vmem:[%s3171_s25 + $0x1ec] sm:$0xf] }
  0xe0   : > { %v1034_v35 = vpop.f32.mrf.mxu0  ;;  %v1354_v37 = vpop.f32.mrf.mxu1  ;;  %v2698_v24 = vcombine.low %v385_v14, %v386_v15 }
  0xe1   : > { %v2932_v36 = vpack.c.bf16 %v1034_v35, %v1032_v29  ;;  %v2996_v38 = vpack.c.bf16 %v1354_v37, %v1352_v32  ;;  %v446_v37 = vmax.bf16 %v3117_v2, %v318_v28 }
  0xe2   : > { %v1036_v39 = vpop.f32.mrf.mxu0  ;;  %v1356_v41 = vpop.f32.mrf.mxu1 }
  0xe3   : > { %2431 = vst [vmem:[%s3484_s29 + $0x10] sm:$0xff] %v2932_v36  ;;  %2495 = vst [vmem:[%s3484_s29 + $0x210] sm:$0xff] %v2996_v38  ;;  %v445_v36 = vmax.bf16 %v3117_v2, %v317_v27 }
  0xe4   : > { %v1038_v45 = vpop.f32.mrf.mxu0  ;;  %v1358_v49 = vpop.f32.mrf.mxu1 }
  0xe5   : > { %v2933_v48 = vpack.c.bf16 %v1038_v45, %v1036_v39  ;;  %v2997_v50 = vpack.c.bf16 %v1358_v49, %v1356_v41  ;;  %v2728_v45 = vcombine.low %v445_v36, %v446_v37  ;;  %v319_v49 = vld [vmem:[%s3171_s25 + $0x1f0] sm:$0xf] }
  0xe6   : > { %v1042_v51 = vpop.f32.mrf.mxu0  ;;  %2761 = vmatmul.mubr.msk.bf16.gmra.mxu0 %vm795_vm0, %v2693_v40  ;;  %v1362_v54 = vpop.f32.mrf.mxu1  ;;  %2793 = vmatmul.mubr.msk.bf16.gmra.mxu1 %vm795_vm0, %v2725_v42 }
  0xe7   : > { %2432 = vst [vmem:[%s3484_s29 + $0x18] sm:$0xff] %v2933_v48  ;;  %1290 = vmatprep.mubr.bf16.mxu0 %v3117_v2  ;;  %2496 = vst [vmem:[%s3484_s29 + $0x218] sm:$0xff] %v2997_v50  ;;  %1610 = vmatprep.mubr.bf16.mxu1 %v3117_v2  ;;  %v320_v50 = vld [vmem:[%s3171_s25 + $0x1f4] sm:$0xf] }
  0xe8   : > { %v1044_v57 = vpop.f32.mrf.mxu0  ;;  %v1364_v59 = vpop.f32.mrf.mxu1 }
  0xe9   : > { %v2934_v58 = vpack.c.bf16 %v1044_v57, %v1042_v51  ;;  %v2998_v60 = vpack.c.bf16 %v1364_v59, %v1362_v54  ;;  %v448_v59 = vmax.bf16 %v3117_v2, %v320_v50 }
  0xea   : > { %v1046_v61 = vpop.f32.mrf.mxu0  ;;  %v1366_v63 = vpop.f32.mrf.mxu1 }
  0xeb   : > { %2433 = vst [vmem:[%s3484_s29 + $0x20] sm:$0xff] %v2934_v58  ;;  %2497 = vst [vmem:[%s3484_s29 + $0x220] sm:$0xff] %v2998_v60  ;;  %v447_v58 = vmax.bf16 %v3117_v2, %v319_v49 }
  0xec   : > { %v1048_v4 = vpop.f32.mrf.mxu0  ;;  %v1368_v8 = vpop.f32.mrf.mxu1 }
  0xed   : > { %v2935_v7 = vpack.c.bf16 %v1048_v4, %v1046_v61  ;;  %v2999_v9 = vpack.c.bf16 %v1368_v8, %v1366_v63  ;;  %v2729_v4 = vcombine.low %v447_v58, %v448_v59  ;;  %v321_v8 = vld [vmem:[%s3171_s25 + $0x1f8] sm:$0xf] }
  0xee   : > { %v1052_v10 = vpop.f32.mrf.mxu0  ;;  %2762 = vmatmul.mubr.msk.bf16.gmra.mxu0 %vm795_vm0, %v2694_v62  ;;  %v1372_v13 = vpop.f32.mrf.mxu1  ;;  %2794 = vmatmul.mubr.msk.bf16.gmra.mxu1 %vm795_vm0, %v2726_v0 }
  0xef   : > { %2434 = vst [vmem:[%s3484_s29 + $0x28] sm:$0xff] %v2935_v7  ;;  %1300 = vmatprep.mubr.bf16.mxu0 %v3117_v2  ;;  %2498 = vst [vmem:[%s3484_s29 + $0x228] sm:$0xff] %v2999_v9  ;;  %1620 = vmatprep.mubr.bf16.mxu1 %v3117_v2  ;;  %v322_v9 = vld [vmem:[%s3171_s25 + $0x1fc] sm:$0xf] }
  0xf0   : > { %v1054_v16 = vpop.f32.mrf.mxu0  ;;  %v1374_v18 = vpop.f32.mrf.mxu1 }
  0xf1   : > { %v2936_v17 = vpack.c.bf16 %v1054_v16, %v1052_v10  ;;  %v3000_v19 = vpack.c.bf16 %v1374_v18, %v1372_v13  ;;  %v450_v18 = vmax.bf16 %v3117_v2, %v322_v9 }
  0xf2   : > { %v1056_v20 = vpop.f32.mrf.mxu0  ;;  %v1376_v22 = vpop.f32.mrf.mxu1 }
  0xf3   : > { %2435 = vst [vmem:[%s3484_s29 + $0x30] sm:$0xff] %v2936_v17  ;;  %2499 = vst [vmem:[%s3484_s29 + $0x230] sm:$0xff] %v3000_v19  ;;  %v449_v17 = vmax.bf16 %v3117_v2, %v321_v8 }
  0xf4   : > { %v1058_v26 = vpop.f32.mrf.mxu0  ;;  %v1378_v30 = vpop.f32.mrf.mxu1 }
  0xf5   : > { %v2937_v29 = vpack.c.bf16 %v1058_v26, %v1056_v20  ;;  %v3001_v31 = vpack.c.bf16 %v1378_v30, %v1376_v22  ;;  %v2730_v26 = vcombine.low %v449_v17, %v450_v18 }
  0xf6   : > { %v1062_v32 = vpop.f32.mrf.mxu0  ;;  %2763 = vmatmul.mubr.msk.bf16.gmra.mxu0 %vm795_vm0, %v2695_v21  ;;  %v1382_v35 = vpop.f32.mrf.mxu1  ;;  %2795 = vmatmul.mubr.msk.bf16.gmra.mxu1 %vm795_vm0, %v2727_v23 }
  0xf7   : > { %2436 = vst [vmem:[%s3484_s29 + $0x38] sm:$0xff] %v2937_v29  ;;  %1310 = vmatprep.mubr.bf16.mxu0 %v3117_v2  ;;  %2500 = vst [vmem:[%s3484_s29 + $0x238] sm:$0xff] %v3001_v31  ;;  %1630 = vmatprep.mubr.bf16.mxu1 %v3117_v2 }
  0xf8   : > { %v1064_v38 = vpop.f32.mrf.mxu0  ;;  %v1384_v40 = vpop.f32.mrf.mxu1 }
  0xf9   : > { %v2938_v39 = vpack.c.bf16 %v1064_v38, %v1062_v32  ;;  %v3002_v41 = vpack.c.bf16 %v1384_v40, %v1382_v35 }
  0xfa   : > { %v1066_v42 = vpop.f32.mrf.mxu0  ;;  %v1386_v44 = vpop.f32.mrf.mxu1 }
  0xfb   : > { %2437 = vst [vmem:[%s3484_s29 + $0x40] sm:$0xff] %v2938_v39  ;;  %2501 = vst [vmem:[%s3484_s29 + $0x240] sm:$0xff] %v3002_v41 }
  0xfc   : > { %v1068_v48 = vpop.f32.mrf.mxu0  ;;  %v1388_v52 = vpop.f32.mrf.mxu1 }
  0xfd   : > { %v2939_v51 = vpack.c.bf16 %v1068_v48, %v1066_v42  ;;  %v3003_v53 = vpack.c.bf16 %v1388_v52, %v1386_v44 }
  0xfe   : > { %v1072_v54 = vpop.f32.mrf.mxu0  ;;  %2764 = vmatmul.mubr.msk.bf16.gmra.mxu0 %vm795_vm0, %v2696_v43  ;;  %v1392_v57 = vpop.f32.mrf.mxu1  ;;  %2796 = vmatmul.mubr.msk.bf16.gmra.mxu1 %vm795_vm0, %v2728_v45 }
  0xff   : > { %2438 = vst [vmem:[%s3484_s29 + $0x48] sm:$0xff] %v2939_v51  ;;  %1320 = vmatprep.mubr.bf16.mxu0 %v3117_v2  ;;  %2502 = vst [vmem:[%s3484_s29 + $0x248] sm:$0xff] %v3003_v53  ;;  %1640 = vmatprep.mubr.bf16.mxu1 %v3117_v2 }
 0x100   : > { %v1074_v60 = vpop.f32.mrf.mxu0  ;;  %v1394_v62 = vpop.f32.mrf.mxu1 }
 0x101   : > { %v2940_v61 = vpack.c.bf16 %v1074_v60, %v1072_v54  ;;  %v3004_v63 = vpack.c.bf16 %v1394_v62, %v1392_v57 }
 0x102   : > { %v1076_v0 = vpop.f32.mrf.mxu0  ;;  %v1396_v3 = vpop.f32.mrf.mxu1 }
 0x103   : > { %2439 = vst [vmem:[%s3484_s29 + $0x50] sm:$0xff] %v2940_v61  ;;  %2503 = vst [vmem:[%s3484_s29 + $0x250] sm:$0xff] %v3004_v63 }
 0x104   : > { %v1078_v7 = vpop.f32.mrf.mxu0  ;;  %v1398_v11 = vpop.f32.mrf.mxu1 }
 0x105   : > { %v2941_v10 = vpack.c.bf16 %v1078_v7, %v1076_v0  ;;  %v3005_v12 = vpack.c.bf16 %v1398_v11, %v1396_v3 }
 0x106   : > { %v1082_v13 = vpop.f32.mrf.mxu0  ;;  %2765 = vmatmul.mubr.msk.bf16.gmra.mxu0 %vm795_vm0, %v2697_v1  ;;  %v1402_v16 = vpop.f32.mrf.mxu1  ;;  %2797 = vmatmul.mubr.msk.bf16.gmra.mxu1 %vm795_vm0, %v2729_v4 }
 0x107   : > { %2440 = vst [vmem:[%s3484_s29 + $0x58] sm:$0xff] %v2941_v10  ;;  %1330 = vmatprep.mubr.bf16.mxu0 %v3117_v2  ;;  %2504 = vst [vmem:[%s3484_s29 + $0x258] sm:$0xff] %v3005_v12  ;;  %1650 = vmatprep.mubr.bf16.mxu1 %v3117_v2 }
 0x108   : > { %v1084_v19 = vpop.f32.mrf.mxu0  ;;  %v1404_v21 = vpop.f32.mrf.mxu1 }
 0x109   : > { %v2942_v20 = vpack.c.bf16 %v1084_v19, %v1082_v13  ;;  %v3006_v22 = vpack.c.bf16 %v1404_v21, %v1402_v16 }
 0x10a   : > { %v1086_v23 = vpop.f32.mrf.mxu0  ;;  %v1406_v25 = vpop.f32.mrf.mxu1 }
 0x10b   : > { %2441 = vst [vmem:[%s3484_s29 + $0x60] sm:$0xff] %v2942_v20  ;;  %2505 = vst [vmem:[%s3484_s29 + $0x260] sm:$0xff] %v3006_v22 }
 0x10c   : > { %v1088_v27 = vpop.f32.mrf.mxu0  ;;  %v1408_v29 = vpop.f32.mrf.mxu1 }
 0x10d   : > { %v2943_v28 = vpack.c.bf16 %v1088_v27, %v1086_v23  ;;  %v3007_v30 = vpack.c.bf16 %v1408_v29, %v1406_v25 }
 0x10e   : > { %v1092_v31 = vpop.f32.mrf.mxu0  ;;  %2766 = vmatmul.mubr.msk.bf16.gmra.mxu0 %vm795_vm0, %v2698_v24  ;;  %v1412_v2 = vpop.f32.mrf.mxu1  ;;  %2798 = vmatmul.mubr.msk.bf16.gmra.mxu1 %vm795_vm0, %v2730_v26 }
 0x10f   : > { %2442 = vst [vmem:[%s3484_s29 + $0x68] sm:$0xff] %v2943_v28  ;;  %2506 = vst [vmem:[%s3484_s29 + $0x268] sm:$0xff] %v3007_v30 }
 0x110   : > { %v1094_v32 = vpop.f32.mrf.mxu0  ;;  %v1414_v34 = vpop.f32.mrf.mxu1 }
 0x111   : > { %v2944_v33 = vpack.c.bf16 %v1094_v32, %v1092_v31  ;;  %v3008_v35 = vpack.c.bf16 %v1414_v34, %v1412_v2 }
 0x112   : > { %v1096_v36 = vpop.f32.mrf.mxu0  ;;  %v1416_v37 = vpop.f32.mrf.mxu1 }
 0x113   : > { %2443 = vst [vmem:[%s3484_s29 + $0x70] sm:$0xff] %v2944_v33  ;;  %2507 = vst [vmem:[%s3484_s29 + $0x270] sm:$0xff] %v3008_v35 }
 0x114   : > { %v1098_v38 = vpop.f32.mrf.mxu0  ;;  %v1418_v40 = vpop.f32.mrf.mxu1 }
 0x115   : > { %v2945_v39 = vpack.c.bf16 %v1098_v38, %v1096_v36  ;;  %v3009_v41 = vpack.c.bf16 %v1418_v40, %v1416_v37 }
 0x116   : > { %v1102_v42 = vpop.f32.mrf.mxu0  ;;  %v1422_v43 = vpop.f32.mrf.mxu1 }
 0x117   : > { %2444 = vst [vmem:[%s3484_s29 + $0x78] sm:$0xff] %v2945_v39  ;;  %2508 = vst [vmem:[%s3484_s29 + $0x278] sm:$0xff] %v3009_v41 }
 0x118   : > { %v1104_v44 = vpop.f32.mrf.mxu0  ;;  %v1424_v46 = vpop.f32.mrf.mxu1 }
 0x119   : > { %v2946_v45 = vpack.c.bf16 %v1104_v44, %v1102_v42  ;;  %v3010_v47 = vpack.c.bf16 %v1424_v46, %v1422_v43 }
 0x11a   : > { %v1106_v48 = vpop.f32.mrf.mxu0  ;;  %v1426_v49 = vpop.f32.mrf.mxu1 }
 0x11b   : > { %2445 = vst [vmem:[%s3484_s29 + $0x80] sm:$0xff] %v2946_v45  ;;  %2509 = vst [vmem:[%s3484_s29 + $0x280] sm:$0xff] %v3010_v47 }
 0x11c   : > { %v1108_v50 = vpop.f32.mrf.mxu0  ;;  %v1428_v52 = vpop.f32.mrf.mxu1 }
 0x11d   : > { %v2947_v51 = vpack.c.bf16 %v1108_v50, %v1106_v48  ;;  %v3011_v53 = vpack.c.bf16 %v1428_v52, %v1426_v49 }
 0x11e   : > { %v1112_v54 = vpop.f32.mrf.mxu0  ;;  %v1432_v55 = vpop.f32.mrf.mxu1 }
 0x11f   : > { %2446 = vst [vmem:[%s3484_s29 + $0x88] sm:$0xff] %v2947_v51  ;;  %2510 = vst [vmem:[%s3484_s29 + $0x288] sm:$0xff] %v3011_v53 }
 0x120   : > { %v1114_v56 = vpop.f32.mrf.mxu0  ;;  %v1434_v58 = vpop.f32.mrf.mxu1 }
 0x121   : > { %v2948_v57 = vpack.c.bf16 %v1114_v56, %v1112_v54  ;;  %v3012_v59 = vpack.c.bf16 %v1434_v58, %v1432_v55 }
 0x122   : > { %v1116_v60 = vpop.f32.mrf.mxu0  ;;  %v1436_v61 = vpop.f32.mrf.mxu1 }
 0x123   : > { %2447 = vst [vmem:[%s3484_s29 + $0x90] sm:$0xff] %v2948_v57  ;;  %2511 = vst [vmem:[%s3484_s29 + $0x290] sm:$0xff] %v3012_v59 }
 0x124   : > { %v1118_v62 = vpop.f32.mrf.mxu0  ;;  %v1438_v0 = vpop.f32.mrf.mxu1 }
 0x125   : > { %v2949_v63 = vpack.c.bf16 %v1118_v62, %v1116_v60  ;;  %v3013_v1 = vpack.c.bf16 %v1438_v0, %v1436_v61 }
 0x126   : > { %v1122_v3 = vpop.f32.mrf.mxu0  ;;  %v1442_v4 = vpop.f32.mrf.mxu1 }
 0x127   : > { %2448 = vst [vmem:[%s3484_s29 + $0x98] sm:$0xff] %v2949_v63  ;;  %2512 = vst [vmem:[%s3484_s29 + $0x298] sm:$0xff] %v3013_v1 }
 0x128   : > { %v1124_v5 = vpop.f32.mrf.mxu0  ;;  %v1444_v7 = vpop.f32.mrf.mxu1 }
 0x129   : > { %v2950_v6 = vpack.c.bf16 %v1124_v5, %v1122_v3  ;;  %v3014_v8 = vpack.c.bf16 %v1444_v7, %v1442_v4 }
 0x12a   : > { %v1126_v9 = vpop.f32.mrf.mxu0  ;;  %v1446_v10 = vpop.f32.mrf.mxu1 }
 0x12b   : > { %2449 = vst [vmem:[%s3484_s29 + $0xa0] sm:$0xff] %v2950_v6  ;;  %2513 = vst [vmem:[%s3484_s29 + $0x2a0] sm:$0xff] %v3014_v8 }
 0x12c   : > { %v1128_v11 = vpop.f32.mrf.mxu0  ;;  %v1448_v13 = vpop.f32.mrf.mxu1 }
 0x12d   : > { %v2951_v12 = vpack.c.bf16 %v1128_v11, %v1126_v9  ;;  %v3015_v14 = vpack.c.bf16 %v1448_v13, %v1446_v10 }
 0x12e   : > { %v1132_v15 = vpop.f32.mrf.mxu0  ;;  %v1452_v16 = vpop.f32.mrf.mxu1 }
 0x12f   : > { %2450 = vst [vmem:[%s3484_s29 + $0xa8] sm:$0xff] %v2951_v12  ;;  %2514 = vst [vmem:[%s3484_s29 + $0x2a8] sm:$0xff] %v3015_v14 }
 0x130   : > { %v1134_v17 = vpop.f32.mrf.mxu0  ;;  %v1454_v19 = vpop.f32.mrf.mxu1 }
 0x131   : > { %v2952_v18 = vpack.c.bf16 %v1134_v17, %v1132_v15  ;;  %v3016_v20 = vpack.c.bf16 %v1454_v19, %v1452_v16 }
 0x132   : > { %v1136_v21 = vpop.f32.mrf.mxu0  ;;  %v1456_v22 = vpop.f32.mrf.mxu1 }
 0x133   : > { %2451 = vst [vmem:[%s3484_s29 + $0xb0] sm:$0xff] %v2952_v18  ;;  %2515 = vst [vmem:[%s3484_s29 + $0x2b0] sm:$0xff] %v3016_v20 }
 0x134   : > { %v1138_v23 = vpop.f32.mrf.mxu0  ;;  %v1458_v25 = vpop.f32.mrf.mxu1 }
 0x135   : > { %v2953_v24 = vpack.c.bf16 %v1138_v23, %v1136_v21  ;;  %v3017_v26 = vpack.c.bf16 %v1458_v25, %v1456_v22 }
 0x136   : > { %v1142_v27 = vpop.f32.mrf.mxu0  ;;  %v1462_v28 = vpop.f32.mrf.mxu1 }
 0x137   : > { %2452 = vst [vmem:[%s3484_s29 + $0xb8] sm:$0xff] %v2953_v24  ;;  %2516 = vst [vmem:[%s3484_s29 + $0x2b8] sm:$0xff] %v3017_v26 }
 0x138   : > { %v1144_v29 = vpop.f32.mrf.mxu0  ;;  %v1464_v31 = vpop.f32.mrf.mxu1 }
 0x139   : > { %v2954_v30 = vpack.c.bf16 %v1144_v29, %v1142_v27  ;;  %v3018_v2 = vpack.c.bf16 %v1464_v31, %v1462_v28 }
 0x13a   : > { %v1146_v32 = vpop.f32.mrf.mxu0  ;;  %v1466_v33 = vpop.f32.mrf.mxu1 }
 0x13b   : > { %2453 = vst [vmem:[%s3484_s29 + $0xc0] sm:$0xff] %v2954_v30  ;;  %2517 = vst [vmem:[%s3484_s29 + $0x2c0] sm:$0xff] %v3018_v2 }
 0x13c   : > { %v1148_v34 = vpop.f32.mrf.mxu0  ;;  %v1468_v36 = vpop.f32.mrf.mxu1 }
 0x13d   : > { %v2955_v35 = vpack.c.bf16 %v1148_v34, %v1146_v32  ;;  %v3019_v37 = vpack.c.bf16 %v1468_v36, %v1466_v33 }
 0x13e   : > { %v1152_v38 = vpop.f32.mrf.mxu0  ;;  %v1472_v39 = vpop.f32.mrf.mxu1 }
 0x13f   : > { %2454 = vst [vmem:[%s3484_s29 + $0xc8] sm:$0xff] %v2955_v35  ;;  %2518 = vst [vmem:[%s3484_s29 + $0x2c8] sm:$0xff] %v3019_v37 }
 0x140   : > { %v1154_v40 = vpop.f32.mrf.mxu0  ;;  %v1474_v42 = vpop.f32.mrf.mxu1 }
 0x141   : > { %v2956_v41 = vpack.c.bf16 %v1154_v40, %v1152_v38  ;;  %v3020_v43 = vpack.c.bf16 %v1474_v42, %v1472_v39 }
 0x142   : > { %v1156_v44 = vpop.f32.mrf.mxu0  ;;  %v1476_v45 = vpop.f32.mrf.mxu1 }
 0x143   : > { %2455 = vst [vmem:[%s3484_s29 + $0xd0] sm:$0xff] %v2956_v41  ;;  %2519 = vst [vmem:[%s3484_s29 + $0x2d0] sm:$0xff] %v3020_v43 }
 0x144   : > { %v1158_v46 = vpop.f32.mrf.mxu0  ;;  %v1478_v48 = vpop.f32.mrf.mxu1 }
 0x145   : > { %v2957_v47 = vpack.c.bf16 %v1158_v46, %v1156_v44  ;;  %v3021_v49 = vpack.c.bf16 %v1478_v48, %v1476_v45 }
 0x146   : > { %v1162_v50 = vpop.f32.mrf.mxu0  ;;  %v1482_v51 = vpop.f32.mrf.mxu1 }
 0x147   : > { %2456 = vst [vmem:[%s3484_s29 + $0xd8] sm:$0xff] %v2957_v47  ;;  %2520 = vst [vmem:[%s3484_s29 + $0x2d8] sm:$0xff] %v3021_v49 }
 0x148   : > { %v1164_v52 = vpop.f32.mrf.mxu0  ;;  %v1484_v54 = vpop.f32.mrf.mxu1 }
 0x149   : > { %v2958_v53 = vpack.c.bf16 %v1164_v52, %v1162_v50  ;;  %v3022_v55 = vpack.c.bf16 %v1484_v54, %v1482_v51 }
 0x14a   : > { %v1166_v56 = vpop.f32.mrf.mxu0  ;;  %v1486_v57 = vpop.f32.mrf.mxu1 }
 0x14b   : > { %2457 = vst [vmem:[%s3484_s29 + $0xe0] sm:$0xff] %v2958_v53  ;;  %2521 = vst [vmem:[%s3484_s29 + $0x2e0] sm:$0xff] %v3022_v55 }
 0x14c   : > { %v1168_v58 = vpop.f32.mrf.mxu0  ;;  %v1488_v60 = vpop.f32.mrf.mxu1 }
 0x14d   : > { %v2959_v59 = vpack.c.bf16 %v1168_v58, %v1166_v56  ;;  %v3023_v61 = vpack.c.bf16 %v1488_v60, %v1486_v57 }
 0x14e   : > { %v1172_v62 = vpop.f32.mrf.mxu0  ;;  %v1492_v63 = vpop.f32.mrf.mxu1 }
 0x14f   : > { %2458 = vst [vmem:[%s3484_s29 + $0xe8] sm:$0xff] %v2959_v59  ;;  %2522 = vst [vmem:[%s3484_s29 + $0x2e8] sm:$0xff] %v3023_v61 }
 0x150   : > { %v1174_v0 = vpop.f32.mrf.mxu0  ;;  %v1494_v3 = vpop.f32.mrf.mxu1 }
 0x151   : > { %v2960_v1 = vpack.c.bf16 %v1174_v0, %v1172_v62  ;;  %v3024_v4 = vpack.c.bf16 %v1494_v3, %v1492_v63 }
 0x152   : > { %v1176_v5 = vpop.f32.mrf.mxu0  ;;  %v1496_v6 = vpop.f32.mrf.mxu1 }
 0x153   : > { %2459 = vst [vmem:[%s3484_s29 + $0xf0] sm:$0xff] %v2960_v1  ;;  %2523 = vst [vmem:[%s3484_s29 + $0x2f0] sm:$0xff] %v3024_v4 }
 0x154   : > { %v1178_v7 = vpop.f32.mrf.mxu0  ;;  %v1498_v9 = vpop.f32.mrf.mxu1 }
 0x155   : > { %v2961_v8 = vpack.c.bf16 %v1178_v7, %v1176_v5  ;;  %v3025_v10 = vpack.c.bf16 %v1498_v9, %v1496_v6 }
 0x156   : > { %v1182_v11 = vpop.f32.mrf.mxu0  ;;  %v1502_v12 = vpop.f32.mrf.mxu1 }
 0x157   : > { %2460 = vst [vmem:[%s3484_s29 + $0xf8] sm:$0xff] %v2961_v8  ;;  %2524 = vst [vmem:[%s3484_s29 + $0x2f8] sm:$0xff] %v3025_v10 }
 0x158   : > { %v1184_v13 = vpop.f32.mrf.mxu0  ;;  %v1504_v15 = vpop.f32.mrf.mxu1 }
 0x159   : > { %v2962_v14 = vpack.c.bf16 %v1184_v13, %v1182_v11  ;;  %v3026_v16 = vpack.c.bf16 %v1504_v15, %v1502_v12 }
 0x15a   : > { %v1186_v17 = vpop.f32.mrf.mxu0  ;;  %v1506_v18 = vpop.f32.mrf.mxu1 }
 0x15b   : > { %2461 = vst [vmem:[%s3484_s29 + $0x100] sm:$0xff] %v2962_v14  ;;  %2525 = vst [vmem:[%s3484_s29 + $0x300] sm:$0xff] %v3026_v16 }
 0x15c   : > { %v1188_v19 = vpop.f32.mrf.mxu0  ;;  %v1508_v21 = vpop.f32.mrf.mxu1 }
 0x15d   : > { %v2963_v20 = vpack.c.bf16 %v1188_v19, %v1186_v17  ;;  %v3027_v22 = vpack.c.bf16 %v1508_v21, %v1506_v18 }
 0x15e   : > { %v1192_v23 = vpop.f32.mrf.mxu0  ;;  %v1512_v24 = vpop.f32.mrf.mxu1 }
 0x15f   : > { %2462 = vst [vmem:[%s3484_s29 + $0x108] sm:$0xff] %v2963_v20  ;;  %2526 = vst [vmem:[%s3484_s29 + $0x308] sm:$0xff] %v3027_v22 }
 0x160   : > { %v1194_v25 = vpop.f32.mrf.mxu0  ;;  %v1514_v27 = vpop.f32.mrf.mxu1 }
 0x161   : > { %v2964_v26 = vpack.c.bf16 %v1194_v25, %v1192_v23  ;;  %v3028_v28 = vpack.c.bf16 %v1514_v27, %v1512_v24 }
 0x162   : > { %v1196_v29 = vpop.f32.mrf.mxu0  ;;  %v1516_v30 = vpop.f32.mrf.mxu1 }
 0x163   : > { %2463 = vst [vmem:[%s3484_s29 + $0x110] sm:$0xff] %v2964_v26  ;;  %2527 = vst [vmem:[%s3484_s29 + $0x310] sm:$0xff] %v3028_v28 }
 0x164   : > { %v1198_v31 = vpop.f32.mrf.mxu0  ;;  %v1518_v32 = vpop.f32.mrf.mxu1 }
 0x165   : > { %v2965_v2 = vpack.c.bf16 %v1198_v31, %v1196_v29  ;;  %v3029_v33 = vpack.c.bf16 %v1518_v32, %v1516_v30 }
 0x166   : > { %v1202_v34 = vpop.f32.mrf.mxu0  ;;  %v1522_v35 = vpop.f32.mrf.mxu1 }
 0x167   : > { %2464 = vst [vmem:[%s3484_s29 + $0x118] sm:$0xff] %v2965_v2  ;;  %2528 = vst [vmem:[%s3484_s29 + $0x318] sm:$0xff] %v3029_v33 }
 0x168   : > { %v1204_v36 = vpop.f32.mrf.mxu0  ;;  %v1524_v38 = vpop.f32.mrf.mxu1 }
 0x169   : > { %v2966_v37 = vpack.c.bf16 %v1204_v36, %v1202_v34  ;;  %v3030_v39 = vpack.c.bf16 %v1524_v38, %v1522_v35 }
 0x16a   : > { %v1206_v40 = vpop.f32.mrf.mxu0  ;;  %v1526_v41 = vpop.f32.mrf.mxu1 }
 0x16b   : > { %2465 = vst [vmem:[%s3484_s29 + $0x120] sm:$0xff] %v2966_v37  ;;  %2529 = vst [vmem:[%s3484_s29 + $0x320] sm:$0xff] %v3030_v39 }
 0x16c   : > { %v1208_v42 = vpop.f32.mrf.mxu0  ;;  %v1528_v44 = vpop.f32.mrf.mxu1 }
 0x16d   : > { %v2967_v43 = vpack.c.bf16 %v1208_v42, %v1206_v40  ;;  %v3031_v45 = vpack.c.bf16 %v1528_v44, %v1526_v41 }
 0x16e   : > { %v1212_v46 = vpop.f32.mrf.mxu0  ;;  %v1532_v47 = vpop.f32.mrf.mxu1 }
 0x16f   : > { %2466 = vst [vmem:[%s3484_s29 + $0x128] sm:$0xff] %v2967_v43  ;;  %2530 = vst [vmem:[%s3484_s29 + $0x328] sm:$0xff] %v3031_v45 }
 0x170   : > { %v1214_v48 = vpop.f32.mrf.mxu0  ;;  %v1534_v50 = vpop.f32.mrf.mxu1 }
 0x171   : > { %v2968_v49 = vpack.c.bf16 %v1214_v48, %v1212_v46  ;;  %v3032_v51 = vpack.c.bf16 %v1534_v50, %v1532_v47 }
 0x172   : > { %v1216_v52 = vpop.f32.mrf.mxu0  ;;  %v1536_v53 = vpop.f32.mrf.mxu1 }
 0x173   : > { %2467 = vst [vmem:[%s3484_s29 + $0x130] sm:$0xff] %v2968_v49  ;;  %2531 = vst [vmem:[%s3484_s29 + $0x330] sm:$0xff] %v3032_v51 }
 0x174   : > { %v1218_v54 = vpop.f32.mrf.mxu0  ;;  %v1538_v56 = vpop.f32.mrf.mxu1 }
 0x175   : > { %v2969_v55 = vpack.c.bf16 %v1218_v54, %v1216_v52  ;;  %v3033_v57 = vpack.c.bf16 %v1538_v56, %v1536_v53 }
 0x176   : > { %v1222_v58 = vpop.f32.mrf.mxu0  ;;  %v1542_v59 = vpop.f32.mrf.mxu1 }
 0x177   : > { %2468 = vst [vmem:[%s3484_s29 + $0x138] sm:$0xff] %v2969_v55  ;;  %2532 = vst [vmem:[%s3484_s29 + $0x338] sm:$0xff] %v3033_v57 }
 0x178   : > { %v1224_v60 = vpop.f32.mrf.mxu0  ;;  %v1544_v62 = vpop.f32.mrf.mxu1 }
 0x179   : > { %v2970_v61 = vpack.c.bf16 %v1224_v60, %v1222_v58  ;;  %v3034_v63 = vpack.c.bf16 %v1544_v62, %v1542_v59 }
 0x17a   : > { %v1226_v0 = vpop.f32.mrf.mxu0  ;;  %v1546_v1 = vpop.f32.mrf.mxu1 }
 0x17b   : > { %2469 = vst [vmem:[%s3484_s29 + $0x140] sm:$0xff] %v2970_v61  ;;  %2533 = vst [vmem:[%s3484_s29 + $0x340] sm:$0xff] %v3034_v63 }
 0x17c   : > { %v1228_v3 = vpop.f32.mrf.mxu0  ;;  %v1548_v5 = vpop.f32.mrf.mxu1 }
 0x17d   : > { %v2971_v4 = vpack.c.bf16 %v1228_v3, %v1226_v0  ;;  %v3035_v6 = vpack.c.bf16 %v1548_v5, %v1546_v1 }
 0x17e   : > { %v1232_v7 = vpop.f32.mrf.mxu0  ;;  %v1552_v8 = vpop.f32.mrf.mxu1 }
 0x17f   : > { %2470 = vst [vmem:[%s3484_s29 + $0x148] sm:$0xff] %v2971_v4  ;;  %2534 = vst [vmem:[%s3484_s29 + $0x348] sm:$0xff] %v3035_v6 }
 0x180   : > { %v1234_v9 = vpop.f32.mrf.mxu0  ;;  %v1554_v11 = vpop.f32.mrf.mxu1 }
 0x181   : > { %v2972_v10 = vpack.c.bf16 %v1234_v9, %v1232_v7  ;;  %v3036_v12 = vpack.c.bf16 %v1554_v11, %v1552_v8 }
 0x182   : > { %v1236_v13 = vpop.f32.mrf.mxu0  ;;  %v1556_v14 = vpop.f32.mrf.mxu1 }
 0x183   : > { %2471 = vst [vmem:[%s3484_s29 + $0x150] sm:$0xff] %v2972_v10  ;;  %2535 = vst [vmem:[%s3484_s29 + $0x350] sm:$0xff] %v3036_v12 }
 0x184   : > { %v1238_v15 = vpop.f32.mrf.mxu0  ;;  %v1558_v17 = vpop.f32.mrf.mxu1 }
 0x185   : > { %v2973_v16 = vpack.c.bf16 %v1238_v15, %v1236_v13  ;;  %v3037_v18 = vpack.c.bf16 %v1558_v17, %v1556_v14 }
 0x186   : > { %v1242_v19 = vpop.f32.mrf.mxu0  ;;  %v1562_v20 = vpop.f32.mrf.mxu1 }
 0x187   : > { %2472 = vst [vmem:[%s3484_s29 + $0x158] sm:$0xff] %v2973_v16  ;;  %2536 = vst [vmem:[%s3484_s29 + $0x358] sm:$0xff] %v3037_v18 }
 0x188   : > { %v1244_v21 = vpop.f32.mrf.mxu0  ;;  %v1564_v23 = vpop.f32.mrf.mxu1 }
 0x189   : > { %v2974_v22 = vpack.c.bf16 %v1244_v21, %v1242_v19  ;;  %v3038_v24 = vpack.c.bf16 %v1564_v23, %v1562_v20 }
 0x18a   : > { %v1246_v25 = vpop.f32.mrf.mxu0  ;;  %v1566_v26 = vpop.f32.mrf.mxu1 }
 0x18b   : > { %2473 = vst [vmem:[%s3484_s29 + $0x160] sm:$0xff] %v2974_v22  ;;  %2537 = vst [vmem:[%s3484_s29 + $0x360] sm:$0xff] %v3038_v24 }
 0x18c   : > { %v1248_v27 = vpop.f32.mrf.mxu0  ;;  %v1568_v29 = vpop.f32.mrf.mxu1 }
 0x18d   : > { %v2975_v28 = vpack.c.bf16 %v1248_v27, %v1246_v25  ;;  %v3039_v30 = vpack.c.bf16 %v1568_v29, %v1566_v26 }
 0x18e   : > { %v1252_v31 = vpop.f32.mrf.mxu0  ;;  %v1572_v2 = vpop.f32.mrf.mxu1 }
 0x18f   : > { %2474 = vst [vmem:[%s3484_s29 + $0x168] sm:$0xff] %v2975_v28  ;;  %2538 = vst [vmem:[%s3484_s29 + $0x368] sm:$0xff] %v3039_v30 }
 0x190   : > { %v1254_v32 = vpop.f32.mrf.mxu0  ;;  %v1574_v34 = vpop.f32.mrf.mxu1 }
 0x191   : > { %v2976_v33 = vpack.c.bf16 %v1254_v32, %v1252_v31  ;;  %v3040_v35 = vpack.c.bf16 %v1574_v34, %v1572_v2 }
 0x192   : > { %v1256_v36 = vpop.f32.mrf.mxu0  ;;  %v1576_v37 = vpop.f32.mrf.mxu1 }
 0x193   : > { %2475 = vst [vmem:[%s3484_s29 + $0x170] sm:$0xff] %v2976_v33  ;;  %2539 = vst [vmem:[%s3484_s29 + $0x370] sm:$0xff] %v3040_v35 }
 0x194   : > { %v1258_v38 = vpop.f32.mrf.mxu0  ;;  %v1578_v40 = vpop.f32.mrf.mxu1 }
 0x195   : > { %v2977_v39 = vpack.c.bf16 %v1258_v38, %v1256_v36  ;;  %v3041_v41 = vpack.c.bf16 %v1578_v40, %v1576_v37 }
 0x196   : > { %v1262_v42 = vpop.f32.mrf.mxu0  ;;  %v1582_v43 = vpop.f32.mrf.mxu1 }
 0x197   : > { %2476 = vst [vmem:[%s3484_s29 + $0x178] sm:$0xff] %v2977_v39  ;;  %2540 = vst [vmem:[%s3484_s29 + $0x378] sm:$0xff] %v3041_v41 }
 0x198   : > { %v1264_v44 = vpop.f32.mrf.mxu0  ;;  %v1584_v46 = vpop.f32.mrf.mxu1 }
 0x199   : > { %v2978_v45 = vpack.c.bf16 %v1264_v44, %v1262_v42  ;;  %v3042_v47 = vpack.c.bf16 %v1584_v46, %v1582_v43 }
 0x19a   : > { %v1266_v48 = vpop.f32.mrf.mxu0  ;;  %v1586_v49 = vpop.f32.mrf.mxu1 }
 0x19b   : > { %2477 = vst [vmem:[%s3484_s29 + $0x180] sm:$0xff] %v2978_v45  ;;  %2541 = vst [vmem:[%s3484_s29 + $0x380] sm:$0xff] %v3042_v47 }
 0x19c   : > { %v1268_v50 = vpop.f32.mrf.mxu0  ;;  %v1588_v52 = vpop.f32.mrf.mxu1 }
 0x19d   : > { %v2979_v51 = vpack.c.bf16 %v1268_v50, %v1266_v48  ;;  %v3043_v53 = vpack.c.bf16 %v1588_v52, %v1586_v49 }
 0x19e   : > { %v1272_v54 = vpop.f32.mrf.mxu0  ;;  %v1592_v55 = vpop.f32.mrf.mxu1 }
 0x19f   : > { %2478 = vst [vmem:[%s3484_s29 + $0x188] sm:$0xff] %v2979_v51  ;;  %2542 = vst [vmem:[%s3484_s29 + $0x388] sm:$0xff] %v3043_v53 }
 0x1a0   : > { %v1274_v56 = vpop.f32.mrf.mxu0  ;;  %v1594_v58 = vpop.f32.mrf.mxu1 }
 0x1a1   : > { %v2980_v57 = vpack.c.bf16 %v1274_v56, %v1272_v54  ;;  %v3044_v59 = vpack.c.bf16 %v1594_v58, %v1592_v55 }
 0x1a2   : > { %v1276_v60 = vpop.f32.mrf.mxu0  ;;  %v1596_v61 = vpop.f32.mrf.mxu1 }
 0x1a3   : > { %2479 = vst [vmem:[%s3484_s29 + $0x190] sm:$0xff] %v2980_v57  ;;  %2543 = vst [vmem:[%s3484_s29 + $0x390] sm:$0xff] %v3044_v59 }
 0x1a4   : > { %v1278_v62 = vpop.f32.mrf.mxu0  ;;  %v1598_v0 = vpop.f32.mrf.mxu1 }
 0x1a5   : > { %v2981_v63 = vpack.c.bf16 %v1278_v62, %v1276_v60  ;;  %v3045_v1 = vpack.c.bf16 %v1598_v0, %v1596_v61 }
 0x1a6   : > { %v1282_v3 = vpop.f32.mrf.mxu0  ;;  %v1602_v4 = vpop.f32.mrf.mxu1 }
 0x1a7   : > { %2480 = vst [vmem:[%s3484_s29 + $0x198] sm:$0xff] %v2981_v63  ;;  %2544 = vst [vmem:[%s3484_s29 + $0x398] sm:$0xff] %v3045_v1 }
 0x1a8   : > { %v1284_v5 = vpop.f32.mrf.mxu0  ;;  %v1604_v7 = vpop.f32.mrf.mxu1 }
 0x1a9   : > { %v2982_v6 = vpack.c.bf16 %v1284_v5, %v1282_v3  ;;  %v3046_v8 = vpack.c.bf16 %v1604_v7, %v1602_v4 }
 0x1aa   : > { %v1286_v9 = vpop.f32.mrf.mxu0  ;;  %v1606_v10 = vpop.f32.mrf.mxu1 }
 0x1ab   : > { %2481 = vst [vmem:[%s3484_s29 + $0x1a0] sm:$0xff] %v2982_v6  ;;  %2545 = vst [vmem:[%s3484_s29 + $0x3a0] sm:$0xff] %v3046_v8 }
 0x1ac   : > { %v1288_v11 = vpop.f32.mrf.mxu0  ;;  %v1608_v13 = vpop.f32.mrf.mxu1 }
 0x1ad   : > { %v2983_v12 = vpack.c.bf16 %v1288_v11, %v1286_v9  ;;  %v3047_v14 = vpack.c.bf16 %v1608_v13, %v1606_v10 }
 0x1ae   : > { %v1292_v15 = vpop.f32.mrf.mxu0  ;;  %v1612_v16 = vpop.f32.mrf.mxu1 }
 0x1af   : > { %2482 = vst [vmem:[%s3484_s29 + $0x1a8] sm:$0xff] %v2983_v12  ;;  %2546 = vst [vmem:[%s3484_s29 + $0x3a8] sm:$0xff] %v3047_v14 }
 0x1b0   : > { %v1294_v17 = vpop.f32.mrf.mxu0  ;;  %v1614_v19 = vpop.f32.mrf.mxu1 }
 0x1b1   : > { %v2984_v18 = vpack.c.bf16 %v1294_v17, %v1292_v15  ;;  %v3048_v20 = vpack.c.bf16 %v1614_v19, %v1612_v16 }
 0x1b2   : > { %v1296_v21 = vpop.f32.mrf.mxu0  ;;  %v1616_v22 = vpop.f32.mrf.mxu1 }
 0x1b3   : > { %2483 = vst [vmem:[%s3484_s29 + $0x1b0] sm:$0xff] %v2984_v18  ;;  %2547 = vst [vmem:[%s3484_s29 + $0x3b0] sm:$0xff] %v3048_v20 }
 0x1b4   : > { %v1298_v23 = vpop.f32.mrf.mxu0  ;;  %v1618_v25 = vpop.f32.mrf.mxu1 }
 0x1b5   : > { %v2985_v24 = vpack.c.bf16 %v1298_v23, %v1296_v21  ;;  %v3049_v26 = vpack.c.bf16 %v1618_v25, %v1616_v22 }
 0x1b6   : > { %v1302_v27 = vpop.f32.mrf.mxu0  ;;  %v1622_v28 = vpop.f32.mrf.mxu1 }
 0x1b7   : > { %2484 = vst [vmem:[%s3484_s29 + $0x1b8] sm:$0xff] %v2985_v24  ;;  %2548 = vst [vmem:[%s3484_s29 + $0x3b8] sm:$0xff] %v3049_v26 }
 0x1b8   : > { %v1304_v29 = vpop.f32.mrf.mxu0  ;;  %v1624_v31 = vpop.f32.mrf.mxu1 }
 0x1b9   : > { %v2986_v30 = vpack.c.bf16 %v1304_v29, %v1302_v27  ;;  %v3050_v2 = vpack.c.bf16 %v1624_v31, %v1622_v28 }
 0x1ba   : > { %v1306_v32 = vpop.f32.mrf.mxu0  ;;  %v1626_v33 = vpop.f32.mrf.mxu1 }
 0x1bb   : > { %2485 = vst [vmem:[%s3484_s29 + $0x1c0] sm:$0xff] %v2986_v30  ;;  %2549 = vst [vmem:[%s3484_s29 + $0x3c0] sm:$0xff] %v3050_v2 }
 0x1bc   : > { %v1308_v34 = vpop.f32.mrf.mxu0  ;;  %v1628_v36 = vpop.f32.mrf.mxu1 }
 0x1bd   : > { %v2987_v35 = vpack.c.bf16 %v1308_v34, %v1306_v32  ;;  %v3051_v37 = vpack.c.bf16 %v1628_v36, %v1626_v33 }
 0x1be   : > { %v1312_v38 = vpop.f32.mrf.mxu0  ;;  %v1632_v39 = vpop.f32.mrf.mxu1 }
 0x1bf   : > { %2486 = vst [vmem:[%s3484_s29 + $0x1c8] sm:$0xff] %v2987_v35  ;;  %2550 = vst [vmem:[%s3484_s29 + $0x3c8] sm:$0xff] %v3051_v37 }
 0x1c0   : > { %v1314_v40 = vpop.f32.mrf.mxu0  ;;  %v1634_v42 = vpop.f32.mrf.mxu1 }
 0x1c1   : > { %v2988_v41 = vpack.c.bf16 %v1314_v40, %v1312_v38  ;;  %v3052_v43 = vpack.c.bf16 %v1634_v42, %v1632_v39 }
 0x1c2   : > { %v1316_v44 = vpop.f32.mrf.mxu0  ;;  %v1636_v45 = vpop.f32.mrf.mxu1 }
 0x1c3   : > { %2487 = vst [vmem:[%s3484_s29 + $0x1d0] sm:$0xff] %v2988_v41  ;;  %2551 = vst [vmem:[%s3484_s29 + $0x3d0] sm:$0xff] %v3052_v43 }
 0x1c4   : > { %v1318_v46 = vpop.f32.mrf.mxu0  ;;  %v1638_v48 = vpop.f32.mrf.mxu1 }
 0x1c5   : > { %v2989_v47 = vpack.c.bf16 %v1318_v46, %v1316_v44  ;;  %v3053_v49 = vpack.c.bf16 %v1638_v48, %v1636_v45 }
 0x1c6   : > { %v1322_v50 = vpop.f32.mrf.mxu0  ;;  %v1642_v51 = vpop.f32.mrf.mxu1 }
 0x1c7   : > { %2488 = vst [vmem:[%s3484_s29 + $0x1d8] sm:$0xff] %v2989_v47  ;;  %2552 = vst [vmem:[%s3484_s29 + $0x3d8] sm:$0xff] %v3053_v49 }
 0x1c8   : > { %v1324_v52 = vpop.f32.mrf.mxu0  ;;  %v1644_v54 = vpop.f32.mrf.mxu1 }
 0x1c9   : > { %v2990_v53 = vpack.c.bf16 %v1324_v52, %v1322_v50  ;;  %v3054_v55 = vpack.c.bf16 %v1644_v54, %v1642_v51 }
 0x1ca   : > { %v1326_v56 = vpop.f32.mrf.mxu0  ;;  %v1646_v57 = vpop.f32.mrf.mxu1 }
 0x1cb   : > { %2489 = vst [vmem:[%s3484_s29 + $0x1e0] sm:$0xff] %v2990_v53  ;;  %2553 = vst [vmem:[%s3484_s29 + $0x3e0] sm:$0xff] %v3054_v55 }
 0x1cc   : > { %v1328_v58 = vpop.f32.mrf.mxu0  ;;  %v1648_v60 = vpop.f32.mrf.mxu1 }
 0x1cd   : > { %v2991_v59 = vpack.c.bf16 %v1328_v58, %v1326_v56  ;;  %v3055_v61 = vpack.c.bf16 %v1648_v60, %v1646_v57 }
 0x1ce   : > { %v1332_v62 = vpop.f32.mrf.mxu0  ;;  %v1652_v63 = vpop.f32.mrf.mxu1 }
 0x1cf   : > { %2490 = vst [vmem:[%s3484_s29 + $0x1e8] sm:$0xff] %v2991_v59  ;;  %2554 = vst [vmem:[%s3484_s29 + $0x3e8] sm:$0xff] %v3055_v61 }
 0x1d0   : > { %v1334_v0 = vpop.f32.mrf.mxu0  ;;  %v1654_v3 = vpop.f32.mrf.mxu1 }
 0x1d1   : > { %v2992_v1 = vpack.c.bf16 %v1334_v0, %v1332_v62  ;;  %v3056_v4 = vpack.c.bf16 %v1654_v3, %v1652_v63 }
 0x1d2   : > { %v1336_v5 = vpop.f32.mrf.mxu0  ;;  %v1656_v6 = vpop.f32.mrf.mxu1 }
 0x1d3   : > { %2491 = vst [vmem:[%s3484_s29 + $0x1f0] sm:$0xff] %v2992_v1  ;;  %2555 = vst [vmem:[%s3484_s29 + $0x3f0] sm:$0xff] %v3056_v4 }
 0x1d4   : > { %v1338_v7 = vpop.f32.mrf.mxu0  ;;  %v1658_v9 = vpop.f32.mrf.mxu1 }
 0x1d5   : > { %v2993_v8 = vpack.c.bf16 %v1338_v7, %v1336_v5  ;;  %v3057_v10 = vpack.c.bf16 %v1658_v9, %v1656_v6 }
 0x1d7   : > { %2492 = vst [vmem:[%s3484_s29 + $0x1f8] sm:$0xff] %v2993_v8  ;;  %2556 = vst [vmem:[%s3484_s29 + $0x3f8] sm:$0xff] %v3057_v10 }
 0x1d8 PF: > { %s12_s11 = sadd.s32 1, %s3115_s11   ;;  %s3701_s9 = smov %s3111_s10 }
 0x1d9   : > { %p9_p5 = scmp.ge.s32.totalorder %s12_s11, 4   ;;  %s3702_s10 = smov %s3704_s12 }
 0x1db   :  { %11 = sbr.rel (!%p9_p5) target bundleno = 2 (0x2), region = 61 }

</bundles_post_ra>
